<compile_context>
chip_gen: v7x
topology: tpu7x:2x2x1
jax: 0.10.0
libtpu: 0.0.40
codegen_flags: <defaults>
</compile_context>

<pallas_src>
import functools

import numpy as np
import jax
import jax.numpy as jnp
from jax.experimental import pallas as pl
from jax.experimental.pallas import tpu as pltpu


# ------------------------------ helpers ------------------------------


def _round_up(x, m):
    return (x + m - 1) // m * m


def _apply_act(y, act):
    if act == "leaky_relu":
        return jnp.where(y >= 0.0, y, 0.2 * y)
    if act == "sigmoid":
        return jax.nn.sigmoid(y)
    return y


def _k_tile(k):
    """K-axis chunk: stream big weight matrices through VMEM in 1024-wide
    slabs (multiple of 128 lanes); small K stays one full-extent block."""
    if k >= 2048 and k % 1024 == 0:
        return 1024
    return k


def _row_tile(m):
    """Row tile for the no-BN matmul: >=2 tiles when M is large (restores
    DMA/compute pipelining and lets both v7x TensorCores run), cap 512 rows."""
    m8 = _round_up(max(m, 1), 8)
    if m8 <= 256:
        return m8, m8
    tm = min(512, _round_up((m8 + 3) // 4, 8))
    m_pad = _round_up(m8, tm)
    return tm, m_pad


def _vmem_limit(*buffer_bytes):
    """vmem_limit_bytes from real block footprints + headroom, capped at the
    32 MiB scoped default (valid on v5e/v6e/v7x)."""
    total = sum(buffer_bytes) + (8 << 20)
    return int(min(max(total, 16 << 20), 32 << 20))


# ------------------------------ Pallas kernels ------------------------------


def _mm_act_kernel(a_ref, b_ref, y_ref, acc_ref, *, act):
    """y = act(A @ B): K-chunked MXU matmul, f32 VMEM accumulator, activation
    fused into the epilogue (no-BN layers 1 and 5)."""
    k = pl.program_id(1)

    @pl.when(k == 0)
    def _():
        acc_ref[...] = jnp.zeros_like(acc_ref)

    acc_ref[...] += jnp.dot(a_ref[...], b_ref[...],
                            preferred_element_type=jnp.float32)

    @pl.when(k == pl.num_programs(1) - 1)
    def _():
        y_ref[...] = _apply_act(acc_ref[...], act).astype(y_ref.dtype)


def _mm_bn_act_kernel(a_ref, b_ref, gamma_ref, beta_ref, o_ref, acc_ref,
                      *, act, m_true, eps):
    """out = act(BN(A @ B)) fully fused (BN layers 2-4).

    The whole row dimension lives in one block (M is small for the BN layers),
    so the per-channel batch statistics are exact; the K grid axis streams the
    weight matrix and accumulates in f32 VMEM.  Zero-padded rows contribute 0
    to the sums and the divisor is the true M, so stats are unbiased."""
    k = pl.program_id(0)

    @pl.when(k == 0)
    def _():
        acc_ref[...] = jnp.zeros_like(acc_ref)

    acc_ref[...] += jnp.dot(a_ref[...], b_ref[...],
                            preferred_element_type=jnp.float32)

    @pl.when(k == pl.num_programs(0) - 1)
    def _():
        y = acc_ref[...]                                   # (M_pad, OC) f32
        mean = jnp.sum(y, axis=0, keepdims=True) / m_true
        var = jnp.maximum(
            jnp.sum(y * y, axis=0, keepdims=True) / m_true - mean * mean, 0.0)
        scale = gamma_ref[...] * jax.lax.rsqrt(var + eps)  # EUP rsqrt
        shift = beta_ref[...] - mean * scale
        o_ref[...] = _apply_act(y * scale + shift, act).astype(o_ref.dtype)


# ------------------------------ Pallas wrappers ------------------------------


def _pallas_matmul_act(a, b, act, out_dtype):
    """act(A @ B); A:(M,K) bf16, B:(K,OC_pad) bf16; M tiled (parallel), K
    chunked (arbitrary, f32 accumulator)."""
    m, k = a.shape
    _, oc = b.shape
    tm, m_pad = _row_tile(m)
    if m_pad != m:
        a = jnp.pad(a, ((0, m_pad - m), (0, 0)))
    tk = _k_tile(k)
    nm, nk = m_pad // tm, k // tk
    ob = jnp.dtype(out_dtype).itemsize
    vmem = _vmem_limit(2 * tm * tk * 2, 2 * tk * oc * 2,
                       2 * tm * oc * ob, tm * oc * 4)
    return pl.pallas_call(
        functools.partial(_mm_act_kernel, act=act),
        out_shape=jax.ShapeDtypeStruct((m_pad, oc), out_dtype),
        grid=(nm, nk),
        in_specs=[pl.BlockSpec((tm, tk), lambda i, j: (i, j)),
                  pl.BlockSpec((tk, oc), lambda i, j: (j, 0))],
        out_specs=pl.BlockSpec((tm, oc), lambda i, j: (i, 0)),
        scratch_shapes=[pltpu.VMEM((tm, oc), jnp.float32)],
        compiler_params=pltpu.CompilerParams(
            dimension_semantics=("parallel", "arbitrary"),
            vmem_limit_bytes=vmem),
    )(a, b)


def _pallas_matmul_bn_act(a, b, gamma, beta, act, out_dtype, m_true, eps):
    """act(BN(A @ B)) fully fused; all of M in one block, K streamed.

    TODO(synk): for much larger M (bigger batch/resolution) the accumulator
    no longer fits one block; switch to a two-pass grid (pass 0: tiles + VMEM
    partial stats, pass 1: affine) instead of this single-block fusion."""
    m, k = a.shape
    _, oc = b.shape
    m_pad = _round_up(max(m, 8), 8)
    if m_pad != m:
        a = jnp.pad(a, ((0, m_pad - m), (0, 0)))
    tk = _k_tile(k)
    nk = k // tk
    ob = jnp.dtype(out_dtype).itemsize
    vmem = _vmem_limit(2 * m_pad * tk * 2, 2 * tk * oc * 2,
                       2 * m_pad * oc * ob, m_pad * oc * 4, 4 * oc * 4)
    return pl.pallas_call(
        functools.partial(_mm_bn_act_kernel, act=act,
                          m_true=float(m_true), eps=eps),
        out_shape=jax.ShapeDtypeStruct((m_pad, oc), out_dtype),
        grid=(nk,),
        in_specs=[pl.BlockSpec((m_pad, tk), lambda j: (0, j)),
                  pl.BlockSpec((tk, oc), lambda j: (j, 0)),
                  pl.BlockSpec((1, oc), lambda j: (0, 0)),
                  pl.BlockSpec((1, oc), lambda j: (0, 0))],
        out_specs=pl.BlockSpec((m_pad, oc), lambda j: (0, 0)),
        scratch_shapes=[pltpu.VMEM((m_pad, oc), jnp.float32)],
        compiler_params=pltpu.CompilerParams(
            dimension_semantics=("arbitrary",),
            vmem_limit_bytes=vmem),
    )(a, b, gamma, beta)


# ------------------------------ conv building blocks ------------------------------


def _im2col(x_nhwc, kh, kw, stride, pad):
    """Extract conv patches. Returns ((N*OH*OW, KH*KW*C), N, OH, OW)."""
    # TODO(synk): fold patch extraction into the matmul pipeline (kh*kw grid
    # axis walking strided windows of the NHWC input) to avoid the kh*kw x
    # activation HBM blow-up once batch/resolution grow beyond this toy size.
    if pad:
        x_nhwc = jnp.pad(x_nhwc, ((0, 0), (pad, pad), (pad, pad), (0, 0)))
    n, h, w, c = x_nhwc.shape
    oh = (h - kh) // stride + 1
    ow = (w - kw) // stride + 1
    cols = []
    for ki in range(kh):
        for kj in range(kw):
            cols.append(
                x_nhwc[:, ki:ki + stride * oh:stride, kj:kj + stride * ow:stride, :])
    p = jnp.stack(cols, axis=3)  # (N, OH, OW, KH*KW, C)
    return p.reshape(n * oh * ow, kh * kw * c), n, oh, ow


def conv_block(x_nhwc, w_mat, *, kh, kw, oc, stride, pad, use_bn, act,
               gamma=None, beta=None, out_dtype=jnp.bfloat16, eps=1e-5):
    a, n, oh, ow = _im2col(x_nhwc, kh, kw, stride, pad)
    k = a.shape[1]
    kp = w_mat.shape[0]
    a = a.astype(jnp.bfloat16)
    if kp != k:
        a = jnp.pad(a, ((0, 0), (0, kp - k)))      # zero K cols == zero B rows
    m = n * oh * ow

    if use_bn:
        # training-mode BatchNorm2d: biased variance over (N, H, W) per channel,
        # fused with the matmul and LeakyReLU in a single pallas_call.
        out_pad = _pallas_matmul_bn_act(a, w_mat, gamma[None, :], beta[None, :],
                                        act, out_dtype, m, eps)
        # TODO(synk): nn.BatchNorm2d also updates running_mean/var buffers as a
        # side effect; that stateful update does not affect the forward output.
    else:
        out_pad = _pallas_matmul_act(a, w_mat, act, out_dtype)

    return out_pad[:m, :oc].reshape(n, oh, ow, oc)


# ------------------------------ EncoderCNN forward ------------------------------


_LAYER_SPECS = (
    # (weight, gamma, beta, stride, pad, use_bn, act)
    ("w1", None, None, 1, 0, False, "leaky_relu"),
    ("w2", "g2", "b2", 2, 1, True, "leaky_relu"),
    ("w3", "g3", "b3", 2, 1, True, "leaky_relu"),
    ("w4", "g4", "b4", 2, 1, True, "leaky_relu"),
    ("w5", None, None, 1, 0, False, "sigmoid"),
)


def _prep_weight(w_oihw):
    """OIHW f32 -> (K_pad8, OC_pad128) bf16 matmul layout (done once at init).

    K is NOT padded to 128 (full-extent blocks are legal; avoids the 48->128
    inflation on layer 1); OC is padded to a lane-dense multiple of 128."""
    oc, ic, kh, kw = w_oihw.shape
    k = kh * kw * ic
    b = jnp.transpose(w_oihw, (2, 3, 1, 0)).reshape(k, oc)   # (ki,kj,ic) x oc
    kp = _round_up(k, 8)
    ocp = _round_up(max(oc, 128), 128)
    b = jnp.pad(b, ((0, kp - k), (0, ocp - oc)))
    return b.astype(jnp.bfloat16)


def prepare_encoder(params):
    """One-time weight relayout + static layer config (outside the step jit)."""
    cfg = []
    kweights = {}
    for idx, (wn, gn, bn, stride, pad, use_bn, act) in enumerate(_LAYER_SPECS):
        w = params[wn]
        oc, ic, kh, kw = w.shape
        wm = _prep_weight(w)
        kweights[f"w{idx}"] = wm
        if use_bn:
            ocp = wm.shape[1]
            kweights[f"g{idx}"] = jnp.pad(
                params[gn].astype(jnp.float32), (0, ocp - oc))
            kweights[f"b{idx}"] = jnp.pad(
                params[bn].astype(jnp.float32), (0, ocp - oc))
        cfg.append(dict(kh=kh, kw=kw, oc=oc, stride=stride, pad=pad,
                        use_bn=use_bn, act=act))
    return tuple(cfg), kweights


def encoder_cnn_forward(x_nchw, kweights, *, cfg):
    x = jnp.transpose(x_nchw, (0, 2, 3, 1)).astype(jnp.bfloat16)  # NCHW -> NHWC
    n_layers = len(cfg)
    for idx, layer in enumerate(cfg):
        out_dtype = jnp.float32 if idx == n_layers - 1 else jnp.bfloat16
        x = conv_block(
            x, kweights[f"w{idx}"],
            kh=layer["kh"], kw=layer["kw"], oc=layer["oc"],
            stride=layer["stride"], pad=layer["pad"],
            use_bn=layer["use_bn"], act=layer["act"],
            gamma=kweights.get(f"g{idx}"), beta=kweights.get(f"b{idx}"),
            out_dtype=out_dtype)
    return jnp.transpose(x, (0, 3, 1, 2))   # NHWC -> NCHW


def init_params(key, in_channels, out_channels):
    ks = jax.random.split(key, 5)

    def conv_w(k, oc, ic, kh=4, kw=4):
        bound = 1.0 / np.sqrt(ic * kh * kw)  # PyTorch default kaiming-uniform bound
        return jax.random.uniform(k, (oc, ic, kh, kw), jnp.float32, -bound, bound)

    return {
        "w1": conv_w(ks[0], 64, in_channels),
        "w2": conv_w(ks[1], 128, 64),
        "w3": conv_w(ks[2], 256, 128),
        "w4": conv_w(ks[3], 512, 256),
        "w5": conv_w(ks[4], out_channels, 512),
        "g2": jnp.ones((128,), jnp.float32), "b2": jnp.zeros((128,), jnp.float32),
        "g3": jnp.ones((256,), jnp.float32), "b3": jnp.zeros((256,), jnp.float32),
        "g4": jnp.ones((512,), jnp.float32), "b4": jnp.zeros((512,), jnp.float32),
    }


# ------------------------------ pure-JAX reference ------------------------------


def reference_forward(x_nchw, params):
    def conv(x, w, stride, pad):
        return jax.lax.conv_general_dilated(
            x, w, window_strides=(stride, stride),
            padding=[(pad, pad), (pad, pad)],
            dimension_numbers=("NCHW", "OIHW", "NCHW"))

    def bn(x, g, b, eps=1e-5):
        mean = jnp.mean(x, axis=(0, 2, 3), keepdims=True)
        var = jnp.mean((x - mean) ** 2, axis=(0, 2, 3), keepdims=True)
        return ((x - mean) / jnp.sqrt(var + eps)
                * g[None, :, None, None] + b[None, :, None, None])

    def lrelu(x):
        return jnp.where(x >= 0, x, 0.2 * x)

    x = lrelu(conv(x_nchw, params["w1"], 1, 0))
    x = lrelu(bn(conv(x, params["w2"], 2, 1), params["g2"], params["b2"]))
    x = lrelu(bn(conv(x, params["w3"], 2, 1), params["g3"], params["b3"]))
    x = lrelu(bn(conv(x, params["w4"], 2, 1), params["g4"], params["b4"]))
    x = jax.nn.sigmoid(conv(x, params["w5"], 1, 0))
    return x


# ------------------------------ main ------------------------------


if __name__ == "__main__":
    key = jax.random.PRNGKey(0)
    kx, kp = jax.random.split(key)

    in_channels, out_channels = 3, 16
    # spatial: 35 -> 32 -> 16 -> 8 -> 4 -> 1
    x = jax.random.normal(kx, (2, in_channels, 35, 35), jnp.float32)
    params = init_params(kp, in_channels, out_channels)

    cfg, kweights = prepare_encoder(params)           # one-time weight relayout
    fwd = jax.jit(functools.partial(encoder_cnn_forward, cfg=cfg))
    out = jax.block_until_ready(fwd(x, kweights))
    assert out.shape == (2, out_channels, 1, 1), out.shape
    assert bool(jnp.all(jnp.isfinite(out)))

    ref = jax.block_until_ready(reference_forward(x, params))
    np.testing.assert_allclose(np.asarray(out), np.asarray(ref),
                               atol=1e-2, rtol=1e-2)

    print("KERNEL_OK")
</pallas_src>

<mosaic_0001>
module attributes {stable_mosaic.version = 11 : i64} {
  func.func @_mm_act_kernel(%arg0: i32, %arg1: i32, %arg2: memref<512x48xbf16, #tpu.memory_space<vmem>>, %arg3: memref<48x128xbf16, #tpu.memory_space<vmem>>, %arg4: memref<512x128xbf16, #tpu.memory_space<vmem>>, %arg5: memref<512x128xf32, #tpu.memory_space<vmem>>) attributes {dimension_semantics = [#tpu.dimension_semantics<parallel>, #tpu.dimension_semantics<arbitrary>], iteration_bounds = array<i64: 4, 1>, scalar_prefetch = 0 : i64, scratch_operands = 1 : i64, tpu.core_type = #tpu.core_type<tc>, window_params = [{transform_indices = @transform_0, window_bounds = array<i64: 512, 48>}, {transform_indices = @transform_1, window_bounds = array<i64: 48, 128>}, {transform_indices = @transform_2, window_bounds = array<i64: 512, 128>}]} {
    %c0_i32 = arith.constant 0 : i32
    %0 = arith.cmpi eq, %arg1, %c0_i32 : i32
    %1 = arith.extui %0 : i1 to i32
    %c0_i32_0 = arith.constant 0 : i32
    %2 = arith.cmpi ne, %1, %c0_i32_0 : i32
    scf.if %2 {
      %cst_10 = arith.constant 0.000000e+00 : f32
      %12 = vector.broadcast %cst_10 : f32 to vector<512x128xf32>
      %c0_11 = arith.constant 0 : index
      %c0_12 = arith.constant 0 : index
      %13 = vector.load %arg5[%c0_11, %c0_12] : memref<512x128xf32, #tpu.memory_space<vmem>>, vector<512x128xf32>
      tpu.vector_store %arg5[%c0_11, %c0_12], %12 {strides = array<i32>} : memref<512x128xf32, #tpu.memory_space<vmem>>, vector<512x128xf32>,
    } else {
    }
    %c0 = arith.constant 0 : index
    %c0_1 = arith.constant 0 : index
    %3 = vector.load %arg5[%c0, %c0_1] : memref<512x128xf32, #tpu.memory_space<vmem>>, vector<512x128xf32>
    %c0_2 = arith.constant 0 : index
    %c0_3 = arith.constant 0 : index
    %4 = vector.load %arg2[%c0_2, %c0_3] : memref<512x48xbf16, #tpu.memory_space<vmem>>, vector<512x48xbf16>
    %c0_4 = arith.constant 0 : index
    %c0_5 = arith.constant 0 : index
    %5 = vector.load %arg3[%c0_4, %c0_5] : memref<48x128xbf16, #tpu.memory_space<vmem>>, vector<48x128xbf16>
    %cst = arith.constant dense<0.000000e+00> : vector<512x128xf32>
    %6 = tpu.matmul %4, %5, %cst {dimension_numbers = #tpu.dot_dimension_numbers<[1], [0], [0], [1], [0, 0, 1, 1], [], []>} : vector<512x48xbf16>, vector<48x128xbf16>, vector<512x128xf32> -> vector<512x128xf32>
    %7 = arith.addf %3, %6 : vector<512x128xf32>
    %c0_6 = arith.constant 0 : index
    %c0_7 = arith.constant 0 : index
    %8 = vector.load %arg5[%c0_6, %c0_7] : memref<512x128xf32, #tpu.memory_space<vmem>>, vector<512x128xf32>
    tpu.vector_store %arg5[%c0_6, %c0_7], %7 {strides = array<i32>} : memref<512x128xf32, #tpu.memory_space<vmem>>, vector<512x128xf32>,
    %c0_i32_8 = arith.constant 0 : i32
    %9 = arith.cmpi eq, %arg1, %c0_i32_8 : i32
    %10 = arith.extui %9 : i1 to i32
    %c0_i32_9 = arith.constant 0 : i32
    %11 = arith.cmpi ne, %10, %c0_i32_9 : i32
    scf.if %11 {
      %c0_10 = arith.constant 0 : index
      %c0_11 = arith.constant 0 : index
      %12 = vector.load %arg5[%c0_10, %c0_11] : memref<512x128xf32, #tpu.memory_space<vmem>>, vector<512x128xf32>
      %cst_12 = arith.constant 0.000000e+00 : f32
      %13 = vector.broadcast %cst_12 : f32 to vector<512x128xf32>
      %14 = arith.cmpf oge, %12, %13 : vector<512x128xf32>
      %cst_13 = arith.constant 2.000000e-01 : f32
      %15 = vector.broadcast %cst_13 : f32 to vector<512x128xf32>
      %16 = arith.mulf %15, %12 : vector<512x128xf32>
      %17 = arith.select %14, %12, %16 : vector<512x128xi1>, vector<512x128xf32>
      %18 = arith.truncf %17 : vector<512x128xf32> to vector<512x128xbf16>
      %c0_14 = arith.constant 0 : index
      %c0_15 = arith.constant 0 : index
      %19 = vector.load %arg4[%c0_14, %c0_15] : memref<512x128xbf16, #tpu.memory_space<vmem>>, vector<512x128xbf16>
      tpu.vector_store %arg4[%c0_14, %c0_15], %18 {strides = array<i32>} : memref<512x128xbf16, #tpu.memory_space<vmem>>, vector<512x128xbf16>,
    } else {
    }
    return
  }
  func.func @transform_0(%arg0: i32, %arg1: i32) -> (i32, i32) {
    %c0_i32 = arith.constant 0 : i32
    return %arg0, %arg1 : i32, i32
  }
  func.func @transform_1(%arg0: i32, %arg1: i32) -> (i32, i32) {
    %c0_i32 = arith.constant 0 : i32
    %c0_i32_0 = arith.constant 0 : i32
    return %arg1, %c0_i32 : i32, i32
  }
  func.func @transform_2(%arg0: i32, %arg1: i32) -> (i32, i32) {
    %c0_i32 = arith.constant 0 : i32
    %c0_i32_0 = arith.constant 0 : i32
    return %arg0, %c0_i32 : i32, i32
  }
}

module attributes {stable_mosaic.version = 11 : i64} {
  func.func @_mm_bn_act_kernel(%arg0: i32, %arg1: memref<512x1024xbf16, #tpu.memory_space<vmem>>, %arg2: memref<1024x128xbf16, #tpu.memory_space<vmem>>, %arg3: memref<1x128xf32, #tpu.memory_space<vmem>>, %arg4: memref<1x128xf32, #tpu.memory_space<vmem>>, %arg5: memref<512x128xbf16, #tpu.memory_space<vmem>>, %arg6: memref<512x128xf32, #tpu.memory_space<vmem>>) attributes {dimension_semantics = [#tpu.dimension_semantics<arbitrary>], iteration_bounds = array<i64: 1>, scalar_prefetch = 0 : i64, scratch_operands = 1 : i64, tpu.core_type = #tpu.core_type<tc>, window_params = [{transform_indices = @transform_0, window_bounds = array<i64: 512, 1024>}, {transform_indices = @transform_1, window_bounds = array<i64: 1024, 128>}, {pipeline_mode = #tpu.pipeline_mode<synchronous>, transform_indices = @transform_2, window_bounds = array<i64: 1, 128>}, {pipeline_mode = #tpu.pipeline_mode<synchronous>, transform_indices = @transform_3, window_bounds = array<i64: 1, 128>}, {pipeline_mode = #tpu.pipeline_mode<synchronous>, transform_indices = @transform_4, window_bounds = array<i64: 512, 128>}]} {
    %c0_i32 = arith.constant 0 : i32
    %0 = arith.cmpi eq, %arg0, %c0_i32 : i32
    %1 = arith.extui %0 : i1 to i32
    %c0_i32_0 = arith.constant 0 : i32
    %2 = arith.cmpi ne, %1, %c0_i32_0 : i32
    scf.if %2 {
      %cst_10 = arith.constant 0.000000e+00 : f32
      %12 = vector.broadcast %cst_10 : f32 to vector<512x128xf32>
      %c0_11 = arith.constant 0 : index
      %c0_12 = arith.constant 0 : index
      %13 = vector.load %arg6[%c0_11, %c0_12] : memref<512x128xf32, #tpu.memory_space<vmem>>, vector<512x128xf32>
      tpu.vector_store %arg6[%c0_11, %c0_12], %12 {strides = array<i32>} : memref<512x128xf32, #tpu.memory_space<vmem>>, vector<512x128xf32>,
    } else {
    }
    %c0 = arith.constant 0 : index
    %c0_1 = arith.constant 0 : index
    %3 = vector.load %arg6[%c0, %c0_1] : memref<512x128xf32, #tpu.memory_space<vmem>>, vector<512x128xf32>
    %c0_2 = arith.constant 0 : index
    %c0_3 = arith.constant 0 : index
    %4 = vector.load %arg1[%c0_2, %c0_3] : memref<512x1024xbf16, #tpu.memory_space<vmem>>, vector<512x1024xbf16>
    %c0_4 = arith.constant 0 : index
    %c0_5 = arith.constant 0 : index
    %5 = vector.load %arg2[%c0_4, %c0_5] : memref<1024x128xbf16, #tpu.memory_space<vmem>>, vector<1024x128xbf16>
    %cst = arith.constant dense<0.000000e+00> : vector<512x128xf32>
    %6 = tpu.matmul %4, %5, %cst {dimension_numbers = #tpu.dot_dimension_numbers<[1], [0], [0], [1], [0, 0, 1, 1], [], []>} : vector<512x1024xbf16>, vector<1024x128xbf16>, vector<512x128xf32> -> vector<512x128xf32>
    %7 = arith.addf %3, %6 : vector<512x128xf32>
    %c0_6 = arith.constant 0 : index
    %c0_7 = arith.constant 0 : index
    %8 = vector.load %arg6[%c0_6, %c0_7] : memref<512x128xf32, #tpu.memory_space<vmem>>, vector<512x128xf32>
    tpu.vector_store %arg6[%c0_6, %c0_7], %7 {strides = array<i32>} : memref<512x128xf32, #tpu.memory_space<vmem>>, vector<512x128xf32>,
    %c0_i32_8 = arith.constant 0 : i32
    %9 = arith.cmpi eq, %arg0, %c0_i32_8 : i32
    %10 = arith.extui %9 : i1 to i32
    %c0_i32_9 = arith.constant 0 : i32
    %11 = arith.cmpi ne, %10, %c0_i32_9 : i32
    scf.if %11 {
      %c0_10 = arith.constant 0 : index
      %c0_11 = arith.constant 0 : index
      %12 = vector.load %arg6[%c0_10, %c0_11] : memref<512x128xf32, #tpu.memory_space<vmem>>, vector<512x128xf32>
      %cst_12 = arith.constant dense<0.000000e+00> : vector<128xf32>
      %13 = vector.multi_reduction <add>, %12, %cst_12 [0] : vector<512x128xf32> to vector<128xf32>
      %14 = vector.shape_cast %13 : vector<128xf32> to vector<1x128xf32>
      %cst_13 = arith.constant 5.120000e+02 : f32
      %15 = vector.broadcast %cst_13 : f32 to vector<1x128xf32>
      %16 = arith.divf %14, %15 : vector<1x128xf32>
      %17 = arith.mulf %12, %12 : vector<512x128xf32>
      %cst_14 = arith.constant dense<0.000000e+00> : vector<128xf32>
      %18 = vector.multi_reduction <add>, %17, %cst_14 [0] : vector<512x128xf32> to vector<128xf32>
      %19 = vector.shape_cast %18 : vector<128xf32> to vector<1x128xf32>
      %cst_15 = arith.constant 5.120000e+02 : f32
      %20 = vector.broadcast %cst_15 : f32 to vector<1x128xf32>
      %21 = arith.divf %19, %20 : vector<1x128xf32>
      %22 = arith.mulf %16, %16 : vector<1x128xf32>
      %23 = arith.subf %21, %22 : vector<1x128xf32>
      %cst_16 = arith.constant 0.000000e+00 : f32
      %24 = vector.broadcast %cst_16 : f32 to vector<1x128xf32>
      %25 = arith.maximumf %23, %24 : vector<1x128xf32>
      %c0_17 = arith.constant 0 : index
      %c0_18 = arith.constant 0 : index
      %26 = vector.load %arg3[%c0_17, %c0_18] : memref<1x128xf32, #tpu.memory_space<vmem>>, vector<1x128xf32>
      %cst_19 = arith.constant 9.99999974E-6 : f32
      %27 = vector.broadcast %cst_19 : f32 to vector<1x128xf32>
      %28 = arith.addf %25, %27 : vector<1x128xf32>
      %29 = math.rsqrt %28 : vector<1x128xf32>
      %30 = arith.mulf %26, %29 : vector<1x128xf32>
      %c0_20 = arith.constant 0 : index
      %c0_21 = arith.constant 0 : index
      %31 = vector.load %arg4[%c0_20, %c0_21] : memref<1x128xf32, #tpu.memory_space<vmem>>, vector<1x128xf32>
      %32 = arith.mulf %16, %30 : vector<1x128xf32>
      %33 = arith.subf %31, %32 : vector<1x128xf32>
      %34 = vector.broadcast %30 : vector<1x128xf32> to vector<512x128xf32>
      %35 = arith.mulf %12, %34 : vector<512x128xf32>
      %36 = vector.broadcast %33 : vector<1x128xf32> to vector<512x128xf32>
      %37 = arith.addf %35, %36 : vector<512x128xf32>
      %cst_22 = arith.constant 0.000000e+00 : f32
      %38 = vector.broadcast %cst_22 : f32 to vector<512x128xf32>
      %39 = arith.cmpf oge, %37, %38 : vector<512x128xf32>
      %cst_23 = arith.constant 2.000000e-01 : f32
      %40 = vector.broadcast %cst_23 : f32 to vector<512x128xf32>
      %41 = arith.mulf %40, %37 : vector<512x128xf32>
      %42 = arith.select %39, %37, %41 : vector<512x128xi1>, vector<512x128xf32>
      %43 = arith.truncf %42 : vector<512x128xf32> to vector<512x128xbf16>
      %c0_24 = arith.constant 0 : index
      %c0_25 = arith.constant 0 : index
      %44 = vector.load %arg5[%c0_24, %c0_25] : memref<512x128xbf16, #tpu.memory_space<vmem>>, vector<512x128xbf16>
      tpu.vector_store %arg5[%c0_24, %c0_25], %43 {strides = array<i32>} : memref<512x128xbf16, #tpu.memory_space<vmem>>, vector<512x128xbf16>,
    } else {
    }
    return
  }
  func.func @transform_0(%arg0: i32) -> (i32, i32) {
    %c0_i32 = arith.constant 0 : i32
    %c0_i32_0 = arith.constant 0 : i32
    return %c0_i32, %arg0 : i32, i32
  }
  func.func @transform_1(%arg0: i32) -> (i32, i32) {
    %c0_i32 = arith.constant 0 : i32
    %c0_i32_0 = arith.constant 0 : i32
    return %arg0, %c0_i32 : i32, i32
  }
  func.func @transform_2(%arg0: i32) -> (i32, i32) {
    %c0_i32 = arith.constant 0 : i32
    %c0_i32_0 = arith.constant 0 : i32
    %c0_i32_1 = arith.constant 0 : i32
    return %c0_i32, %c0_i32_0 : i32, i32
  }
  func.func @transform_3(%arg0: i32) -> (i32, i32) {
    %c0_i32 = arith.constant 0 : i32
    %c0_i32_0 = arith.constant 0 : i32
    %c0_i32_1 = arith.constant 0 : i32
    return %c0_i32, %c0_i32_0 : i32, i32
  }
  func.func @transform_4(%arg0: i32) -> (i32, i32) {
    %c0_i32 = arith.constant 0 : i32
    %c0_i32_0 = arith.constant 0 : i32
    %c0_i32_1 = arith.constant 0 : i32
    return %c0_i32, %c0_i32_0 : i32, i32
  }
}

module attributes {stable_mosaic.version = 11 : i64} {
  func.func @_mm_bn_act_kernel(%arg0: i32, %arg1: memref<128x1024xbf16, #tpu.memory_space<vmem>>, %arg2: memref<1024x256xbf16, #tpu.memory_space<vmem>>, %arg3: memref<1x256xf32, #tpu.memory_space<vmem>>, %arg4: memref<1x256xf32, #tpu.memory_space<vmem>>, %arg5: memref<128x256xbf16, #tpu.memory_space<vmem>>, %arg6: memref<128x256xf32, #tpu.memory_space<vmem>>) attributes {dimension_semantics = [#tpu.dimension_semantics<arbitrary>], iteration_bounds = array<i64: 2>, scalar_prefetch = 0 : i64, scratch_operands = 1 : i64, tpu.core_type = #tpu.core_type<tc>, window_params = [{transform_indices = @transform_0, window_bounds = array<i64: 128, 1024>}, {transform_indices = @transform_1, window_bounds = array<i64: 1024, 256>}, {pipeline_mode = #tpu.pipeline_mode<synchronous>, transform_indices = @transform_2, window_bounds = array<i64: 1, 256>}, {pipeline_mode = #tpu.pipeline_mode<synchronous>, transform_indices = @transform_3, window_bounds = array<i64: 1, 256>}, {pipeline_mode = #tpu.pipeline_mode<synchronous>, transform_indices = @transform_4, window_bounds = array<i64: 128, 256>}]} {
    %c0_i32 = arith.constant 0 : i32
    %0 = arith.cmpi eq, %arg0, %c0_i32 : i32
    %1 = arith.extui %0 : i1 to i32
    %c0_i32_0 = arith.constant 0 : i32
    %2 = arith.cmpi ne, %1, %c0_i32_0 : i32
    scf.if %2 {
      %cst_9 = arith.constant 0.000000e+00 : f32
      %12 = vector.broadcast %cst_9 : f32 to vector<128x256xf32>
      %c0_10 = arith.constant 0 : index
      %c0_11 = arith.constant 0 : index
      %13 = vector.load %arg6[%c0_10, %c0_11] : memref<128x256xf32, #tpu.memory_space<vmem>>, vector<128x256xf32>
      tpu.vector_store %arg6[%c0_10, %c0_11], %12 {strides = array<i32>} : memref<128x256xf32, #tpu.memory_space<vmem>>, vector<128x256xf32>,
    } else {
    }
    %c0 = arith.constant 0 : index
    %c0_1 = arith.constant 0 : index
    %3 = vector.load %arg6[%c0, %c0_1] : memref<128x256xf32, #tpu.memory_space<vmem>>, vector<128x256xf32>
    %c0_2 = arith.constant 0 : index
    %c0_3 = arith.constant 0 : index
    %4 = vector.load %arg1[%c0_2, %c0_3] : memref<128x1024xbf16, #tpu.memory_space<vmem>>, vector<128x1024xbf16>
    %c0_4 = arith.constant 0 : index
    %c0_5 = arith.constant 0 : index
    %5 = vector.load %arg2[%c0_4, %c0_5] : memref<1024x256xbf16, #tpu.memory_space<vmem>>, vector<1024x256xbf16>
    %cst = arith.constant dense<0.000000e+00> : vector<128x256xf32>
    %6 = tpu.matmul %4, %5, %cst {dimension_numbers = #tpu.dot_dimension_numbers<[1], [0], [0], [1], [0, 0, 1, 1], [], []>} : vector<128x1024xbf16>, vector<1024x256xbf16>, vector<128x256xf32> -> vector<128x256xf32>
    %7 = arith.addf %3, %6 : vector<128x256xf32>
    %c0_6 = arith.constant 0 : index
    %c0_7 = arith.constant 0 : index
    %8 = vector.load %arg6[%c0_6, %c0_7] : memref<128x256xf32, #tpu.memory_space<vmem>>, vector<128x256xf32>
    tpu.vector_store %arg6[%c0_6, %c0_7], %7 {strides = array<i32>} : memref<128x256xf32, #tpu.memory_space<vmem>>, vector<128x256xf32>,
    %c1_i32 = arith.constant 1 : i32
    %9 = arith.cmpi eq, %arg0, %c1_i32 : i32
    %10 = arith.extui %9 : i1 to i32
    %c0_i32_8 = arith.constant 0 : i32
    %11 = arith.cmpi ne, %10, %c0_i32_8 : i32
    scf.if %11 {
      %c0_9 = arith.constant 0 : index
      %c0_10 = arith.constant 0 : index
      %12 = vector.load %arg6[%c0_9, %c0_10] : memref<128x256xf32, #tpu.memory_space<vmem>>, vector<128x256xf32>
      %cst_11 = arith.constant dense<0.000000e+00> : vector<256xf32>
      %13 = vector.multi_reduction <add>, %12, %cst_11 [0] : vector<128x256xf32> to vector<256xf32>
      %14 = vector.shape_cast %13 : vector<256xf32> to vector<1x256xf32>
      %cst_12 = arith.constant 1.280000e+02 : f32
      %15 = vector.broadcast %cst_12 : f32 to vector<1x256xf32>
      %16 = arith.divf %14, %15 : vector<1x256xf32>
      %17 = arith.mulf %12, %12 : vector<128x256xf32>
      %cst_13 = arith.constant dense<0.000000e+00> : vector<256xf32>
      %18 = vector.multi_reduction <add>, %17, %cst_13 [0] : vector<128x256xf32> to vector<256xf32>
      %19 = vector.shape_cast %18 : vector<256xf32> to vector<1x256xf32>
      %cst_14 = arith.constant 1.280000e+02 : f32
      %20 = vector.broadcast %cst_14 : f32 to vector<1x256xf32>
      %21 = arith.divf %19, %20 : vector<1x256xf32>
      %22 = arith.mulf %16, %16 : vector<1x256xf32>
      %23 = arith.subf %21, %22 : vector<1x256xf32>
      %cst_15 = arith.constant 0.000000e+00 : f32
      %24 = vector.broadcast %cst_15 : f32 to vector<1x256xf32>
      %25 = arith.maximumf %23, %24 : vector<1x256xf32>
      %c0_16 = arith.constant 0 : index
      %c0_17 = arith.constant 0 : index
      %26 = vector.load %arg3[%c0_16, %c0_17] : memref<1x256xf32, #tpu.memory_space<vmem>>, vector<1x256xf32>
      %cst_18 = arith.constant 9.99999974E-6 : f32
      %27 = vector.broadcast %cst_18 : f32 to vector<1x256xf32>
      %28 = arith.addf %25, %27 : vector<1x256xf32>
      %29 = math.rsqrt %28 : vector<1x256xf32>
      %30 = arith.mulf %26, %29 : vector<1x256xf32>
      %c0_19 = arith.constant 0 : index
      %c0_20 = arith.constant 0 : index
      %31 = vector.load %arg4[%c0_19, %c0_20] : memref<1x256xf32, #tpu.memory_space<vmem>>, vector<1x256xf32>
      %32 = arith.mulf %16, %30 : vector<1x256xf32>
      %33 = arith.subf %31, %32 : vector<1x256xf32>
      %34 = vector.broadcast %30 : vector<1x256xf32> to vector<128x256xf32>
      %35 = arith.mulf %12, %34 : vector<128x256xf32>
      %36 = vector.broadcast %33 : vector<1x256xf32> to vector<128x256xf32>
      %37 = arith.addf %35, %36 : vector<128x256xf32>
      %cst_21 = arith.constant 0.000000e+00 : f32
      %38 = vector.broadcast %cst_21 : f32 to vector<128x256xf32>
      %39 = arith.cmpf oge, %37, %38 : vector<128x256xf32>
      %cst_22 = arith.constant 2.000000e-01 : f32
      %40 = vector.broadcast %cst_22 : f32 to vector<128x256xf32>
      %41 = arith.mulf %40, %37 : vector<128x256xf32>
      %42 = arith.select %39, %37, %41 : vector<128x256xi1>, vector<128x256xf32>
      %43 = arith.truncf %42 : vector<128x256xf32> to vector<128x256xbf16>
      %c0_23 = arith.constant 0 : index
      %c0_24 = arith.constant 0 : index
      %44 = vector.load %arg5[%c0_23, %c0_24] : memref<128x256xbf16, #tpu.memory_space<vmem>>, vector<128x256xbf16>
      tpu.vector_store %arg5[%c0_23, %c0_24], %43 {strides = array<i32>} : memref<128x256xbf16, #tpu.memory_space<vmem>>, vector<128x256xbf16>,
    } else {
    }
    return
  }
  func.func @transform_0(%arg0: i32) -> (i32, i32) {
    %c0_i32 = arith.constant 0 : i32
    %c0_i32_0 = arith.constant 0 : i32
    return %c0_i32, %arg0 : i32, i32
  }
  func.func @transform_1(%arg0: i32) -> (i32, i32) {
    %c0_i32 = arith.constant 0 : i32
    %c0_i32_0 = arith.constant 0 : i32
    return %arg0, %c0_i32 : i32, i32
  }
  func.func @transform_2(%arg0: i32) -> (i32, i32) {
    %c0_i32 = arith.constant 0 : i32
    %c0_i32_0 = arith.constant 0 : i32
    %c0_i32_1 = arith.constant 0 : i32
    return %c0_i32, %c0_i32_0 : i32, i32
  }
  func.func @transform_3(%arg0: i32) -> (i32, i32) {
    %c0_i32 = arith.constant 0 : i32
    %c0_i32_0 = arith.constant 0 : i32
    %c0_i32_1 = arith.constant 0 : i32
    return %c0_i32, %c0_i32_0 : i32, i32
  }
  func.func @transform_4(%arg0: i32) -> (i32, i32) {
    %c0_i32 = arith.constant 0 : i32
    %c0_i32_0 = arith.constant 0 : i32
    %c0_i32_1 = arith.constant 0 : i32
    return %c0_i32, %c0_i32_0 : i32, i32
  }
}

module attributes {stable_mosaic.version = 11 : i64} {
  func.func @_mm_bn_act_kernel(%arg0: i32, %arg1: memref<32x1024xbf16, #tpu.memory_space<vmem>>, %arg2: memref<1024x512xbf16, #tpu.memory_space<vmem>>, %arg3: memref<1x512xf32, #tpu.memory_space<vmem>>, %arg4: memref<1x512xf32, #tpu.memory_space<vmem>>, %arg5: memref<32x512xbf16, #tpu.memory_space<vmem>>, %arg6: memref<32x512xf32, #tpu.memory_space<vmem>>) attributes {dimension_semantics = [#tpu.dimension_semantics<arbitrary>], iteration_bounds = array<i64: 4>, scalar_prefetch = 0 : i64, scratch_operands = 1 : i64, tpu.core_type = #tpu.core_type<tc>, window_params = [{transform_indices = @transform_0, window_bounds = array<i64: 32, 1024>}, {transform_indices = @transform_1, window_bounds = array<i64: 1024, 512>}, {pipeline_mode = #tpu.pipeline_mode<synchronous>, transform_indices = @transform_2, window_bounds = array<i64: 1, 512>}, {pipeline_mode = #tpu.pipeline_mode<synchronous>, transform_indices = @transform_3, window_bounds = array<i64: 1, 512>}, {pipeline_mode = #tpu.pipeline_mode<synchronous>, transform_indices = @transform_4, window_bounds = array<i64: 32, 512>}]} {
    %c0_i32 = arith.constant 0 : i32
    %0 = arith.cmpi eq, %arg0, %c0_i32 : i32
    %1 = arith.extui %0 : i1 to i32
    %c0_i32_0 = arith.constant 0 : i32
    %2 = arith.cmpi ne, %1, %c0_i32_0 : i32
    scf.if %2 {
      %cst_9 = arith.constant 0.000000e+00 : f32
      %12 = vector.broadcast %cst_9 : f32 to vector<32x512xf32>
      %c0_10 = arith.constant 0 : index
      %c0_11 = arith.constant 0 : index
      %13 = vector.load %arg6[%c0_10, %c0_11] : memref<32x512xf32, #tpu.memory_space<vmem>>, vector<32x512xf32>
      tpu.vector_store %arg6[%c0_10, %c0_11], %12 {strides = array<i32>} : memref<32x512xf32, #tpu.memory_space<vmem>>, vector<32x512xf32>,
    } else {
    }
    %c0 = arith.constant 0 : index
    %c0_1 = arith.constant 0 : index
    %3 = vector.load %arg6[%c0, %c0_1] : memref<32x512xf32, #tpu.memory_space<vmem>>, vector<32x512xf32>
    %c0_2 = arith.constant 0 : index
    %c0_3 = arith.constant 0 : index
    %4 = vector.load %arg1[%c0_2, %c0_3] : memref<32x1024xbf16, #tpu.memory_space<vmem>>, vector<32x1024xbf16>
    %c0_4 = arith.constant 0 : index
    %c0_5 = arith.constant 0 : index
    %5 = vector.load %arg2[%c0_4, %c0_5] : memref<1024x512xbf16, #tpu.memory_space<vmem>>, vector<1024x512xbf16>
    %cst = arith.constant dense<0.000000e+00> : vector<32x512xf32>
    %6 = tpu.matmul %4, %5, %cst {dimension_numbers = #tpu.dot_dimension_numbers<[1], [0], [0], [1], [0, 0, 1, 1], [], []>} : vector<32x1024xbf16>, vector<1024x512xbf16>, vector<32x512xf32> -> vector<32x512xf32>
    %7 = arith.addf %3, %6 : vector<32x512xf32>
    %c0_6 = arith.constant 0 : index
    %c0_7 = arith.constant 0 : index
    %8 = vector.load %arg6[%c0_6, %c0_7] : memref<32x512xf32, #tpu.memory_space<vmem>>, vector<32x512xf32>
    tpu.vector_store %arg6[%c0_6, %c0_7], %7 {strides = array<i32>} : memref<32x512xf32, #tpu.memory_space<vmem>>, vector<32x512xf32>,
    %c3_i32 = arith.constant 3 : i32
    %9 = arith.cmpi eq, %arg0, %c3_i32 : i32
    %10 = arith.extui %9 : i1 to i32
    %c0_i32_8 = arith.constant 0 : i32
    %11 = arith.cmpi ne, %10, %c0_i32_8 : i32
    scf.if %11 {
      %c0_9 = arith.constant 0 : index
      %c0_10 = arith.constant 0 : index
      %12 = vector.load %arg6[%c0_9, %c0_10] : memref<32x512xf32, #tpu.memory_space<vmem>>, vector<32x512xf32>
      %cst_11 = arith.constant dense<0.000000e+00> : vector<512xf32>
      %13 = vector.multi_reduction <add>, %12, %cst_11 [0] : vector<32x512xf32> to vector<512xf32>
      %14 = vector.shape_cast %13 : vector<512xf32> to vector<1x512xf32>
      %cst_12 = arith.constant 3.200000e+01 : f32
      %15 = vector.broadcast %cst_12 : f32 to vector<1x512xf32>
      %16 = arith.divf %14, %15 : vector<1x512xf32>
      %17 = arith.mulf %12, %12 : vector<32x512xf32>
      %cst_13 = arith.constant dense<0.000000e+00> : vector<512xf32>
      %18 = vector.multi_reduction <add>, %17, %cst_13 [0] : vector<32x512xf32> to vector<512xf32>
      %19 = vector.shape_cast %18 : vector<512xf32> to vector<1x512xf32>
      %cst_14 = arith.constant 3.200000e+01 : f32
      %20 = vector.broadcast %cst_14 : f32 to vector<1x512xf32>
      %21 = arith.divf %19, %20 : vector<1x512xf32>
      %22 = arith.mulf %16, %16 : vector<1x512xf32>
      %23 = arith.subf %21, %22 : vector<1x512xf32>
      %cst_15 = arith.constant 0.000000e+00 : f32
      %24 = vector.broadcast %cst_15 : f32 to vector<1x512xf32>
      %25 = arith.maximumf %23, %24 : vector<1x512xf32>
      %c0_16 = arith.constant 0 : index
      %c0_17 = arith.constant 0 : index
      %26 = vector.load %arg3[%c0_16, %c0_17] : memref<1x512xf32, #tpu.memory_space<vmem>>, vector<1x512xf32>
      %cst_18 = arith.constant 9.99999974E-6 : f32
      %27 = vector.broadcast %cst_18 : f32 to vector<1x512xf32>
      %28 = arith.addf %25, %27 : vector<1x512xf32>
      %29 = math.rsqrt %28 : vector<1x512xf32>
      %30 = arith.mulf %26, %29 : vector<1x512xf32>
      %c0_19 = arith.constant 0 : index
      %c0_20 = arith.constant 0 : index
      %31 = vector.load %arg4[%c0_19, %c0_20] : memref<1x512xf32, #tpu.memory_space<vmem>>, vector<1x512xf32>
      %32 = arith.mulf %16, %30 : vector<1x512xf32>
      %33 = arith.subf %31, %32 : vector<1x512xf32>
      %34 = vector.broadcast %30 : vector<1x512xf32> to vector<32x512xf32>
      %35 = arith.mulf %12, %34 : vector<32x512xf32>
      %36 = vector.broadcast %33 : vector<1x512xf32> to vector<32x512xf32>
      %37 = arith.addf %35, %36 : vector<32x512xf32>
      %cst_21 = arith.constant 0.000000e+00 : f32
      %38 = vector.broadcast %cst_21 : f32 to vector<32x512xf32>
      %39 = arith.cmpf oge, %37, %38 : vector<32x512xf32>
      %cst_22 = arith.constant 2.000000e-01 : f32
      %40 = vector.broadcast %cst_22 : f32 to vector<32x512xf32>
      %41 = arith.mulf %40, %37 : vector<32x512xf32>
      %42 = arith.select %39, %37, %41 : vector<32x512xi1>, vector<32x512xf32>
      %43 = arith.truncf %42 : vector<32x512xf32> to vector<32x512xbf16>
      %c0_23 = arith.constant 0 : index
      %c0_24 = arith.constant 0 : index
      %44 = vector.load %arg5[%c0_23, %c0_24] : memref<32x512xbf16, #tpu.memory_space<vmem>>, vector<32x512xbf16>
      tpu.vector_store %arg5[%c0_23, %c0_24], %43 {strides = array<i32>} : memref<32x512xbf16, #tpu.memory_space<vmem>>, vector<32x512xbf16>,
    } else {
    }
    return
  }
  func.func @transform_0(%arg0: i32) -> (i32, i32) {
    %c0_i32 = arith.constant 0 : i32
    %c0_i32_0 = arith.constant 0 : i32
    return %c0_i32, %arg0 : i32, i32
  }
  func.func @transform_1(%arg0: i32) -> (i32, i32) {
    %c0_i32 = arith.constant 0 : i32
    %c0_i32_0 = arith.constant 0 : i32
    return %arg0, %c0_i32 : i32, i32
  }
  func.func @transform_2(%arg0: i32) -> (i32, i32) {
    %c0_i32 = arith.constant 0 : i32
    %c0_i32_0 = arith.constant 0 : i32
    %c0_i32_1 = arith.constant 0 : i32
    return %c0_i32, %c0_i32_0 : i32, i32
  }
  func.func @transform_3(%arg0: i32) -> (i32, i32) {
    %c0_i32 = arith.constant 0 : i32
    %c0_i32_0 = arith.constant 0 : i32
    %c0_i32_1 = arith.constant 0 : i32
    return %c0_i32, %c0_i32_0 : i32, i32
  }
  func.func @transform_4(%arg0: i32) -> (i32, i32) {
    %c0_i32 = arith.constant 0 : i32
    %c0_i32_0 = arith.constant 0 : i32
    %c0_i32_1 = arith.constant 0 : i32
    return %c0_i32, %c0_i32_0 : i32, i32
  }
}

module attributes {stable_mosaic.version = 11 : i64} {
  func.func @_mm_act_kernel(%arg0: i32, %arg1: i32, %arg2: memref<8x1024xbf16, #tpu.memory_space<vmem>>, %arg3: memref<1024x128xbf16, #tpu.memory_space<vmem>>, %arg4: memref<8x128xf32, #tpu.memory_space<vmem>>, %arg5: memref<8x128xf32, #tpu.memory_space<vmem>>) attributes {dimension_semantics = [#tpu.dimension_semantics<parallel>, #tpu.dimension_semantics<arbitrary>], iteration_bounds = array<i64: 1, 8>, scalar_prefetch = 0 : i64, scratch_operands = 1 : i64, tpu.core_type = #tpu.core_type<tc>, window_params = [{transform_indices = @transform_0, window_bounds = array<i64: 8, 1024>}, {transform_indices = @transform_1, window_bounds = array<i64: 1024, 128>}, {transform_indices = @transform_2, window_bounds = array<i64: 8, 128>}]} {
    %c0_i32 = arith.constant 0 : i32
    %0 = arith.cmpi eq, %arg1, %c0_i32 : i32
    %1 = arith.extui %0 : i1 to i32
    %c0_i32_0 = arith.constant 0 : i32
    %2 = arith.cmpi ne, %1, %c0_i32_0 : i32
    scf.if %2 {
      %cst_9 = arith.constant 0.000000e+00 : f32
      %12 = vector.broadcast %cst_9 : f32 to vector<8x128xf32>
      %c0_10 = arith.constant 0 : index
      %c0_11 = arith.constant 0 : index
      %13 = vector.load %arg5[%c0_10, %c0_11] : memref<8x128xf32, #tpu.memory_space<vmem>>, vector<8x128xf32>
      tpu.vector_store %arg5[%c0_10, %c0_11], %12 {strides = array<i32>} : memref<8x128xf32, #tpu.memory_space<vmem>>, vector<8x128xf32>,
    } else {
    }
    %c0 = arith.constant 0 : index
    %c0_1 = arith.constant 0 : index
    %3 = vector.load %arg5[%c0, %c0_1] : memref<8x128xf32, #tpu.memory_space<vmem>>, vector<8x128xf32>
    %c0_2 = arith.constant 0 : index
    %c0_3 = arith.constant 0 : index
    %4 = vector.load %arg2[%c0_2, %c0_3] : memref<8x1024xbf16, #tpu.memory_space<vmem>>, vector<8x1024xbf16>
    %c0_4 = arith.constant 0 : index
    %c0_5 = arith.constant 0 : index
    %5 = vector.load %arg3[%c0_4, %c0_5] : memref<1024x128xbf16, #tpu.memory_space<vmem>>, vector<1024x128xbf16>
    %cst = arith.constant dense<0.000000e+00> : vector<8x128xf32>
    %6 = tpu.matmul %4, %5, %cst {dimension_numbers = #tpu.dot_dimension_numbers<[1], [0], [0], [1], [0, 0, 1, 1], [], []>} : vector<8x1024xbf16>, vector<1024x128xbf16>, vector<8x128xf32> -> vector<8x128xf32>
    %7 = arith.addf %3, %6 : vector<8x128xf32>
    %c0_6 = arith.constant 0 : index
    %c0_7 = arith.constant 0 : index
    %8 = vector.load %arg5[%c0_6, %c0_7] : memref<8x128xf32, #tpu.memory_space<vmem>>, vector<8x128xf32>
    tpu.vector_store %arg5[%c0_6, %c0_7], %7 {strides = array<i32>} : memref<8x128xf32, #tpu.memory_space<vmem>>, vector<8x128xf32>,
    %c7_i32 = arith.constant 7 : i32
    %9 = arith.cmpi eq, %arg1, %c7_i32 : i32
    %10 = arith.extui %9 : i1 to i32
    %c0_i32_8 = arith.constant 0 : i32
    %11 = arith.cmpi ne, %10, %c0_i32_8 : i32
    scf.if %11 {
      %c0_9 = arith.constant 0 : index
      %c0_10 = arith.constant 0 : index
      %12 = vector.load %arg5[%c0_9, %c0_10] : memref<8x128xf32, #tpu.memory_space<vmem>>, vector<8x128xf32>
      %13 = arith.negf %12 : vector<8x128xf32>
      %14 = math.exp %13 : vector<8x128xf32>
      %cst_11 = arith.constant 1.000000e+00 : f32
      %15 = vector.broadcast %cst_11 : f32 to vector<8x128xf32>
      %16 = arith.addf %15, %14 : vector<8x128xf32>
      %17 = arith.divf %15, %16 : vector<8x128xf32>
      %c0_12 = arith.constant 0 : index
      %c0_13 = arith.constant 0 : index
      %18 = vector.load %arg4[%c0_12, %c0_13] : memref<8x128xf32, #tpu.memory_space<vmem>>, vector<8x128xf32>
      tpu.vector_store %arg4[%c0_12, %c0_13], %17 {strides = array<i32>} : memref<8x128xf32, #tpu.memory_space<vmem>>, vector<8x128xf32>,
    } else {
    }
    return
  }
  func.func @transform_0(%arg0: i32, %arg1: i32) -> (i32, i32) {
    %c0_i32 = arith.constant 0 : i32
    return %arg0, %arg1 : i32, i32
  }
  func.func @transform_1(%arg0: i32, %arg1: i32) -> (i32, i32) {
    %c0_i32 = arith.constant 0 : i32
    %c0_i32_0 = arith.constant 0 : i32
    return %arg1, %c0_i32 : i32, i32
  }
  func.func @transform_2(%arg0: i32, %arg1: i32) -> (i32, i32) {
    %c0_i32 = arith.constant 0 : i32
    %c0_i32_0 = arith.constant 0 : i32
    return %arg0, %c0_i32 : i32, i32
  }
}

</mosaic_0001>

<bundles_post_ra>
// kernel: encoder_cnn_forward.5
= control target key start
LH: loop header
LB: loop body
LE: loop exit
PB: predicated region body
PF: predicated region fallthrough
CT: control target
= control target key end

     0   :  { %s2356_s9 = smov 0   ;;  %s2358_s10 = smov 0   ;;  %s2512_s0 = inlined_call_operand.vmem [shape: bf16[2048,48], index: 0, kind: input, shape index: {}]   ;;  %s2513_s1 = inlined_call_operand.vmem [shape: bf16[48,128], index: 1, kind: input, shape index: {}]   ;;  %s2514_s2 = inlined_call_operand.vmem [shape: bf16[2048,128], index: 2, kind: output, shape index: {}]  }
   0x1   :  { %s2360_s11 = smov 0  }
   0x2 LB: > { %s24_s12 = sadd.s32 1, %s2335_s10  ;;  %p1754_p0 = scmp.ge.s32.totalorder %s2339_s11, 1  ;;  %s2339_s11 = sphi %s2360_s11, %s12_s11   ;;  %s2335_s10 = sphi %s2358_s10, %s2516_s10   ;;  %s2331_s9 = sphi %s2356_s9, %s2515_s9  }
   0x3   : > { %p26_p1 = scmp.ge.s32.totalorder %s24_s12, 4  ;;  %p141_p2 = scmp.lt.s32.totalorder %s2339_s11, 5 }
   0x5   : > { %s2518_s12 = smov (%p26_p1, %s24_s12), 0  ;;  %p142_p3 = pnand %p1754_p0, %p141_p2 }
   0x6   : > { %v2282_v0 = vld [vmem:[%s2513_s1] sm:$0xff] (!%p142_p3)   ;;  %s1755_s15 = sshll.u32 (!%p142_p3), %s2331_s9, 6  ;;  %v2283_v1 = vld [vmem:[%s2513_s1 + $0x8] sm:$0xff] (!%p142_p3)   ;;  %v2284_v2 = vld [vmem:[%s2513_s1 + $0x10] sm:$0xff] (!%p142_p3)   ;;  %vm573_vm0 = vcmask (!%p142_p3), 392192  }
   0x7   : > { %145 = sbr.rel (%p142_p3) target bundleno = 298 (0x12a), region = 28  ;;  %p172_p4 = scmp.lt.s32.totalorder (!%p142_p3), %s1755_s15, 255  ;;  %2182 = vmatprep.subr.bf16.mxu0 (!%p142_p3), %v2282_v0  ;;  %2252 = vmatprep.subr.bf16.mxu1 (!%p142_p3), %v2282_v0 }
   0x8   : > { %2183 = vmatpush3.bf16.msra.mxu0 (!%p142_p3), %v2282_v0  ;;  %2255 = vmatpush3.bf16.msra.mxu1 (!%p142_p3), %v2282_v0 }
   0x9   : > { %2184 = vmatprep.subr.bf16.mxu0 (!%p142_p3), %v2283_v1  ;;  %2253 = vmatprep.subr.bf16.mxu1 (!%p142_p3), %v2283_v1 }
   0xc   : > { %2185 = vmatpush3.bf16.msra.mxu0 (!%p142_p3), %v2283_v1  ;;  %2256 = vmatpush3.bf16.msra.mxu1 (!%p142_p3), %v2283_v1 }
   0xd   : > { %2186 = vmatprep.subr.bf16.mxu0 (!%p142_p3), %v2284_v2  ;;  %2254 = vmatprep.subr.bf16.mxu1 (!%p142_p3), %v2284_v2 }
   0xe   : > { %s2520_s15 = smov (!%p172_p4, %s1755_s15), 255 }
   0xf   : > { %s1756_s20 = sshll.u32 %s2520_s15, 2 }
  0x10   : > { %s2391_s23 = scalar_lea.vmem %s2512_s0, %s1756_s20  ;;  %2187 = vmatpush3.bf16.msra.mxu0 %v2284_v2  ;;  %2257 = vmatpush3.bf16.msra.mxu1 %v2284_v2  ;;  %s2462_s26 = scalar_lea.vmem %s2514_s2, %s1756_s20 }
  0x11   : > { %v2285_v3 = vld [vmem:[%s2391_s23] sm:$0xff]   ;;  %v2287_v5 = vld [vmem:[%s2391_s23 + $0x8] sm:$0xff]   ;;  %v2289_v7 = vld [vmem:[%s2391_s23 + $0x10] sm:$0xff]  }
  0x12   : > { %v2286_v4 = vld [vmem:[%s2391_s23 + $0x80] sm:$0xff]   ;;  %2188 = vmatprep.mubr.msk.bf16.mxu0 %vm573_vm0, %v2285_v3  ;;  %v2288_v6 = vld [vmem:[%s2391_s23 + $0x88] sm:$0xff]   ;;  %v2290_v8 = vld [vmem:[%s2391_s23 + $0x90] sm:$0xff]  }
  0x13   : > { %2220 = vmatprep.mubr.msk.bf16.mxu1 %vm573_vm0, %v2286_v4  ;;  %2189 = vmatmul.mubr.msk.bf16.vlgmr.msra.gmra.mrb[0].mxu0 %vm573_vm0, %v2287_v5  ;;  %v2291_v9 = vld [vmem:[%s2391_s23 + $0x18] sm:$0xff]   ;;  %v2293_v11 = vld [vmem:[%s2391_s23 + $0x20] sm:$0xff]   ;;  %v2295_v13 = vld [vmem:[%s2391_s23 + $0x28] sm:$0xff]  }
  0x14   : > { %2221 = vmatmul.mubr.msk.bf16.vlgmr.msra.gmra.mrb[0].mxu1 %vm573_vm0, %v2288_v6  ;;  %2192 = vmatprep.mubr.msk.bf16.mxu0 %vm573_vm0, %v2289_v7  ;;  %v2292_v10 = vld [vmem:[%s2391_s23 + $0x98] sm:$0xff]   ;;  %v2294_v12 = vld [vmem:[%s2391_s23 + $0xa0] sm:$0xff]   ;;  %v2296_v14 = vld [vmem:[%s2391_s23 + $0xa8] sm:$0xff]  }
  0x15   : > { %2224 = vmatprep.mubr.msk.bf16.mxu1 %vm573_vm0, %v2290_v8  ;;  %v2297_v15 = vld [vmem:[%s2391_s23 + $0x30] sm:$0xff]   ;;  %v2299_v17 = vld [vmem:[%s2391_s23 + $0x38] sm:$0xff]   ;;  %v2301_v19 = vld [vmem:[%s2391_s23 + $0x40] sm:$0xff]  }
  0x16   : > { %v2298_v16 = vld [vmem:[%s2391_s23 + $0xb0] sm:$0xff]   ;;  %v2300_v18 = vld [vmem:[%s2391_s23 + $0xb8] sm:$0xff]   ;;  %v2302_v20 = vld [vmem:[%s2391_s23 + $0xc0] sm:$0xff]  }
  0x17   : > { %v2303_v21 = vld [vmem:[%s2391_s23 + $0x48] sm:$0xff]   ;;  %v2305_v23 = vld [vmem:[%s2391_s23 + $0x50] sm:$0xff]   ;;  %v2307_v25 = vld [vmem:[%s2391_s23 + $0x58] sm:$0xff]  }
  0x18   : > { %v2304_v22 = vld [vmem:[%s2391_s23 + $0xc8] sm:$0xff]   ;;  %v2306_v24 = vld [vmem:[%s2391_s23 + $0xd0] sm:$0xff]   ;;  %v2308_v26 = vld [vmem:[%s2391_s23 + $0xd8] sm:$0xff]  }
  0x19   : > { %v2309_v27 = vld [vmem:[%s2391_s23 + $0x60] sm:$0xff]   ;;  %v2311_v29 = vld [vmem:[%s2391_s23 + $0x68] sm:$0xff]   ;;  %v2313_v31 = vld [vmem:[%s2391_s23 + $0x70] sm:$0xff]  }
  0x1a   : > { %v2310_v28 = vld [vmem:[%s2391_s23 + $0xe0] sm:$0xff]   ;;  %v2312_v30 = vld [vmem:[%s2391_s23 + $0xe8] sm:$0xff]   ;;  %v2314_v32 = vld [vmem:[%s2391_s23 + $0xf0] sm:$0xff]  }
  0x1b   : > { %2193 = vmatmul.mubr.msk.bf16.gmra.mrb[4].mxu0 %vm573_vm0, %v2291_v9  ;;  %v2315_v33 = vld [vmem:[%s2391_s23 + $0x78] sm:$0xff]  }
  0x1c   : > { %2225 = vmatmul.mubr.msk.bf16.gmra.mrb[4].mxu1 %vm573_vm0, %v2292_v10  ;;  %2196 = vmatprep.mubr.msk.bf16.mxu0 %vm573_vm0, %v2293_v11  ;;  %v2316_v34 = vld [vmem:[%s2391_s23 + $0xf8] sm:$0xff]  }
  0x1d   : > { %2228 = vmatprep.mubr.msk.bf16.mxu1 %vm573_vm0, %v2294_v12 }
  0x23   : > { %2197 = vmatmul.mubr.msk.bf16.gmra.mrb[8].mxu0 %vm573_vm0, %v2295_v13 }
  0x24   : > { %2229 = vmatmul.mubr.msk.bf16.gmra.mrb[8].mxu1 %vm573_vm0, %v2296_v14  ;;  %2200 = vmatprep.mubr.msk.bf16.mxu0 %vm573_vm0, %v2297_v15 }
  0x25   : > { %2232 = vmatprep.mubr.msk.bf16.mxu1 %vm573_vm0, %v2298_v16 }
  0x2b   : > { %2201 = vmatmul.mubr.msk.bf16.gmra.mrb[12].mxu0 %vm573_vm0, %v2299_v17 }
  0x2c   : > { %2233 = vmatmul.mubr.msk.bf16.gmra.mrb[12].mxu1 %vm573_vm0, %v2300_v18  ;;  %2204 = vmatprep.mubr.msk.bf16.mxu0 %vm573_vm0, %v2301_v19 }
  0x2d   : > { %2236 = vmatprep.mubr.msk.bf16.mxu1 %vm573_vm0, %v2302_v20 }
  0x33   : > { %2205 = vmatmul.mubr.msk.bf16.gmra.mrb[16].mxu0 %vm573_vm0, %v2303_v21 }
  0x34   : > { %2237 = vmatmul.mubr.msk.bf16.gmra.mrb[16].mxu1 %vm573_vm0, %v2304_v22  ;;  %2208 = vmatprep.mubr.msk.bf16.mxu0 %vm573_vm0, %v2305_v23 }
  0x35   : > { %2240 = vmatprep.mubr.msk.bf16.mxu1 %vm573_vm0, %v2306_v24 }
  0x3b   : > { %2209 = vmatmul.mubr.msk.bf16.gmra.mrb[20].mxu0 %vm573_vm0, %v2307_v25 }
  0x3c   : > { %2241 = vmatmul.mubr.msk.bf16.gmra.mrb[20].mxu1 %vm573_vm0, %v2308_v26  ;;  %2212 = vmatprep.mubr.msk.bf16.mxu0 %vm573_vm0, %v2309_v27 }
  0x3d   : > { %2244 = vmatprep.mubr.msk.bf16.mxu1 %vm573_vm0, %v2310_v28 }
  0x43   : > { %2213 = vmatmul.mubr.msk.bf16.gmra.mrb[24].mxu0 %vm573_vm0, %v2311_v29 }
  0x44   : > { %2245 = vmatmul.mubr.msk.bf16.gmra.mrb[24].mxu1 %vm573_vm0, %v2312_v30  ;;  %2216 = vmatprep.mubr.msk.bf16.mxu0 %vm573_vm0, %v2313_v31 }
  0x45   : > { %2248 = vmatprep.mubr.msk.bf16.mxu1 %vm573_vm0, %v2314_v32 }
  0x4b   : > { %2217 = vmatmul.mubr.msk.bf16.gmra.mrb[28].mxu0 %vm573_vm0, %v2315_v33 }
  0x4c   : > { %2249 = vmatmul.mubr.msk.bf16.gmra.mrb[28].mxu1 %vm573_vm0, %v2316_v34 }
  0xe6   : > { %v2190_v35 = vpop.f32.mrb[0].mxu0 }
  0xe7   : > { %v2222_v36 = vpop.f32.mrb[0].mxu1  ;;  %vm1156_vm1 = vcmp.ge.f32.partialorder %v2190_v35, 0.0  ;;  %v1220_v37 = vmul.f32 0.2, %v2190_v35  ;;  %v704_v39 = vpop.f32.mrb[1].mxu0 }
  0xe8   : > { %v1252_v38 = vmul.f32 0.2, %v2222_v36  ;;  %vm1188_vm2 = vcmp.ge.f32.partialorder %v2222_v36, 0.0  ;;  %v832_v40 = vpop.f32.mrb[1].mxu1  ;;  %v1218_v41 = vmul.f32 0.2, %v704_v39 }
  0xe9   : > { %v2191_v42 = vpop.f32.mrb[2].mxu0  ;;  %v2223_v43 = vpop.f32.mrb[2].mxu1  ;;  %v1284_v44 = vsel %vm1156_vm1, %v2190_v35, %v1220_v37  ;;  %v1250_v45 = vmul.f32 0.2, %v832_v40  ;;  %vm1154_vm4 = vcmp.ge.f32.partialorder %v704_v39, 0.0  ;;  %vm1186_vm6 = vcmp.ge.f32.partialorder %v832_v40, 0.0 }
  0xea   : > { %vm1157_vm3 = vcmp.ge.f32.partialorder %v2191_v42, 0.0  ;;  %v1221_v46 = vmul.f32 0.2, %v2191_v42  ;;  %v1316_v47 = vsel %vm1188_vm2, %v2222_v36, %v1252_v38  ;;  %vm1189_vm5 = vcmp.ge.f32.partialorder %v2223_v43, 0.0  ;;  %v707_v49 = vpop.f32.mrb[3].mxu0  ;;  %v835_v50 = vpop.f32.mrb[3].mxu1 }
  0xeb   : > { %v1253_v48 = vmul.f32 0.2, %v2223_v43  ;;  %vm1155_vm7 = vcmp.ge.f32.partialorder %v707_v49, 0.0  ;;  %v1219_v52 = vmul.f32 0.2, %v707_v49  ;;  %vm1187_vm8 = vcmp.ge.f32.partialorder %v835_v50, 0.0 }
  0xec   : > { %v1285_v51 = vsel %vm1157_vm3, %v2191_v42, %v1221_v46  ;;  %v1251_v55 = vmul.f32 0.2, %v835_v50  ;;  %v1282_v56 = vsel %vm1154_vm4, %v704_v39, %v1218_v41  ;;  %v1314_v61 = vsel %vm1186_vm6, %v832_v40, %v1250_v45 }
  0xed   : > { %v1964_v53 = vpack.c.bf16 %v1285_v51, %v1284_v44  ;;  %v1317_v54 = vsel %vm1189_vm5, %v2223_v43, %v1253_v48  ;;  %v1283_v58 = vsel %vm1155_vm7, %v707_v49, %v1219_v52 }
  0xee   : > { %v2044_v57 = vpack.c.bf16 %v1317_v54, %v1316_v47  ;;  %v2194_v59 = vpop.f32.mrb[4].mxu0  ;;  %v1959_v62 = vpack.c.bf16 %v1283_v58, %v1282_v56  ;;  %v1315_v63 = vsel %vm1187_vm8, %v835_v50, %v1251_v55 }
  0xef   : > { %v2226_v60 = vpop.f32.mrb[4].mxu1  ;;  %2116 = vst [vmem:[%s2462_s26 + $0x8] sm:$0xff] %v1964_v53   ;;  %v1224_v0 = vmul.f32 0.2, %v2194_v59  ;;  %v720_v1 = vpop.f32.mrb[5].mxu0  ;;  %v2039_v3 = vpack.c.bf16 %v1315_v63, %v1314_v61  ;;  %vm1160_vm9 = vcmp.ge.f32.partialorder %v2194_v59, 0.0 }
  0xf0   : > { %v848_v2 = vpop.f32.mrb[5].mxu1  ;;  %2132 = vst [vmem:[%s2462_s26 + $0x88] sm:$0xff] %v2044_v57   ;;  %v1256_v4 = vmul.f32 0.2, %v2226_v60  ;;  %v2195_v5 = vpop.f32.mrb[6].mxu0  ;;  %1960 = vst [vmem:[%s2462_s26] sm:$0xff] %v1959_v62   ;;  %vm1192_vm10 = vcmp.ge.f32.partialorder %v2226_v60, 0.0 }
  0xf1   : > { %v2227_v6 = vpop.f32.mrb[6].mxu1  ;;  %v1222_v7 = vmul.f32 0.2, %v720_v1  ;;  %v1254_v8 = vmul.f32 0.2, %v848_v2  ;;  %v723_v9 = vpop.f32.mrb[7].mxu0  ;;  %v1288_v12 = vsel %vm1160_vm9, %v2194_v59, %v1224_v0 }
  0xf2   : > { %2131 = vst [vmem:[%s2462_s26 + $0x80] sm:$0xff] %v2039_v3   ;;  %vm1158_vm11 = vcmp.ge.f32.partialorder %v720_v1, 0.0  ;;  %vm1161_vm12 = vcmp.ge.f32.partialorder %v2195_v5, 0.0  ;;  %v1225_v10 = vmul.f32 0.2, %v2195_v5  ;;  %vm1193_vm13 = vcmp.ge.f32.partialorder %v2227_v6, 0.0 }
  0xf3   : > { %v851_v11 = vpop.f32.mrb[7].mxu1  ;;  %vm1190_vm14 = vcmp.ge.f32.partialorder %v848_v2, 0.0  ;;  %v1257_v13 = vmul.f32 0.2, %v2227_v6  ;;  %vm1159_vm15 = vcmp.ge.f32.partialorder %v723_v9, 0.0  ;;  %v1320_v17 = vsel %vm1192_vm10, %v2226_v60, %v1256_v4 }
  0xf4   : > { %v1289_v14 = vsel %vm1161_vm12, %v2195_v5, %v1225_v10  ;;  %v1223_v15 = vmul.f32 0.2, %v723_v9  ;;  %vm1191_vm0 = vcmp.ge.f32.partialorder %v851_v11, 0.0  ;;  %v1255_v16 = vmul.f32 0.2, %v851_v11 }
  0xf5   : > { %v1286_v18 = vsel %vm1158_vm11, %v720_v1, %v1222_v7  ;;  %v1974_v19 = vpack.c.bf16 %v1289_v14, %v1288_v12  ;;  %v1321_v20 = vsel %vm1193_vm13, %v2227_v6, %v1257_v13  ;;  %v1318_v21 = vsel %vm1190_vm14, %v848_v2, %v1254_v8 }
  0xf6   : > { %v2054_v22 = vpack.c.bf16 %v1321_v20, %v1320_v17  ;;  %v1287_v23 = vsel %vm1159_vm15, %v723_v9, %v1223_v15  ;;  %v1319_v24 = vsel %vm1191_vm0, %v851_v11, %v1255_v16  ;;  %v2198_v25 = vpop.f32.mrb[8].mxu0 }
  0xf7   : > { %v2230_v26 = vpop.f32.mrb[8].mxu1  ;;  %2118 = vst [vmem:[%s2462_s26 + $0x18] sm:$0xff] %v1974_v19   ;;  %v1969_v27 = vpack.c.bf16 %v1287_v23, %v1286_v18  ;;  %v2049_v28 = vpack.c.bf16 %v1319_v24, %v1318_v21  ;;  %vm1164_vm1 = vcmp.ge.f32.partialorder %v2198_v25, 0.0  ;;  %v1228_v29 = vmul.f32 0.2, %v2198_v25  ;;  %v736_v30 = vpop.f32.mrb[9].mxu0 }
  0xf8   : > { %v864_v31 = vpop.f32.mrb[9].mxu1  ;;  %2134 = vst [vmem:[%s2462_s26 + $0x98] sm:$0xff] %v2054_v22   ;;  %vm1196_vm2 = vcmp.ge.f32.partialorder %v2230_v26, 0.0  ;;  %v1260_v32 = vmul.f32 0.2, %v2230_v26  ;;  %v2199_v35 = vpop.f32.mrb[10].mxu0 }
  0xf9   : > { %2117 = vst [vmem:[%s2462_s26 + $0x10] sm:$0xff] %v1969_v27   ;;  %2133 = vst [vmem:[%s2462_s26 + $0x90] sm:$0xff] %v2049_v28   ;;  %v1226_v33 = vmul.f32 0.2, %v736_v30  ;;  %v1258_v34 = vmul.f32 0.2, %v864_v31  ;;  %v1292_v37 = vsel %vm1164_vm1, %v2198_v25, %v1228_v29 }
  0xfa   : > { %v2231_v36 = vpop.f32.mrb[10].mxu1  ;;  %vm1162_vm3 = vcmp.ge.f32.partialorder %v736_v30, 0.0  ;;  %vm1165_vm4 = vcmp.ge.f32.partialorder %v2199_v35, 0.0  ;;  %v1229_v38 = vmul.f32 0.2, %v2199_v35  ;;  %v739_v39 = vpop.f32.mrb[11].mxu0  ;;  %v1324_v45 = vsel %vm1196_vm2, %v2230_v26, %v1260_v32 }
  0xfb   : > { %v867_v40 = vpop.f32.mrb[11].mxu1  ;;  %vm1194_vm5 = vcmp.ge.f32.partialorder %v864_v31, 0.0  ;;  %vm1197_vm6 = vcmp.ge.f32.partialorder %v2231_v36, 0.0  ;;  %v1261_v41 = vmul.f32 0.2, %v2231_v36  ;;  %vm1163_vm7 = vcmp.ge.f32.partialorder %v739_v39, 0.0 }
  0xfc   : > { %v1293_v42 = vsel %vm1165_vm4, %v2199_v35, %v1229_v38  ;;  %v1227_v43 = vmul.f32 0.2, %v739_v39  ;;  %vm1195_vm8 = vcmp.ge.f32.partialorder %v867_v40, 0.0  ;;  %v1259_v44 = vmul.f32 0.2, %v867_v40 }
  0xfd   : > { %v1290_v46 = vsel %vm1162_vm3, %v736_v30, %v1226_v33  ;;  %v1984_v47 = vpack.c.bf16 %v1293_v42, %v1292_v37  ;;  %v1325_v48 = vsel %vm1197_vm6, %v2231_v36, %v1261_v41  ;;  %v1322_v49 = vsel %vm1194_vm5, %v864_v31, %v1258_v34 }
  0xfe   : > { %v2064_v50 = vpack.c.bf16 %v1325_v48, %v1324_v45  ;;  %v1291_v51 = vsel %vm1163_vm7, %v739_v39, %v1227_v43  ;;  %v1323_v52 = vsel %vm1195_vm8, %v867_v40, %v1259_v44  ;;  %v2202_v53 = vpop.f32.mrb[12].mxu0 }
  0xff   : > { %v2234_v54 = vpop.f32.mrb[12].mxu1  ;;  %2120 = vst [vmem:[%s2462_s26 + $0x28] sm:$0xff] %v1984_v47   ;;  %v1979_v55 = vpack.c.bf16 %v1291_v51, %v1290_v46  ;;  %v2059_v56 = vpack.c.bf16 %v1323_v52, %v1322_v49  ;;  %vm1168_vm9 = vcmp.ge.f32.partialorder %v2202_v53, 0.0  ;;  %v1232_v57 = vmul.f32 0.2, %v2202_v53  ;;  %v752_v58 = vpop.f32.mrb[13].mxu0 }
 0x100   : > { %v880_v59 = vpop.f32.mrb[13].mxu1  ;;  %2136 = vst [vmem:[%s2462_s26 + $0xa8] sm:$0xff] %v2064_v50   ;;  %vm1200_vm10 = vcmp.ge.f32.partialorder %v2234_v54, 0.0  ;;  %v1264_v60 = vmul.f32 0.2, %v2234_v54  ;;  %v2203_v63 = vpop.f32.mrb[14].mxu0 }
 0x101   : > { %2119 = vst [vmem:[%s2462_s26 + $0x20] sm:$0xff] %v1979_v55   ;;  %2135 = vst [vmem:[%s2462_s26 + $0xa0] sm:$0xff] %v2059_v56   ;;  %v1230_v61 = vmul.f32 0.2, %v752_v58  ;;  %v1262_v62 = vmul.f32 0.2, %v880_v59  ;;  %v1296_v1 = vsel %vm1168_vm9, %v2202_v53, %v1232_v57 }
 0x102   : > { %v2235_v0 = vpop.f32.mrb[14].mxu1  ;;  %vm1166_vm11 = vcmp.ge.f32.partialorder %v752_v58, 0.0  ;;  %vm1169_vm12 = vcmp.ge.f32.partialorder %v2203_v63, 0.0  ;;  %v1233_v2 = vmul.f32 0.2, %v2203_v63  ;;  %v755_v3 = vpop.f32.mrb[15].mxu0  ;;  %v1328_v9 = vsel %vm1200_vm10, %v2234_v54, %v1264_v60 }
 0x103   : > { %v883_v4 = vpop.f32.mrb[15].mxu1  ;;  %vm1198_vm13 = vcmp.ge.f32.partialorder %v880_v59, 0.0  ;;  %vm1201_vm14 = vcmp.ge.f32.partialorder %v2235_v0, 0.0  ;;  %v1265_v5 = vmul.f32 0.2, %v2235_v0  ;;  %vm1167_vm15 = vcmp.ge.f32.partialorder %v755_v3, 0.0 }
 0x104   : > { %v1297_v6 = vsel %vm1169_vm12, %v2203_v63, %v1233_v2  ;;  %v1231_v7 = vmul.f32 0.2, %v755_v3  ;;  %vm1199_vm0 = vcmp.ge.f32.partialorder %v883_v4, 0.0  ;;  %v1263_v8 = vmul.f32 0.2, %v883_v4 }
 0x105   : > { %v1294_v10 = vsel %vm1166_vm11, %v752_v58, %v1230_v61  ;;  %v1994_v11 = vpack.c.bf16 %v1297_v6, %v1296_v1  ;;  %v1329_v12 = vsel %vm1201_vm14, %v2235_v0, %v1265_v5  ;;  %v1326_v13 = vsel %vm1198_vm13, %v880_v59, %v1262_v62 }
 0x106   : > { %v2074_v14 = vpack.c.bf16 %v1329_v12, %v1328_v9  ;;  %v1295_v15 = vsel %vm1167_vm15, %v755_v3, %v1231_v7  ;;  %v1327_v16 = vsel %vm1199_vm0, %v883_v4, %v1263_v8  ;;  %v2206_v17 = vpop.f32.mrb[16].mxu0 }
 0x107   : > { %v2238_v18 = vpop.f32.mrb[16].mxu1  ;;  %2122 = vst [vmem:[%s2462_s26 + $0x38] sm:$0xff] %v1994_v11   ;;  %v1989_v19 = vpack.c.bf16 %v1295_v15, %v1294_v10  ;;  %v2069_v20 = vpack.c.bf16 %v1327_v16, %v1326_v13  ;;  %vm1172_vm1 = vcmp.ge.f32.partialorder %v2206_v17, 0.0  ;;  %v1236_v21 = vmul.f32 0.2, %v2206_v17  ;;  %v768_v22 = vpop.f32.mrb[17].mxu0 }
 0x108   : > { %v896_v23 = vpop.f32.mrb[17].mxu1  ;;  %2138 = vst [vmem:[%s2462_s26 + $0xb8] sm:$0xff] %v2074_v14   ;;  %vm1204_vm2 = vcmp.ge.f32.partialorder %v2238_v18, 0.0  ;;  %v1268_v24 = vmul.f32 0.2, %v2238_v18  ;;  %v2207_v27 = vpop.f32.mrb[18].mxu0 }
 0x109   : > { %2121 = vst [vmem:[%s2462_s26 + $0x30] sm:$0xff] %v1989_v19   ;;  %2137 = vst [vmem:[%s2462_s26 + $0xb0] sm:$0xff] %v2069_v20   ;;  %v1234_v25 = vmul.f32 0.2, %v768_v22  ;;  %v1266_v26 = vmul.f32 0.2, %v896_v23  ;;  %v1300_v29 = vsel %vm1172_vm1, %v2206_v17, %v1236_v21 }
 0x10a   : > { %v2239_v28 = vpop.f32.mrb[18].mxu1  ;;  %vm1170_vm3 = vcmp.ge.f32.partialorder %v768_v22, 0.0  ;;  %vm1173_vm4 = vcmp.ge.f32.partialorder %v2207_v27, 0.0  ;;  %v1237_v30 = vmul.f32 0.2, %v2207_v27  ;;  %v771_v31 = vpop.f32.mrb[19].mxu0  ;;  %v1332_v37 = vsel %vm1204_vm2, %v2238_v18, %v1268_v24 }
 0x10b   : > { %v899_v32 = vpop.f32.mrb[19].mxu1  ;;  %vm1202_vm5 = vcmp.ge.f32.partialorder %v896_v23, 0.0  ;;  %vm1205_vm6 = vcmp.ge.f32.partialorder %v2239_v28, 0.0  ;;  %v1269_v33 = vmul.f32 0.2, %v2239_v28  ;;  %vm1171_vm7 = vcmp.ge.f32.partialorder %v771_v31, 0.0 }
 0x10c   : > { %v1301_v34 = vsel %vm1173_vm4, %v2207_v27, %v1237_v30  ;;  %v1235_v35 = vmul.f32 0.2, %v771_v31  ;;  %vm1203_vm8 = vcmp.ge.f32.partialorder %v899_v32, 0.0  ;;  %v1267_v36 = vmul.f32 0.2, %v899_v32 }
 0x10d   : > { %v1298_v38 = vsel %vm1170_vm3, %v768_v22, %v1234_v25  ;;  %v2004_v39 = vpack.c.bf16 %v1301_v34, %v1300_v29  ;;  %v1333_v40 = vsel %vm1205_vm6, %v2239_v28, %v1269_v33  ;;  %v1330_v41 = vsel %vm1202_vm5, %v896_v23, %v1266_v26 }
 0x10e   : > { %v2084_v42 = vpack.c.bf16 %v1333_v40, %v1332_v37  ;;  %v1299_v43 = vsel %vm1171_vm7, %v771_v31, %v1235_v35  ;;  %v1331_v44 = vsel %vm1203_vm8, %v899_v32, %v1267_v36  ;;  %v2210_v45 = vpop.f32.mrb[20].mxu0 }
 0x10f   : > { %v2242_v46 = vpop.f32.mrb[20].mxu1  ;;  %2124 = vst [vmem:[%s2462_s26 + $0x48] sm:$0xff] %v2004_v39   ;;  %v1999_v47 = vpack.c.bf16 %v1299_v43, %v1298_v38  ;;  %v2079_v48 = vpack.c.bf16 %v1331_v44, %v1330_v41  ;;  %vm1176_vm9 = vcmp.ge.f32.partialorder %v2210_v45, 0.0  ;;  %v1240_v49 = vmul.f32 0.2, %v2210_v45  ;;  %v784_v50 = vpop.f32.mrb[21].mxu0 }
 0x110   : > { %v912_v51 = vpop.f32.mrb[21].mxu1  ;;  %2140 = vst [vmem:[%s2462_s26 + $0xc8] sm:$0xff] %v2084_v42   ;;  %vm1208_vm10 = vcmp.ge.f32.partialorder %v2242_v46, 0.0  ;;  %v1272_v52 = vmul.f32 0.2, %v2242_v46  ;;  %v2211_v55 = vpop.f32.mrb[22].mxu0 }
 0x111   : > { %2123 = vst [vmem:[%s2462_s26 + $0x40] sm:$0xff] %v1999_v47   ;;  %2139 = vst [vmem:[%s2462_s26 + $0xc0] sm:$0xff] %v2079_v48   ;;  %v1238_v53 = vmul.f32 0.2, %v784_v50  ;;  %v1270_v54 = vmul.f32 0.2, %v912_v51  ;;  %v1304_v57 = vsel %vm1176_vm9, %v2210_v45, %v1240_v49 }
 0x112   : > { %v2243_v56 = vpop.f32.mrb[22].mxu1  ;;  %vm1174_vm11 = vcmp.ge.f32.partialorder %v784_v50, 0.0  ;;  %vm1177_vm12 = vcmp.ge.f32.partialorder %v2211_v55, 0.0  ;;  %v1241_v58 = vmul.f32 0.2, %v2211_v55  ;;  %v787_v59 = vpop.f32.mrb[23].mxu0  ;;  %v1336_v1 = vsel %vm1208_vm10, %v2242_v46, %v1272_v52 }
 0x113   : > { %v915_v60 = vpop.f32.mrb[23].mxu1  ;;  %vm1206_vm13 = vcmp.ge.f32.partialorder %v912_v51, 0.0  ;;  %vm1209_vm14 = vcmp.ge.f32.partialorder %v2243_v56, 0.0  ;;  %v1273_v61 = vmul.f32 0.2, %v2243_v56  ;;  %vm1175_vm15 = vcmp.ge.f32.partialorder %v787_v59, 0.0 }
 0x114   : > { %v1305_v62 = vsel %vm1177_vm12, %v2211_v55, %v1241_v58  ;;  %v1239_v63 = vmul.f32 0.2, %v787_v59  ;;  %vm1207_vm0 = vcmp.ge.f32.partialorder %v915_v60, 0.0  ;;  %v1271_v0 = vmul.f32 0.2, %v915_v60 }
 0x115   : > { %v1302_v2 = vsel %vm1174_vm11, %v784_v50, %v1238_v53  ;;  %v2014_v3 = vpack.c.bf16 %v1305_v62, %v1304_v57  ;;  %v1337_v4 = vsel %vm1209_vm14, %v2243_v56, %v1273_v61  ;;  %v1334_v5 = vsel %vm1206_vm13, %v912_v51, %v1270_v54 }
 0x116   : > { %v2094_v6 = vpack.c.bf16 %v1337_v4, %v1336_v1  ;;  %v1303_v7 = vsel %vm1175_vm15, %v787_v59, %v1239_v63  ;;  %v1335_v8 = vsel %vm1207_vm0, %v915_v60, %v1271_v0  ;;  %v2214_v9 = vpop.f32.mrb[24].mxu0 }
 0x117   : > { %v2246_v10 = vpop.f32.mrb[24].mxu1  ;;  %2126 = vst [vmem:[%s2462_s26 + $0x58] sm:$0xff] %v2014_v3   ;;  %v2009_v11 = vpack.c.bf16 %v1303_v7, %v1302_v2  ;;  %v2089_v12 = vpack.c.bf16 %v1335_v8, %v1334_v5  ;;  %vm1180_vm1 = vcmp.ge.f32.partialorder %v2214_v9, 0.0  ;;  %v1244_v13 = vmul.f32 0.2, %v2214_v9  ;;  %v800_v14 = vpop.f32.mrb[25].mxu0 }
 0x118   : > { %v928_v15 = vpop.f32.mrb[25].mxu1  ;;  %2142 = vst [vmem:[%s2462_s26 + $0xd8] sm:$0xff] %v2094_v6   ;;  %vm1212_vm2 = vcmp.ge.f32.partialorder %v2246_v10, 0.0  ;;  %v1276_v16 = vmul.f32 0.2, %v2246_v10  ;;  %v2215_v19 = vpop.f32.mrb[26].mxu0 }
 0x119   : > { %2125 = vst [vmem:[%s2462_s26 + $0x50] sm:$0xff] %v2009_v11   ;;  %2141 = vst [vmem:[%s2462_s26 + $0xd0] sm:$0xff] %v2089_v12   ;;  %v1242_v17 = vmul.f32 0.2, %v800_v14  ;;  %v1274_v18 = vmul.f32 0.2, %v928_v15  ;;  %v1308_v21 = vsel %vm1180_vm1, %v2214_v9, %v1244_v13 }
 0x11a   : > { %v2247_v20 = vpop.f32.mrb[26].mxu1  ;;  %vm1178_vm3 = vcmp.ge.f32.partialorder %v800_v14, 0.0  ;;  %vm1181_vm4 = vcmp.ge.f32.partialorder %v2215_v19, 0.0  ;;  %v1245_v22 = vmul.f32 0.2, %v2215_v19  ;;  %v803_v23 = vpop.f32.mrb[27].mxu0  ;;  %v1340_v29 = vsel %vm1212_vm2, %v2246_v10, %v1276_v16 }
 0x11b   : > { %v931_v24 = vpop.f32.mrb[27].mxu1  ;;  %vm1210_vm5 = vcmp.ge.f32.partialorder %v928_v15, 0.0  ;;  %vm1213_vm6 = vcmp.ge.f32.partialorder %v2247_v20, 0.0  ;;  %v1277_v25 = vmul.f32 0.2, %v2247_v20  ;;  %vm1179_vm7 = vcmp.ge.f32.partialorder %v803_v23, 0.0 }
 0x11c   : > { %v1309_v26 = vsel %vm1181_vm4, %v2215_v19, %v1245_v22  ;;  %v1243_v27 = vmul.f32 0.2, %v803_v23  ;;  %vm1211_vm8 = vcmp.ge.f32.partialorder %v931_v24, 0.0  ;;  %v1275_v28 = vmul.f32 0.2, %v931_v24 }
 0x11d   : > { %v1306_v30 = vsel %vm1178_vm3, %v800_v14, %v1242_v17  ;;  %v2024_v31 = vpack.c.bf16 %v1309_v26, %v1308_v21  ;;  %v1341_v32 = vsel %vm1213_vm6, %v2247_v20, %v1277_v25  ;;  %v1338_v33 = vsel %vm1210_vm5, %v928_v15, %v1274_v18 }
 0x11e   : > { %v2104_v34 = vpack.c.bf16 %v1341_v32, %v1340_v29  ;;  %v1307_v35 = vsel %vm1179_vm7, %v803_v23, %v1243_v27  ;;  %v1339_v36 = vsel %vm1211_vm8, %v931_v24, %v1275_v28  ;;  %v2218_v37 = vpop.f32.mrb[28].mxu0 }
 0x11f   : > { %v2250_v38 = vpop.f32.mrb[28].mxu1  ;;  %2128 = vst [vmem:[%s2462_s26 + $0x68] sm:$0xff] %v2024_v31   ;;  %v2019_v39 = vpack.c.bf16 %v1307_v35, %v1306_v30  ;;  %v2099_v40 = vpack.c.bf16 %v1339_v36, %v1338_v33  ;;  %vm1184_vm9 = vcmp.ge.f32.partialorder %v2218_v37, 0.0  ;;  %v1248_v41 = vmul.f32 0.2, %v2218_v37  ;;  %v816_v42 = vpop.f32.mrb[29].mxu0 }
 0x120   : > { %v944_v43 = vpop.f32.mrb[29].mxu1  ;;  %2144 = vst [vmem:[%s2462_s26 + $0xe8] sm:$0xff] %v2104_v34   ;;  %vm1216_vm10 = vcmp.ge.f32.partialorder %v2250_v38, 0.0  ;;  %v1280_v44 = vmul.f32 0.2, %v2250_v38  ;;  %v2219_v47 = vpop.f32.mrb[30].mxu0 }
 0x121   : > { %2127 = vst [vmem:[%s2462_s26 + $0x60] sm:$0xff] %v2019_v39   ;;  %2143 = vst [vmem:[%s2462_s26 + $0xe0] sm:$0xff] %v2099_v40   ;;  %v1246_v45 = vmul.f32 0.2, %v816_v42  ;;  %v1278_v46 = vmul.f32 0.2, %v944_v43  ;;  %v1312_v49 = vsel %vm1184_vm9, %v2218_v37, %v1248_v41 }
 0x122   : > { %v2251_v48 = vpop.f32.mrb[30].mxu1  ;;  %vm1182_vm11 = vcmp.ge.f32.partialorder %v816_v42, 0.0  ;;  %vm1185_vm12 = vcmp.ge.f32.partialorder %v2219_v47, 0.0  ;;  %v1249_v50 = vmul.f32 0.2, %v2219_v47  ;;  %v819_v51 = vpop.f32.mrb[31].mxu0  ;;  %v1344_v57 = vsel %vm1216_vm10, %v2250_v38, %v1280_v44 }
 0x123   : > { %v947_v52 = vpop.f32.mrb[31].mxu1  ;;  %vm1214_vm13 = vcmp.ge.f32.partialorder %v944_v43, 0.0  ;;  %vm1217_vm14 = vcmp.ge.f32.partialorder %v2251_v48, 0.0  ;;  %v1281_v53 = vmul.f32 0.2, %v2251_v48  ;;  %vm1183_vm15 = vcmp.ge.f32.partialorder %v819_v51, 0.0 }
 0x124   : > { %v1313_v54 = vsel %vm1185_vm12, %v2219_v47, %v1249_v50  ;;  %v1247_v55 = vmul.f32 0.2, %v819_v51  ;;  %vm1215_vm0 = vcmp.ge.f32.partialorder %v947_v52, 0.0  ;;  %v1279_v56 = vmul.f32 0.2, %v947_v52 }
 0x125   : > { %v1310_v58 = vsel %vm1182_vm11, %v816_v42, %v1246_v45  ;;  %v2034_v59 = vpack.c.bf16 %v1313_v54, %v1312_v49  ;;  %v1345_v60 = vsel %vm1217_vm14, %v2251_v48, %v1281_v53  ;;  %v1342_v61 = vsel %vm1214_vm13, %v944_v43, %v1278_v46 }
 0x126   : > { %v2114_v62 = vpack.c.bf16 %v1345_v60, %v1344_v57  ;;  %v1311_v63 = vsel %vm1183_vm15, %v819_v51, %v1247_v55  ;;  %v1343_v0 = vsel %vm1215_vm0, %v947_v52, %v1279_v56 }
 0x127   : > { %2130 = vst [vmem:[%s2462_s26 + $0x78] sm:$0xff] %v2034_v59   ;;  %v2029_v1 = vpack.c.bf16 %v1311_v63, %v1310_v58  ;;  %v2109_v2 = vpack.c.bf16 %v1343_v0, %v1342_v61 }
 0x128   : > { %2146 = vst [vmem:[%s2462_s26 + $0xf8] sm:$0xff] %v2114_v62  }
 0x129   : > { %2129 = vst [vmem:[%s2462_s26 + $0x70] sm:$0xff] %v2029_v1   ;;  %2145 = vst [vmem:[%s2462_s26 + $0xf0] sm:$0xff] %v2109_v2  }
 0x12a PF: > { %s12_s11 = sadd.s32 1, %s2339_s11   ;;  %s2515_s9 = smov %s2335_s10 }
 0x12b   : > { %p9_p5 = scmp.ge.s32.totalorder %s12_s11, 6   ;;  %s2516_s10 = smov %s2518_s12 }
 0x12d   :  { %11 = sbr.rel (!%p9_p5) target bundleno = 2 (0x2), region = 69 }

// kernel: encoder_cnn_forward.6
= control target key start
LH: loop header
LB: loop body
LE: loop exit
PB: predicated region body
PF: predicated region fallthrough
CT: control target
= control target key end

     0   :  { %v5446_v0 = vmov 0   ;;  %s8086_s1 = inlined_call_operand.vmem [shape: bf16[1024,128], index: 1, kind: input, shape index: {}]   ;;  %s8087_s0 = inlined_call_operand.vmem [shape: bf16[512,1024], index: 0, kind: input, shape index: {}]   ;;  %s8088_s2 = inlined_call_operand.vmem [shape: f32[1,128], index: 2, kind: input, shape index: {}]   ;;  %s8089_s3 = inlined_call_operand.vmem [shape: f32[1,128], index: 3, kind: input, shape index: {}]   ;;  %s8090_s4 = inlined_call_operand.vmem [shape: bf16[512,128], index: 4, kind: output, shape index: {}]  }
   0x1   :  { %2198 = vmatprep.subr.bf16.mxu1 %v5446_v0  ;;  %2776 = vmatprep.subr.bf16.mxu0 %v5446_v0  ;;  %v5380_v1 = vld [vmem:[%s8086_s1] sm:$0xff]   ;;  %v5382_v3 = vld [vmem:[%s8086_s1 + $0x8] sm:$0xff]   ;;  %v5384_v5 = vld [vmem:[%s8086_s1 + $0x10] sm:$0xff]  }
   0x2   :  { %v5381_v2 = vld [vmem:[%s8086_s1 + $0x100] sm:$0xff]   ;;  %2199 = vmatpush1.bf16.msra.mxu1 %v5380_v1  ;;  %v5383_v4 = vld [vmem:[%s8086_s1 + $0x108] sm:$0xff]   ;;  %v5385_v6 = vld [vmem:[%s8086_s1 + $0x110] sm:$0xff]  }
   0x3   :  { %2777 = vmatpush1.bf16.msra.mxu0 %v5381_v2  ;;  %2200 = vmatprep.subr.bf16.mxu1 %v5446_v0  ;;  %v5386_v7 = vld [vmem:[%s8086_s1 + $0x18] sm:$0xff]   ;;  %v5388_v9 = vld [vmem:[%s8086_s1 + $0x20] sm:$0xff]   ;;  %v5390_v11 = vld [vmem:[%s8086_s1 + $0x28] sm:$0xff]  }
   0x4   :  { %2778 = vmatprep.subr.bf16.mxu0 %v5446_v0  ;;  %v5387_v8 = vld [vmem:[%s8086_s1 + $0x118] sm:$0xff]   ;;  %v5389_v10 = vld [vmem:[%s8086_s1 + $0x120] sm:$0xff]   ;;  %v5391_v12 = vld [vmem:[%s8086_s1 + $0x128] sm:$0xff]  }
   0x5   :  { %v5392_v13 = vld [vmem:[%s8086_s1 + $0x30] sm:$0xff]   ;;  %v5394_v15 = vld [vmem:[%s8086_s1 + $0x38] sm:$0xff]   ;;  %v5396_v17 = vld [vmem:[%s8086_s1 + $0x40] sm:$0xff]  }
   0x6   :  { %2201 = vmatpush1.bf16.msra.mxu1 %v5382_v3  ;;  %v5393_v14 = vld [vmem:[%s8086_s1 + $0x130] sm:$0xff]   ;;  %v5395_v16 = vld [vmem:[%s8086_s1 + $0x138] sm:$0xff]   ;;  %v5397_v18 = vld [vmem:[%s8086_s1 + $0x140] sm:$0xff]  }
   0x7   :  { %2779 = vmatpush1.bf16.msra.mxu0 %v5383_v4  ;;  %2202 = vmatprep.subr.bf16.mxu1 %v5446_v0  ;;  %v5547_v19 = vld [vmem:[%s8087_s0] sm:$0xff]  ;;  %v5557_v21 = vld [vmem:[%s8087_s0 + $0x10] sm:$0xff]  ;;  %v5398_v24 = vld [vmem:[%s8086_s1 + $0x48] sm:$0xff]  }
   0x8   :  { %2780 = vmatprep.subr.bf16.mxu0 %v5446_v0  ;;  %v5552_v20 = vld [vmem:[%s8087_s0 + $0x20] sm:$0xff]  ;;  %v5564_v23 = vld [vmem:[%s8087_s0 + $0x30] sm:$0xff]  ;;  %v5399_v26 = vld [vmem:[%s8086_s1 + $0x148] sm:$0xff]  }
   0x9   :  { %v4421_v22 = vcombine.high %v5547_v19, %v5552_v20  ;;  %v4425_v25 = vcombine.high %v5557_v21, %v5564_v23  ;;  %v5400_v27 = vld [vmem:[%s8086_s1 + $0x50] sm:$0xff]   ;;  %v5402_v29 = vld [vmem:[%s8086_s1 + $0x58] sm:$0xff]   ;;  %v5404_v31 = vld [vmem:[%s8086_s1 + $0x60] sm:$0xff]   ;;  %v4420_v42 = vcombine.low %v5547_v19, %v5552_v20  ;;  %v4424_v44 = vcombine.low %v5557_v21, %v5564_v23 }
   0xa   :  { %2203 = vmatpush1.bf16.msra.mxu1 %v5384_v5  ;;  %v5401_v28 = vld [vmem:[%s8086_s1 + $0x150] sm:$0xff]   ;;  %v5403_v30 = vld [vmem:[%s8086_s1 + $0x158] sm:$0xff]   ;;  %v5405_v32 = vld [vmem:[%s8086_s1 + $0x160] sm:$0xff]  }
   0xb   :  { %2781 = vmatpush1.bf16.msra.mxu0 %v5385_v6  ;;  %2204 = vmatprep.subr.bf16.mxu1 %v5446_v0  ;;  %v5406_v33 = vld [vmem:[%s8086_s1 + $0x68] sm:$0xff]   ;;  %v5408_v35 = vld [vmem:[%s8086_s1 + $0x70] sm:$0xff]   ;;  %v5410_v37 = vld [vmem:[%s8086_s1 + $0x78] sm:$0xff]  }
   0xc   :  { %2782 = vmatprep.subr.bf16.mxu0 %v5446_v0  ;;  %2230 = vmatprep.mubr.bf16.mxu1 %v4421_v22  ;;  %v5407_v34 = vld [vmem:[%s8086_s1 + $0x168] sm:$0xff]   ;;  %v5409_v36 = vld [vmem:[%s8086_s1 + $0x170] sm:$0xff]   ;;  %v5411_v38 = vld [vmem:[%s8086_s1 + $0x178] sm:$0xff]  }
   0xd   :  { %2808 = vmatprep.mubr.bf16.mxu0 %v4425_v25  ;;  %v158_v39 = vld [vmem:[%s8087_s0 + $0x40] sm:$0xff]  ;;  %v160_v41 = vld [vmem:[%s8087_s0 + $0x50] sm:$0xff]  ;;  %v5414_v51 = vld [vmem:[%s8086_s1 + $0x88] sm:$0xff]  }
   0xe   :  { %2205 = vmatpush1.bf16.msra.mxu1 %v5386_v7  ;;  %v162_v40 = vld [vmem:[%s8087_s0 + $0x60] sm:$0xff]  ;;  %v164_v43 = vld [vmem:[%s8087_s0 + $0x70] sm:$0xff]  ;;  %v5415_v52 = vld [vmem:[%s8086_s1 + $0x188] sm:$0xff]  }
   0xf   :  { %2783 = vmatpush1.bf16.msra.mxu0 %v5387_v8  ;;  %2206 = vmatprep.subr.bf16.mxu1 %v5446_v0  ;;  %v5412_v45 = vld [vmem:[%s8086_s1 + $0x80] sm:$0xff]   ;;  %v4429_v47 = vcombine.high %v158_v39, %v162_v40  ;;  %v4433_v48 = vcombine.high %v160_v41, %v164_v43  ;;  %v168_v53 = vld [vmem:[%s8087_s0 + $0x90] sm:$0xff]  ;;  %v4428_v55 = vcombine.low %v158_v39, %v162_v40  ;;  %v5418_v2 = vld [vmem:[%s8086_s1 + $0x98] sm:$0xff]  }
  0x10   :  { %2784 = vmatprep.subr.bf16.mxu0 %v5446_v0  ;;  %v5413_v46 = vld [vmem:[%s8086_s1 + $0x180] sm:$0xff]   ;;  %v172_v54 = vld [vmem:[%s8087_s0 + $0xb0] sm:$0xff]  ;;  %v4432_v56 = vcombine.low %v160_v41, %v164_v43  ;;  %v5419_v3 = vld [vmem:[%s8086_s1 + $0x198] sm:$0xff]  }
  0x11   :  { %v166_v49 = vld [vmem:[%s8087_s0 + $0x80] sm:$0xff]  ;;  %v4441_v58 = vcombine.high %v168_v53, %v172_v54  ;;  %v5416_v59 = vld [vmem:[%s8086_s1 + $0x90] sm:$0xff]   ;;  %v4440_v6 = vcombine.low %v168_v53, %v172_v54  ;;  %v5431_v39 = vld [vmem:[%s8086_s1 + $0x1c8] sm:$0xff]  }
  0x12   :  { %2207 = vmatpush1.bf16.msra.mxu1 %v5388_v9  ;;  %v170_v50 = vld [vmem:[%s8087_s0 + $0xa0] sm:$0xff]  ;;  %v5417_v60 = vld [vmem:[%s8086_s1 + $0x190] sm:$0xff]   ;;  %v5434_v54 = vld [vmem:[%s8086_s1 + $0xd8] sm:$0xff]  }
  0x13   :  { %2785 = vmatpush1.bf16.msra.mxu0 %v5389_v10  ;;  %2208 = vmatprep.subr.bf16.mxu1 %v5446_v0  ;;  %v4437_v57 = vcombine.high %v166_v49, %v170_v50  ;;  %v174_v61 = vld [vmem:[%s8087_s0 + $0xc0] sm:$0xff]  ;;  %v176_v63 = vld [vmem:[%s8087_s0 + $0xd0] sm:$0xff]  ;;  %v4436_v4 = vcombine.low %v166_v49, %v170_v50 }
  0x14   :  { %2786 = vmatprep.subr.bf16.mxu0 %v5446_v0  ;;  %v178_v62 = vld [vmem:[%s8087_s0 + $0xe0] sm:$0xff]  ;;  %v180_v1 = vld [vmem:[%s8087_s0 + $0xf0] sm:$0xff] }
  0x15   :  { %v5420_v5 = vld [vmem:[%s8086_s1 + $0xa0] sm:$0xff]   ;;  %v4445_v7 = vcombine.high %v174_v61, %v178_v62  ;;  %v4449_v9 = vcombine.high %v176_v63, %v180_v1  ;;  %v5424_v20 = vld [vmem:[%s8086_s1 + $0xb0] sm:$0xff]  }
  0x16   :  { %2209 = vmatpush1.bf16.msra.mxu1 %v5390_v11  ;;  %v5421_v8 = vld [vmem:[%s8086_s1 + $0x1a0] sm:$0xff]   ;;  %v5425_v21 = vld [vmem:[%s8086_s1 + $0x1b0] sm:$0xff]  }
  0x17   :  { %2787 = vmatpush1.bf16.msra.mxu0 %v5391_v12  ;;  %2210 = vmatprep.subr.bf16.mxu1 %v5446_v0  ;;  %v182_v10 = vld [vmem:[%s8087_s0 + $0x100] sm:$0xff]  ;;  %v184_v12 = vld [vmem:[%s8087_s0 + $0x110] sm:$0xff] }
  0x18   :  { %2788 = vmatprep.subr.bf16.mxu0 %v5446_v0  ;;  %v186_v11 = vld [vmem:[%s8087_s0 + $0x120] sm:$0xff]  ;;  %v192_v25 = vld [vmem:[%s8087_s0 + $0x150] sm:$0xff] }
  0x19   :  { %v190_v22 = vld [vmem:[%s8087_s0 + $0x140] sm:$0xff]  ;;  %v212_v49 = vld [vmem:[%s8087_s0 + $0x1f0] sm:$0xff] }
  0x1a   :  { %2211 = vmatpush1.bf16.msra.mxu1 %v5392_v13  ;;  %v188_v13 = vld [vmem:[%s8087_s0 + $0x130] sm:$0xff]  ;;  %v194_v23 = vld [vmem:[%s8087_s0 + $0x160] sm:$0xff] }
  0x1b   :  { %2789 = vmatpush1.bf16.msra.mxu0 %v5393_v14  ;;  %2212 = vmatprep.subr.bf16.mxu1 %v5446_v0  ;;  %v5422_v14 = vld [vmem:[%s8086_s1 + $0xa8] sm:$0xff]   ;;  %v4457_v19 = vcombine.high %v184_v12, %v188_v13  ;;  %v4460_v40 = vcombine.low %v190_v22, %v194_v23 }
  0x1c   :  { %2790 = vmatprep.subr.bf16.mxu0 %v5446_v0 }
  0x1e   :  { %2213 = vmatpush1.bf16.msra.mxu1 %v5394_v15  ;;  %v5423_v15 = vld [vmem:[%s8086_s1 + $0x1a8] sm:$0xff]  }
  0x1f   :  { %2791 = vmatpush1.bf16.msra.mxu0 %v5395_v16  ;;  %2214 = vmatprep.subr.bf16.mxu1 %v5446_v0  ;;  %v4444_v16 = vcombine.low %v174_v61, %v178_v62 }
  0x20   :  { %2792 = vmatprep.subr.bf16.mxu0 %v5446_v0 }
  0x22   :  { %2215 = vmatpush1.bf16.msra.mxu1 %v5396_v17  ;;  %v4448_v17 = vcombine.low %v176_v63, %v180_v1  ;;  %v222_v1 = vld [vmem:[%s8087_s0 + $0x240] sm:$0xff] }
  0x23   :  { %2793 = vmatpush1.bf16.msra.mxu0 %v5397_v18  ;;  %2216 = vmatprep.subr.bf16.mxu1 %v5446_v0  ;;  %v4453_v18 = vcombine.high %v182_v10, %v186_v11 }
  0x24   :  { %2794 = vmatprep.subr.bf16.mxu0 %v5446_v0 }
  0x26   :  { %2217 = vmatpush1.bf16.msra.mxu1 %v5398_v24  ;;  %v5426_v24 = vld [vmem:[%s8086_s1 + $0xb8] sm:$0xff]  }
  0x27   :  { %2795 = vmatpush1.bf16.msra.mxu0 %v5399_v26  ;;  %2218 = vmatprep.subr.bf16.mxu1 %v5446_v0  ;;  %v196_v26 = vld [vmem:[%s8087_s0 + $0x170] sm:$0xff] }
  0x28   :  { %2796 = vmatprep.subr.bf16.mxu0 %v5446_v0  ;;  %v4464_v41 = vcombine.low %v192_v25, %v196_v26 }
  0x2a   :  { %2219 = vmatpush1.bf16.msra.mxu1 %v5400_v27  ;;  %v5427_v27 = vld [vmem:[%s8086_s1 + $0x1b8] sm:$0xff]  }
  0x2b   :  { %2797 = vmatpush1.bf16.msra.mxu0 %v5401_v28  ;;  %2220 = vmatprep.subr.bf16.mxu1 %v5446_v0  ;;  %v4452_v28 = vcombine.low %v182_v10, %v186_v11  ;;  %v5437_v10 = vld [vmem:[%s8086_s1 + $0x1e0] sm:$0xff]  }
  0x2c   :  { %2798 = vmatprep.subr.bf16.mxu0 %v5446_v0  ;;  %v230_v11 = vld [vmem:[%s8087_s0 + $0x280] sm:$0xff] }
  0x2e   :  { %2221 = vmatpush1.bf16.msra.mxu1 %v5402_v29  ;;  %v4456_v29 = vcombine.low %v184_v12, %v188_v13  ;;  %v234_v12 = vld [vmem:[%s8087_s0 + $0x2a0] sm:$0xff]  ;;  %v232_v13 = vld [vmem:[%s8087_s0 + $0x290] sm:$0xff] }
  0x2f   :  { %2799 = vmatpush1.bf16.msra.mxu0 %v5403_v30  ;;  %2222 = vmatprep.subr.bf16.mxu1 %v5446_v0  ;;  %v4461_v30 = vcombine.high %v190_v22, %v194_v23  ;;  %v244_v22 = vld [vmem:[%s8087_s0 + $0x2f0] sm:$0xff]  ;;  %v4500_v23 = vcombine.low %v230_v11, %v234_v12 }
  0x30   :  { %2800 = vmatprep.subr.bf16.mxu0 %v5446_v0 }
  0x32   :  { %2223 = vmatpush1.bf16.msra.mxu1 %v5404_v31  ;;  %v4465_v31 = vcombine.high %v192_v25, %v196_v26 }
  0x33   :  { %2801 = vmatpush1.bf16.msra.mxu0 %v5405_v32  ;;  %2224 = vmatprep.subr.bf16.mxu1 %v5446_v0  ;;  %v5428_v32 = vld [vmem:[%s8086_s1 + $0xc0] sm:$0xff]  }
  0x34   :  { %2802 = vmatprep.subr.bf16.mxu0 %v5446_v0 }
  0x36   :  { %2225 = vmatpush1.bf16.msra.mxu1 %v5406_v33  ;;  %v5429_v33 = vld [vmem:[%s8086_s1 + $0x1c0] sm:$0xff]  }
  0x37   :  { %2803 = vmatpush1.bf16.msra.mxu0 %v5407_v34  ;;  %2226 = vmatprep.subr.bf16.mxu1 %v5446_v0  ;;  %v198_v34 = vld [vmem:[%s8087_s0 + $0x180] sm:$0xff] }
  0x38   :  { %2804 = vmatprep.subr.bf16.mxu0 %v5446_v0 }
  0x3a   :  { %2227 = vmatpush1.bf16.msra.mxu1 %v5408_v35  ;;  %v202_v35 = vld [vmem:[%s8087_s0 + $0x1a0] sm:$0xff] }
  0x3b   :  { %2805 = vmatpush1.bf16.msra.mxu0 %v5409_v36  ;;  %2228 = vmatprep.subr.bf16.mxu1 %v5446_v0  ;;  %v5430_v36 = vld [vmem:[%s8086_s1 + $0xc8] sm:$0xff]   ;;  %v4468_v50 = vcombine.low %v198_v34, %v202_v35 }
  0x3c   :  { %2806 = vmatprep.subr.bf16.mxu0 %v5446_v0 }
  0x3e   :  { %2229 = vmatpush1.bf16.msra.mxu1 %v5410_v37  ;;  %v200_v37 = vld [vmem:[%s8087_s0 + $0x190] sm:$0xff] }
  0x3f   :  { %2807 = vmatpush1.bf16.msra.mxu0 %v5411_v38  ;;  %2487 = vmatprep.subr.bf16.mxu1 %v5446_v0  ;;  %v204_v38 = vld [vmem:[%s8087_s0 + $0x1b0] sm:$0xff] }
  0x40   :  { %3065 = vmatprep.subr.bf16.mxu0 %v5446_v0  ;;  %v4473_v43 = vcombine.high %v200_v37, %v204_v38 }
  0x41   :  { %2231 = vmatmul.mubr.bf16.vlgmr.msra.gmra.mrb[0].mxu1 %v4420_v42  ;;  %v4469_v42 = vcombine.high %v198_v34, %v202_v35 }
  0x42   :  { %2809 = vmatmul.mubr.bf16.vlgmr.msra.gmra.mrb[0].mxu0 %v4424_v44  ;;  %2488 = vmatpush1.bf16.msra.mxu1 %v5412_v45  ;;  %v5432_v44 = vld [vmem:[%s8086_s1 + $0xd0] sm:$0xff]  }
  0x43   :  { %3066 = vmatpush1.bf16.msra.mxu0 %v5413_v46  ;;  %2238 = vmatprep.mubr.bf16.mxu1 %v4429_v47  ;;  %v5433_v45 = vld [vmem:[%s8086_s1 + $0x1d0] sm:$0xff]   ;;  %v206_v46 = vld [vmem:[%s8087_s0 + $0x1c0] sm:$0xff] }
  0x44   :  { %2816 = vmatprep.mubr.bf16.mxu0 %v4433_v48  ;;  %2489 = vmatprep.subr.bf16.mxu1 %v5446_v0  ;;  %v210_v47 = vld [vmem:[%s8087_s0 + $0x1e0] sm:$0xff]  ;;  %v208_v48 = vld [vmem:[%s8087_s0 + $0x1d0] sm:$0xff] }
  0x45   :  { %3067 = vmatprep.subr.bf16.mxu0 %v5446_v0  ;;  %v4481_v53 = vcombine.high %v208_v48, %v212_v49  ;;  %v4480_v61 = vcombine.low %v208_v48, %v212_v49  ;;  %v266_v48 = vld [vmem:[%s8087_s0 + $0x3a0] sm:$0xff]  ;;  %v264_v49 = vld [vmem:[%s8087_s0 + $0x390] sm:$0xff] }
  0x46   :  { %2490 = vmatpush1.bf16.msra.mxu1 %v5414_v51  ;;  %v4472_v51 = vcombine.low %v200_v37, %v204_v38  ;;  %v254_v37 = vld [vmem:[%s8087_s0 + $0x340] sm:$0xff] }
  0x47   :  { %3068 = vmatpush1.bf16.msra.mxu0 %v5415_v52  ;;  %2491 = vmatprep.subr.bf16.mxu1 %v5446_v0  ;;  %v4477_v52 = vcombine.high %v206_v46, %v210_v47  ;;  %v258_v38 = vld [vmem:[%s8087_s0 + $0x360] sm:$0xff] }
  0x48   :  { %3069 = vmatprep.subr.bf16.mxu0 %v5446_v0 }
  0x49   :  { %2239 = vmatmul.mubr.bf16.gmra.mrb[4].mxu1 %v4428_v55  ;;  %v5435_v55 = vld [vmem:[%s8086_s1 + $0x1d8] sm:$0xff]  }
  0x4a   :  { %2817 = vmatmul.mubr.bf16.gmra.mrb[4].mxu0 %v4432_v56  ;;  %2246 = vmatprep.mubr.bf16.mxu1 %v4437_v57  ;;  %v214_v56 = vld [vmem:[%s8087_s0 + $0x200] sm:$0xff] }
  0x4b   :  { %2824 = vmatprep.mubr.bf16.mxu0 %v4441_v58  ;;  %2492 = vmatpush1.bf16.msra.mxu1 %v5416_v59  ;;  %v218_v57 = vld [vmem:[%s8087_s0 + $0x220] sm:$0xff]  ;;  %v216_v58 = vld [vmem:[%s8087_s0 + $0x210] sm:$0xff] }
  0x4c   :  { %3070 = vmatpush1.bf16.msra.mxu0 %v5417_v60  ;;  %2493 = vmatprep.subr.bf16.mxu1 %v5446_v0  ;;  %v220_v59 = vld [vmem:[%s8087_s0 + $0x230] sm:$0xff]  ;;  %v4476_v60 = vcombine.low %v206_v46, %v210_v47  ;;  %v4485_v62 = vcombine.high %v214_v56, %v218_v57  ;;  %v262_v47 = vld [vmem:[%s8087_s0 + $0x380] sm:$0xff] }
  0x4d   :  { %3071 = vmatprep.subr.bf16.mxu0 %v5446_v0  ;;  %v4489_v63 = vcombine.high %v216_v58, %v220_v59  ;;  %v5441_v46 = vld [vmem:[%s8086_s1 + $0x1f0] sm:$0xff]  }
  0x4f   :  { %2494 = vmatpush1.bf16.msra.mxu1 %v5418_v2  ;;  %v226_v2 = vld [vmem:[%s8087_s0 + $0x260] sm:$0xff] }
  0x50   :  { %3072 = vmatpush1.bf16.msra.mxu0 %v5419_v3  ;;  %2495 = vmatprep.subr.bf16.mxu1 %v5446_v0  ;;  %v224_v3 = vld [vmem:[%s8087_s0 + $0x250] sm:$0xff] }
  0x51   :  { %2247 = vmatmul.mubr.bf16.gmra.mrb[8].mxu1 %v4436_v4  ;;  %3073 = vmatprep.subr.bf16.mxu0 %v5446_v0  ;;  %v228_v4 = vld [vmem:[%s8087_s0 + $0x270] sm:$0xff] }
  0x52   :  { %2825 = vmatmul.mubr.bf16.gmra.mrb[8].mxu0 %v4440_v6  ;;  %2254 = vmatprep.mubr.bf16.mxu1 %v4445_v7  ;;  %v4488_v6 = vcombine.low %v216_v58, %v220_v59  ;;  %v4493_v7 = vcombine.high %v222_v1, %v226_v2  ;;  %v4532_v58 = vcombine.low %v262_v47, %v266_v48 }
  0x53   :  { %2832 = vmatprep.mubr.bf16.mxu0 %v4449_v9  ;;  %2496 = vmatpush1.bf16.msra.mxu1 %v5420_v5  ;;  %v4484_v5 = vcombine.low %v214_v56, %v218_v57  ;;  %v5436_v9 = vld [vmem:[%s8086_s1 + $0xe0] sm:$0xff]   ;;  %v272_v57 = vld [vmem:[%s8087_s0 + $0x3d0] sm:$0xff] }
  0x54   :  { %3074 = vmatpush1.bf16.msra.mxu0 %v5421_v8  ;;  %2497 = vmatprep.subr.bf16.mxu1 %v5446_v0  ;;  %v4497_v8 = vcombine.high %v224_v3, %v228_v4  ;;  %v274_v56 = vld [vmem:[%s8087_s0 + $0x3e0] sm:$0xff] }
  0x55   :  { %3075 = vmatprep.subr.bf16.mxu0 %v5446_v0 }
  0x57   :  { %2498 = vmatpush1.bf16.msra.mxu1 %v5422_v14  ;;  %v236_v14 = vld [vmem:[%s8087_s0 + $0x2b0] sm:$0xff] }
  0x58   :  { %3076 = vmatpush1.bf16.msra.mxu0 %v5423_v15  ;;  %2499 = vmatprep.subr.bf16.mxu1 %v5446_v0  ;;  %v4492_v15 = vcombine.low %v222_v1, %v226_v2  ;;  %v278_v1 = vld [vmem:[%s8087_s0 + $0x400] sm:$0xff] }
  0x59   :  { %2255 = vmatmul.mubr.bf16.gmra.mrb[12].mxu1 %v4444_v16  ;;  %3077 = vmatprep.subr.bf16.mxu0 %v5446_v0  ;;  %v4496_v16 = vcombine.low %v224_v3, %v228_v4  ;;  %v282_v2 = vld [vmem:[%s8087_s0 + $0x420] sm:$0xff]  ;;  %v280_v3 = vld [vmem:[%s8087_s0 + $0x410] sm:$0xff] }
  0x5a   :  { %2833 = vmatmul.mubr.bf16.gmra.mrb[12].mxu0 %v4448_v17  ;;  %2262 = vmatprep.mubr.bf16.mxu1 %v4453_v18  ;;  %v4501_v17 = vcombine.high %v230_v11, %v234_v12  ;;  %v4505_v18 = vcombine.high %v232_v13, %v236_v14  ;;  %v284_v4 = vld [vmem:[%s8087_s0 + $0x430] sm:$0xff] }
  0x5b   :  { %2840 = vmatprep.mubr.bf16.mxu0 %v4457_v19  ;;  %2500 = vmatpush1.bf16.msra.mxu1 %v5424_v20  ;;  %v238_v19 = vld [vmem:[%s8087_s0 + $0x2c0] sm:$0xff]  ;;  %v288_v11 = vld [vmem:[%s8087_s0 + $0x450] sm:$0xff] }
  0x5c   :  { %3078 = vmatpush1.bf16.msra.mxu0 %v5425_v21  ;;  %2501 = vmatprep.subr.bf16.mxu1 %v5446_v0  ;;  %v242_v20 = vld [vmem:[%s8087_s0 + $0x2e0] sm:$0xff]  ;;  %v240_v21 = vld [vmem:[%s8087_s0 + $0x2d0] sm:$0xff] }
  0x5d   :  { %3079 = vmatprep.subr.bf16.mxu0 %v5446_v0  ;;  %v4509_v25 = vcombine.high %v238_v19, %v242_v20  ;;  %v4513_v26 = vcombine.high %v240_v21, %v244_v22  ;;  %v4512_v34 = vcombine.low %v240_v21, %v244_v22  ;;  %v292_v12 = vld [vmem:[%s8087_s0 + $0x470] sm:$0xff] }
  0x5e   :  { %v4560_v22 = vcombine.low %v288_v11, %v292_v12 }
  0x5f   :  { %2502 = vmatpush1.bf16.msra.mxu1 %v5426_v24  ;;  %v4504_v24 = vcombine.low %v232_v13, %v236_v14  ;;  %v4548_v13 = vcombine.low %v278_v1, %v282_v2  ;;  %v4552_v14 = vcombine.low %v280_v3, %v284_v4 }
  0x60   :  { %3080 = vmatpush1.bf16.msra.mxu0 %v5427_v27  ;;  %2503 = vmatprep.subr.bf16.mxu1 %v5446_v0  ;;  %v5438_v27 = vld [vmem:[%s8086_s1 + $0xe8] sm:$0xff]  }
  0x61   :  { %2263 = vmatmul.mubr.bf16.gmra.mrb[16].mxu1 %v4452_v28  ;;  %3081 = vmatprep.subr.bf16.mxu0 %v5446_v0  ;;  %v5439_v28 = vld [vmem:[%s8086_s1 + $0x1e8] sm:$0xff]  }
  0x62   :  { %2841 = vmatmul.mubr.bf16.gmra.mrb[16].mxu0 %v4456_v29  ;;  %2270 = vmatprep.mubr.bf16.mxu1 %v4461_v30  ;;  %v246_v29 = vld [vmem:[%s8087_s0 + $0x300] sm:$0xff] }
  0x63   :  { %2848 = vmatprep.mubr.bf16.mxu0 %v4465_v31  ;;  %2504 = vmatpush1.bf16.msra.mxu1 %v5428_v32  ;;  %v250_v30 = vld [vmem:[%s8087_s0 + $0x320] sm:$0xff]  ;;  %v248_v31 = vld [vmem:[%s8087_s0 + $0x310] sm:$0xff] }
  0x64   :  { %3082 = vmatpush1.bf16.msra.mxu0 %v5429_v33  ;;  %2505 = vmatprep.subr.bf16.mxu1 %v5446_v0  ;;  %v252_v32 = vld [vmem:[%s8087_s0 + $0x330] sm:$0xff]  ;;  %v4508_v33 = vcombine.low %v238_v19, %v242_v20  ;;  %v4517_v35 = vcombine.high %v246_v29, %v250_v30 }
  0x65   :  { %3083 = vmatprep.subr.bf16.mxu0 %v5446_v0  ;;  %v296_v19 = vld [vmem:[%s8087_s0 + $0x490] sm:$0xff] }
  0x66   :  { %v300_v20 = vld [vmem:[%s8087_s0 + $0x4b0] sm:$0xff] }
  0x67   :  { %2506 = vmatpush1.bf16.msra.mxu1 %v5430_v36  ;;  %v4521_v36 = vcombine.high %v248_v31, %v252_v32 }
  0x68   :  { %3084 = vmatpush1.bf16.msra.mxu0 %v5431_v39  ;;  %2507 = vmatprep.subr.bf16.mxu1 %v5446_v0  ;;  %v256_v39 = vld [vmem:[%s8087_s0 + $0x350] sm:$0xff] }
  0x69   :  { %2271 = vmatmul.mubr.bf16.gmra.mrb[20].mxu1 %v4460_v40  ;;  %3085 = vmatprep.subr.bf16.mxu0 %v5446_v0  ;;  %v260_v40 = vld [vmem:[%s8087_s0 + $0x370] sm:$0xff] }
  0x6a   :  { %2849 = vmatmul.mubr.bf16.gmra.mrb[20].mxu0 %v4464_v41  ;;  %2278 = vmatprep.mubr.bf16.mxu1 %v4469_v42  ;;  %v4516_v41 = vcombine.low %v246_v29, %v250_v30  ;;  %v4520_v42 = vcombine.low %v248_v31, %v252_v32  ;;  %v4568_v30 = vcombine.low %v296_v19, %v300_v20 }
  0x6b   :  { %2856 = vmatprep.mubr.bf16.mxu0 %v4473_v43  ;;  %2508 = vmatpush1.bf16.msra.mxu1 %v5432_v44  ;;  %v4525_v43 = vcombine.high %v254_v37, %v258_v38  ;;  %v4529_v44 = vcombine.high %v256_v39, %v260_v40 }
  0x6c   :  { %3086 = vmatpush1.bf16.msra.mxu0 %v5433_v45  ;;  %2509 = vmatprep.subr.bf16.mxu1 %v5446_v0  ;;  %v5440_v45 = vld [vmem:[%s8086_s1 + $0xf0] sm:$0xff]  }
  0x6d   :  { %3087 = vmatprep.subr.bf16.mxu0 %v5446_v0 }
  0x6f   :  { %2510 = vmatpush1.bf16.msra.mxu1 %v5434_v54 }
  0x70   :  { %3088 = vmatpush1.bf16.msra.mxu0 %v5435_v55  ;;  %2511 = vmatprep.subr.bf16.mxu1 %v5446_v0  ;;  %v270_v55 = vld [vmem:[%s8087_s0 + $0x3c0] sm:$0xff] }
  0x71   :  { %2279 = vmatmul.mubr.bf16.gmra.mrb[24].mxu1 %v4468_v50  ;;  %3089 = vmatprep.subr.bf16.mxu0 %v5446_v0  ;;  %v268_v50 = vld [vmem:[%s8087_s0 + $0x3b0] sm:$0xff] }
  0x72   :  { %2857 = vmatmul.mubr.bf16.gmra.mrb[24].mxu0 %v4472_v51  ;;  %2286 = vmatprep.mubr.bf16.mxu1 %v4477_v52  ;;  %v4524_v51 = vcombine.low %v254_v37, %v258_v38  ;;  %v4528_v52 = vcombine.low %v256_v39, %v260_v40  ;;  %v4537_v54 = vcombine.high %v264_v49, %v268_v50 }
  0x73   :  { %2864 = vmatprep.mubr.bf16.mxu0 %v4481_v53  ;;  %2512 = vmatpush1.bf16.msra.mxu1 %v5436_v9  ;;  %v4533_v53 = vcombine.high %v262_v47, %v266_v48  ;;  %v4536_v59 = vcombine.low %v264_v49, %v268_v50  ;;  %v286_v9 = vld [vmem:[%s8087_s0 + $0x440] sm:$0xff] }
  0x74   :  { %3090 = vmatpush1.bf16.msra.mxu0 %v5437_v10  ;;  %2513 = vmatprep.subr.bf16.mxu1 %v5446_v0  ;;  %v290_v10 = vld [vmem:[%s8087_s0 + $0x460] sm:$0xff] }
  0x75   :  { %3091 = vmatprep.subr.bf16.mxu0 %v5446_v0  ;;  %v4556_v21 = vcombine.low %v286_v9, %v290_v10  ;;  %v326_v49 = vld [vmem:[%s8087_s0 + $0x580] sm:$0xff] }
  0x76   :  { %v330_v50 = vld [vmem:[%s8087_s0 + $0x5a0] sm:$0xff] }
  0x77   :  { %2514 = vmatpush1.bf16.msra.mxu1 %v5438_v27  ;;  %v304_v27 = vld [vmem:[%s8087_s0 + $0x4d0] sm:$0xff] }
  0x78   :  { %3092 = vmatpush1.bf16.msra.mxu0 %v5439_v28  ;;  %2515 = vmatprep.subr.bf16.mxu1 %v5446_v0  ;;  %v308_v28 = vld [vmem:[%s8087_s0 + $0x4f0] sm:$0xff] }
  0x79   :  { %2287 = vmatmul.mubr.bf16.gmra.mrb[28].mxu1 %v4476_v60  ;;  %3093 = vmatprep.subr.bf16.mxu0 %v5446_v0  ;;  %v4541_v60 = vcombine.high %v270_v55, %v274_v56  ;;  %v4577_v32 = vcombine.high %v304_v27, %v308_v28  ;;  %v4576_v38 = vcombine.low %v304_v27, %v308_v28  ;;  %v368_v27 = vld [vmem:[%s8087_s0 + $0x6d0] sm:$0xff] }
  0x7a   :  { %2865 = vmatmul.mubr.bf16.gmra.mrb[28].mxu0 %v4480_v61  ;;  %2294 = vmatprep.mubr.bf16.mxu1 %v4485_v62  ;;  %v5442_v62 = vld [vmem:[%s8086_s1 + $0xf8] sm:$0xff]   ;;  %v372_v28 = vld [vmem:[%s8087_s0 + $0x6f0] sm:$0xff] }
  0x7b   :  { %2872 = vmatprep.mubr.bf16.mxu0 %v4489_v63  ;;  %2516 = vmatpush1.bf16.msra.mxu1 %v5440_v45  ;;  %v5443_v63 = vld [vmem:[%s8086_s1 + $0x1f8] sm:$0xff]  }
  0x7c   :  { %3094 = vmatpush1.bf16.msra.mxu0 %v5441_v46  ;;  %2517 = vmatprep.subr.bf16.mxu1 %v5446_v0 }
  0x7d   :  { %3095 = vmatprep.subr.bf16.mxu0 %v5446_v0  ;;  %v276_v0 = vld [vmem:[%s8087_s0 + $0x3f0] sm:$0xff] }
  0x7e   :  { %v4545_v61 = vcombine.high %v272_v57, %v276_v0 }
  0x7f   :  { %2518 = vmatpush1.bf16.msra.mxu1 %v5442_v62 }
  0x80   :  { %3096 = vmatpush1.bf16.msra.mxu0 %v5443_v63 }
  0x81   :  { %2295 = vmatmul.mubr.bf16.gmra.mrb[32].mxu1 %v4484_v5  ;;  %v4540_v5 = vcombine.low %v270_v55, %v274_v56  ;;  %v4597_v55 = vcombine.high %v326_v49, %v330_v50 }
  0x82   :  { %2873 = vmatmul.mubr.bf16.gmra.mrb[32].mxu0 %v4488_v6  ;;  %2302 = vmatprep.mubr.bf16.mxu1 %v4493_v7  ;;  %v4544_v6 = vcombine.low %v272_v57, %v276_v0  ;;  %v4549_v7 = vcombine.high %v278_v1, %v282_v2  ;;  %v334_v57 = vld [vmem:[%s8087_s0 + $0x5c0] sm:$0xff] }
  0x83   :  { %2880 = vmatprep.mubr.bf16.mxu0 %v4497_v8  ;;  %v4553_v8 = vcombine.high %v280_v3, %v284_v4  ;;  %v338_v0 = vld [vmem:[%s8087_s0 + $0x5e0] sm:$0xff]  ;;  %v344_v3 = vld [vmem:[%s8087_s0 + $0x610] sm:$0xff] }
  0x84   :  { %v4605_v62 = vcombine.high %v334_v57, %v338_v0  ;;  %v342_v1 = vld [vmem:[%s8087_s0 + $0x600] sm:$0xff]  ;;  %v348_v4 = vld [vmem:[%s8087_s0 + $0x630] sm:$0xff] }
  0x85   :  { %v346_v2 = vld [vmem:[%s8087_s0 + $0x620] sm:$0xff] }
  0x89   :  { %2303 = vmatmul.mubr.bf16.gmra.mrb[36].mxu1 %v4492_v15  ;;  %v4557_v15 = vcombine.high %v286_v9, %v290_v10  ;;  %v350_v9 = vld [vmem:[%s8087_s0 + $0x640] sm:$0xff] }
  0x8a   :  { %2881 = vmatmul.mubr.bf16.gmra.mrb[36].mxu0 %v4496_v16  ;;  %2310 = vmatprep.mubr.bf16.mxu1 %v4501_v17  ;;  %v4561_v16 = vcombine.high %v288_v11, %v292_v12  ;;  %v294_v17 = vld [vmem:[%s8087_s0 + $0x480] sm:$0xff]  ;;  %v352_v11 = vld [vmem:[%s8087_s0 + $0x650] sm:$0xff] }
  0x8b   :  { %2888 = vmatprep.mubr.bf16.mxu0 %v4505_v18  ;;  %v298_v18 = vld [vmem:[%s8087_s0 + $0x4a0] sm:$0xff]  ;;  %v356_v12 = vld [vmem:[%s8087_s0 + $0x670] sm:$0xff] }
  0x8c   :  { %v4564_v29 = vcombine.low %v294_v17, %v298_v18  ;;  %v354_v10 = vld [vmem:[%s8087_s0 + $0x660] sm:$0xff] }
  0x91   :  { %2311 = vmatmul.mubr.bf16.gmra.mrb[40].mxu1 %v4500_v23  ;;  %v4565_v23 = vcombine.high %v294_v17, %v298_v18  ;;  %v358_v17 = vld [vmem:[%s8087_s0 + $0x680] sm:$0xff] }
  0x92   :  { %2889 = vmatmul.mubr.bf16.gmra.mrb[40].mxu0 %v4504_v24  ;;  %2318 = vmatprep.mubr.bf16.mxu1 %v4509_v25  ;;  %v4569_v24 = vcombine.high %v296_v19, %v300_v20  ;;  %v302_v25 = vld [vmem:[%s8087_s0 + $0x4c0] sm:$0xff]  ;;  %v360_v19 = vld [vmem:[%s8087_s0 + $0x690] sm:$0xff] }
  0x93   :  { %2896 = vmatprep.mubr.bf16.mxu0 %v4513_v26  ;;  %v306_v26 = vld [vmem:[%s8087_s0 + $0x4e0] sm:$0xff]  ;;  %v364_v20 = vld [vmem:[%s8087_s0 + $0x6b0] sm:$0xff] }
  0x94   :  { %v4573_v31 = vcombine.high %v302_v25, %v306_v26  ;;  %v4572_v37 = vcombine.low %v302_v25, %v306_v26  ;;  %v362_v18 = vld [vmem:[%s8087_s0 + $0x6a0] sm:$0xff] }
  0x95   :  { %v366_v25 = vld [vmem:[%s8087_s0 + $0x6c0] sm:$0xff] }
  0x96   :  { %v370_v26 = vld [vmem:[%s8087_s0 + $0x6e0] sm:$0xff] }
  0x99   :  { %2319 = vmatmul.mubr.bf16.gmra.mrb[44].mxu1 %v4508_v33  ;;  %v310_v33 = vld [vmem:[%s8087_s0 + $0x500] sm:$0xff] }
  0x9a   :  { %2897 = vmatmul.mubr.bf16.gmra.mrb[44].mxu0 %v4512_v34  ;;  %2326 = vmatprep.mubr.bf16.mxu1 %v4517_v35  ;;  %v314_v34 = vld [vmem:[%s8087_s0 + $0x520] sm:$0xff]  ;;  %v312_v35 = vld [vmem:[%s8087_s0 + $0x510] sm:$0xff] }
  0x9b   :  { %2904 = vmatprep.mubr.bf16.mxu0 %v4521_v36  ;;  %v316_v36 = vld [vmem:[%s8087_s0 + $0x530] sm:$0xff]  ;;  %v4581_v39 = vcombine.high %v310_v33, %v314_v34  ;;  %v4580_v45 = vcombine.low %v310_v33, %v314_v34  ;;  %v374_v33 = vld [vmem:[%s8087_s0 + $0x700] sm:$0xff] }
  0x9c   :  { %v4585_v40 = vcombine.high %v312_v35, %v316_v36  ;;  %v4584_v46 = vcombine.low %v312_v35, %v316_v36  ;;  %v378_v34 = vld [vmem:[%s8087_s0 + $0x720] sm:$0xff]  ;;  %v376_v35 = vld [vmem:[%s8087_s0 + $0x710] sm:$0xff] }
  0x9d   :  { %v380_v36 = vld [vmem:[%s8087_s0 + $0x730] sm:$0xff] }
  0xa1   :  { %2327 = vmatmul.mubr.bf16.gmra.mrb[48].mxu1 %v4516_v41  ;;  %v318_v41 = vld [vmem:[%s8087_s0 + $0x540] sm:$0xff] }
  0xa2   :  { %2905 = vmatmul.mubr.bf16.gmra.mrb[48].mxu0 %v4520_v42  ;;  %2334 = vmatprep.mubr.bf16.mxu1 %v4525_v43  ;;  %v322_v42 = vld [vmem:[%s8087_s0 + $0x560] sm:$0xff]  ;;  %v320_v43 = vld [vmem:[%s8087_s0 + $0x550] sm:$0xff] }
  0xa3   :  { %2912 = vmatprep.mubr.bf16.mxu0 %v4529_v44  ;;  %v324_v44 = vld [vmem:[%s8087_s0 + $0x570] sm:$0xff]  ;;  %v4589_v47 = vcombine.high %v318_v41, %v322_v42 }
  0xa4   :  { %v4593_v48 = vcombine.high %v320_v43, %v324_v44 }
  0xa9   :  { %2335 = vmatmul.mubr.bf16.gmra.mrb[52].mxu1 %v4524_v51  ;;  %v328_v51 = vld [vmem:[%s8087_s0 + $0x590] sm:$0xff] }
  0xaa   :  { %2913 = vmatmul.mubr.bf16.gmra.mrb[52].mxu0 %v4528_v52  ;;  %2342 = vmatprep.mubr.bf16.mxu1 %v4533_v53  ;;  %v332_v52 = vld [vmem:[%s8087_s0 + $0x5b0] sm:$0xff]  ;;  %v4588_v53 = vcombine.low %v318_v41, %v322_v42  ;;  %v382_v41 = vld [vmem:[%s8087_s0 + $0x740] sm:$0xff] }
  0xab   :  { %2920 = vmatprep.mubr.bf16.mxu0 %v4537_v54  ;;  %v4592_v54 = vcombine.low %v320_v43, %v324_v44  ;;  %v4601_v56 = vcombine.high %v328_v51, %v332_v52  ;;  %v386_v42 = vld [vmem:[%s8087_s0 + $0x760] sm:$0xff]  ;;  %v384_v43 = vld [vmem:[%s8087_s0 + $0x750] sm:$0xff] }
  0xac   :  { %v388_v44 = vld [vmem:[%s8087_s0 + $0x770] sm:$0xff] }
  0xb1   :  { %2343 = vmatmul.mubr.bf16.gmra.mrb[56].mxu1 %v4532_v58  ;;  %v336_v58 = vld [vmem:[%s8087_s0 + $0x5d0] sm:$0xff] }
  0xb2   :  { %2921 = vmatmul.mubr.bf16.gmra.mrb[56].mxu0 %v4536_v59  ;;  %2350 = vmatprep.mubr.bf16.mxu1 %v4541_v60  ;;  %v340_v59 = vld [vmem:[%s8087_s0 + $0x5f0] sm:$0xff]  ;;  %v4596_v60 = vcombine.low %v326_v49, %v330_v50  ;;  %v390_v49 = vld [vmem:[%s8087_s0 + $0x780] sm:$0xff] }
  0xb3   :  { %2928 = vmatprep.mubr.bf16.mxu0 %v4545_v61  ;;  %v4600_v61 = vcombine.low %v328_v51, %v332_v52  ;;  %v4609_v63 = vcombine.high %v336_v58, %v340_v59  ;;  %v394_v50 = vld [vmem:[%s8087_s0 + $0x7a0] sm:$0xff]  ;;  %v392_v51 = vld [vmem:[%s8087_s0 + $0x790] sm:$0xff] }
  0xb4   :  { %v396_v52 = vld [vmem:[%s8087_s0 + $0x7b0] sm:$0xff] }
  0xb9   :  { %2351 = vmatmul.mubr.bf16.gmra.mrb[60].mxu1 %v4540_v5  ;;  %v4604_v5 = vcombine.low %v334_v57, %v338_v0  ;;  %v398_v57 = vld [vmem:[%s8087_s0 + $0x7c0] sm:$0xff] }
  0xba   :  { %2929 = vmatmul.mubr.bf16.gmra.mrb[60].mxu0 %v4544_v6  ;;  %2358 = vmatprep.mubr.bf16.mxu1 %v4549_v7  ;;  %v4608_v6 = vcombine.low %v336_v58, %v340_v59  ;;  %v4613_v7 = vcombine.high %v342_v1, %v346_v2  ;;  %v402_v0 = vld [vmem:[%s8087_s0 + $0x7e0] sm:$0xff]  ;;  %v400_v58 = vld [vmem:[%s8087_s0 + $0x7d0] sm:$0xff] }
  0xbb   :  { %2936 = vmatprep.mubr.bf16.mxu0 %v4553_v8  ;;  %v4617_v8 = vcombine.high %v344_v3, %v348_v4  ;;  %v404_v59 = vld [vmem:[%s8087_s0 + $0x7f0] sm:$0xff] }
  0xc1   :  { %2359 = vmatmul.mubr.bf16.gmra.mrb[64].mxu1 %v4548_v13  ;;  %v4612_v13 = vcombine.low %v342_v1, %v346_v2  ;;  %v151_v1 = vld [vmem:[%s8087_s0 + $0x8] sm:$0xff] }
  0xc2   :  { %2937 = vmatmul.mubr.bf16.gmra.mrb[64].mxu0 %v4552_v14  ;;  %2366 = vmatprep.mubr.bf16.mxu1 %v4557_v15  ;;  %v4616_v14 = vcombine.low %v344_v3, %v348_v4  ;;  %v4621_v15 = vcombine.high %v350_v9, %v354_v10  ;;  %v155_v2 = vld [vmem:[%s8087_s0 + $0x28] sm:$0xff]  ;;  %v153_v3 = vld [vmem:[%s8087_s0 + $0x18] sm:$0xff] }
  0xc3   :  { %2944 = vmatprep.mubr.bf16.mxu0 %v4561_v16  ;;  %v4625_v16 = vcombine.high %v352_v11, %v356_v12  ;;  %v157_v4 = vld [vmem:[%s8087_s0 + $0x38] sm:$0xff] }
  0xc9   :  { %2367 = vmatmul.mubr.bf16.gmra.mrb[68].mxu1 %v4556_v21  ;;  %v4620_v21 = vcombine.low %v350_v9, %v354_v10  ;;  %v159_v9 = vld [vmem:[%s8087_s0 + $0x48] sm:$0xff] }
  0xca   :  { %2945 = vmatmul.mubr.bf16.gmra.mrb[68].mxu0 %v4560_v22  ;;  %2374 = vmatprep.mubr.bf16.mxu1 %v4565_v23  ;;  %v4624_v22 = vcombine.low %v352_v11, %v356_v12  ;;  %v4629_v23 = vcombine.high %v358_v17, %v362_v18  ;;  %v163_v10 = vld [vmem:[%s8087_s0 + $0x68] sm:$0xff]  ;;  %v161_v11 = vld [vmem:[%s8087_s0 + $0x58] sm:$0xff] }
  0xcb   :  { %2952 = vmatprep.mubr.bf16.mxu0 %v4569_v24  ;;  %v4633_v24 = vcombine.high %v360_v19, %v364_v20  ;;  %v165_v12 = vld [vmem:[%s8087_s0 + $0x78] sm:$0xff] }
  0xd1   :  { %2375 = vmatmul.mubr.bf16.gmra.mrb[72].mxu1 %v4564_v29  ;;  %v4628_v29 = vcombine.low %v358_v17, %v362_v18  ;;  %v167_v17 = vld [vmem:[%s8087_s0 + $0x88] sm:$0xff] }
  0xd2   :  { %2953 = vmatmul.mubr.bf16.gmra.mrb[72].mxu0 %v4568_v30  ;;  %2382 = vmatprep.mubr.bf16.mxu1 %v4573_v31  ;;  %v4632_v30 = vcombine.low %v360_v19, %v364_v20  ;;  %v4637_v31 = vcombine.high %v366_v25, %v370_v26  ;;  %v171_v18 = vld [vmem:[%s8087_s0 + $0xa8] sm:$0xff]  ;;  %v169_v19 = vld [vmem:[%s8087_s0 + $0x98] sm:$0xff] }
  0xd3   :  { %2960 = vmatprep.mubr.bf16.mxu0 %v4577_v32  ;;  %v4641_v32 = vcombine.high %v368_v27, %v372_v28  ;;  %v173_v20 = vld [vmem:[%s8087_s0 + $0xb8] sm:$0xff] }
  0xd9   :  { %2383 = vmatmul.mubr.bf16.gmra.mrb[76].mxu1 %v4572_v37  ;;  %v4636_v37 = vcombine.low %v366_v25, %v370_v26  ;;  %v175_v25 = vld [vmem:[%s8087_s0 + $0xc8] sm:$0xff] }
  0xda   :  { %2961 = vmatmul.mubr.bf16.gmra.mrb[76].mxu0 %v4576_v38  ;;  %2390 = vmatprep.mubr.bf16.mxu1 %v4581_v39  ;;  %v4640_v38 = vcombine.low %v368_v27, %v372_v28  ;;  %v4645_v39 = vcombine.high %v374_v33, %v378_v34  ;;  %v179_v26 = vld [vmem:[%s8087_s0 + $0xe8] sm:$0xff]  ;;  %v177_v27 = vld [vmem:[%s8087_s0 + $0xd8] sm:$0xff] }
  0xdb   :  { %2968 = vmatprep.mubr.bf16.mxu0 %v4585_v40  ;;  %v4649_v40 = vcombine.high %v376_v35, %v380_v36  ;;  %v181_v28 = vld [vmem:[%s8087_s0 + $0xf8] sm:$0xff] }
  0xe1   :  { %2391 = vmatmul.mubr.bf16.gmra.mrb[80].mxu1 %v4580_v45  ;;  %v4644_v45 = vcombine.low %v374_v33, %v378_v34  ;;  %v183_v33 = vld [vmem:[%s8087_s0 + $0x108] sm:$0xff] }
  0xe2   :  { %2969 = vmatmul.mubr.bf16.gmra.mrb[80].mxu0 %v4584_v46  ;;  %2398 = vmatprep.mubr.bf16.mxu1 %v4589_v47  ;;  %v4648_v46 = vcombine.low %v376_v35, %v380_v36  ;;  %v4653_v47 = vcombine.high %v382_v41, %v386_v42  ;;  %v187_v34 = vld [vmem:[%s8087_s0 + $0x128] sm:$0xff]  ;;  %v185_v35 = vld [vmem:[%s8087_s0 + $0x118] sm:$0xff] }
  0xe3   :  { %2976 = vmatprep.mubr.bf16.mxu0 %v4593_v48  ;;  %v4657_v48 = vcombine.high %v384_v43, %v388_v44  ;;  %v189_v36 = vld [vmem:[%s8087_s0 + $0x138] sm:$0xff] }
  0xe9   :  { %2399 = vmatmul.mubr.bf16.gmra.mrb[84].mxu1 %v4588_v53  ;;  %v4652_v53 = vcombine.low %v382_v41, %v386_v42  ;;  %v191_v41 = vld [vmem:[%s8087_s0 + $0x148] sm:$0xff] }
  0xea   :  { %2977 = vmatmul.mubr.bf16.gmra.mrb[84].mxu0 %v4592_v54  ;;  %2406 = vmatprep.mubr.bf16.mxu1 %v4597_v55  ;;  %v4656_v54 = vcombine.low %v384_v43, %v388_v44  ;;  %v4661_v55 = vcombine.high %v390_v49, %v394_v50  ;;  %v195_v42 = vld [vmem:[%s8087_s0 + $0x168] sm:$0xff]  ;;  %v193_v43 = vld [vmem:[%s8087_s0 + $0x158] sm:$0xff] }
  0xeb   :  { %2984 = vmatprep.mubr.bf16.mxu0 %v4601_v56  ;;  %v4665_v56 = vcombine.high %v392_v51, %v396_v52  ;;  %v197_v44 = vld [vmem:[%s8087_s0 + $0x178] sm:$0xff] }
  0xf1   :  { %2407 = vmatmul.mubr.bf16.gmra.mrb[88].mxu1 %v4596_v60  ;;  %v4660_v60 = vcombine.low %v390_v49, %v394_v50  ;;  %v199_v49 = vld [vmem:[%s8087_s0 + $0x188] sm:$0xff] }
  0xf2   :  { %2985 = vmatmul.mubr.bf16.gmra.mrb[88].mxu0 %v4600_v61  ;;  %2414 = vmatprep.mubr.bf16.mxu1 %v4605_v62  ;;  %v4664_v61 = vcombine.low %v392_v51, %v396_v52  ;;  %v4669_v62 = vcombine.high %v398_v57, %v402_v0  ;;  %v203_v50 = vld [vmem:[%s8087_s0 + $0x1a8] sm:$0xff]  ;;  %v201_v51 = vld [vmem:[%s8087_s0 + $0x198] sm:$0xff] }
  0xf3   :  { %2992 = vmatprep.mubr.bf16.mxu0 %v4609_v63  ;;  %v4673_v63 = vcombine.high %v400_v58, %v404_v59  ;;  %v205_v52 = vld [vmem:[%s8087_s0 + $0x1b8] sm:$0xff] }
  0xf9   :  { %2415 = vmatmul.mubr.bf16.gmra.mrb[92].mxu1 %v4604_v5  ;;  %v4668_v5 = vcombine.low %v398_v57, %v402_v0  ;;  %v207_v57 = vld [vmem:[%s8087_s0 + $0x1c8] sm:$0xff] }
  0xfa   :  { %2993 = vmatmul.mubr.bf16.gmra.mrb[92].mxu0 %v4608_v6  ;;  %2422 = vmatprep.mubr.bf16.mxu1 %v4613_v7  ;;  %v4672_v6 = vcombine.low %v400_v58, %v404_v59  ;;  %v4423_v7 = vcombine.high %v151_v1, %v155_v2  ;;  %v211_v0 = vld [vmem:[%s8087_s0 + $0x1e8] sm:$0xff]  ;;  %v209_v58 = vld [vmem:[%s8087_s0 + $0x1d8] sm:$0xff] }
  0xfb   :  { %3000 = vmatprep.mubr.bf16.mxu0 %v4617_v8  ;;  %v4427_v8 = vcombine.high %v153_v3, %v157_v4  ;;  %v213_v59 = vld [vmem:[%s8087_s0 + $0x1f8] sm:$0xff] }
 0x101   :  { %2423 = vmatmul.mubr.bf16.gmra.mrb[96].mxu1 %v4612_v13  ;;  %v4422_v13 = vcombine.low %v151_v1, %v155_v2  ;;  %v215_v1 = vld [vmem:[%s8087_s0 + $0x208] sm:$0xff] }
 0x102   :  { %3001 = vmatmul.mubr.bf16.gmra.mrb[96].mxu0 %v4616_v14  ;;  %2430 = vmatprep.mubr.bf16.mxu1 %v4621_v15  ;;  %v4426_v14 = vcombine.low %v153_v3, %v157_v4  ;;  %v4431_v15 = vcombine.high %v159_v9, %v163_v10  ;;  %v219_v2 = vld [vmem:[%s8087_s0 + $0x228] sm:$0xff]  ;;  %v217_v3 = vld [vmem:[%s8087_s0 + $0x218] sm:$0xff] }
 0x103   :  { %3008 = vmatprep.mubr.bf16.mxu0 %v4625_v16  ;;  %v4435_v16 = vcombine.high %v161_v11, %v165_v12  ;;  %v221_v4 = vld [vmem:[%s8087_s0 + $0x238] sm:$0xff] }
 0x109   :  { %2431 = vmatmul.mubr.bf16.gmra.mrb[100].mxu1 %v4620_v21  ;;  %v4430_v21 = vcombine.low %v159_v9, %v163_v10  ;;  %v223_v9 = vld [vmem:[%s8087_s0 + $0x248] sm:$0xff] }
 0x10a   :  { %3009 = vmatmul.mubr.bf16.gmra.mrb[100].mxu0 %v4624_v22  ;;  %2438 = vmatprep.mubr.bf16.mxu1 %v4629_v23  ;;  %v4434_v22 = vcombine.low %v161_v11, %v165_v12  ;;  %v4439_v23 = vcombine.high %v167_v17, %v171_v18  ;;  %v227_v10 = vld [vmem:[%s8087_s0 + $0x268] sm:$0xff]  ;;  %v225_v11 = vld [vmem:[%s8087_s0 + $0x258] sm:$0xff] }
 0x10b   :  { %3016 = vmatprep.mubr.bf16.mxu0 %v4633_v24  ;;  %v4443_v24 = vcombine.high %v169_v19, %v173_v20  ;;  %v229_v12 = vld [vmem:[%s8087_s0 + $0x278] sm:$0xff] }
 0x111   :  { %2439 = vmatmul.mubr.bf16.gmra.mrb[104].mxu1 %v4628_v29  ;;  %v4438_v29 = vcombine.low %v167_v17, %v171_v18  ;;  %v231_v17 = vld [vmem:[%s8087_s0 + $0x288] sm:$0xff] }
 0x112   :  { %3017 = vmatmul.mubr.bf16.gmra.mrb[104].mxu0 %v4632_v30  ;;  %2446 = vmatprep.mubr.bf16.mxu1 %v4637_v31  ;;  %v4442_v30 = vcombine.low %v169_v19, %v173_v20  ;;  %v4447_v31 = vcombine.high %v175_v25, %v179_v26  ;;  %v235_v18 = vld [vmem:[%s8087_s0 + $0x2a8] sm:$0xff]  ;;  %v233_v19 = vld [vmem:[%s8087_s0 + $0x298] sm:$0xff] }
 0x113   :  { %3024 = vmatprep.mubr.bf16.mxu0 %v4641_v32  ;;  %v4451_v32 = vcombine.high %v177_v27, %v181_v28  ;;  %v237_v20 = vld [vmem:[%s8087_s0 + $0x2b8] sm:$0xff] }
 0x119   :  { %2447 = vmatmul.mubr.bf16.gmra.mrb[108].mxu1 %v4636_v37  ;;  %v4446_v37 = vcombine.low %v175_v25, %v179_v26  ;;  %v239_v25 = vld [vmem:[%s8087_s0 + $0x2c8] sm:$0xff] }
 0x11a   :  { %3025 = vmatmul.mubr.bf16.gmra.mrb[108].mxu0 %v4640_v38  ;;  %2454 = vmatprep.mubr.bf16.mxu1 %v4645_v39  ;;  %v4450_v38 = vcombine.low %v177_v27, %v181_v28  ;;  %v4455_v39 = vcombine.high %v183_v33, %v187_v34  ;;  %v243_v26 = vld [vmem:[%s8087_s0 + $0x2e8] sm:$0xff]  ;;  %v241_v27 = vld [vmem:[%s8087_s0 + $0x2d8] sm:$0xff] }
 0x11b   :  { %3032 = vmatprep.mubr.bf16.mxu0 %v4649_v40  ;;  %v4459_v40 = vcombine.high %v185_v35, %v189_v36  ;;  %v245_v28 = vld [vmem:[%s8087_s0 + $0x2f8] sm:$0xff] }
 0x121   :  { %2455 = vmatmul.mubr.bf16.gmra.mrb[112].mxu1 %v4644_v45  ;;  %v4454_v45 = vcombine.low %v183_v33, %v187_v34  ;;  %v247_v33 = vld [vmem:[%s8087_s0 + $0x308] sm:$0xff] }
 0x122   :  { %3033 = vmatmul.mubr.bf16.gmra.mrb[112].mxu0 %v4648_v46  ;;  %2462 = vmatprep.mubr.bf16.mxu1 %v4653_v47  ;;  %v4458_v46 = vcombine.low %v185_v35, %v189_v36  ;;  %v4463_v47 = vcombine.high %v191_v41, %v195_v42  ;;  %v251_v34 = vld [vmem:[%s8087_s0 + $0x328] sm:$0xff]  ;;  %v249_v35 = vld [vmem:[%s8087_s0 + $0x318] sm:$0xff] }
 0x123   :  { %3040 = vmatprep.mubr.bf16.mxu0 %v4657_v48  ;;  %v4467_v48 = vcombine.high %v193_v43, %v197_v44  ;;  %v253_v36 = vld [vmem:[%s8087_s0 + $0x338] sm:$0xff] }
 0x129   :  { %2463 = vmatmul.mubr.bf16.gmra.mrb[116].mxu1 %v4652_v53  ;;  %v4462_v53 = vcombine.low %v191_v41, %v195_v42  ;;  %v255_v41 = vld [vmem:[%s8087_s0 + $0x348] sm:$0xff] }
 0x12a   :  { %3041 = vmatmul.mubr.bf16.gmra.mrb[116].mxu0 %v4656_v54  ;;  %2470 = vmatprep.mubr.bf16.mxu1 %v4661_v55  ;;  %v4466_v54 = vcombine.low %v193_v43, %v197_v44  ;;  %v4471_v55 = vcombine.high %v199_v49, %v203_v50  ;;  %v259_v42 = vld [vmem:[%s8087_s0 + $0x368] sm:$0xff]  ;;  %v257_v43 = vld [vmem:[%s8087_s0 + $0x358] sm:$0xff] }
 0x12b   :  { %3048 = vmatprep.mubr.bf16.mxu0 %v4665_v56  ;;  %v4475_v56 = vcombine.high %v201_v51, %v205_v52  ;;  %v261_v44 = vld [vmem:[%s8087_s0 + $0x378] sm:$0xff] }
 0x131   :  { %2471 = vmatmul.mubr.bf16.gmra.mrb[120].mxu1 %v4660_v60  ;;  %v4470_v60 = vcombine.low %v199_v49, %v203_v50  ;;  %v263_v49 = vld [vmem:[%s8087_s0 + $0x388] sm:$0xff] }
 0x132   :  { %3049 = vmatmul.mubr.bf16.gmra.mrb[120].mxu0 %v4664_v61  ;;  %2478 = vmatprep.mubr.bf16.mxu1 %v4669_v62  ;;  %v4474_v61 = vcombine.low %v201_v51, %v205_v52  ;;  %v4479_v62 = vcombine.high %v207_v57, %v211_v0  ;;  %v267_v50 = vld [vmem:[%s8087_s0 + $0x3a8] sm:$0xff]  ;;  %v265_v51 = vld [vmem:[%s8087_s0 + $0x398] sm:$0xff] }
 0x133   :  { %3056 = vmatprep.mubr.bf16.mxu0 %v4673_v63  ;;  %v4483_v63 = vcombine.high %v209_v58, %v213_v59  ;;  %v269_v52 = vld [vmem:[%s8087_s0 + $0x3b8] sm:$0xff] }
 0x139   :  { %2479 = vmatmul.mubr.bf16.gmra.mrb[124].mxu1 %v4668_v5  ;;  %v4478_v5 = vcombine.low %v207_v57, %v211_v0  ;;  %v271_v57 = vld [vmem:[%s8087_s0 + $0x3c8] sm:$0xff] }
 0x13a   :  { %3057 = vmatmul.mubr.bf16.gmra.mrb[124].mxu0 %v4672_v6  ;;  %2519 = vmatprep.mubr.bf16.mxu1 %v4423_v7  ;;  %v4482_v6 = vcombine.low %v209_v58, %v213_v59  ;;  %v4487_v7 = vcombine.high %v215_v1, %v219_v2  ;;  %v275_v0 = vld [vmem:[%s8087_s0 + $0x3e8] sm:$0xff]  ;;  %v273_v58 = vld [vmem:[%s8087_s0 + $0x3d8] sm:$0xff] }
 0x13b   :  { %3097 = vmatprep.mubr.bf16.mxu0 %v4427_v8  ;;  %v4491_v8 = vcombine.high %v217_v3, %v221_v4  ;;  %v277_v59 = vld [vmem:[%s8087_s0 + $0x3f8] sm:$0xff] }
 0x141   :  { %2520 = vmatmul.mubr.bf16.vlgmr.msra.gmra.mrb[0].mxu1 %v4422_v13  ;;  %v4486_v13 = vcombine.low %v215_v1, %v219_v2  ;;  %v279_v1 = vld [vmem:[%s8087_s0 + $0x408] sm:$0xff] }
 0x142   :  { %3098 = vmatmul.mubr.bf16.vlgmr.msra.gmra.mrb[0].mxu0 %v4426_v14  ;;  %2527 = vmatprep.mubr.bf16.mxu1 %v4431_v15  ;;  %v4490_v14 = vcombine.low %v217_v3, %v221_v4  ;;  %v4495_v15 = vcombine.high %v223_v9, %v227_v10  ;;  %v283_v2 = vld [vmem:[%s8087_s0 + $0x428] sm:$0xff]  ;;  %v281_v3 = vld [vmem:[%s8087_s0 + $0x418] sm:$0xff] }
 0x143   :  { %3105 = vmatprep.mubr.bf16.mxu0 %v4435_v16  ;;  %v4499_v16 = vcombine.high %v225_v11, %v229_v12  ;;  %v285_v4 = vld [vmem:[%s8087_s0 + $0x438] sm:$0xff] }
 0x149   :  { %2528 = vmatmul.mubr.bf16.gmra.mrb[4].mxu1 %v4430_v21  ;;  %v4494_v21 = vcombine.low %v223_v9, %v227_v10  ;;  %v287_v9 = vld [vmem:[%s8087_s0 + $0x448] sm:$0xff] }
 0x14a   :  { %3106 = vmatmul.mubr.bf16.gmra.mrb[4].mxu0 %v4434_v22  ;;  %2535 = vmatprep.mubr.bf16.mxu1 %v4439_v23  ;;  %v4498_v22 = vcombine.low %v225_v11, %v229_v12  ;;  %v4503_v23 = vcombine.high %v231_v17, %v235_v18  ;;  %v291_v10 = vld [vmem:[%s8087_s0 + $0x468] sm:$0xff]  ;;  %v289_v11 = vld [vmem:[%s8087_s0 + $0x458] sm:$0xff] }
 0x14b   :  { %3113 = vmatprep.mubr.bf16.mxu0 %v4443_v24  ;;  %v4507_v24 = vcombine.high %v233_v19, %v237_v20  ;;  %v293_v12 = vld [vmem:[%s8087_s0 + $0x478] sm:$0xff] }
 0x151   :  { %2536 = vmatmul.mubr.bf16.gmra.mrb[8].mxu1 %v4438_v29  ;;  %v4502_v29 = vcombine.low %v231_v17, %v235_v18  ;;  %v295_v17 = vld [vmem:[%s8087_s0 + $0x488] sm:$0xff] }
 0x152   :  { %3114 = vmatmul.mubr.bf16.gmra.mrb[8].mxu0 %v4442_v30  ;;  %2543 = vmatprep.mubr.bf16.mxu1 %v4447_v31  ;;  %v4506_v30 = vcombine.low %v233_v19, %v237_v20  ;;  %v4511_v31 = vcombine.high %v239_v25, %v243_v26  ;;  %v299_v18 = vld [vmem:[%s8087_s0 + $0x4a8] sm:$0xff]  ;;  %v297_v19 = vld [vmem:[%s8087_s0 + $0x498] sm:$0xff] }
 0x153   :  { %3121 = vmatprep.mubr.bf16.mxu0 %v4451_v32  ;;  %v4515_v32 = vcombine.high %v241_v27, %v245_v28  ;;  %v301_v20 = vld [vmem:[%s8087_s0 + $0x4b8] sm:$0xff] }
 0x159   :  { %2544 = vmatmul.mubr.bf16.gmra.mrb[12].mxu1 %v4446_v37  ;;  %v4510_v37 = vcombine.low %v239_v25, %v243_v26  ;;  %v303_v25 = vld [vmem:[%s8087_s0 + $0x4c8] sm:$0xff] }
 0x15a   :  { %3122 = vmatmul.mubr.bf16.gmra.mrb[12].mxu0 %v4450_v38  ;;  %2551 = vmatprep.mubr.bf16.mxu1 %v4455_v39  ;;  %v4514_v38 = vcombine.low %v241_v27, %v245_v28  ;;  %v4519_v39 = vcombine.high %v247_v33, %v251_v34  ;;  %v307_v26 = vld [vmem:[%s8087_s0 + $0x4e8] sm:$0xff]  ;;  %v305_v27 = vld [vmem:[%s8087_s0 + $0x4d8] sm:$0xff] }
 0x15b   :  { %3129 = vmatprep.mubr.bf16.mxu0 %v4459_v40  ;;  %v4523_v40 = vcombine.high %v249_v35, %v253_v36  ;;  %v309_v28 = vld [vmem:[%s8087_s0 + $0x4f8] sm:$0xff] }
 0x161   :  { %2552 = vmatmul.mubr.bf16.gmra.mrb[16].mxu1 %v4454_v45  ;;  %v4518_v45 = vcombine.low %v247_v33, %v251_v34  ;;  %v311_v33 = vld [vmem:[%s8087_s0 + $0x508] sm:$0xff] }
 0x162   :  { %3130 = vmatmul.mubr.bf16.gmra.mrb[16].mxu0 %v4458_v46  ;;  %2559 = vmatprep.mubr.bf16.mxu1 %v4463_v47  ;;  %v4522_v46 = vcombine.low %v249_v35, %v253_v36  ;;  %v4527_v47 = vcombine.high %v255_v41, %v259_v42  ;;  %v315_v34 = vld [vmem:[%s8087_s0 + $0x528] sm:$0xff]  ;;  %v313_v35 = vld [vmem:[%s8087_s0 + $0x518] sm:$0xff] }
 0x163   :  { %3137 = vmatprep.mubr.bf16.mxu0 %v4467_v48  ;;  %v4531_v48 = vcombine.high %v257_v43, %v261_v44  ;;  %v317_v36 = vld [vmem:[%s8087_s0 + $0x538] sm:$0xff] }
 0x169   :  { %2560 = vmatmul.mubr.bf16.gmra.mrb[20].mxu1 %v4462_v53  ;;  %v4526_v53 = vcombine.low %v255_v41, %v259_v42  ;;  %v319_v41 = vld [vmem:[%s8087_s0 + $0x548] sm:$0xff] }
 0x16a   :  { %3138 = vmatmul.mubr.bf16.gmra.mrb[20].mxu0 %v4466_v54  ;;  %2567 = vmatprep.mubr.bf16.mxu1 %v4471_v55  ;;  %v4530_v54 = vcombine.low %v257_v43, %v261_v44  ;;  %v4535_v55 = vcombine.high %v263_v49, %v267_v50  ;;  %v323_v42 = vld [vmem:[%s8087_s0 + $0x568] sm:$0xff]  ;;  %v321_v43 = vld [vmem:[%s8087_s0 + $0x558] sm:$0xff] }
 0x16b   :  { %3145 = vmatprep.mubr.bf16.mxu0 %v4475_v56  ;;  %v4539_v56 = vcombine.high %v265_v51, %v269_v52  ;;  %v325_v44 = vld [vmem:[%s8087_s0 + $0x578] sm:$0xff] }
 0x171   :  { %2568 = vmatmul.mubr.bf16.gmra.mrb[24].mxu1 %v4470_v60  ;;  %v4534_v60 = vcombine.low %v263_v49, %v267_v50  ;;  %v327_v49 = vld [vmem:[%s8087_s0 + $0x588] sm:$0xff] }
 0x172   :  { %3146 = vmatmul.mubr.bf16.gmra.mrb[24].mxu0 %v4474_v61  ;;  %2575 = vmatprep.mubr.bf16.mxu1 %v4479_v62  ;;  %v4538_v61 = vcombine.low %v265_v51, %v269_v52  ;;  %v4543_v62 = vcombine.high %v271_v57, %v275_v0  ;;  %v331_v50 = vld [vmem:[%s8087_s0 + $0x5a8] sm:$0xff]  ;;  %v329_v51 = vld [vmem:[%s8087_s0 + $0x598] sm:$0xff] }
 0x173   :  { %3153 = vmatprep.mubr.bf16.mxu0 %v4483_v63  ;;  %v4547_v63 = vcombine.high %v273_v58, %v277_v59  ;;  %v333_v52 = vld [vmem:[%s8087_s0 + $0x5b8] sm:$0xff] }
 0x179   :  { %2576 = vmatmul.mubr.bf16.gmra.mrb[28].mxu1 %v4478_v5  ;;  %v4542_v5 = vcombine.low %v271_v57, %v275_v0  ;;  %v335_v57 = vld [vmem:[%s8087_s0 + $0x5c8] sm:$0xff] }
 0x17a   :  { %3154 = vmatmul.mubr.bf16.gmra.mrb[28].mxu0 %v4482_v6  ;;  %2583 = vmatprep.mubr.bf16.mxu1 %v4487_v7  ;;  %v4546_v6 = vcombine.low %v273_v58, %v277_v59  ;;  %v4551_v7 = vcombine.high %v279_v1, %v283_v2  ;;  %v339_v0 = vld [vmem:[%s8087_s0 + $0x5e8] sm:$0xff]  ;;  %v337_v58 = vld [vmem:[%s8087_s0 + $0x5d8] sm:$0xff] }
 0x17b   :  { %3161 = vmatprep.mubr.bf16.mxu0 %v4491_v8  ;;  %v4555_v8 = vcombine.high %v281_v3, %v285_v4  ;;  %v341_v59 = vld [vmem:[%s8087_s0 + $0x5f8] sm:$0xff] }
 0x181   :  { %2584 = vmatmul.mubr.bf16.gmra.mrb[32].mxu1 %v4486_v13  ;;  %v4550_v13 = vcombine.low %v279_v1, %v283_v2  ;;  %v343_v1 = vld [vmem:[%s8087_s0 + $0x608] sm:$0xff] }
 0x182   :  { %3162 = vmatmul.mubr.bf16.gmra.mrb[32].mxu0 %v4490_v14  ;;  %2591 = vmatprep.mubr.bf16.mxu1 %v4495_v15  ;;  %v4554_v14 = vcombine.low %v281_v3, %v285_v4  ;;  %v4559_v15 = vcombine.high %v287_v9, %v291_v10  ;;  %v347_v2 = vld [vmem:[%s8087_s0 + $0x628] sm:$0xff]  ;;  %v345_v3 = vld [vmem:[%s8087_s0 + $0x618] sm:$0xff] }
 0x183   :  { %3169 = vmatprep.mubr.bf16.mxu0 %v4499_v16  ;;  %v4563_v16 = vcombine.high %v289_v11, %v293_v12  ;;  %v349_v4 = vld [vmem:[%s8087_s0 + $0x638] sm:$0xff] }
 0x189   :  { %2592 = vmatmul.mubr.bf16.gmra.mrb[36].mxu1 %v4494_v21  ;;  %v4558_v21 = vcombine.low %v287_v9, %v291_v10  ;;  %v351_v9 = vld [vmem:[%s8087_s0 + $0x648] sm:$0xff] }
 0x18a   :  { %3170 = vmatmul.mubr.bf16.gmra.mrb[36].mxu0 %v4498_v22  ;;  %2599 = vmatprep.mubr.bf16.mxu1 %v4503_v23  ;;  %v4562_v22 = vcombine.low %v289_v11, %v293_v12  ;;  %v4567_v23 = vcombine.high %v295_v17, %v299_v18  ;;  %v355_v10 = vld [vmem:[%s8087_s0 + $0x668] sm:$0xff]  ;;  %v353_v11 = vld [vmem:[%s8087_s0 + $0x658] sm:$0xff] }
 0x18b   :  { %3177 = vmatprep.mubr.bf16.mxu0 %v4507_v24  ;;  %v4571_v24 = vcombine.high %v297_v19, %v301_v20  ;;  %v357_v12 = vld [vmem:[%s8087_s0 + $0x678] sm:$0xff] }
 0x191   :  { %2600 = vmatmul.mubr.bf16.gmra.mrb[40].mxu1 %v4502_v29  ;;  %v4566_v29 = vcombine.low %v295_v17, %v299_v18  ;;  %v359_v17 = vld [vmem:[%s8087_s0 + $0x688] sm:$0xff] }
 0x192   :  { %3178 = vmatmul.mubr.bf16.gmra.mrb[40].mxu0 %v4506_v30  ;;  %2607 = vmatprep.mubr.bf16.mxu1 %v4511_v31  ;;  %v4570_v30 = vcombine.low %v297_v19, %v301_v20  ;;  %v4575_v31 = vcombine.high %v303_v25, %v307_v26  ;;  %v363_v18 = vld [vmem:[%s8087_s0 + $0x6a8] sm:$0xff]  ;;  %v361_v19 = vld [vmem:[%s8087_s0 + $0x698] sm:$0xff] }
 0x193   :  { %3185 = vmatprep.mubr.bf16.mxu0 %v4515_v32  ;;  %v4579_v32 = vcombine.high %v305_v27, %v309_v28  ;;  %v365_v20 = vld [vmem:[%s8087_s0 + $0x6b8] sm:$0xff] }
 0x199   :  { %2608 = vmatmul.mubr.bf16.gmra.mrb[44].mxu1 %v4510_v37  ;;  %v4574_v37 = vcombine.low %v303_v25, %v307_v26  ;;  %v367_v25 = vld [vmem:[%s8087_s0 + $0x6c8] sm:$0xff] }
 0x19a   :  { %3186 = vmatmul.mubr.bf16.gmra.mrb[44].mxu0 %v4514_v38  ;;  %2615 = vmatprep.mubr.bf16.mxu1 %v4519_v39  ;;  %v4578_v38 = vcombine.low %v305_v27, %v309_v28  ;;  %v4583_v39 = vcombine.high %v311_v33, %v315_v34  ;;  %v371_v26 = vld [vmem:[%s8087_s0 + $0x6e8] sm:$0xff]  ;;  %v369_v27 = vld [vmem:[%s8087_s0 + $0x6d8] sm:$0xff] }
 0x19b   :  { %3193 = vmatprep.mubr.bf16.mxu0 %v4523_v40  ;;  %v4587_v40 = vcombine.high %v313_v35, %v317_v36  ;;  %v373_v28 = vld [vmem:[%s8087_s0 + $0x6f8] sm:$0xff] }
 0x1a1   :  { %2616 = vmatmul.mubr.bf16.gmra.mrb[48].mxu1 %v4518_v45  ;;  %v4582_v45 = vcombine.low %v311_v33, %v315_v34  ;;  %v375_v33 = vld [vmem:[%s8087_s0 + $0x708] sm:$0xff] }
 0x1a2   :  { %3194 = vmatmul.mubr.bf16.gmra.mrb[48].mxu0 %v4522_v46  ;;  %2623 = vmatprep.mubr.bf16.mxu1 %v4527_v47  ;;  %v4586_v46 = vcombine.low %v313_v35, %v317_v36  ;;  %v4591_v47 = vcombine.high %v319_v41, %v323_v42  ;;  %v379_v34 = vld [vmem:[%s8087_s0 + $0x728] sm:$0xff]  ;;  %v377_v36 = vld [vmem:[%s8087_s0 + $0x718] sm:$0xff] }
 0x1a3   :  { %3201 = vmatprep.mubr.bf16.mxu0 %v4531_v48  ;;  %v4595_v48 = vcombine.high %v321_v43, %v325_v44 }
 0x1a9   :  { %2624 = vmatmul.mubr.bf16.gmra.mrb[52].mxu1 %v4526_v53  ;;  %v4590_v53 = vcombine.low %v319_v41, %v323_v42 }
 0x1aa   :  { %3202 = vmatmul.mubr.bf16.gmra.mrb[52].mxu0 %v4530_v54  ;;  %2631 = vmatprep.mubr.bf16.mxu1 %v4535_v55  ;;  %v4594_v54 = vcombine.low %v321_v43, %v325_v44  ;;  %v4599_v55 = vcombine.high %v327_v49, %v331_v50  ;;  %v4642_v44 = vcombine.low %v369_v27, %v373_v28 }
 0x1ab   :  { %3209 = vmatprep.mubr.bf16.mxu0 %v4539_v56  ;;  %v4603_v56 = vcombine.high %v329_v51, %v333_v52 }
 0x1b1   :  { %2632 = vmatmul.mubr.bf16.gmra.mrb[56].mxu1 %v4534_v60  ;;  %v4598_v60 = vcombine.low %v327_v49, %v331_v50 }
 0x1b2   :  { %3210 = vmatmul.mubr.bf16.gmra.mrb[56].mxu0 %v4538_v61  ;;  %2639 = vmatprep.mubr.bf16.mxu1 %v4543_v62  ;;  %v4602_v61 = vcombine.low %v329_v51, %v333_v52  ;;  %v4607_v62 = vcombine.high %v335_v57, %v339_v0  ;;  %v383_v51 = vld [vmem:[%s8087_s0 + $0x748] sm:$0xff] }
 0x1b3   :  { %3217 = vmatprep.mubr.bf16.mxu0 %v4547_v63  ;;  %v4611_v63 = vcombine.high %v337_v58, %v341_v59  ;;  %v387_v52 = vld [vmem:[%s8087_s0 + $0x768] sm:$0xff] }
 0x1b9   :  { %2640 = vmatmul.mubr.bf16.gmra.mrb[60].mxu1 %v4542_v5  ;;  %v4606_v5 = vcombine.low %v335_v57, %v339_v0  ;;  %v4646_v0 = vcombine.low %v375_v33, %v379_v34 }
 0x1ba   :  { %3218 = vmatmul.mubr.bf16.gmra.mrb[60].mxu0 %v4546_v6  ;;  %2647 = vmatprep.mubr.bf16.mxu1 %v4551_v7  ;;  %v4610_v6 = vcombine.low %v337_v58, %v341_v59  ;;  %v4615_v7 = vcombine.high %v343_v1, %v347_v2 }
 0x1bb   :  { %3225 = vmatprep.mubr.bf16.mxu0 %v4555_v8  ;;  %v4619_v8 = vcombine.high %v345_v3, %v349_v4 }
 0x1c1   :  { %2648 = vmatmul.mubr.bf16.gmra.mrb[64].mxu1 %v4550_v13  ;;  %v4614_v13 = vcombine.low %v343_v1, %v347_v2 }
 0x1c2   :  { %3226 = vmatmul.mubr.bf16.gmra.mrb[64].mxu0 %v4554_v14  ;;  %2655 = vmatprep.mubr.bf16.mxu1 %v4559_v15  ;;  %v4618_v14 = vcombine.low %v345_v3, %v349_v4  ;;  %v4623_v15 = vcombine.high %v351_v9, %v355_v10 }
 0x1c3   :  { %3233 = vmatprep.mubr.bf16.mxu0 %v4563_v16  ;;  %v4627_v16 = vcombine.high %v353_v11, %v357_v12 }
 0x1c9   :  { %2656 = vmatmul.mubr.bf16.gmra.mrb[68].mxu1 %v4558_v21  ;;  %v4622_v21 = vcombine.low %v351_v9, %v355_v10  ;;  %v397_v9 = vld [vmem:[%s8087_s0 + $0x7b8] sm:$0xff] }
 0x1ca   :  { %3234 = vmatmul.mubr.bf16.gmra.mrb[68].mxu0 %v4562_v22  ;;  %2663 = vmatprep.mubr.bf16.mxu1 %v4567_v23  ;;  %v4626_v22 = vcombine.low %v353_v11, %v357_v12  ;;  %v4631_v23 = vcombine.high %v359_v17, %v363_v18  ;;  %v4654_v12 = vcombine.low %v383_v51, %v387_v52 }
 0x1cb   :  { %3241 = vmatprep.mubr.bf16.mxu0 %v4571_v24  ;;  %v4635_v24 = vcombine.high %v361_v19, %v365_v20 }
 0x1d1   :  { %2664 = vmatmul.mubr.bf16.gmra.mrb[72].mxu1 %v4566_v29  ;;  %v4630_v29 = vcombine.low %v359_v17, %v363_v18 }
 0x1d2   :  { %3242 = vmatmul.mubr.bf16.gmra.mrb[72].mxu0 %v4570_v30  ;;  %2671 = vmatprep.mubr.bf16.mxu1 %v4575_v31  ;;  %v4634_v30 = vcombine.low %v361_v19, %v365_v20  ;;  %v4639_v31 = vcombine.high %v367_v25, %v371_v26 }
 0x1d3   :  { %3249 = vmatprep.mubr.bf16.mxu0 %v4579_v32  ;;  %v4643_v32 = vcombine.high %v369_v27, %v373_v28  ;;  %v405_v27 = vld [vmem:[%s8087_s0 + $0x7f8] sm:$0xff] }
 0x1d9   :  { %2672 = vmatmul.mubr.bf16.gmra.mrb[76].mxu1 %v4574_v37  ;;  %v381_v37 = vld [vmem:[%s8087_s0 + $0x738] sm:$0xff] }
 0x1da   :  { %3250 = vmatmul.mubr.bf16.gmra.mrb[76].mxu0 %v4578_v38  ;;  %2679 = vmatprep.mubr.bf16.mxu1 %v4583_v39 }
 0x1db   :  { %3257 = vmatprep.mubr.bf16.mxu0 %v4587_v40  ;;  %v4638_v40 = vcombine.low %v367_v25, %v371_v26  ;;  %v401_v26 = vld [vmem:[%s8087_s0 + $0x7d8] sm:$0xff] }
 0x1e1   :  { %2680 = vmatmul.mubr.bf16.gmra.mrb[80].mxu1 %v4582_v45  ;;  %v4647_v45 = vcombine.high %v375_v33, %v379_v34 }
 0x1e2   :  { %3258 = vmatmul.mubr.bf16.gmra.mrb[80].mxu0 %v4586_v46  ;;  %2687 = vmatprep.mubr.bf16.mxu1 %v4591_v47 }
 0x1e3   :  { %3265 = vmatprep.mubr.bf16.mxu0 %v4595_v48  ;;  %v4651_v48 = vcombine.high %v377_v36, %v381_v37 }
 0x1e9   :  { %2688 = vmatmul.mubr.bf16.gmra.mrb[84].mxu1 %v4590_v53 }
 0x1ea   :  { %3266 = vmatmul.mubr.bf16.gmra.mrb[84].mxu0 %v4594_v54  ;;  %2695 = vmatprep.mubr.bf16.mxu1 %v4599_v55  ;;  %v385_v54 = vld [vmem:[%s8087_s0 + $0x758] sm:$0xff] }
 0x1eb   :  { %3273 = vmatprep.mubr.bf16.mxu0 %v4603_v56  ;;  %v389_v55 = vld [vmem:[%s8087_s0 + $0x778] sm:$0xff] }
 0x1ec   :  { %v4659_v2 = vcombine.high %v385_v54, %v389_v55 }
 0x1f1   :  { %2696 = vmatmul.mubr.bf16.gmra.mrb[88].mxu1 %v4598_v60 }
 0x1f2   :  { %3274 = vmatmul.mubr.bf16.gmra.mrb[88].mxu0 %v4602_v61  ;;  %2703 = vmatprep.mubr.bf16.mxu1 %v4607_v62  ;;  %v4650_v61 = vcombine.low %v377_v36, %v381_v37  ;;  %v4655_v62 = vcombine.high %v383_v51, %v387_v52 }
 0x1f3   :  { %3281 = vmatprep.mubr.bf16.mxu0 %v4611_v63 }
 0x1f9   :  { %2704 = vmatmul.mubr.bf16.gmra.mrb[92].mxu1 %v4606_v5  ;;  %v391_v5 = vld [vmem:[%s8087_s0 + $0x788] sm:$0xff] }
 0x1fa   :  { %3282 = vmatmul.mubr.bf16.gmra.mrb[92].mxu0 %v4610_v6  ;;  %2711 = vmatprep.mubr.bf16.mxu1 %v4615_v7  ;;  %v395_v6 = vld [vmem:[%s8087_s0 + $0x7a8] sm:$0xff] }
 0x1fb   :  { %3289 = vmatprep.mubr.bf16.mxu0 %v4619_v8  ;;  %v393_v8 = vld [vmem:[%s8087_s0 + $0x798] sm:$0xff]  ;;  %v4663_v17 = vcombine.high %v391_v5, %v395_v6 }
 0x1fc   :  { %v4667_v20 = vcombine.high %v393_v8, %v397_v9  ;;  %v4666_v34 = vcombine.low %v393_v8, %v397_v9 }
 0x201   :  { %2712 = vmatmul.mubr.bf16.gmra.mrb[96].mxu1 %v4614_v13 }
 0x202   :  { %3290 = vmatmul.mubr.bf16.gmra.mrb[96].mxu0 %v4618_v14  ;;  %2719 = vmatprep.mubr.bf16.mxu1 %v4623_v15 }
 0x203   :  { %3297 = vmatprep.mubr.bf16.mxu0 %v4627_v16  ;;  %v4658_v16 = vcombine.low %v385_v54, %v389_v55 }
 0x209   :  { %2720 = vmatmul.mubr.bf16.gmra.mrb[100].mxu1 %v4622_v21 }
 0x20a   :  { %3298 = vmatmul.mubr.bf16.gmra.mrb[100].mxu0 %v4626_v22  ;;  %2727 = vmatprep.mubr.bf16.mxu1 %v4631_v23  ;;  %v399_v23 = vld [vmem:[%s8087_s0 + $0x7c8] sm:$0xff] }
 0x20b   :  { %3305 = vmatprep.mubr.bf16.mxu0 %v4635_v24  ;;  %v403_v24 = vld [vmem:[%s8087_s0 + $0x7e8] sm:$0xff] }
 0x211   :  { %2728 = vmatmul.mubr.bf16.gmra.mrb[104].mxu1 %v4630_v29 }
 0x212   :  { %3306 = vmatmul.mubr.bf16.gmra.mrb[104].mxu0 %v4634_v30  ;;  %2735 = vmatprep.mubr.bf16.mxu1 %v4639_v31  ;;  %v4662_v30 = vcombine.low %v391_v5, %v395_v6 }
 0x213   :  { %3313 = vmatprep.mubr.bf16.mxu0 %v4643_v32 }
 0x214   :  { %v2521_v35 = vpop.f32.mrb[0].mxu1 }
 0x215   :  { %v3099_v38 = vpop.f32.mrb[0].mxu0  ;;  %v2523_v39 = vpop.f32.mrb[1].mxu1 }
 0x216   :  { %v6476_v41 = vadd.f32 %v3099_v38, %v2521_v35  ;;  %v3101_v42 = vpop.f32.mrb[1].mxu0  ;;  %v2524_v43 = vpop.f32.mrb[2].mxu1  ;;  %v4671_v35 = vcombine.high %v399_v23, %v403_v24  ;;  %v4675_v38 = vcombine.high %v401_v26, %v405_v27 }
 0x217   :  { %v3102_v46 = vpop.f32.mrb[2].mxu0  ;;  %v2526_v47 = vpop.f32.mrb[3].mxu1 }
 0x218   :  { %v6478_v49 = vadd.f32 %v3102_v46, %v2524_v43  ;;  %v3104_v50 = vpop.f32.mrb[3].mxu0 }
 0x219   :  { %2736 = vmatmul.mubr.bf16.gmra.mrb[108].mxu1 %v4638_v40  ;;  %v4674_v50 = vcombine.low %v401_v26, %v405_v27  ;;  %v3620_v26 = vmul.f32 %v6476_v41, %v6476_v41 }
 0x21a   :  { %3314 = vmatmul.mubr.bf16.gmra.mrb[108].mxu0 %v4642_v44  ;;  %2743 = vmatprep.mubr.bf16.mxu1 %v4647_v45  ;;  %v4670_v45 = vcombine.low %v399_v23, %v403_v24  ;;  %v3549_v27 = vadd.f32 %v6478_v49, %v6476_v41 }
 0x21b   :  { %3321 = vmatprep.mubr.bf16.mxu0 %v4651_v48 }
 0x21c   :  { %v2529_v53 = vpop.f32.mrb[4].mxu1 }
 0x21d   :  { %v3107_v56 = vpop.f32.mrb[4].mxu0  ;;  %v2531_v57 = vpop.f32.mrb[5].mxu1 }
 0x21e   :  { %v6492_v58 = vadd.f32 %v3107_v56, %v2529_v53  ;;  %v3109_v59 = vpop.f32.mrb[5].mxu0  ;;  %v2532_v60 = vpop.f32.mrb[6].mxu1 }
 0x21f   :  { %v3110_v63 = vpop.f32.mrb[6].mxu0  ;;  %v2534_v1 = vpop.f32.mrb[7].mxu1 }
 0x220   :  { %v6494_v3 = vadd.f32 %v3110_v63, %v2532_v60  ;;  %v3112_v4 = vpop.f32.mrb[7].mxu0 }
 0x221   :  { %2744 = vmatmul.mubr.bf16.gmra.mrb[112].mxu1 %v4646_v0 }
 0x222   :  { %3322 = vmatmul.mubr.bf16.gmra.mrb[112].mxu0 %v4650_v61  ;;  %2751 = vmatprep.mubr.bf16.mxu1 %v4655_v62 }
 0x223   :  { %3329 = vmatprep.mubr.bf16.mxu0 %v4659_v2 }
 0x224   :  { %v2537_v7 = vpop.f32.mrb[8].mxu1 }
 0x225   :  { %v3115_v10 = vpop.f32.mrb[8].mxu0  ;;  %v2539_v11 = vpop.f32.mrb[9].mxu1 }
 0x226   :  { %v6508_v13 = vadd.f32 %v3115_v10, %v2537_v7  ;;  %v3117_v14 = vpop.f32.mrb[9].mxu0  ;;  %v2540_v15 = vpop.f32.mrb[10].mxu1 }
 0x227   :  { %v3118_v18 = vpop.f32.mrb[10].mxu0  ;;  %v2542_v19 = vpop.f32.mrb[11].mxu1 }
 0x228   :  { %v6510_v21 = vadd.f32 %v3118_v18, %v2540_v15  ;;  %v3120_v22 = vpop.f32.mrb[11].mxu0 }
 0x229   :  { %2752 = vmatmul.mubr.bf16.gmra.mrb[116].mxu1 %v4654_v12 }
 0x22a   :  { %3330 = vmatmul.mubr.bf16.gmra.mrb[116].mxu0 %v4658_v16  ;;  %2759 = vmatprep.mubr.bf16.mxu1 %v4663_v17 }
 0x22b   :  { %3337 = vmatprep.mubr.bf16.mxu0 %v4667_v20 }
 0x22c   :  { %v2545_v25 = vpop.f32.mrb[12].mxu1 }
 0x22d   :  { %v3123_v28 = vpop.f32.mrb[12].mxu0  ;;  %v2547_v29 = vpop.f32.mrb[13].mxu1 }
 0x22e   :  { %v6524_v31 = vadd.f32 %v3123_v28, %v2545_v25  ;;  %v3125_v32 = vpop.f32.mrb[13].mxu0  ;;  %v2548_v33 = vpop.f32.mrb[14].mxu1  ;;  %v3621_v25 = vmul.f32 %v6478_v49, %v6478_v49  ;;  %v3622_v28 = vmul.f32 %v6492_v58, %v6492_v58 }
 0x22f   :  { %v3126_v36 = vpop.f32.mrb[14].mxu0  ;;  %v2550_v37 = vpop.f32.mrb[15].mxu1 }
 0x230   :  { %v6526_v39 = vadd.f32 %v3126_v36, %v2548_v33  ;;  %v3128_v40 = vpop.f32.mrb[15].mxu0  ;;  %v3684_v33 = vadd.f32 %v3621_v25, %v3620_v26 }
 0x231   :  { %2760 = vmatmul.mubr.bf16.gmra.mrb[120].mxu1 %v4662_v30 }
 0x232   :  { %3338 = vmatmul.mubr.bf16.gmra.mrb[120].mxu0 %v4666_v34  ;;  %2767 = vmatprep.mubr.bf16.mxu1 %v4671_v35  ;;  %v3550_v34 = vadd.f32 %v6492_v58, %v3549_v27 }
 0x233   :  { %3345 = vmatprep.mubr.bf16.mxu0 %v4675_v38 }
 0x234   :  { %v2553_v42 = vpop.f32.mrb[16].mxu1 }
 0x235   :  { %v3131_v43 = vpop.f32.mrb[16].mxu0  ;;  %v2555_v44 = vpop.f32.mrb[17].mxu1 }
 0x236   :  { %v6528_v46 = vadd.f32 %v3131_v43, %v2553_v42  ;;  %v3133_v47 = vpop.f32.mrb[17].mxu0  ;;  %v2556_v48 = vpop.f32.mrb[18].mxu1  ;;  %v3685_v42 = vadd.f32 %v3684_v33, %v3622_v28  ;;  %v3623_v43 = vmul.f32 %v6494_v3, %v6494_v3 }
 0x237   :  { %v3134_v51 = vpop.f32.mrb[18].mxu0  ;;  %v2558_v52 = vpop.f32.mrb[19].mxu1  ;;  %v3551_v47 = vadd.f32 %v6494_v3, %v3550_v34 }
 0x238   :  { %v6530_v53 = vadd.f32 %v3134_v51, %v2556_v48  ;;  %v3136_v54 = vpop.f32.mrb[19].mxu0  ;;  %v3624_v48 = vmul.f32 %v6508_v13, %v6508_v13 }
 0x239   :  { %2768 = vmatmul.mubr.bf16.gmra.mrb[124].mxu1 %v4670_v45  ;;  %v3552_v51 = vadd.f32 %v6508_v13, %v3551_v47 }
 0x23a   :  { %3346 = vmatmul.mubr.bf16.gmra.mrb[124].mxu0 %v4674_v50  ;;  %v3686_v50 = vadd.f32 %v3685_v42, %v3623_v43  ;;  %v3629_v33 = vmul.f32 %v6530_v53, %v6530_v53 }
 0x23c   :  { %v2561_v55 = vpop.f32.mrb[20].mxu1 }
 0x23d   :  { %v3139_v56 = vpop.f32.mrb[20].mxu0  ;;  %v2563_v57 = vpop.f32.mrb[21].mxu1 }
 0x23e   :  { %v6532_v0 = vadd.f32 %v3139_v56, %v2561_v55  ;;  %v3141_v59 = vpop.f32.mrb[21].mxu0  ;;  %v2564_v60 = vpop.f32.mrb[22].mxu1  ;;  %v3687_v56 = vadd.f32 %v3686_v50, %v3624_v48  ;;  %v3625_v57 = vmul.f32 %v6510_v21, %v6510_v21 }
 0x23f   :  { %v3142_v61 = vpop.f32.mrb[22].mxu0  ;;  %v2566_v62 = vpop.f32.mrb[23].mxu1 }
 0x240   :  { %v6534_v63 = vadd.f32 %v3142_v61, %v2564_v60  ;;  %v3144_v1 = vpop.f32.mrb[23].mxu0 }
 0x244   :  { %v2569_v2 = vpop.f32.mrb[24].mxu1 }
 0x245   :  { %v3147_v4 = vpop.f32.mrb[24].mxu0  ;;  %v2571_v5 = vpop.f32.mrb[25].mxu1 }
 0x246   :  { %v6536_v6 = vadd.f32 %v3147_v4, %v2569_v2  ;;  %v3149_v7 = vpop.f32.mrb[25].mxu0  ;;  %v2572_v8 = vpop.f32.mrb[26].mxu1  ;;  %v3553_v2 = vadd.f32 %v6510_v21, %v3552_v51  ;;  %v3626_v4 = vmul.f32 %v6524_v31, %v6524_v31 }
 0x247   :  { %v3150_v9 = vpop.f32.mrb[26].mxu0  ;;  %v2574_v10 = vpop.f32.mrb[27].mxu1 }
 0x248   :  { %v6538_v11 = vadd.f32 %v3150_v9, %v2572_v8  ;;  %v3152_v12 = vpop.f32.mrb[27].mxu0  ;;  %v3688_v8 = vadd.f32 %v3687_v56, %v3625_v57  ;;  %v3554_v9 = vadd.f32 %v6524_v31, %v3553_v2 }
 0x249   :  { %v3627_v12 = vmul.f32 %v6526_v39, %v6526_v39 }
 0x24a   :  { %v3689_v10 = vadd.f32 %v3688_v8, %v3626_v4  ;;  %v3633_v8 = vmul.f32 %v6538_v11, %v6538_v11 }
 0x24c   :  { %v2577_v14 = vpop.f32.mrb[28].mxu1  ;;  %v3690_v27 = vadd.f32 %v3689_v10, %v3627_v12 }
 0x24d   :  { %v3155_v15 = vpop.f32.mrb[28].mxu0  ;;  %v2579_v16 = vpop.f32.mrb[29].mxu1 }
 0x24e   :  { %v6540_v17 = vadd.f32 %v3155_v15, %v2577_v14  ;;  %v3157_v18 = vpop.f32.mrb[29].mxu0  ;;  %v2580_v19 = vpop.f32.mrb[30].mxu1 }
 0x24f   :  { %v3158_v20 = vpop.f32.mrb[30].mxu0  ;;  %v2582_v22 = vpop.f32.mrb[31].mxu1  ;;  %v3555_v18 = vadd.f32 %v6526_v39, %v3554_v9 }
 0x250   :  { %v6542_v23 = vadd.f32 %v3158_v20, %v2580_v19  ;;  %v3160_v24 = vpop.f32.mrb[31].mxu0  ;;  %v3628_v19 = vmul.f32 %v6528_v46, %v6528_v46 }
 0x251   :  { %v3556_v28 = vadd.f32 %v6528_v46, %v3555_v18  ;;  %v3634_v18 = vmul.f32 %v6540_v17, %v6540_v17 }
 0x253   :  { %v3557_v34 = vadd.f32 %v6530_v53, %v3556_v28 }
 0x254   :  { %v2585_v29 = vpop.f32.mrb[32].mxu1 }
 0x255   :  { %v3163_v30 = vpop.f32.mrb[32].mxu0  ;;  %v2587_v32 = vpop.f32.mrb[33].mxu1  ;;  %v3558_v43 = vadd.f32 %v6532_v0, %v3557_v34 }
 0x256   :  { %v6553_v35 = vadd.f32 %v3163_v30, %v2585_v29  ;;  %v3165_v36 = vpop.f32.mrb[33].mxu0  ;;  %v2588_v37 = vpop.f32.mrb[34].mxu1  ;;  %v3691_v32 = vadd.f32 %v3690_v27, %v3628_v19  ;;  %v3635_v27 = vmul.f32 %v6542_v23, %v6542_v23 }
 0x257   :  { %v3166_v38 = vpop.f32.mrb[34].mxu0  ;;  %v2590_v40 = vpop.f32.mrb[35].mxu1  ;;  %v3630_v36 = vmul.f32 %v6532_v0, %v6532_v0  ;;  %v3559_v57 = vadd.f32 %v6534_v63, %v3558_v43 }
 0x258   :  { %v6557_v44 = vadd.f32 %v3166_v38, %v2588_v37  ;;  %v3168_v45 = vpop.f32.mrb[35].mxu0  ;;  %v3692_v42 = vadd.f32 %v3691_v32, %v3629_v33  ;;  %v3636_v34 = vmul.f32 %v6553_v35, %v6553_v35 }
 0x25c   :  { %v2593_v52 = vpop.f32.mrb[36].mxu1 }
 0x25d   :  { %v3171_v54 = vpop.f32.mrb[36].mxu0  ;;  %v2595_v55 = vpop.f32.mrb[37].mxu1 }
 0x25e   :  { %v6565_v59 = vadd.f32 %v3171_v54, %v2593_v52  ;;  %v3173_v60 = vpop.f32.mrb[37].mxu0  ;;  %v2596_v61 = vpop.f32.mrb[38].mxu1  ;;  %v3693_v52 = vadd.f32 %v3692_v42, %v3630_v36  ;;  %v3631_v54 = vmul.f32 %v6534_v63, %v6534_v63 }
 0x25f   :  { %v3174_v62 = vpop.f32.mrb[38].mxu0  ;;  %v2598_v1 = vpop.f32.mrb[39].mxu1  ;;  %v3632_v60 = vmul.f32 %v6536_v6, %v6536_v6 }
 0x260   :  { %v6570_v5 = vadd.f32 %v3174_v62, %v2596_v61  ;;  %v3176_v7 = vpop.f32.mrb[39].mxu0  ;;  %v3694_v61 = vadd.f32 %v3693_v52, %v3631_v54  ;;  %v3560_v62 = vadd.f32 %v6536_v6, %v3559_v57  ;;  %v3637_v52 = vmul.f32 %v6557_v44, %v6557_v44 }
 0x262   :  { %v3695_v7 = vadd.f32 %v3694_v61, %v3632_v60 }
 0x264   :  { %v2601_v14 = vpop.f32.mrb[40].mxu1 }
 0x265   :  { %v3179_v15 = vpop.f32.mrb[40].mxu0  ;;  %v2603_v16 = vpop.f32.mrb[41].mxu1 }
 0x266   :  { %v6578_v20 = vadd.f32 %v3179_v15, %v2601_v14  ;;  %v3181_v22 = vpop.f32.mrb[41].mxu0  ;;  %v2604_v24 = vpop.f32.mrb[42].mxu1  ;;  %v3561_v16 = vadd.f32 %v6538_v11, %v3560_v62 }
 0x267   :  { %v3182_v25 = vpop.f32.mrb[42].mxu0  ;;  %v2606_v26 = vpop.f32.mrb[43].mxu1 }
 0x268   :  { %v6581_v29 = vadd.f32 %v3182_v25, %v2604_v24  ;;  %v3184_v30 = vpop.f32.mrb[43].mxu0  ;;  %v3696_v24 = vadd.f32 %v3695_v7, %v3633_v8  ;;  %v3562_v25 = vadd.f32 %v6540_v17, %v3561_v16 }
 0x26a   :  { %v3697_v26 = vadd.f32 %v3696_v24, %v3634_v18  ;;  %v3563_v33 = vadd.f32 %v6542_v23, %v3562_v25 }
 0x26c   :  { %v2609_v37 = vpop.f32.mrb[44].mxu1  ;;  %v3698_v43 = vadd.f32 %v3697_v26, %v3635_v27 }
 0x26d   :  { %v3187_v38 = vpop.f32.mrb[44].mxu0  ;;  %v2611_v40 = vpop.f32.mrb[45].mxu1 }
 0x26e   :  { %v6589_v45 = vadd.f32 %v3187_v38, %v2609_v37  ;;  %v3189_v47 = vpop.f32.mrb[45].mxu0  ;;  %v2612_v48 = vpop.f32.mrb[46].mxu1 }
 0x26f   :  { %v3190_v50 = vpop.f32.mrb[46].mxu0  ;;  %v2614_v51 = vpop.f32.mrb[47].mxu1  ;;  %v3564_v47 = vadd.f32 %v6553_v35, %v3563_v33 }
 0x270   :  { %v6593_v55 = vadd.f32 %v3190_v50, %v2612_v48  ;;  %v3192_v56 = vpop.f32.mrb[47].mxu0  ;;  %v3699_v51 = vadd.f32 %v3698_v43, %v3636_v34  ;;  %v3642_v43 = vmul.f32 %v6589_v45, %v6589_v45 }
 0x271   :  { %v3565_v54 = vadd.f32 %v6557_v44, %v3564_v47  ;;  %v3638_v56 = vmul.f32 %v6565_v59, %v6565_v59 }
 0x272   :  { %v3700_v62 = vadd.f32 %v3699_v51, %v3637_v52 }
 0x274   :  { %v2617_v1 = vpop.f32.mrb[48].mxu1 }
 0x275   :  { %v3195_v2 = vpop.f32.mrb[48].mxu0  ;;  %v2619_v4 = vpop.f32.mrb[49].mxu1 }
 0x276   :  { %v6601_v9 = vadd.f32 %v3195_v2, %v2617_v1  ;;  %v3197_v10 = vpop.f32.mrb[49].mxu0  ;;  %v2620_v12 = vpop.f32.mrb[50].mxu1  ;;  %v3566_v1 = vadd.f32 %v6565_v59, %v3565_v54 }
 0x277   :  { %v3198_v14 = vpop.f32.mrb[50].mxu0  ;;  %v2622_v15 = vpop.f32.mrb[51].mxu1 }
 0x278   :  { %v6606_v19 = vadd.f32 %v3198_v14, %v2620_v12  ;;  %v3200_v22 = vpop.f32.mrb[51].mxu0  ;;  %v3701_v12 = vadd.f32 %v3700_v62, %v3638_v56  ;;  %v3639_v14 = vmul.f32 %v6570_v5, %v6570_v5  ;;  %v3567_v18 = vadd.f32 %v6570_v5, %v3566_v1 }
 0x279   :  { %v3640_v22 = vmul.f32 %v6578_v20, %v6578_v20  ;;  %v3643_v56 = vmul.f32 %v6593_v55, %v6593_v55  ;;  %v3644_v1 = vmul.f32 %v6601_v9, %v6601_v9 }
 0x27a   :  { %v3702_v24 = vadd.f32 %v3701_v12, %v3639_v14  ;;  %v3568_v25 = vadd.f32 %v6578_v20, %v3567_v18 }
 0x27c   :  { %v2625_v28 = vpop.f32.mrb[52].mxu1 }
 0x27d   :  { %v3203_v30 = vpop.f32.mrb[52].mxu0  ;;  %v2627_v32 = vpop.f32.mrb[53].mxu1 }
 0x27e   :  { %v6614_v36 = vadd.f32 %v3203_v30, %v2625_v28  ;;  %v3205_v37 = vpop.f32.mrb[53].mxu0  ;;  %v2628_v38 = vpop.f32.mrb[54].mxu1  ;;  %v3703_v30 = vadd.f32 %v3702_v24, %v3640_v22  ;;  %v3641_v32 = vmul.f32 %v6581_v29, %v6581_v29 }
 0x27f   :  { %v3206_v40 = vpop.f32.mrb[54].mxu0  ;;  %v2630_v42 = vpop.f32.mrb[55].mxu1 }
 0x280   :  { %v6617_v48 = vadd.f32 %v3206_v40, %v2628_v38  ;;  %v3208_v50 = vpop.f32.mrb[55].mxu0  ;;  %v3569_v42 = vadd.f32 %v6581_v29, %v3568_v25  ;;  %v3704_v51 = vadd.f32 %v3703_v30, %v3641_v32  ;;  %v3645_v25 = vmul.f32 %v6606_v19, %v6606_v19 }
 0x282   :  { %v3570_v52 = vadd.f32 %v6589_v45, %v3569_v42  ;;  %v3705_v54 = vadd.f32 %v3704_v51, %v3642_v43 }
 0x284   :  { %v2633_v57 = vpop.f32.mrb[56].mxu1  ;;  %v3571_v62 = vadd.f32 %v6593_v55, %v3570_v52  ;;  %v3706_v14 = vadd.f32 %v3705_v54, %v3643_v56  ;;  %v3647_v52 = vmul.f32 %v6617_v48, %v6617_v48 }
 0x285   :  { %v3211_v60 = vpop.f32.mrb[56].mxu0  ;;  %v2635_v61 = vpop.f32.mrb[57].mxu1 }
 0x286   :  { %v6625_v2 = vadd.f32 %v3211_v60, %v2633_v57  ;;  %v3213_v4 = vpop.f32.mrb[57].mxu0  ;;  %v2636_v7 = vpop.f32.mrb[58].mxu1  ;;  %v3707_v24 = vadd.f32 %v3706_v14, %v3644_v1 }
 0x287   :  { %v3214_v8 = vpop.f32.mrb[58].mxu0  ;;  %v2638_v10 = vpop.f32.mrb[59].mxu1 }
 0x288   :  { %v6629_v15 = vadd.f32 %v3214_v8, %v2636_v7  ;;  %v3216_v16 = vpop.f32.mrb[59].mxu0 }
 0x289   :  { %v3572_v16 = vadd.f32 %v6601_v9, %v3571_v62 }
 0x28c   :  { %v2641_v26 = vpop.f32.mrb[60].mxu1 }
 0x28d   :  { %v3219_v27 = vpop.f32.mrb[60].mxu0  ;;  %v2643_v28 = vpop.f32.mrb[61].mxu1 }
 0x28e   :  { %v6637_v33 = vadd.f32 %v3219_v27, %v2641_v26  ;;  %v3221_v34 = vpop.f32.mrb[61].mxu0  ;;  %v2644_v37 = vpop.f32.mrb[62].mxu1  ;;  %v3573_v26 = vadd.f32 %v6606_v19, %v3572_v16  ;;  %v3646_v27 = vmul.f32 %v6614_v36, %v6614_v36 }
 0x28f   :  { %v3222_v38 = vpop.f32.mrb[62].mxu0  ;;  %v2646_v40 = vpop.f32.mrb[63].mxu1  ;;  %v3708_v34 = vadd.f32 %v3707_v24, %v3645_v25 }
 0x290   :  { %v6642_v47 = vadd.f32 %v3222_v38, %v2644_v37  ;;  %v3224_v50 = vpop.f32.mrb[63].mxu0  ;;  %v3574_v37 = vadd.f32 %v6614_v36, %v3573_v26 }
 0x291   :  { %v3709_v51 = vadd.f32 %v3708_v34, %v3646_v27  ;;  %v3650_v27 = vmul.f32 %v6637_v33, %v6637_v33 }
 0x294   :  { %v2649_v57 = vpop.f32.mrb[64].mxu1 }
 0x295   :  { %v3227_v60 = vpop.f32.mrb[64].mxu0  ;;  %v2651_v61 = vpop.f32.mrb[65].mxu1 }
 0x296   :  { %v6650_v4 = vadd.f32 %v3227_v60, %v2649_v57  ;;  %v3229_v7 = vpop.f32.mrb[65].mxu0  ;;  %v2652_v8 = vpop.f32.mrb[66].mxu1  ;;  %v3575_v57 = vadd.f32 %v6617_v48, %v3574_v37  ;;  %v3648_v60 = vmul.f32 %v6625_v2, %v6625_v2  ;;  %v3710_v61 = vadd.f32 %v3709_v51, %v3647_v52 }
 0x297   :  { %v3230_v10 = vpop.f32.mrb[66].mxu0  ;;  %v2654_v12 = vpop.f32.mrb[67].mxu1 }
 0x298   :  { %v6653_v18 = vadd.f32 %v3230_v10, %v2652_v8  ;;  %v3232_v22 = vpop.f32.mrb[67].mxu0  ;;  %v3576_v62 = vadd.f32 %v6625_v2, %v3575_v57  ;;  %v3711_v10 = vadd.f32 %v3710_v61, %v3648_v60  ;;  %v3649_v12 = vmul.f32 %v6629_v15, %v6629_v15 }
 0x299   :  { %v3652_v52 = vmul.f32 %v6650_v4, %v6650_v4 }
 0x29a   :  { %v3577_v26 = vadd.f32 %v6629_v15, %v3576_v62 }
 0x29c   :  { %v2657_v28 = vpop.f32.mrb[68].mxu1  ;;  %v3578_v34 = vadd.f32 %v6637_v33, %v3577_v26 }
 0x29d   :  { %v3235_v30 = vpop.f32.mrb[68].mxu0  ;;  %v2659_v32 = vpop.f32.mrb[69].mxu1 }
 0x29e   :  { %v6661_v38 = vadd.f32 %v3235_v30, %v2657_v28  ;;  %v3237_v40 = vpop.f32.mrb[69].mxu0  ;;  %v2660_v42 = vpop.f32.mrb[70].mxu1  ;;  %v3712_v32 = vadd.f32 %v3711_v10, %v3649_v12  ;;  %v3579_v51 = vadd.f32 %v6642_v47, %v3578_v34 }
 0x29f   :  { %v3238_v43 = vpop.f32.mrb[70].mxu0  ;;  %v2662_v50 = vpop.f32.mrb[71].mxu1  ;;  %v3651_v40 = vmul.f32 %v6642_v47, %v6642_v47 }
 0x2a0   :  { %v6665_v54 = vadd.f32 %v3238_v43, %v2660_v42  ;;  %v3240_v56 = vpop.f32.mrb[71].mxu0  ;;  %v3713_v37 = vadd.f32 %v3712_v32, %v3650_v27 }
 0x2a4   :  { %v2665_v1 = vpop.f32.mrb[72].mxu1 }
 0x2a5   :  { %v3243_v7 = vpop.f32.mrb[72].mxu0  ;;  %v2667_v8 = vpop.f32.mrb[73].mxu1 }
 0x2a6   :  { %v6673_v14 = vadd.f32 %v3243_v7, %v2665_v1  ;;  %v3245_v16 = vpop.f32.mrb[73].mxu0  ;;  %v2668_v22 = vpop.f32.mrb[74].mxu1  ;;  %v3714_v1 = vadd.f32 %v3713_v37, %v3651_v40  ;;  %v3580_v7 = vadd.f32 %v6650_v4, %v3579_v51  ;;  %v3655_v51 = vmul.f32 %v6665_v54, %v6665_v54 }
 0x2a7   :  { %v3246_v24 = vpop.f32.mrb[74].mxu0  ;;  %v2670_v25 = vpop.f32.mrb[75].mxu1  ;;  %v3653_v16 = vmul.f32 %v6653_v18, %v6653_v18 }
 0x2a8   :  { %v6678_v28 = vadd.f32 %v3246_v24, %v2668_v22  ;;  %v3248_v30 = vpop.f32.mrb[75].mxu0  ;;  %v3715_v12 = vadd.f32 %v3714_v1, %v3652_v52  ;;  %v3581_v22 = vadd.f32 %v6653_v18, %v3580_v7  ;;  %v3654_v24 = vmul.f32 %v6661_v38, %v6661_v38 }
 0x2aa   :  { %v3716_v30 = vadd.f32 %v3715_v12, %v3653_v16  ;;  %v3582_v32 = vadd.f32 %v6661_v38, %v3581_v22  ;;  %v3657_v22 = vmul.f32 %v6678_v28, %v6678_v28 }
 0x2ac   :  { %v2673_v42 = vpop.f32.mrb[76].mxu1 }
 0x2ad   :  { %v3251_v43 = vpop.f32.mrb[76].mxu0  ;;  %v2675_v50 = vpop.f32.mrb[77].mxu1 }
 0x2ae   :  { %v6686_v56 = vadd.f32 %v3251_v43, %v2673_v42  ;;  %v3253_v57 = vpop.f32.mrb[77].mxu0  ;;  %v2676_v60 = vpop.f32.mrb[78].mxu1  ;;  %v3717_v50 = vadd.f32 %v3716_v30, %v3654_v24 }
 0x2af   :  { %v3254_v61 = vpop.f32.mrb[78].mxu0  ;;  %v2678_v62 = vpop.f32.mrb[79].mxu1 }
 0x2b0   :  { %v6689_v8 = vadd.f32 %v3254_v61, %v2676_v60  ;;  %v3256_v10 = vpop.f32.mrb[79].mxu0  ;;  %v3583_v60 = vadd.f32 %v6665_v54, %v3582_v32  ;;  %v3656_v61 = vmul.f32 %v6673_v14, %v6673_v14  ;;  %v3718_v62 = vadd.f32 %v3717_v50, %v3655_v51 }
 0x2b2   :  { %v3584_v1 = vadd.f32 %v6673_v14, %v3583_v60  ;;  %v3719_v16 = vadd.f32 %v3718_v62, %v3656_v61 }
 0x2b4   :  { %v2681_v25 = vpop.f32.mrb[80].mxu1  ;;  %v3585_v32 = vadd.f32 %v6678_v28, %v3584_v1 }
 0x2b5   :  { %v3259_v26 = vpop.f32.mrb[80].mxu0  ;;  %v2683_v27 = vpop.f32.mrb[81].mxu1 }
 0x2b6   :  { %v6697_v34 = vadd.f32 %v3259_v26, %v2681_v25  ;;  %v3261_v37 = vpop.f32.mrb[81].mxu0  ;;  %v2684_v40 = vpop.f32.mrb[82].mxu1  ;;  %v3586_v50 = vadd.f32 %v6686_v56, %v3585_v32 }
 0x2b7   :  { %v3262_v42 = vpop.f32.mrb[82].mxu0  ;;  %v2686_v43 = vpop.f32.mrb[83].mxu1  ;;  %v3658_v37 = vmul.f32 %v6686_v56, %v6686_v56 }
 0x2b8   :  { %v6701_v52 = vadd.f32 %v3262_v42, %v2684_v40  ;;  %v3264_v57 = vpop.f32.mrb[83].mxu0  ;;  %v3720_v43 = vadd.f32 %v3719_v16, %v3657_v22  ;;  %v3660_v1 = vmul.f32 %v6697_v34, %v6697_v34 }
 0x2b9   :  { %v3659_v57 = vmul.f32 %v6689_v8, %v6689_v8 }
 0x2ba   :  { %8146 = vst [vmem:[#allocation3_spill] sm:$0xff] %v6701_v52  ;;  %v3721_v51 = vadd.f32 %v3720_v43, %v3658_v37 }
 0x2bc   :  { %v2689_v7 = vpop.f32.mrb[84].mxu1  ;;  %v3722_v22 = vadd.f32 %v3721_v51, %v3659_v57 }
 0x2bd   :  { %v3267_v10 = vpop.f32.mrb[84].mxu0  ;;  %v2691_v12 = vpop.f32.mrb[85].mxu1 }
 0x2be   :  { %v6709_v24 = vadd.f32 %v3267_v10, %v2689_v7  ;;  %v3269_v25 = vpop.f32.mrb[85].mxu0  ;;  %v2692_v26 = vpop.f32.mrb[86].mxu1  ;;  %v3587_v7 = vadd.f32 %v6689_v8, %v3586_v50  ;;  %v3723_v37 = vadd.f32 %v3722_v22, %v3660_v1 }
 0x2bf   :  { %v3270_v27 = vpop.f32.mrb[86].mxu0  ;;  %v2694_v30 = vpop.f32.mrb[87].mxu1 }
 0x2c0   :  { %8147 = vst [vmem:[#allocation4_spill] sm:$0xff] %v6709_v24  ;;  %v6714_v40 = vadd.f32 %v3270_v27, %v2692_v26  ;;  %v3272_v42 = vpop.f32.mrb[87].mxu0  ;;  %v3588_v27 = vadd.f32 %v6697_v34, %v3587_v7  ;;  %v3662_v50 = vmul.f32 %v6709_v24, %v6709_v24 }
 0x2c1   :  { %v3661_v42 = vmul.f32 %v6701_v52, %v6701_v52 }
 0x2c2   :  { %8148 = vst [vmem:[#allocation5_spill] sm:$0xff] %v6714_v40  ;;  %v3589_v43 = vadd.f32 %v6701_v52, %v3588_v27  ;;  %v3663_v22 = vmul.f32 %v6714_v40, %v6714_v40 }
 0x2c4   :  { %v2697_v60 = vpop.f32.mrb[88].mxu1  ;;  %v3590_v51 = vadd.f32 %v6709_v24, %v3589_v43 }
 0x2c5   :  { %v3275_v61 = vpop.f32.mrb[88].mxu0  ;;  %v2699_v62 = vpop.f32.mrb[89].mxu1 }
 0x2c6   :  { %v6722_v10 = vadd.f32 %v3275_v61, %v2697_v60  ;;  %v3277_v12 = vpop.f32.mrb[89].mxu0  ;;  %v2700_v25 = vpop.f32.mrb[90].mxu1  ;;  %v3591_v52 = vadd.f32 %v6714_v40, %v3590_v51 }
 0x2c7   :  { %v3278_v26 = vpop.f32.mrb[90].mxu0  ;;  %v2702_v16 = vpop.f32.mrb[91].mxu1  ;;  %v3724_v12 = vadd.f32 %v3723_v37, %v3661_v42 }
 0x2c8   :  { %8149 = vst [vmem:[#allocation6_spill] sm:$0xff] %v6722_v10  ;;  %v6725_v30 = vadd.f32 %v3278_v26, %v2700_v25  ;;  %v3280_v32 = vpop.f32.mrb[91].mxu0  ;;  %v3664_v37 = vmul.f32 %v6722_v10, %v6722_v10  ;;  %v3592_v43 = vadd.f32 %v6722_v10, %v3591_v52 }
 0x2c9   :  { %v3725_v16 = vadd.f32 %v3724_v12, %v3662_v50 }
 0x2ca   :  { %8150 = vst [vmem:[#allocation7_spill] sm:$0xff] %v6725_v30  ;;  %v3665_v50 = vmul.f32 %v6725_v30, %v6725_v30  ;;  %v3593_v51 = vadd.f32 %v6725_v30, %v3592_v43 }
 0x2cb   :  { %v3726_v42 = vadd.f32 %v3725_v16, %v3663_v22 }
 0x2cc   :  { %v2705_v60 = vpop.f32.mrb[92].mxu1 }
 0x2cd   :  { %v3283_v61 = vpop.f32.mrb[92].mxu0  ;;  %v2707_v62 = vpop.f32.mrb[93].mxu1 }
 0x2ce   :  { %v6733_v57 = vadd.f32 %v3283_v61, %v2705_v60  ;;  %v3285_v7 = vpop.f32.mrb[93].mxu0  ;;  %v2708_v25 = vpop.f32.mrb[94].mxu1 }
 0x2cf   :  { %v3286_v26 = vpop.f32.mrb[94].mxu0  ;;  %v2710_v1 = vpop.f32.mrb[95].mxu1  ;;  %v3727_v7 = vadd.f32 %v3726_v42, %v3664_v37 }
 0x2d0   :  { %8151 = vst [vmem:[#allocation8_spill] sm:$0xff] %v6733_v57  ;;  %v6737_v27 = vadd.f32 %v3286_v26, %v2708_v25  ;;  %v3288_v32 = vpop.f32.mrb[95].mxu0  ;;  %v3666_v16 = vmul.f32 %v6733_v57, %v6733_v57  ;;  %v3594_v37 = vadd.f32 %v6733_v57, %v3593_v51 }
 0x2d1   :  { %v3728_v10 = vadd.f32 %v3727_v7, %v3665_v50 }
 0x2d2   :  { %8152 = vst [vmem:[#allocation9_spill] sm:$0xff] %v6737_v27 }
 0x2d3   :  { %v3729_v42 = vadd.f32 %v3728_v10, %v3666_v16 }
 0x2d4   :  { %v2713_v60 = vpop.f32.mrb[96].mxu1 }
 0x2d5   :  { %v3291_v61 = vpop.f32.mrb[96].mxu0  ;;  %v2715_v62 = vpop.f32.mrb[97].mxu1 }
 0x2d6   :  { %v6745_v12 = vadd.f32 %v3291_v61, %v2713_v60  ;;  %v3293_v25 = vpop.f32.mrb[97].mxu0  ;;  %v2716_v26 = vpop.f32.mrb[98].mxu1  ;;  %v3667_v60 = vmul.f32 %v6737_v27, %v6737_v27 }
 0x2d7   :  { %v3294_v1 = vpop.f32.mrb[98].mxu0  ;;  %v2718_v32 = vpop.f32.mrb[99].mxu1 }
 0x2d8   :  { %8153 = vst [vmem:[#allocation10_spill] sm:$0xff] %v6745_v12  ;;  %v6750_v22 = vadd.f32 %v3294_v1, %v2716_v26  ;;  %v3296_v52 = vpop.f32.mrb[99].mxu0  ;;  %v3595_v32 = vadd.f32 %v6737_v27, %v3594_v37  ;;  %v3668_v43 = vmul.f32 %v6745_v12, %v6745_v12  ;;  %v3730_v50 = vadd.f32 %v3729_v42, %v3667_v60 }
 0x2da   :  { %8154 = vst [vmem:[#allocation11_spill] sm:$0xff] %v6750_v22  ;;  %v3596_v10 = vadd.f32 %v6745_v12, %v3595_v32  ;;  %v3731_v57 = vadd.f32 %v3730_v50, %v3668_v43 }
 0x2dc   :  { %v2721_v61 = vpop.f32.mrb[100].mxu1  ;;  %v3597_v37 = vadd.f32 %v6750_v22, %v3596_v10 }
 0x2dd   :  { %v3299_v62 = vpop.f32.mrb[100].mxu0  ;;  %v2723_v25 = vpop.f32.mrb[101].mxu1 }
 0x2de   :  { %v6758_v30 = vadd.f32 %v3299_v62, %v2721_v61  ;;  %v3301_v26 = vpop.f32.mrb[101].mxu0  ;;  %v2724_v1 = vpop.f32.mrb[102].mxu1  ;;  %v3669_v25 = vmul.f32 %v6750_v22, %v6750_v22 }
 0x2df   :  { %v3302_v52 = vpop.f32.mrb[102].mxu0  ;;  %v2726_v7 = vpop.f32.mrb[103].mxu1 }
 0x2e0   :  { %8155 = vst [vmem:[#allocation12_spill] sm:$0xff] %v6758_v30  ;;  %v6761_v51 = vadd.f32 %v3302_v52, %v2724_v1  ;;  %v3304_v16 = vpop.f32.mrb[103].mxu0  ;;  %v3670_v61 = vmul.f32 %v6758_v30, %v6758_v30  ;;  %v3732_v40 = vadd.f32 %v3731_v57, %v3669_v25  ;;  %v3598_v42 = vadd.f32 %v6758_v30, %v3597_v37 }
 0x2e2   :  { %8156 = vst [vmem:[#allocation13_spill] sm:$0xff] %v6761_v51  ;;  %v3733_v7 = vadd.f32 %v3732_v40, %v3670_v61  ;;  %v3671_v50 = vmul.f32 %v6761_v51, %v6761_v51  ;;  %v3599_v22 = vadd.f32 %v6761_v51, %v3598_v42 }
 0x2e4   :  { %v2729_v62 = vpop.f32.mrb[104].mxu1 }
 0x2e5   :  { %v3307_v26 = vpop.f32.mrb[104].mxu0  ;;  %v2731_v27 = vpop.f32.mrb[105].mxu1 }
 0x2e6   :  { %v6769_v60 = vadd.f32 %v3307_v26, %v2729_v62  ;;  %v3309_v32 = vpop.f32.mrb[105].mxu0  ;;  %v2732_v1 = vpop.f32.mrb[106].mxu1  ;;  %v3734_v27 = vadd.f32 %v3733_v7, %v3671_v50 }
 0x2e7   :  { %v3310_v52 = vpop.f32.mrb[106].mxu0  ;;  %v2734_v43 = vpop.f32.mrb[107].mxu1 }
 0x2e8   :  { %8157 = vst [vmem:[#allocation14_spill] sm:$0xff] %v6769_v60  ;;  %v6773_v10 = vadd.f32 %v3310_v52, %v2732_v1  ;;  %v3312_v16 = vpop.f32.mrb[107].mxu0  ;;  %v3672_v57 = vmul.f32 %v6769_v60, %v6769_v60  ;;  %v3600_v25 = vadd.f32 %v6769_v60, %v3599_v22 }
 0x2ea   :  { %8158 = vst [vmem:[#allocation15_spill] sm:$0xff] %v6773_v10  ;;  %v3735_v32 = vadd.f32 %v3734_v27, %v3672_v57  ;;  %v3673_v40 = vmul.f32 %v6773_v10, %v6773_v10  ;;  %v3601_v42 = vadd.f32 %v6773_v10, %v3600_v25 }
 0x2ec   :  { %v2737_v37 = vpop.f32.mrb[108].mxu1  ;;  %v3736_v60 = vadd.f32 %v3735_v32, %v3673_v40 }
 0x2ed   :  { %v3315_v62 = vpop.f32.mrb[108].mxu0  ;;  %v2739_v26 = vpop.f32.mrb[109].mxu1 }
 0x2ee   :  { %v6781_v61 = vadd.f32 %v3315_v62, %v2737_v37  ;;  %v3317_v1 = vpop.f32.mrb[109].mxu0  ;;  %v2740_v52 = vpop.f32.mrb[110].mxu1 }
 0x2ef   :  { %v3318_v43 = vpop.f32.mrb[110].mxu0  ;;  %v2742_v16 = vpop.f32.mrb[111].mxu1 }
 0x2f0   :  { %8159 = vst [vmem:[#allocation16_spill] sm:$0xff] %v6781_v61  ;;  %v3674_v7 = vmul.f32 %v6781_v61, %v6781_v61  ;;  %v6786_v50 = vadd.f32 %v3318_v43, %v2740_v52  ;;  %v3320_v22 = vpop.f32.mrb[111].mxu0  ;;  %v3602_v57 = vadd.f32 %v6781_v61, %v3601_v42 }
 0x2f2   :  { %8160 = vst [vmem:[#allocation17_spill] sm:$0xff] %v6786_v50  ;;  %v3737_v27 = vadd.f32 %v3736_v60, %v3674_v7  ;;  %v3675_v37 = vmul.f32 %v6786_v50, %v6786_v50  ;;  %v3603_v16 = vadd.f32 %v6786_v50, %v3602_v57 }
 0x2f4   :  { %v2745_v62 = vpop.f32.mrb[112].mxu1  ;;  %v3738_v43 = vadd.f32 %v3737_v27, %v3675_v37 }
 0x2f5   :  { %v3323_v26 = vpop.f32.mrb[112].mxu0  ;;  %v2747_v1 = vpop.f32.mrb[113].mxu1 }
 0x2f6   :  { %v6792_v51 = vadd.f32 %v3323_v26, %v2745_v62  ;;  %v3325_v25 = vpop.f32.mrb[113].mxu0  ;;  %v2748_v10 = vpop.f32.mrb[114].mxu1 }
 0x2f7   :  { %v3326_v30 = vpop.f32.mrb[114].mxu0  ;;  %v2750_v52 = vpop.f32.mrb[115].mxu1 }
 0x2f8   :  { %8161 = vst [vmem:[#allocation18_spill] sm:$0xff] %v6792_v51  ;;  %v3604_v32 = vadd.f32 %v6792_v51, %v3603_v16  ;;  %v3676_v60 = vmul.f32 %v6792_v51, %v6792_v51  ;;  %v6797_v40 = vadd.f32 %v3326_v30, %v2748_v10  ;;  %v3328_v42 = vpop.f32.mrb[115].mxu0 }
 0x2fa   :  { %8162 = vst [vmem:[#allocation19_spill] sm:$0xff] %v6797_v40  ;;  %v3739_v7 = vadd.f32 %v3738_v43, %v3676_v60  ;;  %v3605_v22 = vadd.f32 %v6797_v40, %v3604_v32  ;;  %v3677_v57 = vmul.f32 %v6797_v40, %v6797_v40 }
 0x2fc   :  { %v3740_v62 = vadd.f32 %v3739_v7, %v3677_v57  ;;  %v2753_v26 = vpop.f32.mrb[116].mxu1 }
 0x2fd   :  { %v3331_v1 = vpop.f32.mrb[116].mxu0  ;;  %v2755_v25 = vpop.f32.mrb[117].mxu1 }
 0x2fe   :  { %v6802_v52 = vadd.f32 %v3331_v1, %v2753_v26  ;;  %v3333_v27 = vpop.f32.mrb[117].mxu0  ;;  %v2756_v37 = vpop.f32.mrb[118].mxu1 }
 0x2ff   :  { %v3334_v16 = vpop.f32.mrb[118].mxu0  ;;  %v2758_v61 = vpop.f32.mrb[119].mxu1 }
 0x300   :  { %8163 = vst [vmem:[#allocation20_spill] sm:$0xff] %v6802_v52  ;;  %v3606_v30 = vadd.f32 %v6802_v52, %v3605_v22  ;;  %v3678_v10 = vmul.f32 %v6802_v52, %v6802_v52  ;;  %v6807_v43 = vadd.f32 %v3334_v16, %v2756_v37  ;;  %v3336_v32 = vpop.f32.mrb[119].mxu0 }
 0x302   :  { %8164 = vst [vmem:[#allocation21_spill] sm:$0xff] %v6807_v43  ;;  %v3741_v60 = vadd.f32 %v3740_v62, %v3678_v10  ;;  %v3607_v42 = vadd.f32 %v6807_v43, %v3606_v30  ;;  %v3679_v7 = vmul.f32 %v6807_v43, %v6807_v43 }
 0x304   :  { %v3742_v57 = vadd.f32 %v3741_v60, %v3679_v7  ;;  %v2761_v26 = vpop.f32.mrb[120].mxu1 }
 0x305   :  { %v3339_v1 = vpop.f32.mrb[120].mxu0  ;;  %v2763_v25 = vpop.f32.mrb[121].mxu1 }
 0x306   :  { %v6812_v27 = vadd.f32 %v3339_v1, %v2761_v26  ;;  %v3341_v61 = vpop.f32.mrb[121].mxu0  ;;  %v2764_v22 = vpop.f32.mrb[122].mxu1 }
 0x307   :  { %v3342_v40 = vpop.f32.mrb[122].mxu0  ;;  %v2766_v51 = vpop.f32.mrb[123].mxu1 }
 0x308   :  { %8165 = vst [vmem:[#allocation22_spill] sm:$0xff] %v6812_v27  ;;  %v3608_v37 = vadd.f32 %v6812_v27, %v3607_v42  ;;  %v3680_v62 = vmul.f32 %v6812_v27, %v6812_v27  ;;  %v6817_v16 = vadd.f32 %v3342_v40, %v2764_v22  ;;  %v3344_v30 = vpop.f32.mrb[123].mxu0 }
 0x30a   :  { %8166 = vst [vmem:[#allocation23_spill] sm:$0xff] %v6817_v16  ;;  %v3743_v10 = vadd.f32 %v3742_v57, %v3680_v62  ;;  %v3609_v32 = vadd.f32 %v6817_v16, %v3608_v37  ;;  %v3681_v60 = vmul.f32 %v6817_v16, %v6817_v16 }
 0x30c   :  { %v3744_v7 = vadd.f32 %v3743_v10, %v3681_v60  ;;  %v2769_v26 = vpop.f32.mrb[124].mxu1 }
 0x30d   :  { %v3347_v1 = vpop.f32.mrb[124].mxu0  ;;  %v2771_v25 = vpop.f32.mrb[125].mxu1 }
 0x30e   :  { %v6822_v61 = vadd.f32 %v3347_v1, %v2769_v26  ;;  %v3349_v51 = vpop.f32.mrb[125].mxu0  ;;  %v2772_v42 = vpop.f32.mrb[126].mxu1 }
 0x30f   :  { %v3350_v43 = vpop.f32.mrb[126].mxu0  ;;  %v2774_v52 = vpop.f32.mrb[127].mxu1 }
 0x310   :  { %8167 = vst [vmem:[#allocation24_spill] sm:$0xff] %v6822_v61  ;;  %v3610_v40 = vadd.f32 %v6822_v61, %v3609_v32  ;;  %v3682_v57 = vmul.f32 %v6822_v61, %v6822_v61  ;;  %v6827_v22 = vadd.f32 %v3350_v43, %v2772_v42  ;;  %v3352_v37 = vpop.f32.mrb[127].mxu0 }
 0x312   :  { %8168 = vst [vmem:[#allocation25_spill] sm:$0xff] %v6827_v22  ;;  %v3745_v62 = vadd.f32 %v3744_v7, %v3682_v57  ;;  %v3611_v30 = vadd.f32 %v6827_v22, %v3610_v40  ;;  %v3683_v10 = vmul.f32 %v6827_v22, %v6827_v22  ;;  %v3765_v22 = vlaneseq }
 0x314   :  { %v3612_v60 = vrot.slane %v3611_v30, 4  ;;  %v3746_v26 = vadd.f32 %v3745_v62, %v3683_v10  ;;  %v6832_v62 = vshrl.u32 %v3765_v22, 7 }
 0x316   :  { %v3613_v1 = vadd.f32 %v3612_v60, %v3611_v30  ;;  %v3747_v25 = vrot.slane %v3746_v26, 4  ;;  %v3757_v30 = vld [vmem:[%s8088_s2] sm:$0x1]  ;;  %v8114_v10 = vsub.s32 0, %v6832_v62 }
 0x318   :  { %v3614_v51 = vrot.slane %v3613_v1, 2  ;;  %v3748_v52 = vadd.f32 %v3747_v25, %v3746_v26 }
 0x31a   :  { %v3615_v16 = vadd.f32 %v3614_v51, %v3613_v1  ;;  %v3749_v32 = vrot.slane %v3748_v52, 2  ;;  %v8169_v51 = vld [vmem:[#allocation3_spill] sm:$0xff] }
 0x31c   :  { %v3616_v27 = vrot.slane %v3615_v16, 1  ;;  %v3750_v50 = vadd.f32 %v3749_v32, %v3748_v52  ;;  %v8170_v52 = vld [vmem:[#allocation4_spill] sm:$0xff]  ;;  %v8171_v32 = vld [vmem:[#allocation5_spill] sm:$0xff] }
 0x31e   :  { %v3617_v61 = vadd.f32 %v3616_v27, %v3615_v16  ;;  %v3751_v43 = vrot.slane %v3750_v50, 1 }
 0x320   :  { %v3619_v42 = vmul.f32 0.001953125, %v3617_v61  ;;  %v3752_v37 = vadd.f32 %v3751_v43, %v3750_v50  ;;  %v6841_v50 = vld [vmem:[%s8089_s3] sm:$0x1]  ;;  %v8172_v43 = vld [vmem:[#allocation6_spill] sm:$0xff] }
 0x322   :  { %v3753_v7 = vmul.f32 0.001953125, %v3752_v37  ;;  %v3754_v57 = vmul.f32 %v3619_v42, %v3619_v42  ;;  %v8174_v37 = vld [vmem:[#allocation8_spill] sm:$0xff] }
 0x324   :  { %v3755_v40 = vsub.f32 %v3753_v7, %v3754_v57  ;;  %v8175_v57 = vld [vmem:[#allocation9_spill] sm:$0xff] }
 0x326   :  { %v3756_v12 = vmax.f32 %v3755_v40, 0.0 }
 0x328   :  { %v3758_v24 = vadd.f32 1e-05, %v3756_v12 }
 0x32a   :  { %5444 = vrsqrt.f32 %v3758_v24 }
 0x334   :  { %v5445_v60 = vpop.eup %5444 }
 0x335   :  { %v3760_v27 = vmul.f32 %v5445_v60, %v3757_v30  ;;  %v8177_v30 = vld [vmem:[#allocation10_spill] sm:$0xff] }
 0x337   :  { %v6843_v16 = vmul.f32 %v3760_v27, %v3619_v42  ;;  %v6847_v24 = vrot.slane %v3760_v27, %v8114_v10  ;;  %v8173_v42 = vld [vmem:[#allocation7_spill] sm:$0xff]  ;;  %v8179_v27 = vld [vmem:[#allocation17_spill] sm:$0xff] }
 0x338   :  { %v8191_v10 = vld [vmem:[#allocation23_spill] sm:$0xff] }
 0x339   :  { %v3763_v12 = vsub.f32 %v6841_v50, %v6843_v16  ;;  %v6853_v61 = vmul.f32 %v6476_v41, %v6847_v24  ;;  %v6857_v22 = vmul.f32 %v6478_v49, %v6847_v24  ;;  %v6861_v26 = vmul.f32 %v6492_v58, %v6847_v24  ;;  %v8181_v16 = vld [vmem:[#allocation18_spill] sm:$0xff] }
 0x33a   :  { %v6865_v1 = vmul.f32 %v6494_v3, %v6847_v24  ;;  %v6869_v25 = vmul.f32 %v6508_v13, %v6847_v24  ;;  %v6873_v41 = vmul.f32 %v6510_v21, %v6847_v24  ;;  %v6877_v49 = vmul.f32 %v6524_v31, %v6847_v24 }
 0x33b   :  { %v6881_v58 = vmul.f32 %v6526_v39, %v6847_v24  ;;  %v6885_v3 = vmul.f32 %v6528_v46, %v6847_v24  ;;  %v6889_v13 = vmul.f32 %v6530_v53, %v6847_v24  ;;  %v6893_v21 = vmul.f32 %v6532_v0, %v6847_v24 }
 0x33c   :  { %v6897_v31 = vmul.f32 %v6534_v63, %v6847_v24  ;;  %v6901_v39 = vmul.f32 %v6536_v6, %v6847_v24  ;;  %v6905_v46 = vmul.f32 %v6538_v11, %v6847_v24  ;;  %v6909_v53 = vmul.f32 %v6540_v17, %v6847_v24 }
 0x33d   :  { %v6913_v0 = vmul.f32 %v6542_v23, %v6847_v24  ;;  %v6917_v63 = vmul.f32 %v6553_v35, %v6847_v24  ;;  %v6921_v6 = vmul.f32 %v6557_v44, %v6847_v24  ;;  %v6925_v11 = vmul.f32 %v6565_v59, %v6847_v24 }
 0x33e   :  { %v6929_v17 = vmul.f32 %v6570_v5, %v6847_v24  ;;  %v6933_v23 = vmul.f32 %v6578_v20, %v6847_v24  ;;  %v6937_v35 = vmul.f32 %v6581_v29, %v6847_v24  ;;  %v6941_v44 = vmul.f32 %v6589_v45, %v6847_v24 }
 0x33f   :  { %v6945_v59 = vmul.f32 %v6593_v55, %v6847_v24  ;;  %v6949_v5 = vmul.f32 %v6601_v9, %v6847_v24  ;;  %v6953_v20 = vmul.f32 %v6606_v19, %v6847_v24  ;;  %v6957_v29 = vmul.f32 %v6614_v36, %v6847_v24 }
 0x340   :  { %v6961_v45 = vmul.f32 %v6617_v48, %v6847_v24  ;;  %v6965_v55 = vmul.f32 %v6625_v2, %v6847_v24  ;;  %v6969_v9 = vmul.f32 %v6629_v15, %v6847_v24  ;;  %v6973_v19 = vmul.f32 %v6637_v33, %v6847_v24 }
 0x341   :  { %v6977_v36 = vmul.f32 %v6642_v47, %v6847_v24  ;;  %v6981_v48 = vmul.f32 %v6650_v4, %v6847_v24  ;;  %v6985_v2 = vmul.f32 %v6653_v18, %v6847_v24  ;;  %v6989_v15 = vmul.f32 %v6661_v38, %v6847_v24 }
 0x342   :  { %v6993_v33 = vmul.f32 %v6665_v54, %v6847_v24  ;;  %v6997_v47 = vmul.f32 %v6673_v14, %v6847_v24  ;;  %v7001_v4 = vmul.f32 %v6678_v28, %v6847_v24  ;;  %v7005_v18 = vmul.f32 %v6686_v56, %v6847_v24 }
 0x343   :  { %v7009_v38 = vmul.f32 %v6689_v8, %v6847_v24  ;;  %v7013_v54 = vmul.f32 %v6697_v34, %v6847_v24  ;;  %v7017_v14 = vmul.f32 %v8169_v51, %v6847_v24  ;;  %v7021_v28 = vmul.f32 %v8170_v52, %v6847_v24  ;;  %v8183_v52 = vld [vmem:[#allocation19_spill] sm:$0xff] }
 0x344   :  { %v7025_v56 = vmul.f32 %v8171_v32, %v6847_v24  ;;  %v7029_v8 = vmul.f32 %v8172_v43, %v6847_v24  ;;  %v7033_v34 = vmul.f32 %v8173_v42, %v6847_v24  ;;  %v7037_v7 = vmul.f32 %v8174_v37, %v6847_v24  ;;  %v8185_v43 = vld [vmem:[#allocation20_spill] sm:$0xff]  ;;  %v8187_v37 = vld [vmem:[#allocation21_spill] sm:$0xff] }
 0x345   :  { %v7041_v40 = vmul.f32 %v8175_v57, %v6847_v24  ;;  %v7045_v60 = vmul.f32 %v8177_v30, %v6847_v24  ;;  %v7049_v50 = vmul.f32 %v8179_v27, %v6847_v24  ;;  %v7053_v51 = vmul.f32 %v8181_v16, %v6847_v24  ;;  %v8189_v30 = vld [vmem:[#allocation22_spill] sm:$0xff] }
 0x346   :  { %v7057_v32 = vmul.f32 %v8183_v52, %v6847_v24  ;;  %v7061_v42 = vmul.f32 %v8185_v43, %v6847_v24  ;;  %v7065_v57 = vmul.f32 %v8187_v37, %v6847_v24  ;;  %v7069_v27 = vmul.f32 %v8189_v30, %v6847_v24  ;;  %v8197_v37 = vld [vmem:[#allocation25_spill] sm:$0xff] }
 0x347   :  { %8176 = vst [vmem:[#allocation3_spill] sm:$0xff] %v7041_v40  ;;  %8178 = vst [vmem:[#allocation4_spill] sm:$0xff] %v7045_v60  ;;  %v7073_v16 = vmul.f32 %v8191_v10, %v6847_v24  ;;  %v8198_v30 = vsub.s32 0, %v6832_v62  ;;  %v8199_v10 = vld [vmem:[#allocation13_spill] sm:$0xff]  ;;  %v8201_v60 = vld [vmem:[#allocation15_spill] sm:$0xff] }
 0x348   :  { %8180 = vst [vmem:[#allocation5_spill] sm:$0xff] %v7049_v50  ;;  %8182 = vst [vmem:[#allocation6_spill] sm:$0xff] %v7053_v51  ;;  %v8193_v51 = vld [vmem:[#allocation24_spill] sm:$0xff] }
 0x349   :  { %8184 = vst [vmem:[#allocation7_spill] sm:$0xff] %v7057_v32  ;;  %8186 = vst [vmem:[#allocation8_spill] sm:$0xff] %v7061_v42  ;;  %v7077_v52 = vmul.f32 %v8193_v51, %v6847_v24  ;;  %v8195_v32 = vld [vmem:[#allocation11_spill] sm:$0xff]  ;;  %v8196_v42 = vld [vmem:[#allocation12_spill] sm:$0xff] }
 0x34a   :  { %8188 = vst [vmem:[#allocation9_spill] sm:$0xff] %v7065_v57  ;;  %8190 = vst [vmem:[#allocation10_spill] sm:$0xff] %v7069_v27  ;;  %v3819_v43 = vmul.f32 %v8195_v32, %v6847_v24  ;;  %v3820_v50 = vmul.f32 %v8196_v42, %v6847_v24  ;;  %v7085_v57 = vmul.f32 %v8197_v37, %v6847_v24  ;;  %v8200_v51 = vld [vmem:[#allocation14_spill] sm:$0xff]  ;;  %v8202_v40 = vld [vmem:[#allocation16_spill] sm:$0xff] }
 0x34b   :  { %8192 = vst [vmem:[#allocation17_spill] sm:$0xff] %v7073_v16  ;;  %8194 = vst [vmem:[#allocation18_spill] sm:$0xff] %v7077_v52  ;;  %v7089_v27 = vrot.slane %v3763_v12, %v8198_v30  ;;  %v3821_v16 = vmul.f32 %v8199_v10, %v6847_v24  ;;  %v3822_v52 = vmul.f32 %v8200_v51, %v6847_v24 }
 0x34c   :  { %v3823_v32 = vmul.f32 %v8201_v60, %v6847_v24  ;;  %v3824_v42 = vmul.f32 %v8202_v40, %v6847_v24 }
 0x34d   :  { %v7101_v37 = vadd.f32 %v7089_v27, %v6853_v61  ;;  %v7105_v62 = vadd.f32 %v7089_v27, %v6857_v22  ;;  %v7109_v12 = vadd.f32 %v7089_v27, %v6861_v26  ;;  %v7113_v30 = vadd.f32 %v7089_v27, %v6865_v1 }
 0x34e   :  { %v7117_v60 = vadd.f32 %v7089_v27, %v6869_v25  ;;  %v7121_v24 = vadd.f32 %v7089_v27, %v6873_v41  ;;  %v7125_v61 = vadd.f32 %v7089_v27, %v6877_v49  ;;  %v7129_v22 = vadd.f32 %v7089_v27, %v6881_v58  ;;  %v8205_v40 = vld [vmem:[#allocation4_spill] sm:$0xff] }
 0x34f   :  { %v7133_v26 = vadd.f32 %v7089_v27, %v6885_v3  ;;  %v7137_v1 = vadd.f32 %v7089_v27, %v6889_v13  ;;  %v7141_v25 = vadd.f32 %v7089_v27, %v6893_v21  ;;  %v7145_v41 = vadd.f32 %v7089_v27, %v6897_v31 }
 0x350   :  { %v7149_v49 = vadd.f32 %v7089_v27, %v6901_v39  ;;  %v7153_v58 = vadd.f32 %v7089_v27, %v6905_v46  ;;  %v7157_v3 = vadd.f32 %v7089_v27, %v6909_v53  ;;  %v7161_v13 = vadd.f32 %v7089_v27, %v6913_v0 }
 0x351   :  { %v7165_v21 = vadd.f32 %v7089_v27, %v6917_v63  ;;  %v7169_v31 = vadd.f32 %v7089_v27, %v6921_v6  ;;  %v7173_v39 = vadd.f32 %v7089_v27, %v6925_v11  ;;  %v7177_v46 = vadd.f32 %v7089_v27, %v6929_v17 }
 0x352   :  { %v7181_v53 = vadd.f32 %v7089_v27, %v6933_v23  ;;  %v7185_v0 = vadd.f32 %v7089_v27, %v6937_v35  ;;  %v7189_v63 = vadd.f32 %v7089_v27, %v6941_v44  ;;  %v7193_v6 = vadd.f32 %v7089_v27, %v6945_v59 }
 0x353   :  { %v7197_v11 = vadd.f32 %v7089_v27, %v6949_v5  ;;  %v7201_v17 = vadd.f32 %v7089_v27, %v6953_v20  ;;  %v7205_v23 = vadd.f32 %v7089_v27, %v6957_v29  ;;  %v7209_v35 = vadd.f32 %v7089_v27, %v6961_v45 }
 0x354   :  { %v7213_v44 = vadd.f32 %v7089_v27, %v6965_v55  ;;  %v7217_v59 = vadd.f32 %v7089_v27, %v6969_v9  ;;  %v7221_v5 = vadd.f32 %v7089_v27, %v6973_v19  ;;  %v7225_v20 = vadd.f32 %v7089_v27, %v6977_v36 }
 0x355   :  { %v7229_v29 = vadd.f32 %v7089_v27, %v6981_v48  ;;  %v7233_v45 = vadd.f32 %v7089_v27, %v6985_v2  ;;  %v7237_v55 = vadd.f32 %v7089_v27, %v6989_v15  ;;  %v7241_v9 = vadd.f32 %v7089_v27, %v6993_v33 }
 0x356   :  { %v7245_v19 = vadd.f32 %v7089_v27, %v6997_v47  ;;  %v7249_v36 = vadd.f32 %v7089_v27, %v7001_v4  ;;  %v7253_v48 = vadd.f32 %v7089_v27, %v7005_v18  ;;  %v7257_v2 = vadd.f32 %v7089_v27, %v7009_v38 }
 0x357   :  { %v7261_v15 = vadd.f32 %v7089_v27, %v7013_v54  ;;  %v7265_v33 = vadd.f32 %v7089_v27, %v7017_v14  ;;  %v7269_v47 = vadd.f32 %v7089_v27, %v7021_v28  ;;  %v7273_v4 = vadd.f32 %v7089_v27, %v7025_v56  ;;  %v8204_v14 = vld [vmem:[#allocation3_spill] sm:$0xff] }
 0x358   :  { %v7277_v18 = vadd.f32 %v7089_v27, %v7029_v8  ;;  %v7281_v38 = vadd.f32 %v7089_v27, %v7033_v34  ;;  %v7285_v54 = vadd.f32 %v7089_v27, %v7037_v7  ;;  %v7289_v28 = vadd.f32 %v7089_v27, %v8204_v14 }
 0x359   :  { %v7293_v56 = vadd.f32 %v7089_v27, %v8205_v40  ;;  %v7296_v10 = vadd.f32 %v7089_v27, %v3819_v43  ;;  %v7299_v8 = vadd.f32 %v7089_v27, %v3820_v50  ;;  %v7302_v34 = vadd.f32 %v7089_v27, %v3821_v16  ;;  %v8213_v40 = vld [vmem:[#allocation5_spill] sm:$0xff]  ;;  %v8215_v43 = vld [vmem:[#allocation6_spill] sm:$0xff] }
 0x35a   :  { %8203 = vst [vmem:[#allocation19_spill] sm:$0xff] %v7281_v38  ;;  %v7305_v7 = vadd.f32 %v7089_v27, %v3822_v52  ;;  %v7308_v51 = vadd.f32 %v7089_v27, %v3823_v32  ;;  %v7311_v14 = vadd.f32 %v7089_v27, %v3824_v42  ;;  %v7319_v50 = vadd.f32 %v7089_v27, %v8215_v43  ;;  %v8219_v52 = vld [vmem:[#allocation8_spill] sm:$0xff]  ;;  %v8221_v32 = vld [vmem:[#allocation9_spill] sm:$0xff] }
 0x35b   :  { %8206 = vst [vmem:[#allocation20_spill] sm:$0xff] %v7293_v56  ;;  %8207 = vst [vmem:[#allocation21_spill] sm:$0xff] %v7296_v10  ;;  %v7315_v56 = vadd.f32 %v7089_v27, %v8213_v40  ;;  %v7331_v42 = vadd.f32 %v7089_v27, %v8221_v32  ;;  %vm3904_vm0 = vcmp.ge.f32.partialorder %v7101_v37, 0.0  ;;  %vm3905_vm1 = vcmp.ge.f32.partialorder %v7105_v62, 0.0 }
 0x35c   :  { %8208 = vst [vmem:[#allocation22_spill] sm:$0xff] %v7299_v8  ;;  %8209 = vst [vmem:[#allocation23_spill] sm:$0xff] %v7302_v34  ;;  %v8217_v8 = vld [vmem:[#allocation7_spill] sm:$0xff]  ;;  %vm3906_vm2 = vcmp.ge.f32.partialorder %v7109_v12, 0.0  ;;  %vm3907_vm3 = vcmp.ge.f32.partialorder %v7113_v30, 0.0  ;;  %vm3908_vm4 = vcmp.ge.f32.partialorder %v7117_v60, 0.0 }
 0x35d   :  { %8210 = vst [vmem:[#allocation24_spill] sm:$0xff] %v7305_v7  ;;  %8211 = vst [vmem:[#allocation11_spill] sm:$0xff] %v7308_v51  ;;  %v7323_v16 = vadd.f32 %v7089_v27, %v8217_v8  ;;  %v7327_v7 = vadd.f32 %v7089_v27, %v8219_v52  ;;  %v7347_v52 = vadd.f32 %v7089_v27, %v7085_v57  ;;  %vm3909_vm5 = vcmp.ge.f32.partialorder %v7121_v24, 0.0 }
 0x35e   :  { %8212 = vst [vmem:[#allocation12_spill] sm:$0xff] %v7311_v14  ;;  %8214 = vst [vmem:[#allocation25_spill] sm:$0xff] %v7315_v56  ;;  %v8223_v14 = vld [vmem:[#allocation10_spill] sm:$0xff]  ;;  %v8225_v56 = vld [vmem:[#allocation17_spill] sm:$0xff]  ;;  %vm3910_vm6 = vcmp.ge.f32.partialorder %v7125_v61, 0.0  ;;  %vm3911_vm7 = vcmp.ge.f32.partialorder %v7129_v22, 0.0 }
 0x35f   :  { %8216 = vst [vmem:[#allocation13_spill] sm:$0xff] %v7319_v50  ;;  %8218 = vst [vmem:[#allocation14_spill] sm:$0xff] %v7323_v16  ;;  %v7335_v40 = vadd.f32 %v7089_v27, %v8223_v14  ;;  %v7339_v43 = vadd.f32 %v7089_v27, %v8225_v56  ;;  %v8227_v50 = vld [vmem:[#allocation18_spill] sm:$0xff]  ;;  %vm3912_vm8 = vcmp.ge.f32.partialorder %v7133_v26, 0.0  ;;  %vm3913_vm9 = vcmp.ge.f32.partialorder %v7137_v1, 0.0 }
 0x360   :  { %8220 = vst [vmem:[#allocation15_spill] sm:$0xff] %v7327_v7  ;;  %8222 = vst [vmem:[#allocation16_spill] sm:$0xff] %v7331_v42  ;;  %v7343_v8 = vadd.f32 %v7089_v27, %v8227_v50  ;;  %v3968_v57 = vmul.f32 0.2, %v7101_v37  ;;  %v3969_v27 = vmul.f32 0.2, %v7105_v62 }
 0x361   :  { %8224 = vst [vmem:[#allocation3_spill] sm:$0xff] %v7335_v40  ;;  %8226 = vst [vmem:[#allocation4_spill] sm:$0xff] %v7339_v43  ;;  %v3970_v56 = vmul.f32 0.2, %v7109_v12  ;;  %vm3914_vm10 = vcmp.ge.f32.partialorder %v7141_v25, 0.0  ;;  %vm3915_vm11 = vcmp.ge.f32.partialorder %v7145_v41, 0.0 }
 0x362   :  { %8228 = vst [vmem:[#allocation5_spill] sm:$0xff] %v7343_v8  ;;  %8229 = vst [vmem:[#allocation6_spill] sm:$0xff] %v7347_v52  ;;  %v3971_v14 = vmul.f32 0.2, %v7113_v30  ;;  %v3972_v50 = vmul.f32 0.2, %v7117_v60  ;;  %v7373_v40 = vsel %vm3904_vm0, %v7101_v37, %v3968_v57  ;;  %v7384_v51 = vsel %vm3905_vm1, %v7105_v62, %v3969_v27 }
 0x363   :  { %v3973_v32 = vmul.f32 0.2, %v7121_v24  ;;  %v3974_v52 = vmul.f32 0.2, %v7125_v61  ;;  %v3975_v8 = vmul.f32 0.2, %v7129_v22 }
 0x364   :  { %v3976_v43 = vmul.f32 0.2, %v7133_v26  ;;  %8230 = vst [vmem:[#allocation7_spill] sm:$0xff] %v7373_v40  ;;  %vm3916_vm12 = vcmp.ge.f32.partialorder %v7149_v49, 0.0  ;;  %v3977_v42 = vmul.f32 0.2, %v7137_v1  ;;  %v7399_v40 = vsel %vm3906_vm2, %v7109_v12, %v3970_v56 }
 0x365   :  { %v3978_v7 = vmul.f32 0.2, %v7141_v25  ;;  %v7379_v16 = vmul.f32 0.2, %v7145_v41  ;;  %8231 = vst [vmem:[#allocation8_spill] sm:$0xff] %v7384_v51  ;;  %vm3917_vm13 = vcmp.ge.f32.partialorder %v7153_v58, 0.0 }
 0x366   :  { %v7388_v34 = vmul.f32 0.2, %v7149_v49  ;;  %v7391_v37 = vmul.f32 0.2, %v7153_v58  ;;  %v7394_v57 = vmul.f32 0.2, %v7157_v3 }
 0x367   :  { %8233 = vst [vmem:[#allocation10_spill] sm:$0xff] %v7399_v40  ;;  %vm3918_vm14 = vcmp.ge.f32.partialorder %v7157_v3, 0.0  ;;  %v7403_v62 = vmul.f32 0.2, %v7161_v13  ;;  %v7406_v27 = vmul.f32 0.2, %v7165_v21 }
 0x368   :  { %8232 = vst [vmem:[#allocation9_spill] sm:$0xff] %v7394_v57  ;;  %v7409_v51 = vmul.f32 0.2, %v7169_v31  ;;  %v7414_v57 = vsel %vm3907_vm3, %v7113_v30, %v3971_v14  ;;  %vm3919_vm15 = vcmp.ge.f32.partialorder %v7161_v13, 0.0  ;;  %v7418_v12 = vmul.f32 0.2, %v7173_v39 }
 0x369   :  { %8235 = vst [vmem:[#allocation18_spill] sm:$0xff] %v7414_v57  ;;  %v7421_v56 = vmul.f32 0.2, %v7177_v46  ;;  %v7424_v40 = vmul.f32 0.2, %v7181_v53  ;;  %vm3920_vm0 = vcmp.ge.f32.partialorder %v7165_v21, 0.0 }
 0x36a   :  { %8234 = vst [vmem:[#allocation17_spill] sm:$0xff] %v7409_v51  ;;  %v7429_v51 = vsel %vm3908_vm4, %v7117_v60, %v3972_v50  ;;  %v7433_v30 = vmul.f32 0.2, %v7185_v0  ;;  %v7436_v14 = vmul.f32 0.2, %v7189_v63  ;;  %vm3921_vm1 = vcmp.ge.f32.partialorder %v7169_v31, 0.0 }
 0x36b   :  { %8236 = vst [vmem:[#allocation26_spill] sm:$0xff] %v7424_v40  ;;  %8237 = vst [vmem:[#allocation27_spill] sm:$0xff] %v7429_v51  ;;  %v7439_v57 = vmul.f32 0.2, %v7193_v6  ;;  %v7444_v40 = vsel %vm3909_vm5, %v7121_v24, %v3973_v32  ;;  %v7448_v60 = vmul.f32 0.2, %v7197_v11 }
 0x36c   :  { %8239 = vst [vmem:[#allocation29_spill] sm:$0xff] %v7444_v40  ;;  %v7451_v50 = vmul.f32 0.2, %v7201_v17  ;;  %v7454_v51 = vmul.f32 0.2, %v7205_v23  ;;  %vm3922_vm2 = vcmp.ge.f32.partialorder %v7173_v39, 0.0 }
 0x36d   :  { %8238 = vst [vmem:[#allocation28_spill] sm:$0xff] %v7439_v57  ;;  %v7459_v57 = vsel %vm3910_vm6, %v7125_v61, %v3974_v52  ;;  %v7463_v24 = vmul.f32 0.2, %v7209_v35  ;;  %v7466_v32 = vmul.f32 0.2, %v7213_v44  ;;  %vm3923_vm3 = vcmp.ge.f32.partialorder %v7177_v46, 0.0 }
 0x36e   :  { %8240 = vst [vmem:[#allocation30_spill] sm:$0xff] %v7454_v51  ;;  %8241 = vst [vmem:[#allocation31_spill] sm:$0xff] %v7459_v57  ;;  %v7469_v40 = vmul.f32 0.2, %v7217_v59  ;;  %v7474_v51 = vsel %vm3911_vm7, %v7129_v22, %v3975_v8  ;;  %v7480_v61 = vmul.f32 0.2, %v7221_v5  ;;  %v7491_v22 = vsel %vm3912_vm8, %v7133_v26, %v3976_v43 }
 0x36f   :  { %8242 = vst [vmem:[#allocation32_spill] sm:$0xff] %v7474_v51  ;;  %v7483_v52 = vmul.f32 0.2, %v7225_v20  ;;  %v7486_v57 = vmul.f32 0.2, %v7229_v29  ;;  %8244 = vst [vmem:[#allocation34_spill] sm:$0xff] %v7491_v22  ;;  %v7509_v26 = vsel %vm3913_vm9, %v7137_v1, %v3977_v42  ;;  %v7527_v1 = vsel %vm3914_vm10, %v7141_v25, %v3978_v7 }
 0x370   :  { %vm3926_vm6 = vcmp.ge.f32.partialorder %v7189_v63, 0.0  ;;  %v7498_v8 = vmul.f32 0.2, %v7233_v45  ;;  %v7501_v51 = vmul.f32 0.2, %v7237_v55  ;;  %8246 = vst [vmem:[#allocation36_spill] sm:$0xff] %v7509_v26  ;;  %v7546_v25 = vsel %vm3915_vm11, %v7145_v41, %v7379_v16 }
 0x371   :  { %8243 = vst [vmem:[#allocation33_spill] sm:$0xff] %v7486_v57  ;;  %v7504_v57 = vmul.f32 0.2, %v7241_v9  ;;  %vm3930_vm8 = vcmp.ge.f32.partialorder %v7205_v23, 0.0  ;;  %v7516_v43 = vmul.f32 0.2, %v7245_v19  ;;  %v7565_v41 = vsel %vm3916_vm12, %v7149_v49, %v7388_v34 }
 0x372   :  { %v7519_v22 = vmul.f32 0.2, %v7249_v36  ;;  %8248 = vst [vmem:[#allocation38_spill] sm:$0xff] %v7527_v1  ;;  %vm3934_vm9 = vcmp.ge.f32.partialorder %v7221_v5, 0.0  ;;  %v7534_v42 = vmul.f32 0.2, %v7257_v2  ;;  %v7584_v49 = vsel %vm3917_vm13, %v7153_v58, %v7391_v37 }
 0x373   :  { %8245 = vst [vmem:[#allocation35_spill] sm:$0xff] %v7504_v57  ;;  %v7522_v57 = vmul.f32 0.2, %v7253_v48  ;;  %v7537_v26 = vmul.f32 0.2, %v7261_v15  ;;  %8250 = vst [vmem:[#allocation40_spill] sm:$0xff] %v7546_v25 }
 0x374   :  { %vm3938_vm10 = vcmp.ge.f32.partialorder %v7237_v55, 0.0  ;;  %v7553_v7 = vmul.f32 0.2, %v7269_v47  ;;  %v7556_v1 = vmul.f32 0.2, %v7273_v4  ;;  %8253 = vst [vmem:[#allocation43_spill] sm:$0xff] %v7565_v41 }
 0x375   :  { %8247 = vst [vmem:[#allocation37_spill] sm:$0xff] %v7522_v57  ;;  %v7540_v57 = vmul.f32 0.2, %v7265_v33  ;;  %vm3942_vm11 = vcmp.ge.f32.partialorder %v7253_v48, 0.0  ;;  %v7572_v16 = vmul.f32 0.2, %v7281_v38 }
 0x376   :  { %8251 = vst [vmem:[#allocation41_spill] sm:$0xff] %v7556_v1  ;;  %v7575_v25 = vmul.f32 0.2, %v7285_v54  ;;  %8257 = vst [vmem:[#allocation47_spill] sm:$0xff] %v7584_v49  ;;  %vm3946_vm12 = vcmp.ge.f32.partialorder %v7269_v47, 0.0  ;;  %v8258_v34 = vld [vmem:[#allocation20_spill] sm:$0xff] }
 0x377   :  { %8249 = vst [vmem:[#allocation39_spill] sm:$0xff] %v7540_v57  ;;  %v7559_v57 = vmul.f32 0.2, %v7277_v18  ;;  %8254 = vst [vmem:[#allocation44_spill] sm:$0xff] %v7572_v16  ;;  %v7591_v41 = vmul.f32 0.2, %v8258_v34 }
 0x378   :  { %8255 = vst [vmem:[#allocation45_spill] sm:$0xff] %v7575_v25  ;;  %v7594_v25 = vmul.f32 0.2, %v7296_v10  ;;  %v8263_v1 = vld [vmem:[#allocation9_spill] sm:$0xff]  ;;  %vm3950_vm13 = vcmp.ge.f32.partialorder %v7285_v54, 0.0  ;;  %v8265_v37 = vld [vmem:[#allocation23_spill] sm:$0xff] }
 0x379   :  { %8252 = vst [vmem:[#allocation42_spill] sm:$0xff] %v7559_v57  ;;  %v7578_v57 = vmul.f32 0.2, %v7289_v28  ;;  %8259 = vst [vmem:[#allocation48_spill] sm:$0xff] %v7591_v41  ;;  %v7603_v58 = vsel %vm3918_vm14, %v7157_v3, %v8263_v1  ;;  %v7610_v49 = vmul.f32 0.2, %v8265_v37  ;;  %v7622_v3 = vsel %vm3919_vm15, %v7161_v13, %v7403_v62 }
 0x37a   :  { %8260 = vst [vmem:[#allocation49_spill] sm:$0xff] %v7594_v25  ;;  %8264 = vst [vmem:[#allocation9_spill] sm:$0xff] %v7603_v58  ;;  %v8267_v25 = vld [vmem:[#allocation24_spill] sm:$0xff]  ;;  %v8274_v10 = vld [vmem:[#allocation13_spill] sm:$0xff]  ;;  %v7635_v13 = vsel %vm3920_vm0, %v7165_v21, %v7406_v27  ;;  %vm8286_vm7 = vcmp.ge.f32.partialorder %v7181_v53, 0.0 }
 0x37b   :  { %8256 = vst [vmem:[#allocation46_spill] sm:$0xff] %v7578_v57  ;;  %v8261_v57 = vld [vmem:[#allocation22_spill] sm:$0xff]  ;;  %8266 = vst [vmem:[#allocation51_spill] sm:$0xff] %v7610_v49  ;;  %v7613_v41 = vmul.f32 0.2, %v8267_v25  ;;  %v8272_v1 = vld [vmem:[#allocation12_spill] sm:$0xff] }
 0x37c   :  { %v7597_v16 = vmul.f32 0.2, %v8261_v57  ;;  %8271 = vst [vmem:[#allocation54_spill] sm:$0xff] %v7622_v3  ;;  %vm3954_vm14 = vcmp.ge.f32.partialorder %v8261_v57, 0.0  ;;  %v4022_v58 = vmul.f32 0.2, %v8272_v1 }
 0x37d   :  { %8268 = vst [vmem:[#allocation52_spill] sm:$0xff] %v7613_v41  ;;  %v8273_v41 = vld [vmem:[#allocation25_spill] sm:$0xff]  ;;  %8275 = vst [vmem:[#allocation55_spill] sm:$0xff] %v7635_v13  ;;  %vm3958_vm15 = vcmp.ge.f32.partialorder %v8272_v1, 0.0  ;;  %v8276_v62 = vld [vmem:[#allocation14_spill] sm:$0xff] }
 0x37e   :  { %8262 = vst [vmem:[#allocation50_spill] sm:$0xff] %v7597_v16  ;;  %v8269_v16 = vld [vmem:[#allocation11_spill] sm:$0xff]  ;;  %v4023_v49 = vmul.f32 0.2, %v8273_v41  ;;  %v4025_v3 = vmul.f32 0.2, %v8276_v62 }
 0x37f   :  { %v7616_v38 = vmul.f32 0.2, %v8269_v16  ;;  %v8277_v16 = vld [vmem:[#allocation15_spill] sm:$0xff]  ;;  %v8278_v37 = vld [vmem:[#allocation16_spill] sm:$0xff]  ;;  %v8279_v34 = vld [vmem:[#allocation17_spill] sm:$0xff] }
 0x380   :  { %v4026_v25 = vmul.f32 0.2, %v8277_v16  ;;  %v4027_v57 = vmul.f32 0.2, %v8278_v37  ;;  %v7648_v21 = vsel %vm3921_vm1, %v7169_v31, %v8279_v34  ;;  %vm3962_vm0 = vcmp.ge.f32.partialorder %v8277_v16, 0.0  ;;  %v8281_v27 = vld [vmem:[#allocation3_spill] sm:$0xff] }
 0x381   :  { %8270 = vst [vmem:[#allocation53_spill] sm:$0xff] %v7616_v38  ;;  %v4024_v38 = vmul.f32 0.2, %v8274_v10  ;;  %8280 = vst [vmem:[#allocation15_spill] sm:$0xff] %v7648_v21  ;;  %vm3964_vm4 = vcmp.ge.f32.partialorder %v8281_v27, 0.0  ;;  %v8282_v13 = vld [vmem:[#allocation4_spill] sm:$0xff]  ;;  %v7661_v31 = vsel %vm3922_vm2, %v7173_v39, %v7418_v12  ;;  %v7688_v12 = vsel %vm3926_vm6, %v7189_v63, %v7436_v14 }
 0x382   :  { %v4028_v62 = vmul.f32 0.2, %v8281_v27  ;;  %v4029_v10 = vmul.f32 0.2, %v8282_v13  ;;  %v8283_v41 = vld [vmem:[#allocation5_spill] sm:$0xff]  ;;  %v8284_v34 = vld [vmem:[#allocation6_spill] sm:$0xff]  ;;  %v7670_v27 = vsel %vm3923_vm3, %v7177_v46, %v7421_v56 }
 0x383   :  { %v4030_v1 = vmul.f32 0.2, %v8283_v41  ;;  %vm3966_vm1 = vcmp.ge.f32.partialorder %v8283_v41, 0.0  ;;  %vm3967_vm5 = vcmp.ge.f32.partialorder %v8284_v34, 0.0  ;;  %v4031_v21 = vmul.f32 0.2, %v8284_v34 }
 0x384   :  { %v8285_v13 = vld [vmem:[#allocation26_spill] sm:$0xff]  ;;  %vm8287_vm2 = vcmp.ge.f32.partialorder %v7185_v0, 0.0  ;;  %v8288_v46 = vld [vmem:[#allocation28_spill] sm:$0xff]  ;;  %vm8289_vm3 = vcmp.ge.f32.partialorder %v7193_v6, 0.0  ;;  %vm8293_vm6 = vcmp.ge.f32.partialorder %v7209_v35, 0.0 }
 0x385   :  { %v7676_v37 = vsel %vm8286_vm7, %v7181_v53, %v8285_v13  ;;  %v7682_v39 = vsel %vm8287_vm2, %v7185_v0, %v7433_v30  ;;  %v7694_v56 = vsel %vm8289_vm3, %v7193_v6, %v8288_v46  ;;  %vm8290_vm7 = vcmp.ge.f32.partialorder %v7197_v11, 0.0  ;;  %v8292_v63 = vld [vmem:[#allocation30_spill] sm:$0xff] }
 0x386   :  { %v7700_v53 = vsel %vm8290_vm7, %v7197_v11, %v7448_v60  ;;  %vm8291_vm2 = vcmp.ge.f32.partialorder %v7201_v17, 0.0  ;;  %v7712_v30 = vsel %vm3930_vm8, %v7205_v23, %v8292_v63  ;;  %v7718_v6 = vsel %vm8293_vm6, %v7209_v35, %v7463_v24  ;;  %v8326_v13 = vld [vmem:[#allocation22_spill] sm:$0xff]  ;;  %v8328_v63 = vld [vmem:[#allocation23_spill] sm:$0xff] }
 0x387   :  { %v7706_v0 = vsel %vm8291_vm2, %v7201_v17, %v7451_v50  ;;  %vm8294_vm3 = vcmp.ge.f32.partialorder %v7213_v44, 0.0  ;;  %vm8295_vm7 = vcmp.ge.f32.partialorder %v7217_v59, 0.0  ;;  %v7736_v23 = vsel %vm3934_vm9, %v7221_v5, %v7480_v61 }
 0x388   :  { %v7724_v11 = vsel %vm8294_vm3, %v7213_v44, %v7466_v32  ;;  %v7730_v17 = vsel %vm8295_vm7, %v7217_v59, %v7469_v40  ;;  %vm8296_vm8 = vcmp.ge.f32.partialorder %v7225_v20, 0.0  ;;  %v8297_v44 = vld [vmem:[#allocation33_spill] sm:$0xff]  ;;  %vm8298_vm2 = vcmp.ge.f32.partialorder %v7229_v29, 0.0  ;;  %v8314_v32 = vld [vmem:[#allocation19_spill] sm:$0xff] }
 0x389   :  { %v7742_v35 = vsel %vm8296_vm8, %v7225_v20, %v7483_v52  ;;  %v7748_v14 = vsel %vm8298_vm2, %v7229_v29, %v8297_v44  ;;  %vm8299_vm6 = vcmp.ge.f32.partialorder %v7233_v45, 0.0  ;;  %v7760_v5 = vsel %vm3938_vm10, %v7237_v55, %v7501_v51  ;;  %v8300_v20 = vld [vmem:[#allocation35_spill] sm:$0xff]  ;;  %v8304_v55 = vld [vmem:[#allocation37_spill] sm:$0xff] }
 0x38a   :  { %v7754_v59 = vsel %vm8299_vm6, %v7233_v45, %v7498_v8  ;;  %vm8301_vm9 = vcmp.ge.f32.partialorder %v7241_v9, 0.0  ;;  %vm8302_vm3 = vcmp.ge.f32.partialorder %v7245_v19, 0.0  ;;  %vm8303_vm7 = vcmp.ge.f32.partialorder %v7249_v36, 0.0  ;;  %v8320_v8 = vld [vmem:[#allocation20_spill] sm:$0xff] }
 0x38b   :  { %v7766_v40 = vsel %vm8301_vm9, %v7241_v9, %v8300_v20  ;;  %v7772_v29 = vsel %vm8302_vm3, %v7245_v19, %v7516_v43  ;;  %v7778_v45 = vsel %vm8303_vm7, %v7249_v36, %v7519_v22  ;;  %v7784_v51 = vsel %vm3942_vm11, %v7253_v48, %v8304_v55  ;;  %v8307_v36 = vld [vmem:[#allocation39_spill] sm:$0xff]  ;;  %v8322_v43 = vld [vmem:[#allocation49_spill] sm:$0xff]  ;;  %v8330_v20 = vld [vmem:[#allocation52_spill] sm:$0xff] }
 0x38c   :  { %vm8305_vm10 = vcmp.ge.f32.partialorder %v7257_v2, 0.0  ;;  %vm8306_vm8 = vcmp.ge.f32.partialorder %v7261_v15, 0.0  ;;  %vm8308_vm2 = vcmp.ge.f32.partialorder %v7265_v33, 0.0  ;;  %v7808_v48 = vsel %vm3946_vm12, %v7269_v47, %v7553_v7  ;;  %v8316_v47 = vld [vmem:[#allocation45_spill] sm:$0xff]  ;;  %v8331_v55 = vld [vmem:[#allocation24_spill] sm:$0xff] }
 0x38d   :  { %v7790_v9 = vsel %vm8305_vm10, %v7257_v2, %v7534_v42  ;;  %v7796_v19 = vsel %vm8306_vm8, %v7261_v15, %v7537_v26  ;;  %v7802_v60 = vsel %vm8308_vm2, %v7265_v33, %v8307_v36  ;;  %v8309_v2 = vld [vmem:[#allocation41_spill] sm:$0xff]  ;;  %vm8310_vm11 = vcmp.ge.f32.partialorder %v7273_v4, 0.0  ;;  %v8311_v15 = vld [vmem:[#allocation42_spill] sm:$0xff]  ;;  %v8313_v33 = vld [vmem:[#allocation44_spill] sm:$0xff] }
 0x38e   :  { %v7814_v50 = vsel %vm8310_vm11, %v7273_v4, %v8309_v2  ;;  %vm8312_vm6 = vcmp.ge.f32.partialorder %v7277_v18, 0.0  ;;  %vm8315_vm9 = vcmp.ge.f32.partialorder %v8314_v32, 0.0  ;;  %v7832_v52 = vsel %vm3950_vm13, %v7285_v54, %v8316_v47  ;;  %v8317_v4 = vld [vmem:[#allocation46_spill] sm:$0xff]  ;;  %v8323_v42 = vld [vmem:[#allocation21_spill] sm:$0xff] }
 0x38f   :  { %v7820_v24 = vsel %vm8312_vm6, %v7277_v18, %v8311_v15  ;;  %v7826_v61 = vsel %vm8315_vm9, %v8314_v32, %v8313_v33  ;;  %vm8318_vm12 = vcmp.ge.f32.partialorder %v7289_v28, 0.0  ;;  %v8319_v18 = vld [vmem:[#allocation48_spill] sm:$0xff]  ;;  %vm8321_vm3 = vcmp.ge.f32.partialorder %v8320_v8, 0.0  ;;  %v8325_v54 = vld [vmem:[#allocation50_spill] sm:$0xff]  ;;  %v8333_v2 = vld [vmem:[#allocation53_spill] sm:$0xff] }
 0x390   :  { %v7838_v22 = vsel %vm8318_vm12, %v7289_v28, %v8317_v4  ;;  %v7844_v26 = vsel %vm8321_vm3, %v8320_v8, %v8319_v18  ;;  %vm8324_vm7 = vcmp.ge.f32.partialorder %v8323_v42, 0.0  ;;  %v7856_v46 = vsel %vm3954_vm14, %v8326_v13, %v8325_v54  ;;  %v8327_v28 = vld [vmem:[#allocation51_spill] sm:$0xff]  ;;  %v8336_v32 = vld [vmem:[#allocation12_spill] sm:$0xff]  ;;  %v8337_v4 = vld [vmem:[#allocation25_spill] sm:$0xff] }
 0x391   :  { %v7850_v7 = vsel %vm8324_vm7, %v8323_v42, %v8322_v43  ;;  %vm8329_vm13 = vcmp.ge.f32.partialorder %v8328_v63, 0.0  ;;  %vm8332_vm10 = vcmp.ge.f32.partialorder %v8331_v55, 0.0  ;;  %v8334_v15 = vld [vmem:[#allocation11_spill] sm:$0xff]  ;;  %v7879_v47 = vsel %vm3958_vm15, %v8336_v32, %v4022_v58  ;;  %v8339_v8 = vld [vmem:[#allocation13_spill] sm:$0xff]  ;;  %v8341_v42 = vld [vmem:[#allocation14_spill] sm:$0xff] }
 0x392   :  { %v7862_v44 = vsel %vm8329_vm13, %v8328_v63, %v8327_v28  ;;  %v7868_v36 = vsel %vm8332_vm10, %v8331_v55, %v8330_v20  ;;  %vm8335_vm8 = vcmp.ge.f32.partialorder %v8334_v15, 0.0  ;;  %vm8338_vm14 = vcmp.ge.f32.partialorder %v8337_v4, 0.0  ;;  %v8343_v13 = vld [vmem:[#allocation16_spill] sm:$0xff]  ;;  %v8345_v28 = vld [vmem:[#allocation3_spill] sm:$0xff] }
 0x393   :  { %v7874_v33 = vsel %vm8335_vm8, %v8334_v15, %v8333_v2  ;;  %v7884_v18 = vsel %vm8338_vm14, %v8337_v4, %v4023_v49  ;;  %vm8340_vm2 = vcmp.ge.f32.partialorder %v8339_v8, 0.0  ;;  %vm8342_vm11 = vcmp.ge.f32.partialorder %v8341_v42, 0.0  ;;  %v8346_v63 = vld [vmem:[#allocation4_spill] sm:$0xff]  ;;  %v8353_v2 = vld [vmem:[#allocation18_spill] sm:$0xff]  ;;  %v8354_v32 = vld [vmem:[#allocation27_spill] sm:$0xff] }
 0x394   :  { %v7889_v43 = vsel %vm8340_vm2, %v8339_v8, %v4024_v38  ;;  %v7894_v54 = vsel %vm8342_vm11, %v8341_v42, %v4025_v3  ;;  %v7899_v58 = vsel %vm3962_vm0, %v8277_v16, %v4026_v25  ;;  %vm8344_vm15 = vcmp.ge.f32.partialorder %v8343_v13, 0.0  ;;  %v8350_v16 = vld [vmem:[#allocation7_spill] sm:$0xff]  ;;  %v8351_v20 = vld [vmem:[#allocation8_spill] sm:$0xff]  ;;  %v8355_v4 = vld [vmem:[#allocation29_spill] sm:$0xff] }
 0x395   :  { %v7904_v49 = vsel %vm8344_vm15, %v8343_v13, %v4027_v57  ;;  %v7909_v38 = vsel %vm3964_vm4, %v8345_v28, %v4028_v62  ;;  %vm8347_vm6 = vcmp.ge.f32.partialorder %v8346_v63, 0.0  ;;  %v7919_v25 = vsel %vm3966_vm1, %v8283_v41, %v4030_v1  ;;  %v8352_v62 = vld [vmem:[#allocation10_spill] sm:$0xff]  ;;  %v8356_v8 = vld [vmem:[#allocation31_spill] sm:$0xff]  ;;  %v8357_v42 = vld [vmem:[#allocation32_spill] sm:$0xff] }
 0x396   :  { %v7914_v3 = vsel %vm8347_vm6, %v8346_v63, %v4029_v10  ;;  %8349 = vst [vmem:[#allocation5_spill] sm:$0xff] %v7919_v25  ;;  %v7924_v57 = vsel %vm3967_vm5, %v8284_v34, %v4031_v21  ;;  %v4871_v55 = vpack.c.bf16 %v8351_v20, %v8350_v16  ;;  %v4876_v15 = vpack.c.bf16 %v8353_v2, %v8352_v62  ;;  %v8358_v28 = vld [vmem:[#allocation34_spill] sm:$0xff]  ;;  %v8359_v41 = vld [vmem:[#allocation36_spill] sm:$0xff]  ;;  %v8362_v21 = vld [vmem:[#allocation43_spill] sm:$0xff] }
 0x397   :  { %8348 = vst [vmem:[#allocation17_spill] sm:$0xff] %v7914_v3  ;;  %v4881_v10 = vpack.c.bf16 %v8355_v4, %v8354_v32  ;;  %v4886_v13 = vpack.c.bf16 %v8357_v42, %v8356_v8  ;;  %v4891_v1 = vpack.c.bf16 %v8359_v41, %v8358_v28  ;;  %v8360_v63 = vld [vmem:[#allocation38_spill] sm:$0xff]  ;;  %v8361_v25 = vld [vmem:[#allocation40_spill] sm:$0xff]  ;;  %v8363_v34 = vld [vmem:[#allocation47_spill] sm:$0xff] }
 0x398   :  { %v4896_v3 = vpack.c.bf16 %v8361_v25, %v8360_v63  ;;  %4872 = vst [vmem:[%s8090_s4] sm:$0xff] %v4871_v55   ;;  %5028 = vst [vmem:[%s8090_s4 + $0x8] sm:$0xff] %v4876_v15   ;;  %v4901_v16 = vpack.c.bf16 %v8363_v34, %v8362_v21  ;;  %v8364_v20 = vld [vmem:[#allocation9_spill] sm:$0xff]  ;;  %v8365_v62 = vld [vmem:[#allocation54_spill] sm:$0xff]  ;;  %v4916_v25 = vpack.c.bf16 %v7670_v27, %v7661_v31 }
 0x399   :  { %v4906_v2 = vpack.c.bf16 %v8365_v62, %v8364_v20  ;;  %v8366_v32 = vld [vmem:[#allocation55_spill] sm:$0xff]  ;;  %5029 = vst [vmem:[%s8090_s4 + $0x10] sm:$0xff] %v4881_v10   ;;  %5030 = vst [vmem:[%s8090_s4 + $0x18] sm:$0xff] %v4886_v13   ;;  %v4921_v55 = vpack.c.bf16 %v7682_v39, %v7676_v37  ;;  %v4926_v27 = vpack.c.bf16 %v7694_v56, %v7688_v12 }
 0x39a   :  { %v8367_v4 = vld [vmem:[#allocation15_spill] sm:$0xff]  ;;  %5031 = vst [vmem:[%s8090_s4 + $0x20] sm:$0xff] %v4891_v1   ;;  %5032 = vst [vmem:[%s8090_s4 + $0x28] sm:$0xff] %v4896_v3   ;;  %v4931_v31 = vpack.c.bf16 %v7706_v0, %v7700_v53  ;;  %v4936_v15 = vpack.c.bf16 %v7718_v6, %v7712_v30  ;;  %v4941_v37 = vpack.c.bf16 %v7730_v17, %v7724_v11 }
 0x39b   :  { %v4911_v8 = vpack.c.bf16 %v8367_v4, %v8366_v32  ;;  %5033 = vst [vmem:[%s8090_s4 + $0x30] sm:$0xff] %v4901_v16   ;;  %5034 = vst [vmem:[%s8090_s4 + $0x38] sm:$0xff] %v4906_v2   ;;  %v4946_v39 = vpack.c.bf16 %v7742_v35, %v7736_v23  ;;  %v4951_v12 = vpack.c.bf16 %v7754_v59, %v7748_v14 }
 0x39c   :  { %5036 = vst [vmem:[%s8090_s4 + $0x48] sm:$0xff] %v4916_v25   ;;  %v4956_v56 = vpack.c.bf16 %v7766_v40, %v7760_v5  ;;  %5037 = vst [vmem:[%s8090_s4 + $0x50] sm:$0xff] %v4921_v55   ;;  %v4961_v53 = vpack.c.bf16 %v7778_v45, %v7772_v29  ;;  %v4966_v0 = vpack.c.bf16 %v7790_v9, %v7784_v51 }
 0x39d   :  { %5035 = vst [vmem:[%s8090_s4 + $0x40] sm:$0xff] %v4911_v8   ;;  %5038 = vst [vmem:[%s8090_s4 + $0x58] sm:$0xff] %v4926_v27   ;;  %v4971_v30 = vpack.c.bf16 %v7802_v60, %v7796_v19  ;;  %v4976_v6 = vpack.c.bf16 %v7814_v50, %v7808_v48  ;;  %v4981_v11 = vpack.c.bf16 %v7826_v61, %v7820_v24  ;;  %v8369_v51 = vld [vmem:[#allocation5_spill] sm:$0xff] }
 0x39e   :  { %5039 = vst [vmem:[%s8090_s4 + $0x60] sm:$0xff] %v4931_v31   ;;  %5040 = vst [vmem:[%s8090_s4 + $0x68] sm:$0xff] %v4936_v15   ;;  %v4986_v17 = vpack.c.bf16 %v7838_v22, %v7832_v52  ;;  %v4991_v23 = vpack.c.bf16 %v7850_v7, %v7844_v26  ;;  %v4996_v35 = vpack.c.bf16 %v7862_v44, %v7856_v46  ;;  %v8368_v29 = vld [vmem:[#allocation17_spill] sm:$0xff] }
 0x39f   :  { %5041 = vst [vmem:[%s8090_s4 + $0x70] sm:$0xff] %v4941_v37   ;;  %5042 = vst [vmem:[%s8090_s4 + $0x78] sm:$0xff] %v4946_v39   ;;  %v5001_v14 = vpack.c.bf16 %v7874_v33, %v7868_v36  ;;  %v5006_v59 = vpack.c.bf16 %v7884_v18, %v7879_v47  ;;  %v5011_v5 = vpack.c.bf16 %v7894_v54, %v7889_v43 }
 0x3a0   :  { %5043 = vst [vmem:[%s8090_s4 + $0x80] sm:$0xff] %v4951_v12   ;;  %5044 = vst [vmem:[%s8090_s4 + $0x88] sm:$0xff] %v4956_v56   ;;  %v5016_v40 = vpack.c.bf16 %v7904_v49, %v7899_v58  ;;  %v5021_v45 = vpack.c.bf16 %v8368_v29, %v7909_v38  ;;  %v5026_v9 = vpack.c.bf16 %v7924_v57, %v8369_v51 }
 0x3a1   :  { %5045 = vst [vmem:[%s8090_s4 + $0x90] sm:$0xff] %v4961_v53   ;;  %5046 = vst [vmem:[%s8090_s4 + $0x98] sm:$0xff] %v4966_v0  }
 0x3a2   :  { %5047 = vst [vmem:[%s8090_s4 + $0xa0] sm:$0xff] %v4971_v30   ;;  %5048 = vst [vmem:[%s8090_s4 + $0xa8] sm:$0xff] %v4976_v6  }
 0x3a3   :  { %5049 = vst [vmem:[%s8090_s4 + $0xb0] sm:$0xff] %v4981_v11   ;;  %5050 = vst [vmem:[%s8090_s4 + $0xb8] sm:$0xff] %v4986_v17  }
 0x3a4   :  { %5051 = vst [vmem:[%s8090_s4 + $0xc0] sm:$0xff] %v4991_v23   ;;  %5052 = vst [vmem:[%s8090_s4 + $0xc8] sm:$0xff] %v4996_v35  }
 0x3a5   :  { %5053 = vst [vmem:[%s8090_s4 + $0xd0] sm:$0xff] %v5001_v14   ;;  %5054 = vst [vmem:[%s8090_s4 + $0xd8] sm:$0xff] %v5006_v59  }
 0x3a6   :  { %5055 = vst [vmem:[%s8090_s4 + $0xe0] sm:$0xff] %v5011_v5   ;;  %5056 = vst [vmem:[%s8090_s4 + $0xe8] sm:$0xff] %v5016_v40  }
 0x3a7   :  { %5057 = vst [vmem:[%s8090_s4 + $0xf0] sm:$0xff] %v5021_v45   ;;  %5058 = vst [vmem:[%s8090_s4 + $0xf8] sm:$0xff] %v5026_v9  }

// kernel: encoder_cnn_forward.7
= control target key start
LH: loop header
LB: loop body
LE: loop exit
PB: predicated region body
PF: predicated region fallthrough
CT: control target
= control target key end

     0   :  { %s3250_s15 = smov 0   ;;  %s3252_s16 = smov 0   ;;  %s3978_s0 = inlined_call_operand.vmem [shape: bf16[128,2048], index: 0, kind: input, shape index: {}]   ;;  %s3979_s1 = inlined_call_operand.vmem [shape: bf16[2048,256], index: 1, kind: input, shape index: {}]   ;;  %s3980_s2 = inlined_call_operand.vmem [shape: f32[1,256], index: 2, kind: input, shape index: {}]   ;;  %s3981_s3 = inlined_call_operand.vmem [shape: f32[1,256], index: 3, kind: input, shape index: {}]   ;;  %s3982_s4 = inlined_call_operand.vmem [shape: bf16[128,256], index: 4, kind: output, shape index: {}]  }
   0x1   :  { %s3254_s17 = smov 0  }
   0x2 LB: > { %s3266_s18 = sadd.s32 4294967295, %s3221_s17   ;;  %s3269_s19 = sadd.s32 1, %s3221_s17   ;;  %s3221_s17 = sphi %s3254_s17, %s3985_s17   ;;  %s3217_s16 = sphi %s3252_s16, %s3984_s16   ;;  %s3213_s15 = sphi %s3250_s15, %s3983_s15  }
   0x3   : > { %s18_s20 = ssub.s32 %s3221_s17, %s3269_s19  ;;  %s21_s21 = sadd.s32 1, %s3217_s16 }
   0x4   : > { %p19_p0 = scmp.eq.s32.totalorder %s18_s20, 0  ;;  %p28_p1 = scmp.ne.s32.totalorder %s3217_s16, %s3213_s15 }
   0x5   : > { %p29_p2 = scmp.eq.s32.totalorder %s3221_s17, 0  ;;  %p2642_p4 = scmp.ge.s32.totalorder %s3221_s17, 2 }
   0x6   : > { %s3278_s22 = scalar_select %p19_p0, %s3217_s16, %s21_s21  }
   0x7   : > { %p30_p3 = por %p29_p2, %p28_p1  ;;  %149 = sbr.rel (%p2642_p4) target bundleno = 50 (0x32), region = 24 }
   0xe   : > { %152 = sbr.rel (!%p30_p3) target bundleno = 50 (0x32), region = 28  ;;  %s154_s23 = sand.u32 (%p30_p3), 1, %s3217_s16  }
   0xf   : > { %s2863_s24 = sshll.u32 (%p30_p3), %s3221_s17, 5  ;;  %s2643_s25 = sshll.u32 (%p30_p3), %s154_s23, 9 }
  0x10   : > { %s3286_s28 = scalar_lea.vmem (%p30_p3), %s3978_s0, %s2863_s24  ;;  %s3291_s29 = scalar_lea.vmem (%p30_p3), [#allocation3], %s2643_s25 }
  0x11   : > { %v172_v0 = vld [vmem:[%s3286_s28] sm:$0xff] (%p30_p3)  ;;  %v174_v1 = vld [vmem:[%s3286_s28 + $0x8] sm:$0xff] (%p30_p3)  ;;  %v176_v2 = vld [vmem:[%s3286_s28 + $0x10] sm:$0xff] (%p30_p3) }
  0x12   : > { %173 = vst [vmem:[%s3291_s29] sm:$0xff] (%p30_p3), %v172_v0  ;;  %175 = vst [vmem:[%s3291_s29 + $0x8] sm:$0xff] (%p30_p3), %v174_v1  ;;  %v178_v3 = vld [vmem:[%s3286_s28 + $0x18] sm:$0xff] (%p30_p3)  ;;  %v180_v4 = vld [vmem:[%s3286_s28 + $0x40] sm:$0xff] (%p30_p3) }
  0x13   : > { %177 = vst [vmem:[%s3291_s29 + $0x10] sm:$0xff] (%p30_p3), %v176_v2  ;;  %v182_v5 = vld [vmem:[%s3286_s28 + $0x48] sm:$0xff] (%p30_p3)  ;;  %179 = vst [vmem:[%s3291_s29 + $0x18] sm:$0xff] (%p30_p3), %v178_v3  ;;  %v184_v6 = vld [vmem:[%s3286_s28 + $0x50] sm:$0xff] (%p30_p3) }
  0x14   : > { %181 = vst [vmem:[%s3291_s29 + $0x20] sm:$0xff] (%p30_p3), %v180_v4  ;;  %183 = vst [vmem:[%s3291_s29 + $0x28] sm:$0xff] (%p30_p3), %v182_v5  ;;  %v186_v7 = vld [vmem:[%s3286_s28 + $0x58] sm:$0xff] (%p30_p3)  ;;  %v188_v8 = vld [vmem:[%s3286_s28 + $0x80] sm:$0xff] (%p30_p3) }
  0x15   : > { %185 = vst [vmem:[%s3291_s29 + $0x30] sm:$0xff] %v184_v6  ;;  %187 = vst [vmem:[%s3291_s29 + $0x38] sm:$0xff] %v186_v7  ;;  %v190_v9 = vld [vmem:[%s3286_s28 + $0x88] sm:$0xff]  ;;  %v192_v10 = vld [vmem:[%s3286_s28 + $0x90] sm:$0xff] }
  0x16   : > { %189 = vst [vmem:[%s3291_s29 + $0x40] sm:$0xff] %v188_v8  ;;  %v194_v11 = vld [vmem:[%s3286_s28 + $0x98] sm:$0xff]  ;;  %191 = vst [vmem:[%s3291_s29 + $0x48] sm:$0xff] %v190_v9  ;;  %v196_v12 = vld [vmem:[%s3286_s28 + $0xc0] sm:$0xff] }
  0x17   : > { %193 = vst [vmem:[%s3291_s29 + $0x50] sm:$0xff] %v192_v10  ;;  %195 = vst [vmem:[%s3291_s29 + $0x58] sm:$0xff] %v194_v11  ;;  %v198_v13 = vld [vmem:[%s3286_s28 + $0xc8] sm:$0xff]  ;;  %v200_v14 = vld [vmem:[%s3286_s28 + $0xd0] sm:$0xff] }
  0x18   : > { %197 = vst [vmem:[%s3291_s29 + $0x60] sm:$0xff] %v196_v12  ;;  %199 = vst [vmem:[%s3291_s29 + $0x68] sm:$0xff] %v198_v13  ;;  %v202_v15 = vld [vmem:[%s3286_s28 + $0xd8] sm:$0xff]  ;;  %v204_v16 = vld [vmem:[%s3286_s28 + $0x100] sm:$0xff] }
  0x19   : > { %201 = vst [vmem:[%s3291_s29 + $0x70] sm:$0xff] %v200_v14  ;;  %v206_v17 = vld [vmem:[%s3286_s28 + $0x108] sm:$0xff]  ;;  %203 = vst [vmem:[%s3291_s29 + $0x78] sm:$0xff] %v202_v15  ;;  %v208_v18 = vld [vmem:[%s3286_s28 + $0x110] sm:$0xff] }
  0x1a   : > { %205 = vst [vmem:[%s3291_s29 + $0x80] sm:$0xff] %v204_v16  ;;  %207 = vst [vmem:[%s3291_s29 + $0x88] sm:$0xff] %v206_v17  ;;  %v210_v19 = vld [vmem:[%s3286_s28 + $0x118] sm:$0xff]  ;;  %v212_v20 = vld [vmem:[%s3286_s28 + $0x140] sm:$0xff] }
  0x1b   : > { %209 = vst [vmem:[%s3291_s29 + $0x90] sm:$0xff] %v208_v18  ;;  %211 = vst [vmem:[%s3291_s29 + $0x98] sm:$0xff] %v210_v19  ;;  %v214_v21 = vld [vmem:[%s3286_s28 + $0x148] sm:$0xff]  ;;  %v216_v22 = vld [vmem:[%s3286_s28 + $0x150] sm:$0xff] }
  0x1c   : > { %213 = vst [vmem:[%s3291_s29 + $0xa0] sm:$0xff] %v212_v20  ;;  %v218_v23 = vld [vmem:[%s3286_s28 + $0x158] sm:$0xff]  ;;  %215 = vst [vmem:[%s3291_s29 + $0xa8] sm:$0xff] %v214_v21  ;;  %v220_v24 = vld [vmem:[%s3286_s28 + $0x180] sm:$0xff] }
  0x1d   : > { %217 = vst [vmem:[%s3291_s29 + $0xb0] sm:$0xff] %v216_v22  ;;  %219 = vst [vmem:[%s3291_s29 + $0xb8] sm:$0xff] %v218_v23  ;;  %v222_v25 = vld [vmem:[%s3286_s28 + $0x188] sm:$0xff]  ;;  %v224_v26 = vld [vmem:[%s3286_s28 + $0x190] sm:$0xff] }
  0x1e   : > { %221 = vst [vmem:[%s3291_s29 + $0xc0] sm:$0xff] %v220_v24  ;;  %223 = vst [vmem:[%s3291_s29 + $0xc8] sm:$0xff] %v222_v25  ;;  %v226_v27 = vld [vmem:[%s3286_s28 + $0x198] sm:$0xff]  ;;  %v228_v28 = vld [vmem:[%s3286_s28 + $0x1c0] sm:$0xff] }
  0x1f   : > { %225 = vst [vmem:[%s3291_s29 + $0xd0] sm:$0xff] %v224_v26  ;;  %v230_v29 = vld [vmem:[%s3286_s28 + $0x1c8] sm:$0xff]  ;;  %227 = vst [vmem:[%s3291_s29 + $0xd8] sm:$0xff] %v226_v27  ;;  %v232_v30 = vld [vmem:[%s3286_s28 + $0x1d0] sm:$0xff] }
  0x20   : > { %229 = vst [vmem:[%s3291_s29 + $0xe0] sm:$0xff] %v228_v28  ;;  %231 = vst [vmem:[%s3291_s29 + $0xe8] sm:$0xff] %v230_v29  ;;  %v234_v31 = vld [vmem:[%s3286_s28 + $0x1d8] sm:$0xff]  ;;  %v236_v32 = vld [vmem:[%s3286_s28 + $0x200] sm:$0xff] }
  0x21   : > { %233 = vst [vmem:[%s3291_s29 + $0xf0] sm:$0xff] %v232_v30  ;;  %235 = vst [vmem:[%s3291_s29 + $0xf8] sm:$0xff] %v234_v31  ;;  %v238_v33 = vld [vmem:[%s3286_s28 + $0x208] sm:$0xff]  ;;  %v240_v34 = vld [vmem:[%s3286_s28 + $0x210] sm:$0xff] }
  0x22   : > { %237 = vst [vmem:[%s3291_s29 + $0x100] sm:$0xff] %v236_v32  ;;  %v242_v35 = vld [vmem:[%s3286_s28 + $0x218] sm:$0xff]  ;;  %239 = vst [vmem:[%s3291_s29 + $0x108] sm:$0xff] %v238_v33  ;;  %v244_v36 = vld [vmem:[%s3286_s28 + $0x240] sm:$0xff] }
  0x23   : > { %241 = vst [vmem:[%s3291_s29 + $0x110] sm:$0xff] %v240_v34  ;;  %243 = vst [vmem:[%s3291_s29 + $0x118] sm:$0xff] %v242_v35  ;;  %v246_v37 = vld [vmem:[%s3286_s28 + $0x248] sm:$0xff]  ;;  %v248_v38 = vld [vmem:[%s3286_s28 + $0x250] sm:$0xff] }
  0x24   : > { %245 = vst [vmem:[%s3291_s29 + $0x120] sm:$0xff] %v244_v36  ;;  %247 = vst [vmem:[%s3291_s29 + $0x128] sm:$0xff] %v246_v37  ;;  %v250_v39 = vld [vmem:[%s3286_s28 + $0x258] sm:$0xff]  ;;  %v252_v40 = vld [vmem:[%s3286_s28 + $0x280] sm:$0xff] }
  0x25   : > { %249 = vst [vmem:[%s3291_s29 + $0x130] sm:$0xff] %v248_v38  ;;  %v254_v41 = vld [vmem:[%s3286_s28 + $0x288] sm:$0xff]  ;;  %251 = vst [vmem:[%s3291_s29 + $0x138] sm:$0xff] %v250_v39  ;;  %v256_v42 = vld [vmem:[%s3286_s28 + $0x290] sm:$0xff] }
  0x26   : > { %253 = vst [vmem:[%s3291_s29 + $0x140] sm:$0xff] %v252_v40  ;;  %255 = vst [vmem:[%s3291_s29 + $0x148] sm:$0xff] %v254_v41  ;;  %v258_v43 = vld [vmem:[%s3286_s28 + $0x298] sm:$0xff]  ;;  %v260_v44 = vld [vmem:[%s3286_s28 + $0x2c0] sm:$0xff] }
  0x27   : > { %257 = vst [vmem:[%s3291_s29 + $0x150] sm:$0xff] %v256_v42  ;;  %259 = vst [vmem:[%s3291_s29 + $0x158] sm:$0xff] %v258_v43  ;;  %v262_v45 = vld [vmem:[%s3286_s28 + $0x2c8] sm:$0xff]  ;;  %v264_v46 = vld [vmem:[%s3286_s28 + $0x2d0] sm:$0xff] }
  0x28   : > { %261 = vst [vmem:[%s3291_s29 + $0x160] sm:$0xff] %v260_v44  ;;  %v266_v47 = vld [vmem:[%s3286_s28 + $0x2d8] sm:$0xff]  ;;  %263 = vst [vmem:[%s3291_s29 + $0x168] sm:$0xff] %v262_v45  ;;  %v268_v48 = vld [vmem:[%s3286_s28 + $0x300] sm:$0xff] }
  0x29   : > { %265 = vst [vmem:[%s3291_s29 + $0x170] sm:$0xff] %v264_v46  ;;  %267 = vst [vmem:[%s3291_s29 + $0x178] sm:$0xff] %v266_v47  ;;  %v270_v49 = vld [vmem:[%s3286_s28 + $0x308] sm:$0xff]  ;;  %v272_v50 = vld [vmem:[%s3286_s28 + $0x310] sm:$0xff] }
  0x2a   : > { %269 = vst [vmem:[%s3291_s29 + $0x180] sm:$0xff] %v268_v48  ;;  %271 = vst [vmem:[%s3291_s29 + $0x188] sm:$0xff] %v270_v49  ;;  %v274_v51 = vld [vmem:[%s3286_s28 + $0x318] sm:$0xff]  ;;  %v276_v52 = vld [vmem:[%s3286_s28 + $0x340] sm:$0xff] }
  0x2b   : > { %273 = vst [vmem:[%s3291_s29 + $0x190] sm:$0xff] %v272_v50  ;;  %v278_v53 = vld [vmem:[%s3286_s28 + $0x348] sm:$0xff]  ;;  %275 = vst [vmem:[%s3291_s29 + $0x198] sm:$0xff] %v274_v51  ;;  %v280_v54 = vld [vmem:[%s3286_s28 + $0x350] sm:$0xff] }
  0x2c   : > { %277 = vst [vmem:[%s3291_s29 + $0x1a0] sm:$0xff] %v276_v52  ;;  %279 = vst [vmem:[%s3291_s29 + $0x1a8] sm:$0xff] %v278_v53  ;;  %v282_v55 = vld [vmem:[%s3286_s28 + $0x358] sm:$0xff]  ;;  %v284_v56 = vld [vmem:[%s3286_s28 + $0x380] sm:$0xff] }
  0x2d   : > { %281 = vst [vmem:[%s3291_s29 + $0x1b0] sm:$0xff] %v280_v54  ;;  %283 = vst [vmem:[%s3291_s29 + $0x1b8] sm:$0xff] %v282_v55  ;;  %v286_v57 = vld [vmem:[%s3286_s28 + $0x388] sm:$0xff]  ;;  %v288_v58 = vld [vmem:[%s3286_s28 + $0x390] sm:$0xff] }
  0x2e   : > { %285 = vst [vmem:[%s3291_s29 + $0x1c0] sm:$0xff] %v284_v56  ;;  %v290_v59 = vld [vmem:[%s3286_s28 + $0x398] sm:$0xff]  ;;  %287 = vst [vmem:[%s3291_s29 + $0x1c8] sm:$0xff] %v286_v57  ;;  %v292_v60 = vld [vmem:[%s3286_s28 + $0x3c0] sm:$0xff] }
  0x2f   : > { %289 = vst [vmem:[%s3291_s29 + $0x1d0] sm:$0xff] %v288_v58  ;;  %291 = vst [vmem:[%s3291_s29 + $0x1d8] sm:$0xff] %v290_v59  ;;  %v294_v61 = vld [vmem:[%s3286_s28 + $0x3c8] sm:$0xff]  ;;  %v296_v62 = vld [vmem:[%s3286_s28 + $0x3d0] sm:$0xff] }
  0x30   : > { %293 = vst [vmem:[%s3291_s29 + $0x1e0] sm:$0xff] %v292_v60  ;;  %295 = vst [vmem:[%s3291_s29 + $0x1e8] sm:$0xff] %v294_v61  ;;  %v298_v63 = vld [vmem:[%s3286_s28 + $0x3d8] sm:$0xff] }
  0x31   : > { %297 = vst [vmem:[%s3291_s29 + $0x1f0] sm:$0xff] %v296_v62  ;;  %299 = vst [vmem:[%s3291_s29 + $0x1f8] sm:$0xff] %v298_v63 }
  0x32 PF: > { %p2646_p5 = scmp.ge.s32.totalorder %s3221_s17, 1  ;;  %p314_p6 = scmp.lt.s32.totalorder %s3221_s17, 3 }
  0x34   : > { %p315_p7 = pnand %p2646_p5, %p314_p6 }
  0x35   : > { %s321_s30 = sand.u32 (!%p315_p7), 1, %s3213_s15   ;;  %s2648_s5 = sshll.u32 (!%p315_p7), %s3266_s18, 7 }
  0x36   : > { %318 = sbr.rel (%p315_p7) target bundleno = 601 (0x259), region = 55  ;;  %s2647_s6 = sshll.u32 (!%p315_p7), %s321_s30, 9 }
  0x37   : > { %p349_p8 = scmp.lt.s32.totalorder (!%p315_p7), %s2648_s5, 255  ;;  %s3427_s11 = scalar_lea.vmem (!%p315_p7), [#allocation3], %s2647_s6 }
  0x38   : > { %p2651_p9 = scmp.ne.s32.totalorder (!%p315_p7), %s3266_s18, 0 }
  0x3d   : > { %s3987_s5 = smov (!%p349_p8, %s2648_s5), 255  ;;  %358 = sbr.rel (%p2651_p9) target bundleno = 79 (0x4f), region = 63 }
  0x3e   : > { %s2864_s7 = sshll.u32 %s3987_s5, 3  ;;  %v3223_v0 = vmov (!%p2651_p9), 0.0  }
  0x3f   : > { %s3425_s10 = scalar_lea.vmem %s3979_s1, %s2864_s7  ;;  %359 = vst [vmem:[#allocation2] sm:$0xff] (!%p2651_p9), %v3223_v0  ;;  %360 = vst [vmem:[#allocation2 + $0x8] sm:$0xff] (!%p2651_p9), %v3223_v0 }
  0x40   : > { %361 = vst [vmem:[#allocation2 + $0x10] sm:$0xff] (!%p2651_p9), %v3223_v0  ;;  %362 = vst [vmem:[#allocation2 + $0x18] sm:$0xff] (!%p2651_p9), %v3223_v0 }
  0x41   : > { %363 = vst [vmem:[#allocation2 + $0x20] sm:$0xff] (!%p2651_p9), %v3223_v0  ;;  %364 = vst [vmem:[#allocation2 + $0x28] sm:$0xff] (!%p2651_p9), %v3223_v0 }
  0x42   : > { %365 = vst [vmem:[#allocation2 + $0x30] sm:$0xff] (!%p2651_p9), %v3223_v0  ;;  %366 = vst [vmem:[#allocation2 + $0x38] sm:$0xff] (!%p2651_p9), %v3223_v0 }
  0x43   : > { %367 = vst [vmem:[#allocation2 + $0x40] sm:$0xff] (!%p2651_p9), %v3223_v0  ;;  %368 = vst [vmem:[#allocation2 + $0x48] sm:$0xff] (!%p2651_p9), %v3223_v0 }
  0x44   : > { %369 = vst [vmem:[#allocation2 + $0x50] sm:$0xff] %v3223_v0  ;;  %370 = vst [vmem:[#allocation2 + $0x58] sm:$0xff] %v3223_v0 }
  0x45   : > { %371 = vst [vmem:[#allocation2 + $0x60] sm:$0xff] %v3223_v0  ;;  %372 = vst [vmem:[#allocation2 + $0x68] sm:$0xff] %v3223_v0 }
  0x46   : > { %373 = vst [vmem:[#allocation2 + $0x70] sm:$0xff] %v3223_v0  ;;  %374 = vst [vmem:[#allocation2 + $0x78] sm:$0xff] %v3223_v0 }
  0x47   : > { %375 = vst [vmem:[#allocation2 + $0x80] sm:$0xff] %v3223_v0  ;;  %376 = vst [vmem:[#allocation2 + $0x88] sm:$0xff] %v3223_v0 }
  0x48   : > { %377 = vst [vmem:[#allocation2 + $0x90] sm:$0xff] %v3223_v0  ;;  %378 = vst [vmem:[#allocation2 + $0x98] sm:$0xff] %v3223_v0 }
  0x49   : > { %379 = vst [vmem:[#allocation2 + $0xa0] sm:$0xff] %v3223_v0  ;;  %380 = vst [vmem:[#allocation2 + $0xa8] sm:$0xff] %v3223_v0 }
  0x4a   : > { %381 = vst [vmem:[#allocation2 + $0xb0] sm:$0xff] %v3223_v0  ;;  %382 = vst [vmem:[#allocation2 + $0xb8] sm:$0xff] %v3223_v0 }
  0x4b   : > { %383 = vst [vmem:[#allocation2 + $0xc0] sm:$0xff] %v3223_v0  ;;  %384 = vst [vmem:[#allocation2 + $0xc8] sm:$0xff] %v3223_v0 }
  0x4c   : > { %385 = vst [vmem:[#allocation2 + $0xd0] sm:$0xff] %v3223_v0  ;;  %386 = vst [vmem:[#allocation2 + $0xd8] sm:$0xff] %v3223_v0 }
  0x4d   : > { %387 = vst [vmem:[#allocation2 + $0xe0] sm:$0xff] %v3223_v0  ;;  %388 = vst [vmem:[#allocation2 + $0xe8] sm:$0xff] %v3223_v0 }
  0x4e   : > { %389 = vst [vmem:[#allocation2 + $0xf0] sm:$0xff] %v3223_v0  ;;  %390 = vst [vmem:[#allocation2 + $0xf8] sm:$0xff] %v3223_v0 }
  0x4f PF: > { %v3003_v1 = vld [vmem:[%s3425_s10 + $0x4] ss:$8 sps:$4 sm:$0xff]   ;;  %v3007_v3 = vld [vmem:[%s3425_s10] ss:$8 sps:$4 sm:$0xff]   ;;  %v3009_v5 = vld [vmem:[%s3425_s10 + $0x14] ss:$8 sps:$4 sm:$0xff]  }
  0x50   : > { %v3005_v2 = vld [vmem:[%s3425_s10 + $0x204] ss:$8 sps:$4 sm:$0xff]   ;;  %1575 = vmatprep.subr.bf16.mxu1 %v3003_v1  ;;  %v3008_v4 = vld [vmem:[%s3425_s10 + $0x200] ss:$8 sps:$4 sm:$0xff]   ;;  %v3011_v6 = vld [vmem:[%s3425_s10 + $0x214] ss:$8 sps:$4 sm:$0xff]  }
  0x51   : > { %1801 = vmatprep.subr.bf16.mxu0 %v3005_v2  ;;  %1576 = vmatpush1.bf16.msra.mxu1 %v3007_v3  ;;  %v3013_v7 = vld [vmem:[%s3425_s10 + $0x10] ss:$8 sps:$4 sm:$0xff]   ;;  %v3015_v9 = vld [vmem:[%s3425_s10 + $0x24] ss:$8 sps:$4 sm:$0xff]   ;;  %v3019_v11 = vld [vmem:[%s3425_s10 + $0x20] ss:$8 sps:$4 sm:$0xff]  }
  0x52   : > { %1802 = vmatpush1.bf16.msra.mxu0 %v3008_v4  ;;  %1577 = vmatprep.subr.bf16.mxu1 %v3009_v5  ;;  %v3014_v8 = vld [vmem:[%s3425_s10 + $0x210] ss:$8 sps:$4 sm:$0xff]   ;;  %v3017_v10 = vld [vmem:[%s3425_s10 + $0x224] ss:$8 sps:$4 sm:$0xff]   ;;  %v3020_v12 = vld [vmem:[%s3425_s10 + $0x220] ss:$8 sps:$4 sm:$0xff]  }
  0x53   : > { %1803 = vmatprep.subr.bf16.mxu0 %v3011_v6  ;;  %v3021_v13 = vld [vmem:[%s3425_s10 + $0x34] ss:$8 sps:$4 sm:$0xff]   ;;  %v3025_v15 = vld [vmem:[%s3425_s10 + $0x30] ss:$8 sps:$4 sm:$0xff]   ;;  %v3027_v17 = vld [vmem:[%s3425_s10 + $0x44] ss:$8 sps:$4 sm:$0xff]  }
  0x54   : > { %v3023_v14 = vld [vmem:[%s3425_s10 + $0x234] ss:$8 sps:$4 sm:$0xff]   ;;  %v3026_v16 = vld [vmem:[%s3425_s10 + $0x230] ss:$8 sps:$4 sm:$0xff]   ;;  %v3029_v18 = vld [vmem:[%s3425_s10 + $0x244] ss:$8 sps:$4 sm:$0xff]  }
  0x55   : > { %1578 = vmatpush1.bf16.msra.mxu1 %v3013_v7  ;;  %v3031_v19 = vld [vmem:[%s3425_s10 + $0x40] ss:$8 sps:$4 sm:$0xff]   ;;  %v3033_v21 = vld [vmem:[%s3425_s10 + $0x54] ss:$8 sps:$4 sm:$0xff]   ;;  %v3037_v23 = vld [vmem:[%s3425_s10 + $0x50] ss:$8 sps:$4 sm:$0xff]  }
  0x56   : > { %1804 = vmatpush1.bf16.msra.mxu0 %v3014_v8  ;;  %1579 = vmatprep.subr.bf16.mxu1 %v3015_v9  ;;  %v3032_v20 = vld [vmem:[%s3425_s10 + $0x240] ss:$8 sps:$4 sm:$0xff]   ;;  %v3035_v22 = vld [vmem:[%s3425_s10 + $0x254] ss:$8 sps:$4 sm:$0xff]   ;;  %v3038_v24 = vld [vmem:[%s3425_s10 + $0x250] ss:$8 sps:$4 sm:$0xff]  }
  0x57   : > { %1805 = vmatprep.subr.bf16.mxu0 %v3017_v10  ;;  %v3039_v25 = vld [vmem:[%s3425_s10 + $0x64] ss:$8 sps:$4 sm:$0xff]   ;;  %v3043_v27 = vld [vmem:[%s3425_s10 + $0x60] ss:$8 sps:$4 sm:$0xff]   ;;  %v3045_v29 = vld [vmem:[%s3425_s10 + $0x74] ss:$8 sps:$4 sm:$0xff]  }
  0x58   : > { %v3041_v26 = vld [vmem:[%s3425_s10 + $0x264] ss:$8 sps:$4 sm:$0xff]   ;;  %v3044_v28 = vld [vmem:[%s3425_s10 + $0x260] ss:$8 sps:$4 sm:$0xff]   ;;  %v3047_v30 = vld [vmem:[%s3425_s10 + $0x274] ss:$8 sps:$4 sm:$0xff]  }
  0x59   : > { %1580 = vmatpush1.bf16.msra.mxu1 %v3019_v11  ;;  %v3049_v31 = vld [vmem:[%s3425_s10 + $0x70] ss:$8 sps:$4 sm:$0xff]   ;;  %v3051_v33 = vld [vmem:[%s3425_s10 + $0x84] ss:$8 sps:$4 sm:$0xff]   ;;  %v3055_v35 = vld [vmem:[%s3425_s10 + $0x80] ss:$8 sps:$4 sm:$0xff]  }
  0x5a   : > { %1806 = vmatpush1.bf16.msra.mxu0 %v3020_v12  ;;  %1581 = vmatprep.subr.bf16.mxu1 %v3021_v13  ;;  %v3050_v32 = vld [vmem:[%s3425_s10 + $0x270] ss:$8 sps:$4 sm:$0xff]   ;;  %v3053_v34 = vld [vmem:[%s3425_s10 + $0x284] ss:$8 sps:$4 sm:$0xff]   ;;  %v3056_v36 = vld [vmem:[%s3425_s10 + $0x280] ss:$8 sps:$4 sm:$0xff]  }
  0x5b   : > { %1807 = vmatprep.subr.bf16.mxu0 %v3023_v14  ;;  %v3057_v37 = vld [vmem:[%s3425_s10 + $0x94] ss:$8 sps:$4 sm:$0xff]   ;;  %v3061_v39 = vld [vmem:[%s3425_s10 + $0x90] ss:$8 sps:$4 sm:$0xff]   ;;  %v3063_v41 = vld [vmem:[%s3425_s10 + $0xa4] ss:$8 sps:$4 sm:$0xff]  }
  0x5c   : > { %v3059_v38 = vld [vmem:[%s3425_s10 + $0x294] ss:$8 sps:$4 sm:$0xff]   ;;  %v3062_v40 = vld [vmem:[%s3425_s10 + $0x290] ss:$8 sps:$4 sm:$0xff]   ;;  %v3065_v42 = vld [vmem:[%s3425_s10 + $0x2a4] ss:$8 sps:$4 sm:$0xff]  }
  0x5d   : > { %1582 = vmatpush1.bf16.msra.mxu1 %v3025_v15  ;;  %v3067_v43 = vld [vmem:[%s3425_s10 + $0xa0] ss:$8 sps:$4 sm:$0xff]   ;;  %v3069_v45 = vld [vmem:[%s3425_s10 + $0xb4] ss:$8 sps:$4 sm:$0xff]   ;;  %v3073_v47 = vld [vmem:[%s3425_s10 + $0xb0] ss:$8 sps:$4 sm:$0xff]  }
  0x5e   : > { %1808 = vmatpush1.bf16.msra.mxu0 %v3026_v16  ;;  %1583 = vmatprep.subr.bf16.mxu1 %v3027_v17  ;;  %v3068_v44 = vld [vmem:[%s3425_s10 + $0x2a0] ss:$8 sps:$4 sm:$0xff]   ;;  %v3071_v46 = vld [vmem:[%s3425_s10 + $0x2b4] ss:$8 sps:$4 sm:$0xff]   ;;  %v3074_v48 = vld [vmem:[%s3425_s10 + $0x2b0] ss:$8 sps:$4 sm:$0xff]  }
  0x5f   : > { %1809 = vmatprep.subr.bf16.mxu0 %v3029_v18  ;;  %v423_v49 = vld [vmem:[%s3427_s11] sm:$0xff]  ;;  %v425_v51 = vld [vmem:[%s3427_s11 + $0x10] sm:$0xff]  ;;  %p2844_p10 = scmp.ne.s32.totalorder %s3266_s18, 1 }
  0x60   : > { %v427_v50 = vld [vmem:[%s3427_s11 + $0x20] sm:$0xff]  ;;  %v429_v52 = vld [vmem:[%s3427_s11 + $0x30] sm:$0xff] }
  0x61   : > { %1584 = vmatpush1.bf16.msra.mxu1 %v3031_v19  ;;  %v3075_v53 = vld [vmem:[%s3425_s10 + $0xc4] ss:$8 sps:$4 sm:$0xff]   ;;  %v2653_v54 = vcombine.high %v423_v49, %v427_v50  ;;  %v2657_v56 = vcombine.high %v425_v51, %v429_v52  ;;  %v3079_v57 = vld [vmem:[%s3425_s10 + $0xc0] ss:$8 sps:$4 sm:$0xff]   ;;  %v3081_v59 = vld [vmem:[%s3425_s10 + $0xd4] ss:$8 sps:$4 sm:$0xff]   ;;  %v2652_v12 = vcombine.low %v423_v49, %v427_v50  ;;  %v2656_v13 = vcombine.low %v425_v51, %v429_v52 }
  0x62   : > { %1810 = vmatpush1.bf16.msra.mxu0 %v3032_v20  ;;  %1585 = vmatprep.subr.bf16.mxu1 %v3033_v21  ;;  %v3077_v55 = vld [vmem:[%s3425_s10 + $0x2c4] ss:$8 sps:$4 sm:$0xff]   ;;  %v3080_v58 = vld [vmem:[%s3425_s10 + $0x2c0] ss:$8 sps:$4 sm:$0xff]   ;;  %v3083_v60 = vld [vmem:[%s3425_s10 + $0x2d4] ss:$8 sps:$4 sm:$0xff]  }
  0x63   : > { %1811 = vmatprep.subr.bf16.mxu0 %v3035_v22  ;;  %1607 = vmatprep.mubr.bf16.mxu1 %v2653_v54  ;;  %v3085_v61 = vld [vmem:[%s3425_s10 + $0xd0] ss:$8 sps:$4 sm:$0xff]   ;;  %v3087_v63 = vld [vmem:[%s3425_s10 + $0xe4] ss:$8 sps:$4 sm:$0xff]   ;;  %v3091_v1 = vld [vmem:[%s3425_s10 + $0xe0] ss:$8 sps:$4 sm:$0xff]  }
  0x64   : > { %1833 = vmatprep.mubr.bf16.mxu0 %v2657_v56  ;;  %v3086_v62 = vld [vmem:[%s3425_s10 + $0x2d0] ss:$8 sps:$4 sm:$0xff]   ;;  %v3089_v0 = vld [vmem:[%s3425_s10 + $0x2e4] ss:$8 sps:$4 sm:$0xff]   ;;  %v3092_v2 = vld [vmem:[%s3425_s10 + $0x2e0] ss:$8 sps:$4 sm:$0xff]  }
  0x65   : > { %1586 = vmatpush1.bf16.msra.mxu1 %v3037_v23  ;;  %v3093_v3 = vld [vmem:[%s3425_s10 + $0xf4] ss:$8 sps:$4 sm:$0xff]   ;;  %v3097_v5 = vld [vmem:[%s3425_s10 + $0xf0] ss:$8 sps:$4 sm:$0xff]   ;;  %v3101_v7 = vld [vmem:[%s3425_s10 + $0x104] ss:$8 sps:$4 sm:$0xff]  }
  0x66   : > { %1812 = vmatpush1.bf16.msra.mxu0 %v3038_v24  ;;  %1587 = vmatprep.subr.bf16.mxu1 %v3039_v25  ;;  %v3095_v4 = vld [vmem:[%s3425_s10 + $0x2f4] ss:$8 sps:$4 sm:$0xff]   ;;  %v3098_v6 = vld [vmem:[%s3425_s10 + $0x2f0] ss:$8 sps:$4 sm:$0xff]   ;;  %v3104_v8 = vld [vmem:[%s3425_s10 + $0x304] ss:$8 sps:$4 sm:$0xff]  }
  0x67   : > { %1813 = vmatprep.subr.bf16.mxu0 %v3041_v26  ;;  %v3099_v9 = vld [vmem:[%s3425_s10 + $0x100] ss:$8 sps:$4 sm:$0xff]   ;;  %v433_v15 = vld [vmem:[%s3427_s11 + $0x50] sm:$0xff]  ;;  %v3113_v23 = vld [vmem:[%s3425_s10 + $0x124] ss:$8 sps:$4 sm:$0xff]  }
  0x68   : > { %v3102_v10 = vld [vmem:[%s3425_s10 + $0x300] ss:$8 sps:$4 sm:$0xff]   ;;  %v437_v16 = vld [vmem:[%s3427_s11 + $0x70] sm:$0xff]  ;;  %v3116_v24 = vld [vmem:[%s3425_s10 + $0x324] ss:$8 sps:$4 sm:$0xff]  }
  0x69   : > { %1588 = vmatpush1.bf16.msra.mxu1 %v3043_v27  ;;  %v431_v11 = vld [vmem:[%s3427_s11 + $0x40] sm:$0xff]  ;;  %v3107_v17 = vld [vmem:[%s3425_s10 + $0x114] ss:$8 sps:$4 sm:$0xff]   ;;  %v2665_v20 = vcombine.high %v433_v15, %v437_v16  ;;  %v3105_v21 = vld [vmem:[%s3425_s10 + $0x110] ss:$8 sps:$4 sm:$0xff]  }
  0x6a   : > { %1814 = vmatpush1.bf16.msra.mxu0 %v3044_v28  ;;  %1589 = vmatprep.subr.bf16.mxu1 %v3045_v29  ;;  %v435_v14 = vld [vmem:[%s3427_s11 + $0x60] sm:$0xff]  ;;  %v3110_v18 = vld [vmem:[%s3425_s10 + $0x314] ss:$8 sps:$4 sm:$0xff]   ;;  %v3108_v22 = vld [vmem:[%s3425_s10 + $0x310] ss:$8 sps:$4 sm:$0xff]  }
  0x6b   : > { %1815 = vmatprep.subr.bf16.mxu0 %v3047_v30  ;;  %v2661_v19 = vcombine.high %v431_v11, %v435_v14  ;;  %v3111_v25 = vld [vmem:[%s3425_s10 + $0x120] ss:$8 sps:$4 sm:$0xff]   ;;  %v2660_v29 = vcombine.low %v431_v11, %v435_v14  ;;  %v2664_v30 = vcombine.low %v433_v15, %v437_v16  ;;  %v3131_v49 = vld [vmem:[%s3425_s10 + $0x154] ss:$8 sps:$4 sm:$0xff]   ;;  %v3132_v54 = vld [vmem:[%s3425_s10 + $0x350] ss:$8 sps:$4 sm:$0xff]  }
  0x6c   : > { %v3114_v26 = vld [vmem:[%s3425_s10 + $0x320] ss:$8 sps:$4 sm:$0xff]   ;;  %v3134_v50 = vld [vmem:[%s3425_s10 + $0x354] ss:$8 sps:$4 sm:$0xff]   ;;  %v3140_v56 = vld [vmem:[%s3425_s10 + $0x364] ss:$8 sps:$4 sm:$0xff]  }
  0x6d   : > { %1590 = vmatpush1.bf16.msra.mxu1 %v3049_v31  ;;  %v439_v27 = vld [vmem:[%s3427_s11 + $0x80] sm:$0xff]  ;;  %v441_v31 = vld [vmem:[%s3427_s11 + $0x90] sm:$0xff] }
  0x6e   : > { %1816 = vmatpush1.bf16.msra.mxu0 %v3050_v32  ;;  %1591 = vmatprep.subr.bf16.mxu1 %v3051_v33  ;;  %v443_v28 = vld [vmem:[%s3427_s11 + $0xa0] sm:$0xff]  ;;  %v445_v32 = vld [vmem:[%s3427_s11 + $0xb0] sm:$0xff] }
  0x6f   : > { %1817 = vmatprep.subr.bf16.mxu0 %v3053_v34  ;;  %v3119_v33 = vld [vmem:[%s3425_s10 + $0x134] ss:$8 sps:$4 sm:$0xff]   ;;  %v3147_v15 = vld [vmem:[%s3425_s10 + $0x180] ss:$8 sps:$4 sm:$0xff]  }
  0x70   : > { %v3122_v34 = vld [vmem:[%s3425_s10 + $0x334] ss:$8 sps:$4 sm:$0xff]   ;;  %v3150_v16 = vld [vmem:[%s3425_s10 + $0x380] ss:$8 sps:$4 sm:$0xff]  }
  0x71   : > { %1592 = vmatpush1.bf16.msra.mxu1 %v3055_v35  ;;  %v2669_v35 = vcombine.high %v439_v27, %v443_v28  ;;  %v469_v14 = vld [vmem:[%s3427_s11 + $0x170] sm:$0xff] }
  0x72   : > { %1818 = vmatpush1.bf16.msra.mxu0 %v3056_v36  ;;  %1593 = vmatprep.subr.bf16.mxu1 %v3057_v37  ;;  %v2673_v36 = vcombine.high %v441_v31, %v445_v32  ;;  %v3117_v37 = vld [vmem:[%s3425_s10 + $0x130] ss:$8 sps:$4 sm:$0xff]  }
  0x73   : > { %1819 = vmatprep.subr.bf16.mxu0 %v3059_v38  ;;  %v3120_v38 = vld [vmem:[%s3425_s10 + $0x330] ss:$8 sps:$4 sm:$0xff]  }
  0x75   : > { %1594 = vmatpush1.bf16.msra.mxu1 %v3061_v39  ;;  %v3125_v39 = vld [vmem:[%s3425_s10 + $0x144] ss:$8 sps:$4 sm:$0xff]  }
  0x76   : > { %1820 = vmatpush1.bf16.msra.mxu0 %v3062_v40  ;;  %1595 = vmatprep.subr.bf16.mxu1 %v3063_v41  ;;  %v3128_v40 = vld [vmem:[%s3425_s10 + $0x344] ss:$8 sps:$4 sm:$0xff]   ;;  %v3123_v41 = vld [vmem:[%s3425_s10 + $0x140] ss:$8 sps:$4 sm:$0xff]  }
  0x77   : > { %1821 = vmatprep.subr.bf16.mxu0 %v3065_v42  ;;  %v3126_v42 = vld [vmem:[%s3425_s10 + $0x340] ss:$8 sps:$4 sm:$0xff]  }
  0x79   : > { %1596 = vmatpush1.bf16.msra.mxu1 %v3067_v43  ;;  %v447_v43 = vld [vmem:[%s3427_s11 + $0xc0] sm:$0xff] }
  0x7a   : > { %1822 = vmatpush1.bf16.msra.mxu0 %v3068_v44  ;;  %1597 = vmatprep.subr.bf16.mxu1 %v3069_v45  ;;  %v451_v44 = vld [vmem:[%s3427_s11 + $0xe0] sm:$0xff]  ;;  %v2668_v45 = vcombine.low %v439_v27, %v443_v28 }
  0x7b   : > { %1823 = vmatprep.subr.bf16.mxu0 %v3071_v46  ;;  %v2672_v46 = vcombine.low %v441_v31, %v445_v32  ;;  %v2677_v51 = vcombine.high %v447_v43, %v451_v44  ;;  %v475_v28 = vld [vmem:[%s3427_s11 + $0x1a0] sm:$0xff] }
  0x7c   : > { %v3159_v31 = vld [vmem:[%s3425_s10 + $0x1a0] ss:$8 sps:$4 sm:$0xff]  }
  0x7d   : > { %1598 = vmatpush1.bf16.msra.mxu1 %v3073_v47  ;;  %v449_v47 = vld [vmem:[%s3427_s11 + $0xd0] sm:$0xff]  ;;  %v3162_v32 = vld [vmem:[%s3425_s10 + $0x3a0] ss:$8 sps:$4 sm:$0xff]  }
  0x7e   : > { %1824 = vmatpush1.bf16.msra.mxu0 %v3074_v48  ;;  %1599 = vmatprep.subr.bf16.mxu1 %v3075_v53  ;;  %v453_v48 = vld [vmem:[%s3427_s11 + $0xf0] sm:$0xff] }
  0x7f   : > { %1825 = vmatprep.subr.bf16.mxu0 %v3077_v55  ;;  %v2681_v52 = vcombine.high %v449_v47, %v453_v48  ;;  %v3129_v53 = vld [vmem:[%s3425_s10 + $0x150] ss:$8 sps:$4 sm:$0xff]   ;;  %v3137_v55 = vld [vmem:[%s3425_s10 + $0x164] ss:$8 sps:$4 sm:$0xff]  }
  0x81   : > { %1600 = vmatpush1.bf16.msra.mxu1 %v3079_v57  ;;  %v3135_v57 = vld [vmem:[%s3425_s10 + $0x160] ss:$8 sps:$4 sm:$0xff]  }
  0x82   : > { %1826 = vmatpush1.bf16.msra.mxu0 %v3080_v58  ;;  %1601 = vmatprep.subr.bf16.mxu1 %v3081_v59  ;;  %v455_v58 = vld [vmem:[%s3427_s11 + $0x100] sm:$0xff] }
  0x83   : > { %1827 = vmatprep.subr.bf16.mxu0 %v3083_v60  ;;  %v459_v59 = vld [vmem:[%s3427_s11 + $0x120] sm:$0xff]  ;;  %v2676_v60 = vcombine.low %v447_v43, %v451_v44 }
  0x84   : > { %v2684_v11 = vcombine.low %v455_v58, %v459_v59  ;;  %v483_v44 = vld [vmem:[%s3427_s11 + $0x1e0] sm:$0xff] }
  0x85   : > { %1602 = vmatpush1.bf16.msra.mxu1 %v3085_v61  ;;  %v2680_v61 = vcombine.low %v449_v47, %v453_v48  ;;  %v3171_v47 = vld [vmem:[%s3425_s10 + $0x1c0] ss:$8 sps:$4 sm:$0xff]  }
  0x86   : > { %1828 = vmatpush1.bf16.msra.mxu0 %v3086_v62  ;;  %1603 = vmatprep.subr.bf16.mxu1 %v3087_v63  ;;  %v457_v62 = vld [vmem:[%s3427_s11 + $0x110] sm:$0xff]  ;;  %v3174_v48 = vld [vmem:[%s3425_s10 + $0x3c0] ss:$8 sps:$4 sm:$0xff]  }
  0x87   : > { %1829 = vmatprep.subr.bf16.mxu0 %v3089_v0  ;;  %v461_v63 = vld [vmem:[%s3427_s11 + $0x130] sm:$0xff]  ;;  %v3138_v0 = vld [vmem:[%s3425_s10 + $0x360] ss:$8 sps:$4 sm:$0xff]  }
  0x89   : > { %1604 = vmatpush1.bf16.msra.mxu1 %v3091_v1  ;;  %v3143_v1 = vld [vmem:[%s3425_s10 + $0x174] ss:$8 sps:$4 sm:$0xff]  }
  0x8a   : > { %1830 = vmatpush1.bf16.msra.mxu0 %v3092_v2  ;;  %1605 = vmatprep.subr.bf16.mxu1 %v3093_v3  ;;  %v3146_v2 = vld [vmem:[%s3425_s10 + $0x374] ss:$8 sps:$4 sm:$0xff]   ;;  %v2685_v3 = vcombine.high %v455_v58, %v459_v59 }
  0x8b   : > { %1831 = vmatprep.subr.bf16.mxu0 %v3095_v4  ;;  %v2689_v4 = vcombine.high %v457_v62, %v461_v63 }
  0x8d   : > { %1606 = vmatpush1.bf16.msra.mxu1 %v3097_v5  ;;  %v3141_v5 = vld [vmem:[%s3425_s10 + $0x170] ss:$8 sps:$4 sm:$0xff]  }
  0x8e   : > { %1832 = vmatpush1.bf16.msra.mxu0 %v3098_v6  ;;  %1688 = vmatprep.subr.bf16.mxu1 %v3101_v7  ;;  %v3144_v6 = vld [vmem:[%s3425_s10 + $0x370] ss:$8 sps:$4 sm:$0xff]   ;;  %v3149_v7 = vld [vmem:[%s3425_s10 + $0x184] ss:$8 sps:$4 sm:$0xff]  }
  0x8f   : > { %1914 = vmatprep.subr.bf16.mxu0 %v3104_v8  ;;  %v3152_v8 = vld [vmem:[%s3425_s10 + $0x384] ss:$8 sps:$4 sm:$0xff]  }
  0x90   : > { %1608 = vmatmul.mubr.bf16.vlgmr.msra.gmra.mrb[0].mxu1 %v2652_v12  ;;  %v2688_v12 = vcombine.low %v457_v62, %v461_v63  ;;  %v430_v62 = vld [vmem:[%s3427_s11 + $0x38] sm:$0xff]  ;;  %v3183_v63 = vld [vmem:[%s3425_s10 + $0x1e0] ss:$8 sps:$4 sm:$0xff]  }
  0x91   : > { %1834 = vmatmul.mubr.bf16.vlgmr.msra.gmra.mrb[0].mxu0 %v2656_v13  ;;  %1689 = vmatpush1.bf16.msra.mxu1 %v3099_v9  ;;  %v463_v9 = vld [vmem:[%s3427_s11 + $0x140] sm:$0xff]  ;;  %v465_v13 = vld [vmem:[%s3427_s11 + $0x150] sm:$0xff] }
  0x92   : > { %1915 = vmatpush1.bf16.msra.mxu0 %v3102_v10  ;;  %1690 = vmatprep.subr.bf16.mxu1 %v3107_v17  ;;  %v467_v10 = vld [vmem:[%s3427_s11 + $0x160] sm:$0xff]  ;;  %v3155_v17 = vld [vmem:[%s3425_s10 + $0x194] ss:$8 sps:$4 sm:$0xff]   ;;  %v2696_v27 = vcombine.low %v465_v13, %v469_v14 }
  0x93   : > { %1916 = vmatprep.subr.bf16.mxu0 %v3110_v18  ;;  %1617 = vmatprep.mubr.bf16.mxu1 %v2661_v19  ;;  %v3158_v18 = vld [vmem:[%s3425_s10 + $0x394] ss:$8 sps:$4 sm:$0xff]   ;;  %v2693_v19 = vcombine.high %v463_v9, %v467_v10 }
  0x94   : > { %1843 = vmatprep.mubr.bf16.mxu0 %v2665_v20  ;;  %v2697_v20 = vcombine.high %v465_v13, %v469_v14 }
  0x95   : > { %1691 = vmatpush1.bf16.msra.mxu1 %v3105_v21  ;;  %v3153_v21 = vld [vmem:[%s3425_s10 + $0x190] ss:$8 sps:$4 sm:$0xff]  }
  0x96   : > { %1917 = vmatpush1.bf16.msra.mxu0 %v3108_v22  ;;  %1692 = vmatprep.subr.bf16.mxu1 %v3113_v23  ;;  %v3156_v22 = vld [vmem:[%s3425_s10 + $0x390] ss:$8 sps:$4 sm:$0xff]   ;;  %v3161_v23 = vld [vmem:[%s3425_s10 + $0x1a4] ss:$8 sps:$4 sm:$0xff]  }
  0x97   : > { %1918 = vmatprep.subr.bf16.mxu0 %v3116_v24  ;;  %v3164_v24 = vld [vmem:[%s3425_s10 + $0x3a4] ss:$8 sps:$4 sm:$0xff]  }
  0x98   : > { %1618 = vmatmul.mubr.bf16.gmra.mrb[4].mxu1 %v2660_v29  ;;  %v473_v29 = vld [vmem:[%s3427_s11 + $0x190] sm:$0xff] }
  0x99   : > { %1844 = vmatmul.mubr.bf16.gmra.mrb[4].mxu0 %v2664_v30  ;;  %1693 = vmatpush1.bf16.msra.mxu1 %v3111_v25  ;;  %v471_v25 = vld [vmem:[%s3427_s11 + $0x180] sm:$0xff]  ;;  %v477_v30 = vld [vmem:[%s3427_s11 + $0x1b0] sm:$0xff] }
  0x9a   : > { %1919 = vmatpush1.bf16.msra.mxu0 %v3114_v26  ;;  %1694 = vmatprep.subr.bf16.mxu1 %v3119_v33  ;;  %v2692_v26 = vcombine.low %v463_v9, %v467_v10  ;;  %v3167_v33 = vld [vmem:[%s3425_s10 + $0x1b4] ss:$8 sps:$4 sm:$0xff]   ;;  %v2704_v43 = vcombine.low %v473_v29, %v477_v30 }
  0x9b   : > { %1920 = vmatprep.subr.bf16.mxu0 %v3122_v34  ;;  %1627 = vmatprep.mubr.bf16.mxu1 %v2669_v35  ;;  %v3170_v34 = vld [vmem:[%s3425_s10 + $0x3b4] ss:$8 sps:$4 sm:$0xff]   ;;  %v2701_v35 = vcombine.high %v471_v25, %v475_v28 }
  0x9c   : > { %1853 = vmatprep.mubr.bf16.mxu0 %v2673_v36  ;;  %v2705_v36 = vcombine.high %v473_v29, %v477_v30  ;;  %v434_v9 = vld [vmem:[%s3427_s11 + $0x58] sm:$0xff] }
  0x9d   : > { %1695 = vmatpush1.bf16.msra.mxu1 %v3117_v37  ;;  %v3165_v37 = vld [vmem:[%s3425_s10 + $0x1b0] ss:$8 sps:$4 sm:$0xff]  }
  0x9e   : > { %1921 = vmatpush1.bf16.msra.mxu0 %v3120_v38  ;;  %1696 = vmatprep.subr.bf16.mxu1 %v3125_v39  ;;  %v3168_v38 = vld [vmem:[%s3425_s10 + $0x3b0] ss:$8 sps:$4 sm:$0xff]   ;;  %v3173_v39 = vld [vmem:[%s3425_s10 + $0x1c4] ss:$8 sps:$4 sm:$0xff]  }
  0x9f   : > { %1922 = vmatprep.subr.bf16.mxu0 %v3128_v40  ;;  %v3176_v40 = vld [vmem:[%s3425_s10 + $0x3c4] ss:$8 sps:$4 sm:$0xff]   ;;  %v438_v10 = vld [vmem:[%s3427_s11 + $0x78] sm:$0xff] }
  0xa0   : > { %1628 = vmatmul.mubr.bf16.gmra.mrb[8].mxu1 %v2668_v45  ;;  %v481_v45 = vld [vmem:[%s3427_s11 + $0x1d0] sm:$0xff]  ;;  %v2667_v14 = vcombine.high %v434_v9, %v438_v10 }
  0xa1   : > { %1854 = vmatmul.mubr.bf16.gmra.mrb[8].mxu0 %v2672_v46  ;;  %1697 = vmatpush1.bf16.msra.mxu1 %v3123_v41  ;;  %v479_v41 = vld [vmem:[%s3427_s11 + $0x1c0] sm:$0xff]  ;;  %v485_v46 = vld [vmem:[%s3427_s11 + $0x1f0] sm:$0xff] }
  0xa2   : > { %1923 = vmatpush1.bf16.msra.mxu0 %v3126_v42  ;;  %1698 = vmatprep.subr.bf16.mxu1 %v3131_v49  ;;  %v2700_v42 = vcombine.low %v471_v25, %v475_v28  ;;  %v3179_v49 = vld [vmem:[%s3425_s10 + $0x1d4] ss:$8 sps:$4 sm:$0xff]   ;;  %v2708_v58 = vcombine.low %v479_v41, %v483_v44  ;;  %v2712_v59 = vcombine.low %v481_v45, %v485_v46 }
  0xa3   : > { %1924 = vmatprep.subr.bf16.mxu0 %v3134_v50  ;;  %1637 = vmatprep.mubr.bf16.mxu1 %v2677_v51  ;;  %v3182_v50 = vld [vmem:[%s3425_s10 + $0x3d4] ss:$8 sps:$4 sm:$0xff]   ;;  %v2709_v51 = vcombine.high %v479_v41, %v483_v44 }
  0xa4   : > { %1863 = vmatprep.mubr.bf16.mxu0 %v2681_v52  ;;  %v2713_v52 = vcombine.high %v481_v45, %v485_v46  ;;  %v450_v25 = vld [vmem:[%s3427_s11 + $0xd8] sm:$0xff] }
  0xa5   : > { %1699 = vmatpush1.bf16.msra.mxu1 %v3129_v53  ;;  %v3177_v53 = vld [vmem:[%s3425_s10 + $0x1d0] ss:$8 sps:$4 sm:$0xff]  }
  0xa6   : > { %1925 = vmatpush1.bf16.msra.mxu0 %v3132_v54  ;;  %1700 = vmatprep.subr.bf16.mxu1 %v3137_v55  ;;  %v3180_v54 = vld [vmem:[%s3425_s10 + $0x3d0] ss:$8 sps:$4 sm:$0xff]   ;;  %v3185_v55 = vld [vmem:[%s3425_s10 + $0x1e4] ss:$8 sps:$4 sm:$0xff]  }
  0xa7   : > { %1926 = vmatprep.subr.bf16.mxu0 %v3140_v56  ;;  %v3188_v56 = vld [vmem:[%s3425_s10 + $0x3e4] ss:$8 sps:$4 sm:$0xff]   ;;  %v466_v41 = vld [vmem:[%s3427_s11 + $0x158] sm:$0xff] }
  0xa8   : > { %1638 = vmatmul.mubr.bf16.gmra.mrb[12].mxu1 %v2676_v60  ;;  %v428_v60 = vld [vmem:[%s3427_s11 + $0x28] sm:$0xff] }
  0xa9   : > { %1864 = vmatmul.mubr.bf16.gmra.mrb[12].mxu0 %v2680_v61  ;;  %1701 = vmatpush1.bf16.msra.mxu1 %v3135_v57  ;;  %v424_v57 = vld [vmem:[%s3427_s11 + $0x8] sm:$0xff]  ;;  %v426_v61 = vld [vmem:[%s3427_s11 + $0x18] sm:$0xff] }
  0xaa   : > { %1927 = vmatpush1.bf16.msra.mxu0 %v3138_v0  ;;  %1702 = vmatprep.subr.bf16.mxu1 %v3143_v1  ;;  %v3186_v0 = vld [vmem:[%s3425_s10 + $0x3e0] ss:$8 sps:$4 sm:$0xff]   ;;  %v3191_v1 = vld [vmem:[%s3425_s10 + $0x1f4] ss:$8 sps:$4 sm:$0xff]  }
  0xab   : > { %1928 = vmatprep.subr.bf16.mxu0 %v3146_v2  ;;  %1647 = vmatprep.mubr.bf16.mxu1 %v2685_v3  ;;  %v3194_v2 = vld [vmem:[%s3425_s10 + $0x3f4] ss:$8 sps:$4 sm:$0xff]   ;;  %v2655_v3 = vcombine.high %v424_v57, %v428_v60 }
  0xac   : > { %1873 = vmatprep.mubr.bf16.mxu0 %v2689_v4  ;;  %v2659_v4 = vcombine.high %v426_v61, %v430_v62 }
  0xad   : > { %1703 = vmatpush1.bf16.msra.mxu1 %v3141_v5  ;;  %v3189_v5 = vld [vmem:[%s3425_s10 + $0x1f0] ss:$8 sps:$4 sm:$0xff]  }
  0xae   : > { %1929 = vmatpush1.bf16.msra.mxu0 %v3144_v6  ;;  %1704 = vmatprep.subr.bf16.mxu1 %v3149_v7  ;;  %v3192_v6 = vld [vmem:[%s3425_s10 + $0x3f0] ss:$8 sps:$4 sm:$0xff]   ;;  %v432_v7 = vld [vmem:[%s3427_s11 + $0x48] sm:$0xff] }
  0xaf   : > { %1930 = vmatprep.subr.bf16.mxu0 %v3152_v8  ;;  %v436_v8 = vld [vmem:[%s3427_s11 + $0x68] sm:$0xff] }
  0xb0   : > { %1648 = vmatmul.mubr.bf16.gmra.mrb[16].mxu1 %v2684_v11  ;;  %v2654_v11 = vcombine.low %v424_v57, %v428_v60  ;;  %v2663_v13 = vcombine.high %v432_v7, %v436_v8  ;;  %v482_v57 = vld [vmem:[%s3427_s11 + $0x1d8] sm:$0xff] }
  0xb1   : > { %1874 = vmatmul.mubr.bf16.gmra.mrb[16].mxu0 %v2688_v12  ;;  %1705 = vmatpush1.bf16.msra.mxu1 %v3147_v15  ;;  %v2658_v12 = vcombine.low %v426_v61, %v430_v62  ;;  %v440_v15 = vld [vmem:[%s3427_s11 + $0x88] sm:$0xff] }
  0xb2   : > { %1931 = vmatpush1.bf16.msra.mxu0 %v3150_v16  ;;  %1706 = vmatprep.subr.bf16.mxu1 %v3155_v17  ;;  %v444_v16 = vld [vmem:[%s3427_s11 + $0xa8] sm:$0xff]  ;;  %v442_v17 = vld [vmem:[%s3427_s11 + $0x98] sm:$0xff] }
  0xb3   : > { %1932 = vmatprep.subr.bf16.mxu0 %v3158_v18  ;;  %1657 = vmatprep.mubr.bf16.mxu1 %v2693_v19  ;;  %v446_v18 = vld [vmem:[%s3427_s11 + $0xb8] sm:$0xff]  ;;  %v2662_v19 = vcombine.low %v432_v7, %v436_v8 }
  0xb4   : > { %1883 = vmatprep.mubr.bf16.mxu0 %v2697_v20  ;;  %v2666_v20 = vcombine.low %v434_v9, %v438_v10  ;;  %v2674_v28 = vcombine.low %v442_v17, %v446_v18  ;;  %v393_v10 = vld [vmem:[#allocation2 + $0x10] sm:$0xff] }
  0xb5   : > { %1707 = vmatpush1.bf16.msra.mxu1 %v3153_v21  ;;  %v2671_v21 = vcombine.high %v440_v15, %v444_v16 }
  0xb6   : > { %1933 = vmatpush1.bf16.msra.mxu0 %v3156_v22  ;;  %1708 = vmatprep.subr.bf16.mxu1 %v3161_v23  ;;  %v2675_v22 = vcombine.high %v442_v17, %v446_v18  ;;  %v448_v23 = vld [vmem:[%s3427_s11 + $0xc8] sm:$0xff] }
  0xb7   : > { %1934 = vmatprep.subr.bf16.mxu0 %v3164_v24  ;;  %v452_v24 = vld [vmem:[%s3427_s11 + $0xe8] sm:$0xff] }
  0xb8   : > { %1658 = vmatmul.mubr.bf16.gmra.mrb[20].mxu1 %v2692_v26  ;;  %v454_v26 = vld [vmem:[%s3427_s11 + $0xf8] sm:$0xff]  ;;  %v2679_v29 = vcombine.high %v448_v23, %v452_v24 }
  0xb9   : > { %1884 = vmatmul.mubr.bf16.gmra.mrb[20].mxu0 %v2696_v27  ;;  %1709 = vmatpush1.bf16.msra.mxu1 %v3159_v31  ;;  %v2670_v27 = vcombine.low %v440_v15, %v444_v16  ;;  %v2683_v30 = vcombine.high %v450_v25, %v454_v26  ;;  %v456_v31 = vld [vmem:[%s3427_s11 + $0x108] sm:$0xff]  ;;  %v394_v15 = vld [vmem:[#allocation2 + $0x18] sm:$0xff] }
  0xba   : > { %1935 = vmatpush1.bf16.msra.mxu0 %v3162_v32  ;;  %1710 = vmatprep.subr.bf16.mxu1 %v3167_v33  ;;  %v460_v32 = vld [vmem:[%s3427_s11 + $0x128] sm:$0xff]  ;;  %v458_v33 = vld [vmem:[%s3427_s11 + $0x118] sm:$0xff] }
  0xbb   : > { %1936 = vmatprep.subr.bf16.mxu0 %v3170_v34  ;;  %1667 = vmatprep.mubr.bf16.mxu1 %v2701_v35  ;;  %v462_v34 = vld [vmem:[%s3427_s11 + $0x138] sm:$0xff]  ;;  %v2678_v35 = vcombine.low %v448_v23, %v452_v24 }
  0xbc   : > { %1893 = vmatprep.mubr.bf16.mxu0 %v2705_v36  ;;  %v2682_v36 = vcombine.low %v450_v25, %v454_v26  ;;  %v2690_v44 = vcombine.low %v458_v33, %v462_v34  ;;  %v396_v26 = vld [vmem:[#allocation2 + $0x28] sm:$0xff] }
  0xbd   : > { %1711 = vmatpush1.bf16.msra.mxu1 %v3165_v37  ;;  %v2687_v37 = vcombine.high %v456_v31, %v460_v32 }
  0xbe   : > { %1937 = vmatpush1.bf16.msra.mxu0 %v3168_v38  ;;  %1712 = vmatprep.subr.bf16.mxu1 %v3173_v39  ;;  %v2691_v38 = vcombine.high %v458_v33, %v462_v34  ;;  %v464_v39 = vld [vmem:[%s3427_s11 + $0x148] sm:$0xff] }
  0xbf   : > { %1938 = vmatprep.subr.bf16.mxu0 %v3176_v40  ;;  %v468_v40 = vld [vmem:[%s3427_s11 + $0x168] sm:$0xff] }
  0xc0   : > { %1668 = vmatmul.mubr.bf16.gmra.mrb[24].mxu1 %v2700_v42  ;;  %v470_v42 = vld [vmem:[%s3427_s11 + $0x178] sm:$0xff]  ;;  %v2695_v45 = vcombine.high %v464_v39, %v468_v40 }
  0xc1   : > { %1894 = vmatmul.mubr.bf16.gmra.mrb[24].mxu0 %v2704_v43  ;;  %1713 = vmatpush1.bf16.msra.mxu1 %v3171_v47  ;;  %v2686_v43 = vcombine.low %v456_v31, %v460_v32  ;;  %v2699_v46 = vcombine.high %v466_v41, %v470_v42  ;;  %v472_v47 = vld [vmem:[%s3427_s11 + $0x188] sm:$0xff] }
  0xc2   : > { %1939 = vmatpush1.bf16.msra.mxu0 %v3174_v48  ;;  %1714 = vmatprep.subr.bf16.mxu1 %v3179_v49  ;;  %v476_v48 = vld [vmem:[%s3427_s11 + $0x1a8] sm:$0xff]  ;;  %v474_v49 = vld [vmem:[%s3427_s11 + $0x198] sm:$0xff] }
  0xc3   : > { %1940 = vmatprep.subr.bf16.mxu0 %v3182_v50  ;;  %1677 = vmatprep.mubr.bf16.mxu1 %v2709_v51  ;;  %v478_v50 = vld [vmem:[%s3427_s11 + $0x1b8] sm:$0xff]  ;;  %v2694_v51 = vcombine.low %v464_v39, %v468_v40 }
  0xc4   : > { %1903 = vmatprep.mubr.bf16.mxu0 %v2713_v52  ;;  %v2698_v52 = vcombine.low %v466_v41, %v470_v42  ;;  %v2706_v60 = vcombine.low %v474_v49, %v478_v50  ;;  %v399_v42 = vld [vmem:[#allocation2 + $0x40] sm:$0xff] }
  0xc5   : > { %1715 = vmatpush1.bf16.msra.mxu1 %v3177_v53  ;;  %v2703_v53 = vcombine.high %v472_v47, %v476_v48 }
  0xc6   : > { %1941 = vmatpush1.bf16.msra.mxu0 %v3180_v54  ;;  %1716 = vmatprep.subr.bf16.mxu1 %v3185_v55  ;;  %v2707_v54 = vcombine.high %v474_v49, %v478_v50  ;;  %v480_v55 = vld [vmem:[%s3427_s11 + $0x1c8] sm:$0xff]  ;;  %v401_v50 = vld [vmem:[#allocation2 + $0x50] sm:$0xff] }
  0xc7   : > { %1942 = vmatprep.subr.bf16.mxu0 %v3188_v56  ;;  %v484_v56 = vld [vmem:[%s3427_s11 + $0x1e8] sm:$0xff] }
  0xc8   : > { %1678 = vmatmul.mubr.bf16.gmra.mrb[28].mxu1 %v2708_v58  ;;  %v486_v58 = vld [vmem:[%s3427_s11 + $0x1f8] sm:$0xff]  ;;  %v2711_v61 = vcombine.high %v480_v55, %v484_v56 }
  0xc9   : > { %1904 = vmatmul.mubr.bf16.gmra.mrb[28].mxu0 %v2712_v59  ;;  %1717 = vmatpush1.bf16.msra.mxu1 %v3183_v63  ;;  %v2702_v59 = vcombine.low %v472_v47, %v476_v48  ;;  %v2715_v62 = vcombine.high %v482_v57, %v486_v58  ;;  %v2710_v63 = vcombine.low %v480_v55, %v484_v56  ;;  %v402_v55 = vld [vmem:[#allocation2 + $0x58] sm:$0xff] }
  0xca   : > { %1943 = vmatpush1.bf16.msra.mxu0 %v3186_v0  ;;  %1718 = vmatprep.subr.bf16.mxu1 %v3191_v1  ;;  %v2714_v0 = vcombine.low %v482_v57, %v486_v58 }
  0xcb   : > { %1944 = vmatprep.subr.bf16.mxu0 %v3194_v2  ;;  %1720 = vmatprep.mubr.bf16.mxu1 %v2655_v3  ;;  %v391_v2 = vld [vmem:[#allocation2] sm:$0xff] }
  0xcc   : > { %1946 = vmatprep.mubr.bf16.mxu0 %v2659_v4 }
  0xcd   : > { %1719 = vmatpush1.bf16.msra.mxu1 %v3189_v5 }
  0xce   : > { %1945 = vmatpush1.bf16.msra.mxu0 %v3192_v6  ;;  %v392_v6 = vld [vmem:[#allocation2 + $0x8] sm:$0xff] }
  0xd0   : > { %1721 = vmatmul.mubr.bf16.vlgmr.msra.gmra.mrb[0].mxu1 %v2654_v11 }
  0xd1   : > { %1947 = vmatmul.mubr.bf16.vlgmr.msra.gmra.mrb[0].mxu0 %v2658_v12  ;;  %1730 = vmatprep.mubr.bf16.mxu1 %v2663_v13 }
  0xd2   : > { %1956 = vmatprep.mubr.bf16.mxu0 %v2667_v14 }
  0xd8   : > { %1731 = vmatmul.mubr.bf16.gmra.mrb[4].mxu1 %v2662_v19 }
  0xd9   : > { %1957 = vmatmul.mubr.bf16.gmra.mrb[4].mxu0 %v2666_v20  ;;  %1740 = vmatprep.mubr.bf16.mxu1 %v2671_v21 }
  0xda   : > { %1966 = vmatprep.mubr.bf16.mxu0 %v2675_v22  ;;  %v395_v22 = vld [vmem:[#allocation2 + $0x20] sm:$0xff] }
  0xe0   : > { %1741 = vmatmul.mubr.bf16.gmra.mrb[8].mxu1 %v2670_v27 }
  0xe1   : > { %1967 = vmatmul.mubr.bf16.gmra.mrb[8].mxu0 %v2674_v28  ;;  %1750 = vmatprep.mubr.bf16.mxu1 %v2679_v29 }
  0xe2   : > { %1976 = vmatprep.mubr.bf16.mxu0 %v2683_v30  ;;  %v397_v30 = vld [vmem:[#allocation2 + $0x30] sm:$0xff] }
  0xe8   : > { %1751 = vmatmul.mubr.bf16.gmra.mrb[12].mxu1 %v2678_v35  ;;  %v398_v35 = vld [vmem:[#allocation2 + $0x38] sm:$0xff] }
  0xe9   : > { %1977 = vmatmul.mubr.bf16.gmra.mrb[12].mxu0 %v2682_v36  ;;  %1760 = vmatprep.mubr.bf16.mxu1 %v2687_v37 }
  0xea   : > { %1986 = vmatprep.mubr.bf16.mxu0 %v2691_v38 }
  0xf0   : > { %1761 = vmatmul.mubr.bf16.gmra.mrb[16].mxu1 %v2686_v43 }
  0xf1   : > { %1987 = vmatmul.mubr.bf16.gmra.mrb[16].mxu0 %v2690_v44  ;;  %1770 = vmatprep.mubr.bf16.mxu1 %v2695_v45 }
  0xf2   : > { %1996 = vmatprep.mubr.bf16.mxu0 %v2699_v46  ;;  %v400_v46 = vld [vmem:[#allocation2 + $0x48] sm:$0xff] }
  0xf8   : > { %1771 = vmatmul.mubr.bf16.gmra.mrb[20].mxu1 %v2694_v51 }
  0xf9   : > { %1997 = vmatmul.mubr.bf16.gmra.mrb[20].mxu0 %v2698_v52  ;;  %1780 = vmatprep.mubr.bf16.mxu1 %v2703_v53 }
  0xfa   : > { %2006 = vmatprep.mubr.bf16.mxu0 %v2707_v54 }
 0x100   : > { %1781 = vmatmul.mubr.bf16.gmra.mrb[24].mxu1 %v2702_v59 }
 0x101   : > { %2007 = vmatmul.mubr.bf16.gmra.mrb[24].mxu0 %v2706_v60  ;;  %1790 = vmatprep.mubr.bf16.mxu1 %v2711_v61 }
 0x102   : > { %2016 = vmatprep.mubr.bf16.mxu0 %v2715_v62  ;;  %v403_v62 = vld [vmem:[#allocation2 + $0x60] sm:$0xff] }
 0x108   : > { %1791 = vmatmul.mubr.bf16.gmra.mrb[28].mxu1 %v2710_v63 }
 0x109   : > { %2017 = vmatmul.mubr.bf16.gmra.mrb[28].mxu0 %v2714_v0 }
 0x1a3   : > { %v1722_v1 = vpop.f32.mrb[0].mxu1 }
 0x1a4   : > { %v1948_v3 = vpop.f32.mrb[0].mxu0  ;;  %v1724_v5 = vpop.f32.mrb[1].mxu1 }
 0x1a5   : > { %v2881_v4 = vadd.f32 %v1948_v3, %v1722_v1  ;;  %v1950_v7 = vpop.f32.mrb[1].mxu0  ;;  %v1726_v9 = vpop.f32.mrb[2].mxu1 }
 0x1a6   : > { %v2882_v8 = vadd.f32 %v1950_v7, %v1724_v5  ;;  %v1952_v11 = vpop.f32.mrb[2].mxu0  ;;  %v1728_v14 = vpop.f32.mrb[3].mxu1 }
 0x1a7   : > { %v2027_v12 = vadd.f32 %v2881_v4, %v391_v2  ;;  %v2883_v13 = vadd.f32 %v1952_v11, %v1726_v9  ;;  %v1954_v16 = vpop.f32.mrb[3].mxu0  ;;  %v404_v2 = vld [vmem:[#allocation2 + $0x68] sm:$0xff]  ;;  %v406_v11 = vld [vmem:[#allocation2 + $0x78] sm:$0xff] }
 0x1a8   : > { %v2028_v17 = vadd.f32 %v2882_v8, %v392_v6  ;;  %v2884_v18 = vadd.f32 %v1954_v16, %v1728_v14  ;;  %v405_v6 = vld [vmem:[#allocation2 + $0x70] sm:$0xff] }
 0x1a9   : > { %2059 = vst [vmem:[#allocation2] sm:$0xff] %v2027_v12  ;;  %v2029_v19 = vadd.f32 %v2883_v13, %v393_v10 }
 0x1aa   : > { %2060 = vst [vmem:[#allocation2 + $0x8] sm:$0xff] %v2028_v17  ;;  %v2030_v20 = vadd.f32 %v2884_v18, %v394_v15  ;;  %v407_v18 = vld [vmem:[#allocation2 + $0x80] sm:$0xff] }
 0x1ab   : > { %2061 = vst [vmem:[#allocation2 + $0x10] sm:$0xff] %v2029_v19  ;;  %v1732_v21 = vpop.f32.mrb[4].mxu1 }
 0x1ac   : > { %2062 = vst [vmem:[#allocation2 + $0x18] sm:$0xff] %v2030_v20  ;;  %v1958_v23 = vpop.f32.mrb[4].mxu0  ;;  %v1734_v25 = vpop.f32.mrb[5].mxu1 }
 0x1ad   : > { %v2885_v24 = vadd.f32 %v1958_v23, %v1732_v21  ;;  %v1960_v27 = vpop.f32.mrb[5].mxu0  ;;  %v1736_v29 = vpop.f32.mrb[6].mxu1 }
 0x1ae   : > { %v2886_v28 = vadd.f32 %v1960_v27, %v1734_v25  ;;  %v1962_v31 = vpop.f32.mrb[6].mxu0  ;;  %v1738_v34 = vpop.f32.mrb[7].mxu1 }
 0x1af   : > { %v2031_v32 = vadd.f32 %v2885_v24, %v395_v22  ;;  %v2887_v33 = vadd.f32 %v1962_v31, %v1736_v29  ;;  %v1964_v36 = vpop.f32.mrb[7].mxu0  ;;  %v408_v22 = vld [vmem:[#allocation2 + $0x88] sm:$0xff]  ;;  %v410_v31 = vld [vmem:[#allocation2 + $0x98] sm:$0xff] }
 0x1b0   : > { %v2032_v37 = vadd.f32 %v2886_v28, %v396_v26  ;;  %v2888_v38 = vadd.f32 %v1964_v36, %v1738_v34  ;;  %v409_v26 = vld [vmem:[#allocation2 + $0x90] sm:$0xff] }
 0x1b1   : > { %2063 = vst [vmem:[#allocation2 + $0x20] sm:$0xff] %v2031_v32  ;;  %v2033_v39 = vadd.f32 %v2887_v33, %v397_v30 }
 0x1b2   : > { %2064 = vst [vmem:[#allocation2 + $0x28] sm:$0xff] %v2032_v37  ;;  %v2034_v40 = vadd.f32 %v2888_v38, %v398_v35  ;;  %v411_v38 = vld [vmem:[#allocation2 + $0xa0] sm:$0xff] }
 0x1b3   : > { %2065 = vst [vmem:[#allocation2 + $0x30] sm:$0xff] %v2033_v39  ;;  %v1742_v41 = vpop.f32.mrb[8].mxu1 }
 0x1b4   : > { %2066 = vst [vmem:[#allocation2 + $0x38] sm:$0xff] %v2034_v40  ;;  %v1968_v43 = vpop.f32.mrb[8].mxu0  ;;  %v1744_v45 = vpop.f32.mrb[9].mxu1 }
 0x1b5   : > { %v2889_v44 = vadd.f32 %v1968_v43, %v1742_v41  ;;  %v1970_v47 = vpop.f32.mrb[9].mxu0  ;;  %v1746_v49 = vpop.f32.mrb[10].mxu1 }
 0x1b6   : > { %v2890_v48 = vadd.f32 %v1970_v47, %v1744_v45  ;;  %v1972_v51 = vpop.f32.mrb[10].mxu0  ;;  %v1748_v54 = vpop.f32.mrb[11].mxu1 }
 0x1b7   : > { %v2035_v52 = vadd.f32 %v2889_v44, %v399_v42  ;;  %v2891_v53 = vadd.f32 %v1972_v51, %v1746_v49  ;;  %v1974_v56 = vpop.f32.mrb[11].mxu0  ;;  %v412_v42 = vld [vmem:[#allocation2 + $0xa8] sm:$0xff]  ;;  %v414_v51 = vld [vmem:[#allocation2 + $0xb8] sm:$0xff] }
 0x1b8   : > { %v2036_v57 = vadd.f32 %v2890_v48, %v400_v46  ;;  %v2892_v58 = vadd.f32 %v1974_v56, %v1748_v54  ;;  %v413_v46 = vld [vmem:[#allocation2 + $0xb0] sm:$0xff] }
 0x1b9   : > { %2067 = vst [vmem:[#allocation2 + $0x40] sm:$0xff] %v2035_v52  ;;  %v2037_v59 = vadd.f32 %v2891_v53, %v401_v50 }
 0x1ba   : > { %2068 = vst [vmem:[#allocation2 + $0x48] sm:$0xff] %v2036_v57  ;;  %v2038_v60 = vadd.f32 %v2892_v58, %v402_v55  ;;  %v415_v58 = vld [vmem:[#allocation2 + $0xc0] sm:$0xff] }
 0x1bb   : > { %2069 = vst [vmem:[#allocation2 + $0x50] sm:$0xff] %v2037_v59  ;;  %v1752_v61 = vpop.f32.mrb[12].mxu1 }
 0x1bc   : > { %2070 = vst [vmem:[#allocation2 + $0x58] sm:$0xff] %v2038_v60  ;;  %v1978_v63 = vpop.f32.mrb[12].mxu0  ;;  %v1754_v1 = vpop.f32.mrb[13].mxu1 }
 0x1bd   : > { %v2893_v0 = vadd.f32 %v1978_v63, %v1752_v61  ;;  %v1980_v3 = vpop.f32.mrb[13].mxu0  ;;  %v1756_v5 = vpop.f32.mrb[14].mxu1 }
 0x1be   : > { %v2894_v4 = vadd.f32 %v1980_v3, %v1754_v1  ;;  %v1982_v7 = vpop.f32.mrb[14].mxu0  ;;  %v1758_v10 = vpop.f32.mrb[15].mxu1 }
 0x1bf   : > { %v2039_v8 = vadd.f32 %v2893_v0, %v403_v62  ;;  %v2895_v9 = vadd.f32 %v1982_v7, %v1756_v5  ;;  %v1984_v12 = vpop.f32.mrb[15].mxu0  ;;  %v416_v62 = vld [vmem:[#allocation2 + $0xc8] sm:$0xff]  ;;  %v418_v7 = vld [vmem:[#allocation2 + $0xd8] sm:$0xff] }
 0x1c0   : > { %v2040_v13 = vadd.f32 %v2894_v4, %v404_v2  ;;  %v2896_v14 = vadd.f32 %v1984_v12, %v1758_v10  ;;  %v417_v2 = vld [vmem:[#allocation2 + $0xd0] sm:$0xff] }
 0x1c1   : > { %2071 = vst [vmem:[#allocation2 + $0x60] sm:$0xff] %v2039_v8  ;;  %v2041_v15 = vadd.f32 %v2895_v9, %v405_v6 }
 0x1c2   : > { %2072 = vst [vmem:[#allocation2 + $0x68] sm:$0xff] %v2040_v13  ;;  %v2042_v16 = vadd.f32 %v2896_v14, %v406_v11  ;;  %v419_v14 = vld [vmem:[#allocation2 + $0xe0] sm:$0xff] }
 0x1c3   : > { %2073 = vst [vmem:[#allocation2 + $0x70] sm:$0xff] %v2041_v15  ;;  %v1762_v17 = vpop.f32.mrb[16].mxu1 }
 0x1c4   : > { %2074 = vst [vmem:[#allocation2 + $0x78] sm:$0xff] %v2042_v16  ;;  %v1988_v19 = vpop.f32.mrb[16].mxu0  ;;  %v1764_v21 = vpop.f32.mrb[17].mxu1 }
 0x1c5   : > { %v2897_v20 = vadd.f32 %v1988_v19, %v1762_v17  ;;  %v1990_v23 = vpop.f32.mrb[17].mxu0  ;;  %v1766_v25 = vpop.f32.mrb[18].mxu1 }
 0x1c6   : > { %v2898_v24 = vadd.f32 %v1990_v23, %v1764_v21  ;;  %v1992_v27 = vpop.f32.mrb[18].mxu0  ;;  %v1768_v30 = vpop.f32.mrb[19].mxu1 }
 0x1c7   : > { %v2043_v28 = vadd.f32 %v2897_v20, %v407_v18  ;;  %v2899_v29 = vadd.f32 %v1992_v27, %v1766_v25  ;;  %v1994_v32 = vpop.f32.mrb[19].mxu0  ;;  %v420_v18 = vld [vmem:[#allocation2 + $0xe8] sm:$0xff]  ;;  %v422_v27 = vld [vmem:[#allocation2 + $0xf8] sm:$0xff] }
 0x1c8   : > { %v2044_v33 = vadd.f32 %v2898_v24, %v408_v22  ;;  %v2900_v34 = vadd.f32 %v1994_v32, %v1768_v30  ;;  %v421_v22 = vld [vmem:[#allocation2 + $0xf0] sm:$0xff] }
 0x1c9   : > { %2075 = vst [vmem:[#allocation2 + $0x80] sm:$0xff] %v2043_v28  ;;  %v2045_v35 = vadd.f32 %v2899_v29, %v409_v26 }
 0x1ca   : > { %2076 = vst [vmem:[#allocation2 + $0x88] sm:$0xff] %v2044_v33  ;;  %v2046_v36 = vadd.f32 %v2900_v34, %v410_v31  ;;  %v3623_v33 = vld [vmem:[#allocation2] sm:$0xff] (!%p2844_p10)  ;;  %v3625_v34 = vld [vmem:[#allocation2 + $0x8] sm:$0xff] (!%p2844_p10) }
 0x1cb   : > { %2077 = vst [vmem:[#allocation2 + $0x90] sm:$0xff] %v2045_v35  ;;  %v1772_v37 = vpop.f32.mrb[20].mxu1  ;;  %v3627_v35 = vld [vmem:[#allocation2 + $0x10] sm:$0xff] (!%p2844_p10) }
 0x1cc   : > { %2078 = vst [vmem:[#allocation2 + $0x98] sm:$0xff] %v2046_v36  ;;  %v1998_v39 = vpop.f32.mrb[20].mxu0  ;;  %v1774_v41 = vpop.f32.mrb[21].mxu1  ;;  %v3629_v36 = vld [vmem:[#allocation2 + $0x18] sm:$0xff] (!%p2844_p10) }
 0x1cd   : > { %v2901_v40 = vadd.f32 %v1998_v39, %v1772_v37  ;;  %v2000_v43 = vpop.f32.mrb[21].mxu0  ;;  %v1776_v45 = vpop.f32.mrb[22].mxu1  ;;  %v3631_v37 = vld [vmem:[#allocation2 + $0x20] sm:$0xff] (!%p2844_p10)  ;;  %v2127_v39 = vadd.f32 (!%p2844_p10), %v3627_v35, %v3623_v33 }
 0x1ce   : > { %v2902_v44 = vadd.f32 %v2000_v43, %v1774_v41  ;;  %v2002_v47 = vpop.f32.mrb[22].mxu0  ;;  %v1778_v50 = vpop.f32.mrb[23].mxu1  ;;  %v2148_v41 = vadd.f32 (!%p2844_p10), %v3629_v36, %v3625_v34 }
 0x1cf   : > { %v2047_v48 = vadd.f32 %v2901_v40, %v411_v38  ;;  %v2903_v49 = vadd.f32 %v2002_v47, %v1776_v45  ;;  %v2004_v52 = vpop.f32.mrb[23].mxu0  ;;  %v3633_v38 = vld [vmem:[#allocation2 + $0x28] sm:$0xff] (!%p2844_p10)  ;;  %v3637_v40 = vld [vmem:[#allocation2 + $0x30] sm:$0xff] (!%p2844_p10)  ;;  %v2128_v43 = vadd.f32 (!%p2844_p10), %v2127_v39, %v3631_v37 }
 0x1d0   : > { %v2048_v53 = vadd.f32 %v2902_v44, %v412_v42  ;;  %v2904_v54 = vadd.f32 %v2004_v52, %v1778_v50  ;;  %v3641_v42 = vld [vmem:[#allocation2 + $0x38] sm:$0xff] (!%p2844_p10)  ;;  %v3644_v44 = vld [vmem:[#allocation2 + $0x40] sm:$0xff] (!%p2844_p10)  ;;  %v2149_v45 = vadd.f32 (!%p2844_p10), %v2148_v41, %v3633_v38  ;;  %v2172_v52 = vmul.f32 (!%p2844_p10), %v3623_v33, %v3623_v33 }
 0x1d1   : > { %2079 = vst [vmem:[#allocation2 + $0xa0] sm:$0xff] %v2047_v48  ;;  %v2049_v55 = vadd.f32 %v2903_v49, %v413_v46  ;;  %v3647_v46 = vld [vmem:[#allocation2 + $0x48] sm:$0xff] (!%p2844_p10)  ;;  %v2129_v47 = vadd.f32 (!%p2844_p10), %v2128_v43, %v3637_v40  ;;  %v3650_v48 = vld [vmem:[#allocation2 + $0x50] sm:$0xff] (!%p2844_p10)  ;;  %v3653_v50 = vld [vmem:[#allocation2 + $0x58] sm:$0xff] (!%p2844_p10) }
 0x1d2   : > { %2080 = vst [vmem:[#allocation2 + $0xa8] sm:$0xff] %v2048_v53  ;;  %v2050_v56 = vadd.f32 %v2904_v54, %v414_v51  ;;  %v2150_v49 = vadd.f32 (!%p2844_p10), %v2149_v45, %v3641_v42  ;;  %v2174_v53 = vmul.f32 (!%p2844_p10), %v3627_v35, %v3627_v35  ;;  %v3660_v54 = vld [vmem:[#allocation2 + $0x60] sm:$0xff] (!%p2844_p10) }
 0x1d3   : > { %2081 = vst [vmem:[#allocation2 + $0xb0] sm:$0xff] %v2049_v55  ;;  %v1782_v57 = vpop.f32.mrb[24].mxu1  ;;  %v2130_v51 = vadd.f32 (!%p2844_p10), %v2129_v47, %v3644_v44 }
 0x1d4   : > { %2082 = vst [vmem:[#allocation2 + $0xb8] sm:$0xff] %v2050_v56  ;;  %v2008_v59 = vpop.f32.mrb[24].mxu0  ;;  %v1784_v61 = vpop.f32.mrb[25].mxu1  ;;  %v2151_v55 = vadd.f32 (!%p2844_p10), %v2150_v49, %v3647_v46  ;;  %v2173_v56 = vmul.f32 (!%p2844_p10), %v3625_v34, %v3625_v34 }
 0x1d5   : > { %v2905_v60 = vadd.f32 %v2008_v59, %v1782_v57  ;;  %v2010_v63 = vpop.f32.mrb[25].mxu0  ;;  %v1786_v1 = vpop.f32.mrb[26].mxu1  ;;  %v2175_v57 = vmul.f32 (!%p2844_p10), %v3629_v36, %v3629_v36  ;;  %v2131_v59 = vadd.f32 (!%p2844_p10), %v2130_v51, %v3650_v48 }
 0x1d6   : > { %v2906_v0 = vadd.f32 %v2010_v63, %v1784_v61  ;;  %v2012_v3 = vpop.f32.mrb[26].mxu0  ;;  %v1788_v6 = vpop.f32.mrb[27].mxu1  ;;  %v3672_v61 = vld [vmem:[#allocation2 + $0x70] sm:$0xff] (!%p2844_p10)  ;;  %v2177_v63 = vmul.f32 (!%p2844_p10), %v3633_v38, %v3633_v38 }
 0x1d7   : > { %v2051_v4 = vadd.f32 %v2905_v60, %v415_v58  ;;  %v2907_v5 = vadd.f32 %v2012_v3, %v1786_v1  ;;  %v2014_v8 = vpop.f32.mrb[27].mxu0  ;;  %v3667_v58 = vld [vmem:[#allocation2 + $0x68] sm:$0xff] (!%p2844_p10)  ;;  %v2176_v60 = vmul.f32 (!%p2844_p10), %v3631_v37, %v3631_v37  ;;  %v2132_v1 = vadd.f32 (!%p2844_p10), %v2131_v59, %v3660_v54 }
 0x1d8   : > { %v2052_v9 = vadd.f32 %v2906_v0, %v416_v62  ;;  %v2908_v10 = vadd.f32 %v2014_v8, %v1788_v6  ;;  %v2152_v62 = vadd.f32 (!%p2844_p10), %v2151_v55, %v3653_v50  ;;  %v3677_v0 = vld [vmem:[#allocation2 + $0x78] sm:$0xff] (!%p2844_p10)  ;;  %v2204_v3 = vadd.f32 (!%p2844_p10), %v2174_v53, %v2172_v52  ;;  %v3687_v8 = vld [vmem:[#allocation2 + $0x88] sm:$0xff] (!%p2844_p10) }
 0x1d9   : > { %2083 = vst [vmem:[#allocation2 + $0xc0] sm:$0xff] %v2051_v4  ;;  %v2053_v11 = vadd.f32 %v2907_v5, %v417_v2  ;;  %v2178_v2 = vmul.f32 (!%p2844_p10), %v3637_v40, %v3637_v40  ;;  %v3682_v4 = vld [vmem:[#allocation2 + $0x80] sm:$0xff] (!%p2844_p10)  ;;  %v2179_v6 = vmul.f32 (!%p2844_p10), %v3641_v42, %v3641_v42  ;;  %v2186_v41 = vmul.f32 (!%p2844_p10), %v3672_v61, %v3672_v61 }
 0x1da   : > { %2084 = vst [vmem:[#allocation2 + $0xc8] sm:$0xff] %v2052_v9  ;;  %v2054_v12 = vadd.f32 %v2908_v10, %v418_v7  ;;  %v2153_v5 = vadd.f32 (!%p2844_p10), %v2152_v62, %v3667_v58  ;;  %v2225_v7 = vadd.f32 (!%p2844_p10), %v2175_v57, %v2173_v56  ;;  %v2133_v9 = vadd.f32 (!%p2844_p10), %v2132_v1, %v3672_v61 }
 0x1db   : > { %2085 = vst [vmem:[#allocation2 + $0xd0] sm:$0xff] %v2053_v11  ;;  %v1792_v13 = vpop.f32.mrb[28].mxu1  ;;  %v2180_v10 = vmul.f32 (!%p2844_p10), %v3644_v44, %v3644_v44  ;;  %v2205_v11 = vadd.f32 (!%p2844_p10), %v2204_v3, %v2176_v60  ;;  %v2187_v49 = vmul.f32 (!%p2844_p10), %v3677_v0, %v3677_v0  ;;  %v2188_v55 = vmul.f32 (!%p2844_p10), %v3682_v4, %v3682_v4 }
 0x1dc   : > { %2086 = vst [vmem:[#allocation2 + $0xd8] sm:$0xff] %v2054_v12  ;;  %v2018_v15 = vpop.f32.mrb[28].mxu0  ;;  %v1794_v17 = vpop.f32.mrb[29].mxu1  ;;  %v3692_v12 = vld [vmem:[#allocation2 + $0x90] sm:$0xff] (!%p2844_p10)  ;;  %v2189_v60 = vmul.f32 (!%p2844_p10), %v3687_v8, %v3687_v8 }
 0x1dd   : > { %v2909_v16 = vadd.f32 %v2018_v15, %v1792_v13  ;;  %v2020_v19 = vpop.f32.mrb[29].mxu0  ;;  %v1796_v21 = vpop.f32.mrb[30].mxu1  ;;  %v2154_v13 = vadd.f32 (!%p2844_p10), %v2153_v5, %v3677_v0  ;;  %v2226_v15 = vadd.f32 (!%p2844_p10), %v2225_v7, %v2177_v63 }
 0x1de   : > { %v2910_v20 = vadd.f32 %v2020_v19, %v1794_v17  ;;  %v2022_v23 = vpop.f32.mrb[30].mxu0  ;;  %v1798_v26 = vpop.f32.mrb[31].mxu1  ;;  %2094 = sbr.rel (%p2844_p10) target bundleno = 601 (0x259), region = 67  ;;  %v2134_v17 = vadd.f32 (!%p2844_p10), %v2133_v9, %v3682_v4  ;;  %v2206_v19 = vadd.f32 (!%p2844_p10), %v2205_v11, %v2178_v2  ;;  %v2190_v2 = vmul.f32 (!%p2844_p10), %v3692_v12, %v3692_v12 }
 0x1df   : > { %v2055_v24 = vadd.f32 %v2909_v16, %v419_v14  ;;  %v2911_v25 = vadd.f32 %v2022_v23, %v1796_v21  ;;  %v2024_v28 = vpop.f32.mrb[31].mxu0  ;;  %v2181_v14 = vmul.f32 (!%p2844_p10), %v3647_v46, %v3647_v46  ;;  %v3697_v16 = vld [vmem:[#allocation2 + $0x98] sm:$0xff] (!%p2844_p10)  ;;  %v2155_v21 = vadd.f32 (!%p2844_p10), %v2154_v13, %v3687_v8 }
 0x1e0   : > { %v2056_v29 = vadd.f32 %v2910_v20, %v420_v18  ;;  %v2912_v30 = vadd.f32 %v2024_v28, %v1798_v26  ;;  %v2182_v18 = vmul.f32 (!%p2844_p10), %v3650_v48, %v3650_v48  ;;  %v3702_v20 = vld [vmem:[#allocation2 + $0xa0] sm:$0xff] (!%p2844_p10)  ;;  %v2227_v23 = vadd.f32 (!%p2844_p10), %v2226_v15, %v2179_v6  ;;  %v3712_v28 = vld [vmem:[#allocation2 + $0xb0] sm:$0xff] (!%p2844_p10) }
 0x1e1   : > { %2087 = vst [vmem:[#allocation2 + $0xe0] sm:$0xff] %v2055_v24  ;;  %v2057_v31 = vadd.f32 %v2911_v25, %v421_v22  ;;  %v2183_v22 = vmul.f32 (!%p2844_p10), %v3653_v50, %v3653_v50  ;;  %v3707_v24 = vld [vmem:[#allocation2 + $0xa8] sm:$0xff] (!%p2844_p10)  ;;  %v2135_v25 = vadd.f32 (!%p2844_p10), %v2134_v17, %v3692_v12  ;;  %v2184_v26 = vmul.f32 (!%p2844_p10), %v3660_v54, %v3660_v54  ;;  %v3722_v45 = vld [vmem:[#allocation2 + $0xc0] sm:$0xff] (!%p2844_p10) }
 0x1e2   : > { %2088 = vst [vmem:[#allocation2 + $0xe8] sm:$0xff] %v2056_v29  ;;  %v2058_v32 = vadd.f32 %v2912_v30, %v422_v27  ;;  %v2207_v27 = vadd.f32 (!%p2844_p10), %v2206_v19, %v2180_v10  ;;  %v2156_v29 = vadd.f32 (!%p2844_p10), %v2155_v21, %v3697_v16  ;;  %v2185_v30 = vmul.f32 (!%p2844_p10), %v3667_v58, %v3667_v58  ;;  %v3727_v52 = vld [vmem:[#allocation2 + $0xc8] sm:$0xff] (!%p2844_p10)  ;;  %v3732_v57 = vld [vmem:[#allocation2 + $0xd0] sm:$0xff] (!%p2844_p10) }
 0x1e3   : > { %2089 = vst [vmem:[#allocation2 + $0xf0] sm:$0xff] %v2057_v31  ;;  %v2228_v31 = vadd.f32 (!%p2844_p10), %v2227_v23, %v2181_v14  ;;  %v2136_v39 = vadd.f32 (!%p2844_p10), %v2135_v25, %v3702_v20  ;;  %v3737_v63 = vld [vmem:[#allocation2 + $0xd8] sm:$0xff] (!%p2844_p10)  ;;  %v2191_v7 = vmul.f32 (!%p2844_p10), %v3697_v16, %v3697_v16  ;;  %v2192_v13 = vmul.f32 (!%p2844_p10), %v3702_v20, %v3702_v20 }
 0x1e4   : > { %2090 = vst [vmem:[#allocation2 + $0xf8] sm:$0xff] %v2058_v32  ;;  %v3717_v32 = vld [vmem:[#allocation2 + $0xb8] sm:$0xff] (!%p2844_p10)  ;;  %v2208_v43 = vadd.f32 (!%p2844_p10), %v2207_v27, %v2182_v18  ;;  %v2157_v47 = vadd.f32 (!%p2844_p10), %v2156_v29, %v3707_v24  ;;  %v2193_v18 = vmul.f32 (!%p2844_p10), %v3707_v24, %v3707_v24  ;;  %v2194_v23 = vmul.f32 (!%p2844_p10), %v3712_v28, %v3712_v28 }
 0x1e5   : > { %v2229_v51 = vadd.f32 %v2228_v31, %v2183_v22  ;;  %v2137_v53 = vadd.f32 %v2136_v39, %v3712_v28  ;;  %v2195_v27 = vmul.f32 %v3717_v32, %v3717_v32  ;;  %v2196_v31 = vmul.f32 %v3722_v45, %v3722_v45 }
 0x1e6   : > { %v2209_v56 = vadd.f32 %v2208_v43, %v2184_v26  ;;  %v2158_v59 = vadd.f32 %v2157_v47, %v3717_v32  ;;  %v2197_v43 = vmul.f32 %v3727_v52, %v3727_v52 }
 0x1e7   : > { %v2230_v62 = vadd.f32 %v2229_v51, %v2185_v30  ;;  %v2138_v1 = vadd.f32 %v2137_v53, %v3722_v45  ;;  %v2198_v51 = vmul.f32 %v3732_v57, %v3732_v57 }
 0x1e8   : > { %v2210_v3 = vadd.f32 %v2209_v56, %v2186_v41  ;;  %v3742_v5 = vld [vmem:[#allocation2 + $0xe0] sm:$0xff]  ;;  %v2159_v6 = vadd.f32 %v2158_v59, %v3727_v52  ;;  %v2199_v56 = vmul.f32 %v3737_v63, %v3737_v63 }
 0x1e9   : > { %v2231_v9 = vadd.f32 %v2230_v62, %v2187_v49  ;;  %v3747_v10 = vld [vmem:[#allocation2 + $0xe8] sm:$0xff]  ;;  %v2139_v11 = vadd.f32 %v2138_v1, %v3732_v57  ;;  %v2200_v62 = vmul.f32 %v3742_v5, %v3742_v5 }
 0x1ea   : > { %v2211_v14 = vadd.f32 %v2210_v3, %v2188_v55  ;;  %v3752_v15 = vld [vmem:[#allocation2 + $0xf0] sm:$0xff]  ;;  %v2160_v17 = vadd.f32 %v2159_v6, %v3737_v63  ;;  %v2201_v3 = vmul.f32 %v3747_v10, %v3747_v10 }
 0x1eb   : > { %v2232_v19 = vadd.f32 %v2231_v9, %v2189_v60  ;;  %v3757_v21 = vld [vmem:[#allocation2 + $0xf8] sm:$0xff]  ;;  %v2140_v22 = vadd.f32 %v2139_v11, %v3742_v5  ;;  %v2202_v9 = vmul.f32 %v3752_v15, %v3752_v15 }
 0x1ec   : > { %v2212_v25 = vadd.f32 %v2211_v14, %v2190_v2  ;;  %v2161_v26 = vadd.f32 %v2160_v17, %v3747_v10  ;;  %v2203_v14 = vmul.f32 %v3757_v21, %v3757_v21 }
 0x1ed   : > { %v2233_v29 = vadd.f32 %v2232_v19, %v2191_v7  ;;  %v2141_v30 = vadd.f32 %v2140_v22, %v3752_v15 }
 0x1ee   : > { %v2213_v39 = vadd.f32 %v2212_v25, %v2192_v13  ;;  %v2162_v41 = vadd.f32 %v2161_v26, %v3757_v21 }
 0x1ef   : > { %v2234_v47 = vadd.f32 %v2233_v29, %v2193_v18  ;;  %v2142_v49 = vrot.slane %v2141_v30, 4 }
 0x1f0   : > { %v2214_v53 = vadd.f32 %v2213_v39, %v2194_v23  ;;  %v2163_v55 = vrot.slane %v2162_v41, 4 }
 0x1f1   : > { %v2235_v59 = vadd.f32 %v2234_v47, %v2195_v27  ;;  %v2143_v60 = vadd.f32 %v2142_v49, %v2141_v30 }
 0x1f2   : > { %v2215_v1 = vadd.f32 %v2214_v53, %v2196_v31  ;;  %v2164_v2 = vadd.f32 %v2163_v55, %v2162_v41 }
 0x1f3   : > { %v2236_v6 = vadd.f32 %v2235_v59, %v2197_v43  ;;  %v2144_v7 = vrot.slane %v2143_v60, 2 }
 0x1f4   : > { %v2216_v11 = vadd.f32 %v2215_v1, %v2198_v51  ;;  %v2165_v13 = vrot.slane %v2164_v2, 2 }
 0x1f5   : > { %v2237_v17 = vadd.f32 %v2236_v6, %v2199_v56  ;;  %v2145_v18 = vadd.f32 %v2144_v7, %v2143_v60 }
 0x1f6   : > { %v2217_v19 = vadd.f32 %v2216_v11, %v2200_v62  ;;  %v2166_v22 = vadd.f32 %v2165_v13, %v2164_v2 }
 0x1f7   : > { %v2238_v23 = vadd.f32 %v2237_v17, %v2201_v3  ;;  %v2146_v25 = vrot.slane %v2145_v18, 1 }
 0x1f8   : > { %v2218_v26 = vadd.f32 %v2217_v19, %v2202_v9  ;;  %v2167_v27 = vrot.slane %v2166_v22, 1 }
 0x1f9   : > { %v2239_v29 = vadd.f32 %v2238_v23, %v2203_v14  ;;  %v2147_v39 = vadd.f32 %v2146_v25, %v2145_v18  ;;  %v2265_v25 = vlaneseq }
 0x1fa   : > { %v2219_v30 = vrot.slane %v2218_v26, 4  ;;  %v2168_v43 = vadd.f32 %v2167_v27, %v2166_v22  ;;  %v3224_v22 = vmov 1966171168  }
 0x1fb   : > { %v2240_v31 = vrot.slane %v2239_v29, 4  ;;  %v2170_v53 = vmul.f32 0.0078125, %v2147_v39  ;;  %v2263_v23 = vunpack.c.l.s4 %v3224_v22  ;;  %v2266_v27 = vshrl.u32 %v2265_v25, 7 }
 0x1fc   : > { %v2220_v41 = vadd.f32 %v2219_v30, %v2218_v26  ;;  %v2171_v59 = vmul.f32 0.0078125, %v2168_v43  ;;  %v2254_v43 = vld [vmem:[%s3980_s2] sm:$0x3] }
 0x1fd   : > { %v2241_v47 = vadd.f32 %v2240_v31, %v2239_v29  ;;  %v2248_v2 = vmul.f32 %v2170_v53, %v2170_v53  ;;  %v2264_v26 = vunpack.c.0.s8 %v2263_v23 }
 0x1fe   : > { %v2221_v49 = vrot.slane %v2220_v41, 2  ;;  %v2249_v6 = vmul.f32 %v2171_v59, %v2171_v59 }
 0x1ff   : > { %v2242_v51 = vrot.slane %v2241_v47, 2  ;;  %v2267_v30 = vsub.s32 %v2264_v26, %v2266_v27 }
 0x200   : > { %v2222_v55 = vadd.f32 %v2221_v49, %v2220_v41  ;;  %v2282_v49 = vsub.s32 0, %v2266_v27 }
 0x201   : > { %v2243_v56 = vadd.f32 %v2242_v51, %v2241_v47  ;;  %v2286_v51 = vsub.s32 1, %v2266_v27 }
 0x202   : > { %v2223_v60 = vrot.slane %v2222_v55, 1 }
 0x203   : > { %v2244_v62 = vrot.slane %v2243_v56, 1 }
 0x204   : > { %v2224_v1 = vadd.f32 %v2223_v60, %v2222_v55 }
 0x205   : > { %v2245_v3 = vadd.f32 %v2244_v62, %v2243_v56 }
 0x206   : > { %v2246_v7 = vmul.f32 0.0078125, %v2224_v1 }
 0x207   : > { %v2247_v9 = vmul.f32 0.0078125, %v2245_v3 }
 0x208   : > { %v2250_v11 = vsub.f32 %v2246_v7, %v2248_v2 }
 0x209   : > { %v2251_v13 = vsub.f32 %v2247_v9, %v2249_v6 }
 0x20a   : > { %v2252_v14 = vmax.f32 %v2250_v11, 0.0 }
 0x20b   : > { %v2253_v17 = vmax.f32 %v2251_v13, 0.0 }
 0x20c   : > { %v2255_v18 = vadd.f32 1e-05, %v2252_v14 }
 0x20d   : > { %v2256_v19 = vadd.f32 1e-05, %v2253_v17 }
 0x20e   : > { %3195 = vrsqrt.f32 %v2255_v18 }
 0x20f   : > { %3197 = vrsqrt.f32 %v2256_v19 }
 0x218   : > { %v3196_v29 = vpop.eup %3195 }
 0x219   : > { %v3198_v31 = vpop.eup %3197 }
 0x21a   : > { %v2261_v39 = vcombine.low %v3196_v29, %v3198_v31 }
 0x21c   : > { %v2268_v41 = vrot.slane %v2261_v39, %v2267_v30 }
 0x21e   : > { %v2275_v47 = vrot.slane %v2268_v41, %v2267_v30 }
 0x220   : > { %v2277_v55 = vmul.f32 %v2275_v47, %v2254_v43 }
 0x222   : > { %v2283_v56 = vrot.slane %v2277_v55, %v2282_v49  ;;  %v2287_v60 = vrot.slane %v2277_v55, %v2286_v51 }
 0x224   : > { %v2290_v62 = vmul.f32 %v2283_v56, %v2170_v53  ;;  %v2291_v1 = vmul.f32 %v2287_v60, %v2171_v59  ;;  %v2311_v3 = vmul.f32 %v2283_v56, %v3623_v33  ;;  %v2312_v6 = vmul.f32 %v2287_v60, %v3625_v34  ;;  %v2278_v53 = vld [vmem:[%s3981_s3] sm:$0x3] }
 0x225   : > { %v2313_v7 = vmul.f32 %v2283_v56, %v3627_v35  ;;  %v2314_v9 = vmul.f32 %v2287_v60, %v3629_v36  ;;  %v2315_v11 = vmul.f32 %v2283_v56, %v3631_v37  ;;  %v2316_v14 = vmul.f32 %v2287_v60, %v3633_v38 }
 0x226   : > { %v2294_v2 = vcombine.low %v2290_v62, %v2291_v1  ;;  %v2317_v17 = vmul.f32 %v2283_v56, %v3637_v40  ;;  %v2318_v18 = vmul.f32 %v2287_v60, %v3641_v42  ;;  %v2319_v33 = vmul.f32 %v2283_v56, %v3644_v44 }
 0x227   : > { %v3799_v34 = vmul.f32 %v2287_v60, %v3647_v46  ;;  %v2321_v35 = vmul.f32 %v2283_v56, %v3650_v48  ;;  %v2322_v36 = vmul.f32 %v2287_v60, %v3653_v50  ;;  %v3804_v38 = vmul.f32 %v2283_v56, %v3660_v54 }
 0x228   : > { %v2301_v13 = vrot.slane %v2294_v2, %v2267_v30  ;;  %v3807_v40 = vmul.f32 %v2287_v60, %v3667_v58  ;;  %v3810_v42 = vmul.f32 %v2283_v56, %v3672_v61  ;;  %v3813_v59 = vmul.f32 %v2287_v60, %v3677_v0 }
 0x229   : > { %v3816_v44 = vmul.f32 %v2283_v56, %v3682_v4  ;;  %v3819_v46 = vmul.f32 %v2287_v60, %v3687_v8  ;;  %v3822_v48 = vmul.f32 %v2283_v56, %v3692_v12  ;;  %v3825_v54 = vmul.f32 %v2287_v60, %v3697_v16 }
 0x22a   : > { %v2308_v37 = vrot.slane %v2301_v13, %v2267_v30  ;;  %v3828_v58 = vmul.f32 %v2283_v56, %v3702_v20  ;;  %v3831_v61 = vmul.f32 %v2287_v60, %v3707_v24  ;;  %v3834_v0 = vmul.f32 %v2283_v56, %v3712_v28 }
 0x22b   : > { %v3837_v4 = vmul.f32 %v2287_v60, %v3717_v32  ;;  %v3840_v8 = vmul.f32 %v2283_v56, %v3722_v45  ;;  %v3843_v12 = vmul.f32 %v2287_v60, %v3727_v52  ;;  %v3850_v20 = vmul.f32 %v2283_v56, %v3732_v57 }
 0x22c   : > { %v2310_v50 = vsub.f32 %v2278_v53, %v2308_v37  ;;  %v3853_v24 = vmul.f32 %v2287_v60, %v3737_v63  ;;  %v3856_v28 = vmul.f32 %v2283_v56, %v3742_v5  ;;  %v3859_v32 = vmul.f32 %v2287_v60, %v3747_v10 }
 0x22d   : > { %v3862_v45 = vmul.f32 %v2283_v56, %v3752_v15  ;;  %v3865_v52 = vmul.f32 %v2287_v60, %v3757_v21 }
 0x22e   : > { %v3845_v16 = vrot.slane %v2310_v50, %v2282_v49  ;;  %v3847_v19 = vrot.slane %v2310_v50, %v2286_v51 }
 0x230   : > { %v2354_v22 = vadd.f32 %v3845_v16, %v2311_v3  ;;  %v2355_v57 = vadd.f32 %v3847_v19, %v2312_v6  ;;  %v2356_v23 = vadd.f32 %v3845_v16, %v2313_v7  ;;  %v2357_v63 = vadd.f32 %v3847_v19, %v2314_v9 }
 0x231   : > { %v2358_v5 = vadd.f32 %v3845_v16, %v2315_v11  ;;  %v2359_v25 = vadd.f32 %v3847_v19, %v2316_v14  ;;  %v2360_v10 = vadd.f32 %v3845_v16, %v2317_v17  ;;  %v2361_v15 = vadd.f32 %v3847_v19, %v2318_v18 }
 0x232   : > { %vm2386_vm0 = vcmp.ge.f32.partialorder %v2354_v22, 0.0  ;;  %vm2387_vm1 = vcmp.ge.f32.partialorder %v2355_v57, 0.0  ;;  %v2418_v21 = vmul.f32 0.2, %v2354_v22  ;;  %v2419_v26 = vmul.f32 0.2, %v2355_v57 }
 0x233   : > { %vm2388_vm2 = vcmp.ge.f32.partialorder %v2356_v23, 0.0  ;;  %vm2389_vm3 = vcmp.ge.f32.partialorder %v2357_v63, 0.0  ;;  %v2420_v27 = vmul.f32 0.2, %v2356_v23  ;;  %v2421_v29 = vmul.f32 0.2, %v2357_v63 }
 0x234   : > { %v2450_v30 = vsel %vm2386_vm0, %v2354_v22, %v2418_v21  ;;  %v2451_v31 = vsel %vm2387_vm1, %v2355_v57, %v2419_v26  ;;  %vm2390_vm4 = vcmp.ge.f32.partialorder %v2358_v5, 0.0  ;;  %vm2391_vm5 = vcmp.ge.f32.partialorder %v2359_v25, 0.0 }
 0x235   : > { %v2865_v39 = vpack.c.bf16 %v2451_v31, %v2450_v30  ;;  %v2452_v41 = vsel %vm2388_vm2, %v2356_v23, %v2420_v27  ;;  %v2453_v43 = vsel %vm2389_vm3, %v2357_v63, %v2421_v29  ;;  %v2422_v47 = vmul.f32 0.2, %v2358_v5 }
 0x236   : > { %v2866_v49 = vpack.c.bf16 %v2453_v43, %v2452_v41  ;;  %v2423_v51 = vmul.f32 0.2, %v2359_v25  ;;  %vm2392_vm6 = vcmp.ge.f32.partialorder %v2360_v10, 0.0  ;;  %vm2393_vm7 = vcmp.ge.f32.partialorder %v2361_v15, 0.0 }
 0x237   : > { %2578 = vst [vmem:[%s3982_s4] sm:$0xff] %v2865_v39  ;;  %v2454_v55 = vsel %vm2390_vm4, %v2358_v5, %v2422_v47  ;;  %v2424_v56 = vmul.f32 0.2, %v2360_v10  ;;  %v2425_v60 = vmul.f32 0.2, %v2361_v15  ;;  %v2362_v62 = vadd.f32 %v3845_v16, %v2319_v33 }
 0x238   : > { %2579 = vst [vmem:[%s3982_s4 + $0x8] sm:$0xff] %v2866_v49  ;;  %v2455_v1 = vsel %vm2391_vm5, %v2359_v25, %v2423_v51  ;;  %v2363_v2 = vadd.f32 %v3847_v19, %v3799_v34  ;;  %v2364_v3 = vadd.f32 %v3845_v16, %v2321_v35  ;;  %v2365_v6 = vadd.f32 %v3847_v19, %v2322_v36 }
 0x239   : > { %v2867_v7 = vpack.c.bf16 %v2455_v1, %v2454_v55  ;;  %v2456_v9 = vsel %vm2392_vm6, %v2360_v10, %v2424_v56  ;;  %v2457_v11 = vsel %vm2393_vm7, %v2361_v15, %v2425_v60  ;;  %vm2394_vm8 = vcmp.ge.f32.partialorder %v2362_v62, 0.0 }
 0x23a   : > { %v2868_v13 = vpack.c.bf16 %v2457_v11, %v2456_v9  ;;  %vm2395_vm9 = vcmp.ge.f32.partialorder %v2363_v2, 0.0  ;;  %v2426_v14 = vmul.f32 0.2, %v2362_v62  ;;  %v2427_v17 = vmul.f32 0.2, %v2363_v2 }
 0x23b   : > { %2580 = vst [vmem:[%s3982_s4 + $0x10] sm:$0xff] %v2867_v7  ;;  %vm2396_vm10 = vcmp.ge.f32.partialorder %v2364_v3, 0.0  ;;  %vm2397_vm11 = vcmp.ge.f32.partialorder %v2365_v6, 0.0  ;;  %v2428_v18 = vmul.f32 0.2, %v2364_v3  ;;  %v2366_v35 = vadd.f32 %v3845_v16, %v3804_v38 }
 0x23c   : > { %v2429_v53 = vmul.f32 0.2, %v2365_v6  ;;  %2581 = vst [vmem:[%s3982_s4 + $0x18] sm:$0xff] %v2868_v13  ;;  %v2458_v33 = vsel %vm2394_vm8, %v2362_v62, %v2426_v14  ;;  %v2459_v34 = vsel %vm2395_vm9, %v2363_v2, %v2427_v17  ;;  %v2367_v36 = vadd.f32 %v3847_v19, %v3807_v40 }
 0x23d   : > { %v2869_v37 = vpack.c.bf16 %v2459_v34, %v2458_v33  ;;  %v2460_v50 = vsel %vm2396_vm10, %v2364_v3, %v2428_v18  ;;  %v2368_v57 = vadd.f32 %v3845_v16, %v3810_v42  ;;  %vm2398_vm12 = vcmp.ge.f32.partialorder %v2366_v35, 0.0 }
 0x23e   : > { %v2461_v22 = vsel %vm2397_vm11, %v2365_v6, %v2429_v53  ;;  %vm2399_vm13 = vcmp.ge.f32.partialorder %v2367_v36, 0.0  ;;  %v2430_v63 = vmul.f32 0.2, %v2366_v35  ;;  %v2431_v5 = vmul.f32 0.2, %v2367_v36 }
 0x23f   : > { %v2870_v23 = vpack.c.bf16 %v2461_v22, %v2460_v50  ;;  %2582 = vst [vmem:[%s3982_s4 + $0x20] sm:$0xff] %v2869_v37  ;;  %v2369_v38 = vadd.f32 %v3847_v19, %v3813_v59  ;;  %vm2400_vm14 = vcmp.ge.f32.partialorder %v2368_v57, 0.0  ;;  %v2432_v40 = vmul.f32 0.2, %v2368_v57 }
 0x240   : > { %v2462_v25 = vsel %vm2398_vm12, %v2366_v35, %v2430_v63  ;;  %v2370_v42 = vadd.f32 %v3845_v16, %v3816_v44  ;;  %v2371_v10 = vadd.f32 %v3847_v19, %v3819_v46  ;;  %v2372_v15 = vadd.f32 %v3845_v16, %v3822_v48 }
 0x241   : > { %2583 = vst [vmem:[%s3982_s4 + $0x28] sm:$0xff] %v2870_v23  ;;  %v2463_v21 = vsel %vm2399_vm13, %v2367_v36, %v2431_v5  ;;  %vm2401_vm15 = vcmp.ge.f32.partialorder %v2369_v38, 0.0  ;;  %v2433_v26 = vmul.f32 0.2, %v2369_v38  ;;  %v2464_v59 = vsel %vm2400_vm14, %v2368_v57, %v2432_v40 }
 0x242   : > { %v2871_v27 = vpack.c.bf16 %v2463_v21, %v2462_v25  ;;  %vm2402_vm0 = vcmp.ge.f32.partialorder %v2370_v42, 0.0  ;;  %vm2403_vm1 = vcmp.ge.f32.partialorder %v2371_v10, 0.0  ;;  %v2434_v29 = vmul.f32 0.2, %v2370_v42 }
 0x243   : > { %v2465_v30 = vsel %vm2401_vm15, %v2369_v38, %v2433_v26  ;;  %v2435_v31 = vmul.f32 0.2, %v2371_v10  ;;  %v2373_v39 = vadd.f32 %v3847_v19, %v3825_v54  ;;  %vm2404_vm2 = vcmp.ge.f32.partialorder %v2372_v15, 0.0 }
 0x244   : > { %2584 = vst [vmem:[%s3982_s4 + $0x30] sm:$0xff] %v2871_v27  ;;  %v2872_v44 = vpack.c.bf16 %v2465_v30, %v2464_v59  ;;  %v2466_v46 = vsel %vm2402_vm0, %v2370_v42, %v2434_v29  ;;  %v2436_v48 = vmul.f32 0.2, %v2372_v15  ;;  %v2374_v41 = vadd.f32 %v3845_v16, %v3828_v58 }
 0x245   : > { %v2467_v43 = vsel %vm2403_vm1, %v2371_v10, %v2435_v31  ;;  %vm2405_vm3 = vcmp.ge.f32.partialorder %v2373_v39, 0.0  ;;  %v2437_v47 = vmul.f32 0.2, %v2373_v39  ;;  %v2375_v49 = vadd.f32 %v3847_v19, %v3831_v61 }
 0x246   : > { %2585 = vst [vmem:[%s3982_s4 + $0x38] sm:$0xff] %v2872_v44  ;;  %v2873_v54 = vpack.c.bf16 %v2467_v43, %v2466_v46  ;;  %v2468_v51 = vsel %vm2404_vm2, %v2372_v15, %v2436_v48  ;;  %vm2406_vm4 = vcmp.ge.f32.partialorder %v2374_v41, 0.0  ;;  %v2438_v55 = vmul.f32 0.2, %v2374_v41 }
 0x247   : > { %v2469_v56 = vsel %vm2405_vm3, %v2373_v39, %v2437_v47  ;;  %vm2407_vm5 = vcmp.ge.f32.partialorder %v2375_v49, 0.0  ;;  %v2439_v60 = vmul.f32 0.2, %v2375_v49  ;;  %v2376_v58 = vadd.f32 %v3845_v16, %v3834_v0 }
 0x248   : > { %2586 = vst [vmem:[%s3982_s4 + $0x40] sm:$0xff] %v2873_v54  ;;  %v2874_v62 = vpack.c.bf16 %v2469_v56, %v2468_v51  ;;  %v2470_v61 = vsel %vm2406_vm4, %v2374_v41, %v2438_v55  ;;  %v2377_v1 = vadd.f32 %v3847_v19, %v3837_v4  ;;  %v2378_v2 = vadd.f32 %v3845_v16, %v3840_v8 }
 0x249   : > { %v2471_v3 = vsel %vm2407_vm5, %v2375_v49, %v2439_v60  ;;  %vm2408_vm6 = vcmp.ge.f32.partialorder %v2376_v58, 0.0  ;;  %v2440_v6 = vmul.f32 0.2, %v2376_v58  ;;  %v2379_v7 = vadd.f32 %v3847_v19, %v3843_v12 }
 0x24a   : > { %2587 = vst [vmem:[%s3982_s4 + $0x48] sm:$0xff] %v2874_v62  ;;  %v2875_v0 = vpack.c.bf16 %v2471_v3, %v2470_v61  ;;  %vm2409_vm7 = vcmp.ge.f32.partialorder %v2377_v1, 0.0  ;;  %v2441_v9 = vmul.f32 0.2, %v2377_v1  ;;  %vm2410_vm8 = vcmp.ge.f32.partialorder %v2378_v2, 0.0 }
 0x24b   : > { %v2472_v11 = vsel %vm2408_vm6, %v2376_v58, %v2440_v6  ;;  %vm2411_vm9 = vcmp.ge.f32.partialorder %v2379_v7, 0.0  ;;  %v2442_v4 = vmul.f32 0.2, %v2378_v2  ;;  %v2443_v13 = vmul.f32 0.2, %v2379_v7 }
 0x24c   : > { %2588 = vst [vmem:[%s3982_s4 + $0x50] sm:$0xff] %v2875_v0  ;;  %v2473_v8 = vsel %vm2409_vm7, %v2377_v1, %v2441_v9  ;;  %v2380_v12 = vadd.f32 %v3845_v16, %v3850_v20  ;;  %v2381_v14 = vadd.f32 %v3847_v19, %v3853_v24  ;;  %v2382_v17 = vadd.f32 %v3845_v16, %v3856_v28 }
 0x24d   : > { %v2876_v18 = vpack.c.bf16 %v2473_v8, %v2472_v11  ;;  %v2474_v53 = vsel %vm2410_vm8, %v2378_v2, %v2442_v4  ;;  %v2475_v33 = vsel %vm2411_vm9, %v2379_v7, %v2443_v13  ;;  %v2383_v34 = vadd.f32 %v3847_v19, %v3859_v32 }
 0x24e   : > { %v2877_v35 = vpack.c.bf16 %v2475_v33, %v2474_v53  ;;  %vm2412_vm10 = vcmp.ge.f32.partialorder %v2380_v12, 0.0  ;;  %vm2413_vm11 = vcmp.ge.f32.partialorder %v2381_v14, 0.0  ;;  %v2444_v36 = vmul.f32 0.2, %v2380_v12 }
 0x24f   : > { %2589 = vst [vmem:[%s3982_s4 + $0x58] sm:$0xff] %v2876_v18  ;;  %v2445_v20 = vmul.f32 0.2, %v2381_v14  ;;  %vm2414_vm12 = vcmp.ge.f32.partialorder %v2382_v17, 0.0  ;;  %vm2415_vm13 = vcmp.ge.f32.partialorder %v2383_v34, 0.0  ;;  %v2384_v32 = vadd.f32 %v3845_v16, %v3862_v45 }
 0x250   : > { %v2446_v24 = vmul.f32 0.2, %v2382_v17  ;;  %2590 = vst [vmem:[%s3982_s4 + $0x60] sm:$0xff] %v2877_v35  ;;  %v2476_v28 = vsel %vm2412_vm10, %v2380_v12, %v2444_v36  ;;  %v2447_v37 = vmul.f32 0.2, %v2383_v34  ;;  %v2385_v50 = vadd.f32 %v3847_v19, %v3865_v52 }
 0x251   : > { %v2477_v22 = vsel %vm2413_vm11, %v2381_v14, %v2445_v20  ;;  %vm2416_vm14 = vcmp.ge.f32.partialorder %v2384_v32, 0.0  ;;  %v2448_v38 = vmul.f32 0.2, %v2384_v32 }
 0x252   : > { %v2478_v57 = vsel %vm2414_vm12, %v2382_v17, %v2446_v24  ;;  %v2878_v23 = vpack.c.bf16 %v2477_v22, %v2476_v28  ;;  %v2479_v63 = vsel %vm2415_vm13, %v2383_v34, %v2447_v37  ;;  %vm2417_vm15 = vcmp.ge.f32.partialorder %v2385_v50, 0.0 }
 0x253   : > { %v2879_v5 = vpack.c.bf16 %v2479_v63, %v2478_v57  ;;  %v2449_v40 = vmul.f32 0.2, %v2385_v50  ;;  %v2480_v16 = vsel %vm2416_vm14, %v2384_v32, %v2448_v38 }
 0x254   : > { %2591 = vst [vmem:[%s3982_s4 + $0x68] sm:$0xff] %v2878_v23 }
 0x255   : > { %2592 = vst [vmem:[%s3982_s4 + $0x70] sm:$0xff] %v2879_v5  ;;  %v2481_v45 = vsel %vm2417_vm15, %v2385_v50, %v2449_v40 }
 0x256   : > { %v2880_v19 = vpack.c.bf16 %v2481_v45, %v2480_v16 }
 0x258   : > { %2593 = vst [vmem:[%s3982_s4 + $0x78] sm:$0xff] %v2880_v19 }
 0x259 PF: > { %p11_p11 = scmp.ge.s32.totalorder %s3269_s19, 4   ;;  %s3983_s15 = smov %s3217_s16 }
 0x25a   : > { %s3984_s16 = smov %s3278_s22  ;;  %s3985_s17 = smov %s3269_s19 }
 0x25b   :  { %13 = sbr.rel (!%p11_p11) target bundleno = 2 (0x2), region = 101 }

// kernel: encoder_cnn_forward.8
= control target key start
LH: loop header
LB: loop body
LE: loop exit
PB: predicated region body
PF: predicated region fallthrough
CT: control target
= control target key end

     0   :  { %s3632_s15 = smov 0   ;;  %s3634_s16 = smov 0   ;;  %s4172_s0 = inlined_call_operand.vmem [shape: bf16[32,4096], index: 0, kind: input, shape index: {}]   ;;  %s4173_s1 = inlined_call_operand.vmem [shape: bf16[4096,512], index: 1, kind: input, shape index: {}]   ;;  %s4174_s2 = inlined_call_operand.vmem [shape: f32[1,512], index: 2, kind: input, shape index: {}]   ;;  %s4175_s3 = inlined_call_operand.vmem [shape: f32[1,512], index: 3, kind: input, shape index: {}]   ;;  %s4176_s4 = inlined_call_operand.vmem [shape: bf16[32,512], index: 4, kind: output, shape index: {}]  }
   0x1   :  { %s3636_s17 = smov 0  }
   0x2 LB: > { %s3648_s18 = sadd.s32 4294967295, %s3603_s17   ;;  %s3651_s19 = sadd.s32 1, %s3603_s17   ;;  %s3603_s17 = sphi %s3636_s17, %s4179_s17   ;;  %s3599_s16 = sphi %s3634_s16, %s4178_s16   ;;  %s3595_s15 = sphi %s3632_s15, %s4177_s15  }
   0x3   : > { %s18_s20 = ssub.s32 %s3603_s17, %s3651_s19  ;;  %s21_s21 = sadd.s32 1, %s3599_s16 }
   0x4   : > { %p19_p0 = scmp.eq.s32.totalorder %s18_s20, 0  ;;  %p28_p1 = scmp.ne.s32.totalorder %s3599_s16, %s3595_s15 }
   0x5   : > { %p29_p2 = scmp.eq.s32.totalorder %s3603_s17, 0  ;;  %p2812_p4 = scmp.ge.s32.totalorder %s3603_s17, 4 }
   0x6   : > { %s3660_s22 = scalar_select %p19_p0, %s3599_s16, %s21_s21  }
   0x7   : > { %p30_p3 = por %p29_p2, %p28_p1  ;;  %149 = sbr.rel (%p2812_p4) target bundleno = 26 (0x1a), region = 24 }
   0xe   : > { %152 = sbr.rel (!%p30_p3) target bundleno = 26 (0x1a), region = 28  ;;  %s154_s23 = sand.u32 (%p30_p3), 1, %s3599_s16  }
   0xf   : > { %s3105_s24 = sshll.u32 (%p30_p3), %s3603_s17, 5  ;;  %s2813_s25 = sshll.u32 (%p30_p3), %s154_s23, 7 }
  0x10   : > { %s3668_s28 = scalar_lea.vmem (%p30_p3), %s4172_s0, %s3105_s24  ;;  %s156_s29 = scalar_lea.vmem (%p30_p3), [#allocation3], %s2813_s25 }
  0x11   : > { %v172_v0 = vld [vmem:[%s3668_s28] sm:$0xff] (%p30_p3)  ;;  %v174_v1 = vld [vmem:[%s3668_s28 + $0x8] sm:$0xff] (%p30_p3)  ;;  %v176_v2 = vld [vmem:[%s3668_s28 + $0x10] sm:$0xff] (%p30_p3) }
  0x12   : > { %173 = vst [vmem:[%s156_s29] sm:$0xff] (%p30_p3), %v172_v0  ;;  %175 = vst [vmem:[%s156_s29 + $0x8] sm:$0xff] (%p30_p3), %v174_v1  ;;  %v178_v3 = vld [vmem:[%s3668_s28 + $0x18] sm:$0xff] (%p30_p3)  ;;  %v180_v4 = vld [vmem:[%s3668_s28 + $0x80] sm:$0xff] (%p30_p3) }
  0x13   : > { %177 = vst [vmem:[%s156_s29 + $0x10] sm:$0xff] (%p30_p3), %v176_v2  ;;  %v182_v5 = vld [vmem:[%s3668_s28 + $0x88] sm:$0xff] (%p30_p3)  ;;  %179 = vst [vmem:[%s156_s29 + $0x18] sm:$0xff] (%p30_p3), %v178_v3  ;;  %v184_v6 = vld [vmem:[%s3668_s28 + $0x90] sm:$0xff] (%p30_p3) }
  0x14   : > { %181 = vst [vmem:[%s156_s29 + $0x20] sm:$0xff] (%p30_p3), %v180_v4  ;;  %183 = vst [vmem:[%s156_s29 + $0x28] sm:$0xff] (%p30_p3), %v182_v5  ;;  %v186_v7 = vld [vmem:[%s3668_s28 + $0x98] sm:$0xff] (%p30_p3)  ;;  %v188_v8 = vld [vmem:[%s3668_s28 + $0x100] sm:$0xff] (%p30_p3) }
  0x15   : > { %185 = vst [vmem:[%s156_s29 + $0x30] sm:$0xff] %v184_v6  ;;  %187 = vst [vmem:[%s156_s29 + $0x38] sm:$0xff] %v186_v7  ;;  %v190_v9 = vld [vmem:[%s3668_s28 + $0x108] sm:$0xff]  ;;  %v192_v10 = vld [vmem:[%s3668_s28 + $0x110] sm:$0xff] }
  0x16   : > { %189 = vst [vmem:[%s156_s29 + $0x40] sm:$0xff] %v188_v8  ;;  %v194_v11 = vld [vmem:[%s3668_s28 + $0x118] sm:$0xff]  ;;  %191 = vst [vmem:[%s156_s29 + $0x48] sm:$0xff] %v190_v9  ;;  %v196_v12 = vld [vmem:[%s3668_s28 + $0x180] sm:$0xff] }
  0x17   : > { %193 = vst [vmem:[%s156_s29 + $0x50] sm:$0xff] %v192_v10  ;;  %195 = vst [vmem:[%s156_s29 + $0x58] sm:$0xff] %v194_v11  ;;  %v198_v13 = vld [vmem:[%s3668_s28 + $0x188] sm:$0xff]  ;;  %v200_v14 = vld [vmem:[%s3668_s28 + $0x190] sm:$0xff] }
  0x18   : > { %197 = vst [vmem:[%s156_s29 + $0x60] sm:$0xff] %v196_v12  ;;  %199 = vst [vmem:[%s156_s29 + $0x68] sm:$0xff] %v198_v13  ;;  %v202_v15 = vld [vmem:[%s3668_s28 + $0x198] sm:$0xff] }
  0x19   : > { %201 = vst [vmem:[%s156_s29 + $0x70] sm:$0xff] %v200_v14  ;;  %203 = vst [vmem:[%s156_s29 + $0x78] sm:$0xff] %v202_v15 }
  0x1a PF: > { %p2816_p5 = scmp.ge.s32.totalorder %s3603_s17, 1  ;;  %p218_p6 = scmp.lt.s32.totalorder %s3603_s17, 5 }
  0x1c   : > { %p219_p7 = pnand %p2816_p5, %p218_p6 }
  0x1d   : > { %s225_s30 = sand.u32 (!%p219_p7), 1, %s3595_s15   ;;  %s2818_s5 = sshll.u32 (!%p219_p7), %s3648_s18, 7 }
  0x1e   : > { %222 = sbr.rel (%p219_p7) target bundleno = 625 (0x271), region = 55  ;;  %s2817_s6 = sshll.u32 (!%p219_p7), %s225_s30, 7 }
  0x1f   : > { %p253_p8 = scmp.lt.s32.totalorder (!%p219_p7), %s2818_s5, 511  ;;  %s3695_s11 = scalar_lea.vmem (!%p219_p7), [#allocation3], %s2817_s6 }
  0x20   : > { %p2821_p9 = scmp.ne.s32.totalorder (!%p219_p7), %s3648_s18, 0 }
  0x25   : > { %s4181_s5 = smov (!%p253_p8, %s2818_s5), 511  ;;  %262 = sbr.rel (%p2821_p9) target bundleno = 47 (0x2f), region = 63 }
  0x26   : > { %s3106_s7 = sshll.u32 %s4181_s5, 4  ;;  %v3605_v16 = vmov (!%p2821_p9), 0.0  }
  0x27   : > { %s3693_s10 = scalar_lea.vmem %s4173_s1, %s3106_s7  ;;  %263 = vst [vmem:[#allocation2] sm:$0xff] (!%p2821_p9), %v3605_v16  ;;  %264 = vst [vmem:[#allocation2 + $0x8] sm:$0xff] (!%p2821_p9), %v3605_v16 }
  0x28   : > { %265 = vst [vmem:[#allocation2 + $0x10] sm:$0xff] (!%p2821_p9), %v3605_v16  ;;  %266 = vst [vmem:[#allocation2 + $0x18] sm:$0xff] (!%p2821_p9), %v3605_v16 }
  0x29   : > { %267 = vst [vmem:[#allocation2 + $0x20] sm:$0xff] (!%p2821_p9), %v3605_v16  ;;  %268 = vst [vmem:[#allocation2 + $0x28] sm:$0xff] (!%p2821_p9), %v3605_v16 }
  0x2a   : > { %269 = vst [vmem:[#allocation2 + $0x30] sm:$0xff] (!%p2821_p9), %v3605_v16  ;;  %270 = vst [vmem:[#allocation2 + $0x38] sm:$0xff] (!%p2821_p9), %v3605_v16 }
  0x2b   : > { %271 = vst [vmem:[#allocation2 + $0x40] sm:$0xff] (!%p2821_p9), %v3605_v16  ;;  %272 = vst [vmem:[#allocation2 + $0x48] sm:$0xff] (!%p2821_p9), %v3605_v16 }
  0x2c   : > { %273 = vst [vmem:[#allocation2 + $0x50] sm:$0xff] %v3605_v16  ;;  %274 = vst [vmem:[#allocation2 + $0x58] sm:$0xff] %v3605_v16 }
  0x2d   : > { %275 = vst [vmem:[#allocation2 + $0x60] sm:$0xff] %v3605_v16  ;;  %276 = vst [vmem:[#allocation2 + $0x68] sm:$0xff] %v3605_v16 }
  0x2e   : > { %277 = vst [vmem:[#allocation2 + $0x70] sm:$0xff] %v3605_v16  ;;  %278 = vst [vmem:[#allocation2 + $0x78] sm:$0xff] %v3605_v16 }
  0x2f PF: > { %v3189_v17 = vld [vmem:[%s3693_s10 + $0x4] ss:$16 sps:$4 sm:$0xff]   ;;  %v3191_v18 = vld [vmem:[%s3693_s10 + $0xc] ss:$16 sps:$4 sm:$0xff]   ;;  %v3193_v19 = vld [vmem:[%s3693_s10] ss:$16 sps:$4 sm:$0xff]  }
  0x30   : > { %1927 = vmatprep.subr.bf16.mxu0 %v3189_v17  ;;  %v3194_v20 = vld [vmem:[%s3693_s10 + $0x8] ss:$16 sps:$4 sm:$0xff]   ;;  %2139 = vmatprep.subr.bf16.mxu1 %v3191_v18  ;;  %v3195_v21 = vld [vmem:[%s3693_s10 + $0x24] ss:$16 sps:$4 sm:$0xff]   ;;  %v3197_v22 = vld [vmem:[%s3693_s10 + $0x2c] ss:$16 sps:$4 sm:$0xff]  }
  0x31   : > { %1928 = vmatpush1.bf16.msra.mxu0 %v3193_v19  ;;  %2140 = vmatpush1.bf16.msra.mxu1 %v3194_v20  ;;  %v3199_v23 = vld [vmem:[%s3693_s10 + $0x20] ss:$16 sps:$4 sm:$0xff]   ;;  %v3200_v24 = vld [vmem:[%s3693_s10 + $0x28] ss:$16 sps:$4 sm:$0xff]   ;;  %v3201_v25 = vld [vmem:[%s3693_s10 + $0x44] ss:$16 sps:$4 sm:$0xff]  }
  0x32   : > { %1929 = vmatprep.subr.bf16.mxu0 %v3195_v21  ;;  %2141 = vmatprep.subr.bf16.mxu1 %v3197_v22  ;;  %v3203_v26 = vld [vmem:[%s3693_s10 + $0x4c] ss:$16 sps:$4 sm:$0xff]   ;;  %v3205_v27 = vld [vmem:[%s3693_s10 + $0x40] ss:$16 sps:$4 sm:$0xff]   ;;  %v3206_v28 = vld [vmem:[%s3693_s10 + $0x48] ss:$16 sps:$4 sm:$0xff]  }
  0x33   : > { %v3207_v29 = vld [vmem:[%s3693_s10 + $0x64] ss:$16 sps:$4 sm:$0xff]   ;;  %v3209_v30 = vld [vmem:[%s3693_s10 + $0x6c] ss:$16 sps:$4 sm:$0xff]   ;;  %v3211_v31 = vld [vmem:[%s3693_s10 + $0x60] ss:$16 sps:$4 sm:$0xff]  }
  0x34   : > { %v3212_v32 = vld [vmem:[%s3693_s10 + $0x68] ss:$16 sps:$4 sm:$0xff]   ;;  %v3213_v33 = vld [vmem:[%s3693_s10 + $0x84] ss:$16 sps:$4 sm:$0xff]   ;;  %v3215_v34 = vld [vmem:[%s3693_s10 + $0x8c] ss:$16 sps:$4 sm:$0xff]  }
  0x35   : > { %1930 = vmatpush1.bf16.msra.mxu0 %v3199_v23  ;;  %2142 = vmatpush1.bf16.msra.mxu1 %v3200_v24  ;;  %v3217_v35 = vld [vmem:[%s3693_s10 + $0x80] ss:$16 sps:$4 sm:$0xff]   ;;  %v3218_v36 = vld [vmem:[%s3693_s10 + $0x88] ss:$16 sps:$4 sm:$0xff]   ;;  %v3219_v37 = vld [vmem:[%s3693_s10 + $0xa4] ss:$16 sps:$4 sm:$0xff]  }
  0x36   : > { %1931 = vmatprep.subr.bf16.mxu0 %v3201_v25  ;;  %2143 = vmatprep.subr.bf16.mxu1 %v3203_v26  ;;  %v3221_v38 = vld [vmem:[%s3693_s10 + $0xac] ss:$16 sps:$4 sm:$0xff]   ;;  %v3223_v39 = vld [vmem:[%s3693_s10 + $0xa0] ss:$16 sps:$4 sm:$0xff]   ;;  %v3224_v40 = vld [vmem:[%s3693_s10 + $0xa8] ss:$16 sps:$4 sm:$0xff]  }
  0x37   : > { %v3225_v41 = vld [vmem:[%s3693_s10 + $0xc4] ss:$16 sps:$4 sm:$0xff]   ;;  %v3227_v42 = vld [vmem:[%s3693_s10 + $0xcc] ss:$16 sps:$4 sm:$0xff]   ;;  %v3229_v43 = vld [vmem:[%s3693_s10 + $0xc0] ss:$16 sps:$4 sm:$0xff]  }
  0x38   : > { %v3230_v44 = vld [vmem:[%s3693_s10 + $0xc8] ss:$16 sps:$4 sm:$0xff]   ;;  %v3231_v45 = vld [vmem:[%s3693_s10 + $0xe4] ss:$16 sps:$4 sm:$0xff]   ;;  %v3233_v46 = vld [vmem:[%s3693_s10 + $0xec] ss:$16 sps:$4 sm:$0xff]  }
  0x39   : > { %1932 = vmatpush1.bf16.msra.mxu0 %v3205_v27  ;;  %2144 = vmatpush1.bf16.msra.mxu1 %v3206_v28  ;;  %v3235_v47 = vld [vmem:[%s3693_s10 + $0xe0] ss:$16 sps:$4 sm:$0xff]   ;;  %v3236_v48 = vld [vmem:[%s3693_s10 + $0xe8] ss:$16 sps:$4 sm:$0xff]   ;;  %v3237_v49 = vld [vmem:[%s3693_s10 + $0x104] ss:$16 sps:$4 sm:$0xff]  }
  0x3a   : > { %1933 = vmatprep.subr.bf16.mxu0 %v3207_v29  ;;  %2145 = vmatprep.subr.bf16.mxu1 %v3209_v30  ;;  %v3239_v50 = vld [vmem:[%s3693_s10 + $0x10c] ss:$16 sps:$4 sm:$0xff]   ;;  %v3241_v51 = vld [vmem:[%s3693_s10 + $0x100] ss:$16 sps:$4 sm:$0xff]   ;;  %v3242_v52 = vld [vmem:[%s3693_s10 + $0x108] ss:$16 sps:$4 sm:$0xff]  }
  0x3b   : > { %v3243_v53 = vld [vmem:[%s3693_s10 + $0x124] ss:$16 sps:$4 sm:$0xff]   ;;  %v3245_v54 = vld [vmem:[%s3693_s10 + $0x12c] ss:$16 sps:$4 sm:$0xff]   ;;  %v3247_v55 = vld [vmem:[%s3693_s10 + $0x120] ss:$16 sps:$4 sm:$0xff]  }
  0x3c   : > { %v3248_v56 = vld [vmem:[%s3693_s10 + $0x128] ss:$16 sps:$4 sm:$0xff]   ;;  %v3249_v57 = vld [vmem:[%s3693_s10 + $0x144] ss:$16 sps:$4 sm:$0xff]   ;;  %v3251_v58 = vld [vmem:[%s3693_s10 + $0x14c] ss:$16 sps:$4 sm:$0xff]  }
  0x3d   : > { %1934 = vmatpush1.bf16.msra.mxu0 %v3211_v31  ;;  %2146 = vmatpush1.bf16.msra.mxu1 %v3212_v32  ;;  %v3253_v59 = vld [vmem:[%s3693_s10 + $0x140] ss:$16 sps:$4 sm:$0xff]   ;;  %v3254_v60 = vld [vmem:[%s3693_s10 + $0x148] ss:$16 sps:$4 sm:$0xff]   ;;  %v3255_v61 = vld [vmem:[%s3693_s10 + $0x164] ss:$16 sps:$4 sm:$0xff]  }
  0x3e   : > { %1935 = vmatprep.subr.bf16.mxu0 %v3213_v33  ;;  %2147 = vmatprep.subr.bf16.mxu1 %v3215_v34  ;;  %v3257_v62 = vld [vmem:[%s3693_s10 + $0x16c] ss:$16 sps:$4 sm:$0xff]   ;;  %v295_v63 = vld [vmem:[%s3695_s11] sm:$0xff]  ;;  %v3260_v2 = vld [vmem:[%s3693_s10 + $0x168] ss:$16 sps:$4 sm:$0xff]   ;;  %p3094_p10 = scmp.ne.s32.totalorder %s3648_s18, 3 }
  0x3f   : > { %v299_v0 = vld [vmem:[%s3695_s11 + $0x20] sm:$0xff]  ;;  %v3263_v5 = vld [vmem:[%s3693_s10 + $0x18c] ss:$16 sps:$4 sm:$0xff]   ;;  %v3266_v7 = vld [vmem:[%s3693_s10 + $0x188] ss:$16 sps:$4 sm:$0xff]  }
  0x40   : > { %v3259_v1 = vld [vmem:[%s3693_s10 + $0x160] ss:$16 sps:$4 sm:$0xff]   ;;  %v2823_v3 = vcombine.high %v295_v63, %v299_v0  ;;  %v3261_v4 = vld [vmem:[%s3693_s10 + $0x184] ss:$16 sps:$4 sm:$0xff]   ;;  %v3269_v9 = vld [vmem:[%s3693_s10 + $0x1ac] ss:$16 sps:$4 sm:$0xff]   ;;  %v2822_v22 = vcombine.low %v295_v63, %v299_v0 }
  0x41   : > { %1936 = vmatpush1.bf16.msra.mxu0 %v3217_v35  ;;  %2148 = vmatpush1.bf16.msra.mxu1 %v3218_v36  ;;  %v3265_v6 = vld [vmem:[%s3693_s10 + $0x180] ss:$16 sps:$4 sm:$0xff]   ;;  %v3267_v8 = vld [vmem:[%s3693_s10 + $0x1a4] ss:$16 sps:$4 sm:$0xff]   ;;  %v3272_v11 = vld [vmem:[%s3693_s10 + $0x1a8] ss:$16 sps:$4 sm:$0xff]  }
  0x42   : > { %1937 = vmatprep.subr.bf16.mxu0 %v3219_v37  ;;  %2149 = vmatprep.subr.bf16.mxu1 %v3221_v38  ;;  %v3271_v10 = vld [vmem:[%s3693_s10 + $0x1a0] ss:$16 sps:$4 sm:$0xff]   ;;  %v3273_v12 = vld [vmem:[%s3693_s10 + $0x1c4] ss:$16 sps:$4 sm:$0xff]   ;;  %v3275_v13 = vld [vmem:[%s3693_s10 + $0x1cc] ss:$16 sps:$4 sm:$0xff]  }
  0x43   : > { %1959 = vmatprep.mubr.bf16.mxu0 %v2823_v3  ;;  %2171 = vmatprep.mubr.bf16.mxu1 %v2823_v3  ;;  %v3277_v14 = vld [vmem:[%s3693_s10 + $0x1c0] ss:$16 sps:$4 sm:$0xff]   ;;  %v3278_v15 = vld [vmem:[%s3693_s10 + $0x1c8] ss:$16 sps:$4 sm:$0xff]   ;;  %v3279_v16 = vld [vmem:[%s3693_s10 + $0x1e4] ss:$16 sps:$4 sm:$0xff]  }
  0x44   : > { %v3281_v17 = vld [vmem:[%s3693_s10 + $0x1ec] ss:$16 sps:$4 sm:$0xff]   ;;  %v3283_v18 = vld [vmem:[%s3693_s10 + $0x1e0] ss:$16 sps:$4 sm:$0xff]   ;;  %v3284_v19 = vld [vmem:[%s3693_s10 + $0x1e8] ss:$16 sps:$4 sm:$0xff]  }
  0x45   : > { %1938 = vmatpush1.bf16.msra.mxu0 %v3223_v39  ;;  %2150 = vmatpush1.bf16.msra.mxu1 %v3224_v40  ;;  %v3287_v20 = vld [vmem:[%s3693_s10 + $0x204] ss:$16 sps:$4 sm:$0xff]   ;;  %v3290_v21 = vld [vmem:[%s3693_s10 + $0x20c] ss:$16 sps:$4 sm:$0xff]   ;;  %v3285_v23 = vld [vmem:[%s3693_s10 + $0x200] ss:$16 sps:$4 sm:$0xff]  }
  0x46   : > { %1939 = vmatprep.subr.bf16.mxu0 %v3225_v41  ;;  %2151 = vmatprep.subr.bf16.mxu1 %v3227_v42  ;;  %v3288_v24 = vld [vmem:[%s3693_s10 + $0x208] ss:$16 sps:$4 sm:$0xff]   ;;  %v3293_v25 = vld [vmem:[%s3693_s10 + $0x224] ss:$16 sps:$4 sm:$0xff]   ;;  %v3296_v26 = vld [vmem:[%s3693_s10 + $0x22c] ss:$16 sps:$4 sm:$0xff]  }
  0x47   : > { %v3291_v27 = vld [vmem:[%s3693_s10 + $0x220] ss:$16 sps:$4 sm:$0xff]   ;;  %v3294_v28 = vld [vmem:[%s3693_s10 + $0x228] ss:$16 sps:$4 sm:$0xff]   ;;  %v3299_v29 = vld [vmem:[%s3693_s10 + $0x244] ss:$16 sps:$4 sm:$0xff]  }
  0x48   : > { %v3302_v30 = vld [vmem:[%s3693_s10 + $0x24c] ss:$16 sps:$4 sm:$0xff]   ;;  %v3297_v31 = vld [vmem:[%s3693_s10 + $0x240] ss:$16 sps:$4 sm:$0xff]   ;;  %v3300_v32 = vld [vmem:[%s3693_s10 + $0x248] ss:$16 sps:$4 sm:$0xff]  }
  0x49   : > { %1940 = vmatpush1.bf16.msra.mxu0 %v3229_v43  ;;  %2152 = vmatpush1.bf16.msra.mxu1 %v3230_v44  ;;  %v3305_v33 = vld [vmem:[%s3693_s10 + $0x264] ss:$16 sps:$4 sm:$0xff]   ;;  %v3308_v34 = vld [vmem:[%s3693_s10 + $0x26c] ss:$16 sps:$4 sm:$0xff]   ;;  %v3303_v35 = vld [vmem:[%s3693_s10 + $0x260] ss:$16 sps:$4 sm:$0xff]  }
  0x4a   : > { %1941 = vmatprep.subr.bf16.mxu0 %v3231_v45  ;;  %2153 = vmatprep.subr.bf16.mxu1 %v3233_v46  ;;  %v3306_v36 = vld [vmem:[%s3693_s10 + $0x268] ss:$16 sps:$4 sm:$0xff]   ;;  %v3311_v37 = vld [vmem:[%s3693_s10 + $0x284] ss:$16 sps:$4 sm:$0xff]   ;;  %v3314_v38 = vld [vmem:[%s3693_s10 + $0x28c] ss:$16 sps:$4 sm:$0xff]  }
  0x4b   : > { %v3309_v39 = vld [vmem:[%s3693_s10 + $0x280] ss:$16 sps:$4 sm:$0xff]   ;;  %v3312_v40 = vld [vmem:[%s3693_s10 + $0x288] ss:$16 sps:$4 sm:$0xff]   ;;  %v3317_v41 = vld [vmem:[%s3693_s10 + $0x2a4] ss:$16 sps:$4 sm:$0xff]  }
  0x4c   : > { %v3320_v42 = vld [vmem:[%s3693_s10 + $0x2ac] ss:$16 sps:$4 sm:$0xff]   ;;  %v303_v43 = vld [vmem:[%s3695_s11 + $0x40] sm:$0xff]  ;;  %v3336_v63 = vld [vmem:[%s3693_s10 + $0x308] ss:$16 sps:$4 sm:$0xff]  }
  0x4d   : > { %1942 = vmatpush1.bf16.msra.mxu0 %v3235_v47  ;;  %2154 = vmatpush1.bf16.msra.mxu1 %v3236_v48  ;;  %v307_v44 = vld [vmem:[%s3695_s11 + $0x60] sm:$0xff]  ;;  %v3318_v47 = vld [vmem:[%s3693_s10 + $0x2a8] ss:$16 sps:$4 sm:$0xff]  }
  0x4e   : > { %1943 = vmatprep.subr.bf16.mxu0 %v3237_v49  ;;  %2155 = vmatprep.subr.bf16.mxu1 %v3239_v50  ;;  %v2831_v45 = vcombine.high %v303_v43, %v307_v44  ;;  %v3315_v46 = vld [vmem:[%s3693_s10 + $0x2a0] ss:$16 sps:$4 sm:$0xff]   ;;  %v2830_v48 = vcombine.low %v303_v43, %v307_v44  ;;  %v3323_v49 = vld [vmem:[%s3693_s10 + $0x2c4] ss:$16 sps:$4 sm:$0xff]   ;;  %v3326_v50 = vld [vmem:[%s3693_s10 + $0x2cc] ss:$16 sps:$4 sm:$0xff]  }
  0x4f   : > { %v3341_v0 = vld [vmem:[%s3693_s10 + $0x324] ss:$16 sps:$4 sm:$0xff]   ;;  %v3342_v3 = vld [vmem:[%s3693_s10 + $0x328] ss:$16 sps:$4 sm:$0xff]  }
  0x50   : > { %v3856_v44 = vld [vmem:[%s3695_s11 + $0x30] sm:$0xff] }
  0x51   : > { %1944 = vmatpush1.bf16.msra.mxu0 %v3241_v51  ;;  %2156 = vmatpush1.bf16.msra.mxu1 %v3242_v52  ;;  %v3793_v51 = vld [vmem:[%s3695_s11 + $0x8] sm:$0xff] }
  0x52   : > { %1945 = vmatprep.subr.bf16.mxu0 %v3243_v53  ;;  %2157 = vmatprep.subr.bf16.mxu1 %v3245_v54  ;;  %v3796_v52 = vld [vmem:[%s3695_s11 + $0x28] sm:$0xff]  ;;  %v3321_v53 = vld [vmem:[%s3693_s10 + $0x2c0] ss:$16 sps:$4 sm:$0xff]  }
  0x53   : > { %v3324_v54 = vld [vmem:[%s3693_s10 + $0x2c8] ss:$16 sps:$4 sm:$0xff]  }
  0x55   : > { %1946 = vmatpush1.bf16.msra.mxu0 %v3247_v55  ;;  %2158 = vmatpush1.bf16.msra.mxu1 %v3248_v56  ;;  %v2825_v55 = vcombine.high %v3793_v51, %v3796_v52  ;;  %v3329_v56 = vld [vmem:[%s3693_s10 + $0x2e4] ss:$16 sps:$4 sm:$0xff]  }
  0x56   : > { %1947 = vmatprep.subr.bf16.mxu0 %v3249_v57  ;;  %2159 = vmatprep.subr.bf16.mxu1 %v3251_v58  ;;  %v3332_v57 = vld [vmem:[%s3693_s10 + $0x2ec] ss:$16 sps:$4 sm:$0xff]   ;;  %v3327_v58 = vld [vmem:[%s3693_s10 + $0x2e0] ss:$16 sps:$4 sm:$0xff]  }
  0x59   : > { %1948 = vmatpush1.bf16.msra.mxu0 %v3253_v59  ;;  %2160 = vmatpush1.bf16.msra.mxu1 %v3254_v60  ;;  %v3330_v59 = vld [vmem:[%s3693_s10 + $0x2e8] ss:$16 sps:$4 sm:$0xff]   ;;  %v3335_v60 = vld [vmem:[%s3693_s10 + $0x304] ss:$16 sps:$4 sm:$0xff]  }
  0x5a   : > { %1949 = vmatprep.subr.bf16.mxu0 %v3255_v61  ;;  %2161 = vmatprep.subr.bf16.mxu1 %v3257_v62  ;;  %v3338_v61 = vld [vmem:[%s3693_s10 + $0x30c] ss:$16 sps:$4 sm:$0xff]   ;;  %v3333_v62 = vld [vmem:[%s3693_s10 + $0x300] ss:$16 sps:$4 sm:$0xff]  }
  0x5d   : > { %1950 = vmatpush1.bf16.msra.mxu0 %v3259_v1  ;;  %2162 = vmatpush1.bf16.msra.mxu1 %v3260_v2  ;;  %v3344_v1 = vld [vmem:[%s3693_s10 + $0x32c] ss:$16 sps:$4 sm:$0xff]   ;;  %v3339_v2 = vld [vmem:[%s3693_s10 + $0x320] ss:$16 sps:$4 sm:$0xff]  }
  0x5e   : > { %1951 = vmatprep.subr.bf16.mxu0 %v3261_v4  ;;  %2163 = vmatprep.subr.bf16.mxu1 %v3263_v5  ;;  %v3347_v4 = vld [vmem:[%s3693_s10 + $0x344] ss:$16 sps:$4 sm:$0xff]   ;;  %v3350_v5 = vld [vmem:[%s3693_s10 + $0x34c] ss:$16 sps:$4 sm:$0xff]  }
  0x61   : > { %1952 = vmatpush1.bf16.msra.mxu0 %v3265_v6  ;;  %2164 = vmatpush1.bf16.msra.mxu1 %v3266_v7  ;;  %v3345_v6 = vld [vmem:[%s3693_s10 + $0x340] ss:$16 sps:$4 sm:$0xff]   ;;  %v3348_v7 = vld [vmem:[%s3693_s10 + $0x348] ss:$16 sps:$4 sm:$0xff]  }
  0x62   : > { %1953 = vmatprep.subr.bf16.mxu0 %v3267_v8  ;;  %2165 = vmatprep.subr.bf16.mxu1 %v3269_v9  ;;  %v3353_v8 = vld [vmem:[%s3693_s10 + $0x364] ss:$16 sps:$4 sm:$0xff]   ;;  %v3356_v9 = vld [vmem:[%s3693_s10 + $0x36c] ss:$16 sps:$4 sm:$0xff]  }
  0x65   : > { %1954 = vmatpush1.bf16.msra.mxu0 %v3271_v10  ;;  %2166 = vmatpush1.bf16.msra.mxu1 %v3272_v11  ;;  %v3351_v10 = vld [vmem:[%s3693_s10 + $0x360] ss:$16 sps:$4 sm:$0xff]   ;;  %v3354_v11 = vld [vmem:[%s3693_s10 + $0x368] ss:$16 sps:$4 sm:$0xff]  }
  0x66   : > { %1955 = vmatprep.subr.bf16.mxu0 %v3273_v12  ;;  %2167 = vmatprep.subr.bf16.mxu1 %v3275_v13  ;;  %v3359_v12 = vld [vmem:[%s3693_s10 + $0x384] ss:$16 sps:$4 sm:$0xff]   ;;  %v3362_v13 = vld [vmem:[%s3693_s10 + $0x38c] ss:$16 sps:$4 sm:$0xff]  }
  0x69   : > { %1956 = vmatpush1.bf16.msra.mxu0 %v3277_v14  ;;  %2168 = vmatpush1.bf16.msra.mxu1 %v3278_v15  ;;  %v3357_v14 = vld [vmem:[%s3693_s10 + $0x380] ss:$16 sps:$4 sm:$0xff]   ;;  %v3360_v15 = vld [vmem:[%s3693_s10 + $0x388] ss:$16 sps:$4 sm:$0xff]  }
  0x6a   : > { %1957 = vmatprep.subr.bf16.mxu0 %v3279_v16  ;;  %2169 = vmatprep.subr.bf16.mxu1 %v3281_v17  ;;  %v3365_v16 = vld [vmem:[%s3693_s10 + $0x3a4] ss:$16 sps:$4 sm:$0xff]   ;;  %v3368_v17 = vld [vmem:[%s3693_s10 + $0x3ac] ss:$16 sps:$4 sm:$0xff]  }
  0x6d   : > { %1958 = vmatpush1.bf16.msra.mxu0 %v3283_v18  ;;  %2170 = vmatpush1.bf16.msra.mxu1 %v3284_v19  ;;  %v3363_v18 = vld [vmem:[%s3693_s10 + $0x3a0] ss:$16 sps:$4 sm:$0xff]   ;;  %v3366_v19 = vld [vmem:[%s3693_s10 + $0x3a8] ss:$16 sps:$4 sm:$0xff]  }
  0x6e   : > { %1980 = vmatprep.subr.bf16.mxu0 %v3287_v20  ;;  %2192 = vmatprep.subr.bf16.mxu1 %v3290_v21  ;;  %v3371_v20 = vld [vmem:[%s3693_s10 + $0x3c4] ss:$16 sps:$4 sm:$0xff]   ;;  %v3374_v21 = vld [vmem:[%s3693_s10 + $0x3cc] ss:$16 sps:$4 sm:$0xff]  }
  0x70   : > { %1960 = vmatmul.mubr.bf16.vlgmr.msra.gmra.mrb[0].mxu0 %v2822_v22  ;;  %2172 = vmatmul.mubr.bf16.vlgmr.msra.gmra.mrb[0].mxu1 %v2822_v22  ;;  %v3369_v22 = vld [vmem:[%s3693_s10 + $0x3c0] ss:$16 sps:$4 sm:$0xff]  }
  0x71   : > { %1981 = vmatpush1.bf16.msra.mxu0 %v3285_v23  ;;  %2193 = vmatpush1.bf16.msra.mxu1 %v3288_v24  ;;  %v3372_v23 = vld [vmem:[%s3693_s10 + $0x3c8] ss:$16 sps:$4 sm:$0xff]   ;;  %v3377_v24 = vld [vmem:[%s3693_s10 + $0x3e4] ss:$16 sps:$4 sm:$0xff]  }
  0x72   : > { %1982 = vmatprep.subr.bf16.mxu0 %v3293_v25  ;;  %2194 = vmatprep.subr.bf16.mxu1 %v3296_v26  ;;  %v3380_v25 = vld [vmem:[%s3693_s10 + $0x3ec] ss:$16 sps:$4 sm:$0xff]   ;;  %v3375_v26 = vld [vmem:[%s3693_s10 + $0x3e0] ss:$16 sps:$4 sm:$0xff]  }
  0x73   : > { %1969 = vmatprep.mubr.bf16.mxu0 %v2831_v45  ;;  %2181 = vmatprep.mubr.bf16.mxu1 %v2831_v45  ;;  %v3393_v45 = vld [vmem:[%s3693_s10 + $0x440] ss:$16 sps:$4 sm:$0xff]  }
  0x75   : > { %1983 = vmatpush1.bf16.msra.mxu0 %v3291_v27  ;;  %2195 = vmatpush1.bf16.msra.mxu1 %v3294_v28  ;;  %v3378_v27 = vld [vmem:[%s3693_s10 + $0x3e8] ss:$16 sps:$4 sm:$0xff]   ;;  %v3383_v28 = vld [vmem:[%s3693_s10 + $0x404] ss:$16 sps:$4 sm:$0xff]  }
  0x76   : > { %1984 = vmatprep.subr.bf16.mxu0 %v3299_v29  ;;  %2196 = vmatprep.subr.bf16.mxu1 %v3302_v30  ;;  %v3386_v29 = vld [vmem:[%s3693_s10 + $0x40c] ss:$16 sps:$4 sm:$0xff]   ;;  %v3381_v30 = vld [vmem:[%s3693_s10 + $0x400] ss:$16 sps:$4 sm:$0xff]  }
  0x78   : > { %1970 = vmatmul.mubr.bf16.gmra.mrb[4].mxu0 %v2830_v48  ;;  %2182 = vmatmul.mubr.bf16.gmra.mrb[4].mxu1 %v2830_v48  ;;  %v3404_v48 = vld [vmem:[%s3693_s10 + $0x46c] ss:$16 sps:$4 sm:$0xff]  }
  0x79   : > { %1985 = vmatpush1.bf16.msra.mxu0 %v3297_v31  ;;  %2197 = vmatpush1.bf16.msra.mxu1 %v3300_v32  ;;  %v3384_v31 = vld [vmem:[%s3693_s10 + $0x408] ss:$16 sps:$4 sm:$0xff]   ;;  %v2824_v32 = vcombine.low %v3793_v51, %v3796_v52  ;;  %v3407_v52 = vld [vmem:[%s3693_s10 + $0x484] ss:$16 sps:$4 sm:$0xff]  }
  0x7a   : > { %1986 = vmatprep.subr.bf16.mxu0 %v3305_v33  ;;  %2198 = vmatprep.subr.bf16.mxu1 %v3308_v34  ;;  %v304_v33 = vld [vmem:[%s3695_s11 + $0x48] sm:$0xff] }
  0x7b   : > { %2012 = vmatprep.mubr.bf16.mxu0 %v2825_v55  ;;  %2224 = vmatprep.mubr.bf16.mxu1 %v2825_v55  ;;  %v308_v34 = vld [vmem:[%s3695_s11 + $0x68] sm:$0xff] }
  0x7c   : > { %v2832_v43 = vcombine.low %v304_v33, %v308_v34  ;;  %v3402_v51 = vld [vmem:[%s3693_s10 + $0x468] ss:$16 sps:$4 sm:$0xff]  }
  0x7d   : > { %1987 = vmatpush1.bf16.msra.mxu0 %v3303_v35  ;;  %2199 = vmatpush1.bf16.msra.mxu1 %v3306_v36  ;;  %v3389_v35 = vld [vmem:[%s3693_s10 + $0x424] ss:$16 sps:$4 sm:$0xff]   ;;  %v3392_v36 = vld [vmem:[%s3693_s10 + $0x42c] ss:$16 sps:$4 sm:$0xff]   ;;  %v3408_v55 = vld [vmem:[%s3693_s10 + $0x488] ss:$16 sps:$4 sm:$0xff]  }
  0x7e   : > { %1988 = vmatprep.subr.bf16.mxu0 %v3311_v37  ;;  %2200 = vmatprep.subr.bf16.mxu1 %v3314_v38  ;;  %v2833_v37 = vcombine.high %v304_v33, %v308_v34  ;;  %v3387_v38 = vld [vmem:[%s3693_s10 + $0x420] ss:$16 sps:$4 sm:$0xff]   ;;  %v3476_v33 = vld [vmem:[%s3693_s10 + $0x5ec] ss:$16 sps:$4 sm:$0xff]  }
  0x7f   : > { %v3471_v34 = vld [vmem:[%s3693_s10 + $0x5e0] ss:$16 sps:$4 sm:$0xff]  }
  0x81   : > { %1989 = vmatpush1.bf16.msra.mxu0 %v3309_v39  ;;  %2201 = vmatpush1.bf16.msra.mxu1 %v3312_v40  ;;  %v3390_v39 = vld [vmem:[%s3693_s10 + $0x428] ss:$16 sps:$4 sm:$0xff]   ;;  %v3395_v40 = vld [vmem:[%s3693_s10 + $0x444] ss:$16 sps:$4 sm:$0xff]  }
  0x82   : > { %1990 = vmatprep.subr.bf16.mxu0 %v3317_v41  ;;  %2202 = vmatprep.subr.bf16.mxu1 %v3320_v42  ;;  %v3398_v41 = vld [vmem:[%s3693_s10 + $0x44c] ss:$16 sps:$4 sm:$0xff]   ;;  %v3853_v42 = vld [vmem:[%s3695_s11 + $0x10] sm:$0xff] }
  0x85   : > { %1991 = vmatpush1.bf16.msra.mxu0 %v3315_v46  ;;  %2203 = vmatpush1.bf16.msra.mxu1 %v3318_v47  ;;  %v3396_v46 = vld [vmem:[%s3693_s10 + $0x448] ss:$16 sps:$4 sm:$0xff]   ;;  %v3401_v47 = vld [vmem:[%s3693_s10 + $0x464] ss:$16 sps:$4 sm:$0xff]  }
  0x86   : > { %1992 = vmatprep.subr.bf16.mxu0 %v3323_v49  ;;  %2204 = vmatprep.subr.bf16.mxu1 %v3326_v50  ;;  %v2827_v49 = vcombine.high %v3853_v42, %v3856_v44  ;;  %v3399_v50 = vld [vmem:[%s3693_s10 + $0x460] ss:$16 sps:$4 sm:$0xff]  }
  0x89   : > { %1993 = vmatpush1.bf16.msra.mxu0 %v3321_v53  ;;  %2205 = vmatpush1.bf16.msra.mxu1 %v3324_v54  ;;  %v3410_v53 = vld [vmem:[%s3693_s10 + $0x48c] ss:$16 sps:$4 sm:$0xff]   ;;  %v3405_v54 = vld [vmem:[%s3693_s10 + $0x480] ss:$16 sps:$4 sm:$0xff]  }
  0x8a   : > { %1994 = vmatprep.subr.bf16.mxu0 %v3329_v56  ;;  %2206 = vmatprep.subr.bf16.mxu1 %v3332_v57  ;;  %v3413_v56 = vld [vmem:[%s3693_s10 + $0x4a4] ss:$16 sps:$4 sm:$0xff]   ;;  %v3416_v57 = vld [vmem:[%s3693_s10 + $0x4ac] ss:$16 sps:$4 sm:$0xff]  }
  0x8d   : > { %1995 = vmatpush1.bf16.msra.mxu0 %v3327_v58  ;;  %2207 = vmatpush1.bf16.msra.mxu1 %v3330_v59  ;;  %v3411_v58 = vld [vmem:[%s3693_s10 + $0x4a0] ss:$16 sps:$4 sm:$0xff]   ;;  %v3414_v59 = vld [vmem:[%s3693_s10 + $0x4a8] ss:$16 sps:$4 sm:$0xff]  }
  0x8e   : > { %1996 = vmatprep.subr.bf16.mxu0 %v3335_v60  ;;  %2208 = vmatprep.subr.bf16.mxu1 %v3338_v61  ;;  %v3419_v60 = vld [vmem:[%s3693_s10 + $0x4c4] ss:$16 sps:$4 sm:$0xff]   ;;  %v3422_v61 = vld [vmem:[%s3693_s10 + $0x4cc] ss:$16 sps:$4 sm:$0xff]  }
  0x91   : > { %1997 = vmatpush1.bf16.msra.mxu0 %v3333_v62  ;;  %2209 = vmatpush1.bf16.msra.mxu1 %v3336_v63  ;;  %v3417_v62 = vld [vmem:[%s3693_s10 + $0x4c0] ss:$16 sps:$4 sm:$0xff]   ;;  %v3420_v63 = vld [vmem:[%s3693_s10 + $0x4c8] ss:$16 sps:$4 sm:$0xff]  }
  0x92   : > { %1998 = vmatprep.subr.bf16.mxu0 %v3341_v0  ;;  %2210 = vmatprep.subr.bf16.mxu1 %v3344_v1  ;;  %v3425_v0 = vld [vmem:[%s3693_s10 + $0x4e4] ss:$16 sps:$4 sm:$0xff]   ;;  %v3428_v1 = vld [vmem:[%s3693_s10 + $0x4ec] ss:$16 sps:$4 sm:$0xff]  }
  0x95   : > { %1999 = vmatpush1.bf16.msra.mxu0 %v3339_v2  ;;  %2211 = vmatpush1.bf16.msra.mxu1 %v3342_v3  ;;  %v3423_v2 = vld [vmem:[%s3693_s10 + $0x4e0] ss:$16 sps:$4 sm:$0xff]   ;;  %v3426_v3 = vld [vmem:[%s3693_s10 + $0x4e8] ss:$16 sps:$4 sm:$0xff]  }
  0x96   : > { %2000 = vmatprep.subr.bf16.mxu0 %v3347_v4  ;;  %2212 = vmatprep.subr.bf16.mxu1 %v3350_v5  ;;  %v3431_v4 = vld [vmem:[%s3693_s10 + $0x504] ss:$16 sps:$4 sm:$0xff]   ;;  %v3434_v5 = vld [vmem:[%s3693_s10 + $0x50c] ss:$16 sps:$4 sm:$0xff]  }
  0x99   : > { %2001 = vmatpush1.bf16.msra.mxu0 %v3345_v6  ;;  %2213 = vmatpush1.bf16.msra.mxu1 %v3348_v7  ;;  %v3429_v6 = vld [vmem:[%s3693_s10 + $0x500] ss:$16 sps:$4 sm:$0xff]   ;;  %v3432_v7 = vld [vmem:[%s3693_s10 + $0x508] ss:$16 sps:$4 sm:$0xff]  }
  0x9a   : > { %2002 = vmatprep.subr.bf16.mxu0 %v3353_v8  ;;  %2214 = vmatprep.subr.bf16.mxu1 %v3356_v9  ;;  %v3437_v8 = vld [vmem:[%s3693_s10 + $0x524] ss:$16 sps:$4 sm:$0xff]   ;;  %v3440_v9 = vld [vmem:[%s3693_s10 + $0x52c] ss:$16 sps:$4 sm:$0xff]  }
  0x9d   : > { %2003 = vmatpush1.bf16.msra.mxu0 %v3351_v10  ;;  %2215 = vmatpush1.bf16.msra.mxu1 %v3354_v11  ;;  %v3435_v10 = vld [vmem:[%s3693_s10 + $0x520] ss:$16 sps:$4 sm:$0xff]   ;;  %v3438_v11 = vld [vmem:[%s3693_s10 + $0x528] ss:$16 sps:$4 sm:$0xff]  }
  0x9e   : > { %2004 = vmatprep.subr.bf16.mxu0 %v3359_v12  ;;  %2216 = vmatprep.subr.bf16.mxu1 %v3362_v13  ;;  %v3443_v12 = vld [vmem:[%s3693_s10 + $0x544] ss:$16 sps:$4 sm:$0xff]   ;;  %v3446_v13 = vld [vmem:[%s3693_s10 + $0x54c] ss:$16 sps:$4 sm:$0xff]  }
  0xa1   : > { %2005 = vmatpush1.bf16.msra.mxu0 %v3357_v14  ;;  %2217 = vmatpush1.bf16.msra.mxu1 %v3360_v15  ;;  %v3441_v14 = vld [vmem:[%s3693_s10 + $0x540] ss:$16 sps:$4 sm:$0xff]   ;;  %v3444_v15 = vld [vmem:[%s3693_s10 + $0x548] ss:$16 sps:$4 sm:$0xff]  }
  0xa2   : > { %2006 = vmatprep.subr.bf16.mxu0 %v3365_v16  ;;  %2218 = vmatprep.subr.bf16.mxu1 %v3368_v17  ;;  %v3449_v16 = vld [vmem:[%s3693_s10 + $0x564] ss:$16 sps:$4 sm:$0xff]   ;;  %v3452_v17 = vld [vmem:[%s3693_s10 + $0x56c] ss:$16 sps:$4 sm:$0xff]  }
  0xa5   : > { %2007 = vmatpush1.bf16.msra.mxu0 %v3363_v18  ;;  %2219 = vmatpush1.bf16.msra.mxu1 %v3366_v19  ;;  %v3447_v18 = vld [vmem:[%s3693_s10 + $0x560] ss:$16 sps:$4 sm:$0xff]   ;;  %v3450_v19 = vld [vmem:[%s3693_s10 + $0x568] ss:$16 sps:$4 sm:$0xff]  }
  0xa6   : > { %2008 = vmatprep.subr.bf16.mxu0 %v3371_v20  ;;  %2220 = vmatprep.subr.bf16.mxu1 %v3374_v21  ;;  %v3455_v20 = vld [vmem:[%s3693_s10 + $0x584] ss:$16 sps:$4 sm:$0xff]   ;;  %v3458_v21 = vld [vmem:[%s3693_s10 + $0x58c] ss:$16 sps:$4 sm:$0xff]  }
  0xa9   : > { %2009 = vmatpush1.bf16.msra.mxu0 %v3369_v22  ;;  %2221 = vmatpush1.bf16.msra.mxu1 %v3372_v23  ;;  %v3453_v22 = vld [vmem:[%s3693_s10 + $0x580] ss:$16 sps:$4 sm:$0xff]   ;;  %v3456_v23 = vld [vmem:[%s3693_s10 + $0x588] ss:$16 sps:$4 sm:$0xff]  }
  0xaa   : > { %2010 = vmatprep.subr.bf16.mxu0 %v3377_v24  ;;  %2222 = vmatprep.subr.bf16.mxu1 %v3380_v25  ;;  %v3461_v24 = vld [vmem:[%s3693_s10 + $0x5a4] ss:$16 sps:$4 sm:$0xff]   ;;  %v3464_v25 = vld [vmem:[%s3693_s10 + $0x5ac] ss:$16 sps:$4 sm:$0xff]  }
  0xad   : > { %2011 = vmatpush1.bf16.msra.mxu0 %v3375_v26  ;;  %2223 = vmatpush1.bf16.msra.mxu1 %v3378_v27  ;;  %v3459_v26 = vld [vmem:[%s3693_s10 + $0x5a0] ss:$16 sps:$4 sm:$0xff]   ;;  %v3462_v27 = vld [vmem:[%s3693_s10 + $0x5a8] ss:$16 sps:$4 sm:$0xff]  }
  0xae   : > { %2033 = vmatprep.subr.bf16.mxu0 %v3383_v28  ;;  %2245 = vmatprep.subr.bf16.mxu1 %v3386_v29  ;;  %v3467_v28 = vld [vmem:[%s3693_s10 + $0x5c4] ss:$16 sps:$4 sm:$0xff]   ;;  %v3470_v29 = vld [vmem:[%s3693_s10 + $0x5cc] ss:$16 sps:$4 sm:$0xff]  }
  0xb0   : > { %2013 = vmatmul.mubr.bf16.vlgmr.msra.gmra.mrb[0].mxu0 %v2824_v32  ;;  %2225 = vmatmul.mubr.bf16.vlgmr.msra.gmra.mrb[0].mxu1 %v2824_v32  ;;  %v3473_v32 = vld [vmem:[%s3693_s10 + $0x5e4] ss:$16 sps:$4 sm:$0xff]  }
  0xb1   : > { %2034 = vmatpush1.bf16.msra.mxu0 %v3381_v30  ;;  %2246 = vmatpush1.bf16.msra.mxu1 %v3384_v31  ;;  %v3465_v30 = vld [vmem:[%s3693_s10 + $0x5c0] ss:$16 sps:$4 sm:$0xff]   ;;  %v3468_v31 = vld [vmem:[%s3693_s10 + $0x5c8] ss:$16 sps:$4 sm:$0xff]  }
  0xb2   : > { %2035 = vmatprep.subr.bf16.mxu0 %v3389_v35  ;;  %2247 = vmatprep.subr.bf16.mxu1 %v3392_v36  ;;  %v3474_v35 = vld [vmem:[%s3693_s10 + $0x5e8] ss:$16 sps:$4 sm:$0xff]   ;;  %v3479_v36 = vld [vmem:[%s3693_s10 + $0x604] ss:$16 sps:$4 sm:$0xff]  }
  0xb3   : > { %2022 = vmatprep.mubr.bf16.mxu0 %v2833_v37  ;;  %2234 = vmatprep.mubr.bf16.mxu1 %v2833_v37  ;;  %v3482_v37 = vld [vmem:[%s3693_s10 + $0x60c] ss:$16 sps:$4 sm:$0xff]  }
  0xb5   : > { %2036 = vmatpush1.bf16.msra.mxu0 %v3387_v38  ;;  %2248 = vmatpush1.bf16.msra.mxu1 %v3390_v39  ;;  %v2826_v38 = vcombine.low %v3853_v42, %v3856_v44  ;;  %v305_v39 = vld [vmem:[%s3695_s11 + $0x50] sm:$0xff]  ;;  %v3486_v44 = vld [vmem:[%s3693_s10 + $0x628] ss:$16 sps:$4 sm:$0xff]  }
  0xb6   : > { %2037 = vmatprep.subr.bf16.mxu0 %v3395_v40  ;;  %2249 = vmatprep.subr.bf16.mxu1 %v3398_v41  ;;  %v309_v40 = vld [vmem:[%s3695_s11 + $0x70] sm:$0xff] }
  0xb7   : > { %v3477_v41 = vld [vmem:[%s3693_s10 + $0x600] ss:$16 sps:$4 sm:$0xff]  }
  0xb8   : > { %2023 = vmatmul.mubr.bf16.gmra.mrb[4].mxu0 %v2832_v43  ;;  %2235 = vmatmul.mubr.bf16.gmra.mrb[4].mxu1 %v2832_v43  ;;  %v3480_v43 = vld [vmem:[%s3693_s10 + $0x608] ss:$16 sps:$4 sm:$0xff]   ;;  %v3483_v42 = vld [vmem:[%s3693_s10 + $0x620] ss:$16 sps:$4 sm:$0xff]  }
  0xb9   : > { %2038 = vmatpush1.bf16.msra.mxu0 %v3393_v45  ;;  %2250 = vmatpush1.bf16.msra.mxu1 %v3396_v46  ;;  %v3485_v45 = vld [vmem:[%s3693_s10 + $0x624] ss:$16 sps:$4 sm:$0xff]   ;;  %v3488_v46 = vld [vmem:[%s3693_s10 + $0x62c] ss:$16 sps:$4 sm:$0xff]  }
  0xba   : > { %2039 = vmatprep.subr.bf16.mxu0 %v3401_v47  ;;  %2251 = vmatprep.subr.bf16.mxu1 %v3404_v48  ;;  %v2835_v47 = vcombine.high %v305_v39, %v309_v40  ;;  %v3491_v48 = vld [vmem:[%s3693_s10 + $0x644] ss:$16 sps:$4 sm:$0xff]  }
  0xbb   : > { %2065 = vmatprep.mubr.bf16.mxu0 %v2827_v49  ;;  %2277 = vmatprep.mubr.bf16.mxu1 %v2827_v49  ;;  %v3494_v49 = vld [vmem:[%s3693_s10 + $0x64c] ss:$16 sps:$4 sm:$0xff]  }
  0xbd   : > { %2040 = vmatpush1.bf16.msra.mxu0 %v3399_v50  ;;  %2252 = vmatpush1.bf16.msra.mxu1 %v3402_v51  ;;  %v2834_v50 = vcombine.low %v305_v39, %v309_v40  ;;  %v3929_v51 = vld [vmem:[%s3695_s11 + $0x18] sm:$0xff]  ;;  %v3569_v40 = vld [vmem:[%s3693_s10 + $0x7e4] ss:$16 sps:$4 sm:$0xff]  }
  0xbe   : > { %2041 = vmatprep.subr.bf16.mxu0 %v3407_v52  ;;  %2253 = vmatprep.subr.bf16.mxu1 %v3410_v53  ;;  %v3932_v52 = vld [vmem:[%s3695_s11 + $0x38] sm:$0xff]  ;;  %v3489_v53 = vld [vmem:[%s3693_s10 + $0x640] ss:$16 sps:$4 sm:$0xff]  }
  0xbf   : > { %v3564_v39 = vld [vmem:[%s3693_s10 + $0x7c8] ss:$16 sps:$4 sm:$0xff]  }
  0xc1   : > { %2042 = vmatpush1.bf16.msra.mxu0 %v3405_v54  ;;  %2254 = vmatpush1.bf16.msra.mxu1 %v3408_v55  ;;  %v3492_v54 = vld [vmem:[%s3693_s10 + $0x648] ss:$16 sps:$4 sm:$0xff]   ;;  %v3497_v55 = vld [vmem:[%s3693_s10 + $0x664] ss:$16 sps:$4 sm:$0xff]  }
  0xc2   : > { %2043 = vmatprep.subr.bf16.mxu0 %v3413_v56  ;;  %2255 = vmatprep.subr.bf16.mxu1 %v3416_v57  ;;  %v3500_v56 = vld [vmem:[%s3693_s10 + $0x66c] ss:$16 sps:$4 sm:$0xff]   ;;  %v2829_v57 = vcombine.high %v3929_v51, %v3932_v52 }
  0xc5   : > { %2044 = vmatpush1.bf16.msra.mxu0 %v3411_v58  ;;  %2256 = vmatpush1.bf16.msra.mxu1 %v3414_v59  ;;  %v3495_v58 = vld [vmem:[%s3693_s10 + $0x660] ss:$16 sps:$4 sm:$0xff]   ;;  %v3498_v59 = vld [vmem:[%s3693_s10 + $0x668] ss:$16 sps:$4 sm:$0xff]  }
  0xc6   : > { %2045 = vmatprep.subr.bf16.mxu0 %v3419_v60  ;;  %2257 = vmatprep.subr.bf16.mxu1 %v3422_v61  ;;  %v3503_v60 = vld [vmem:[%s3693_s10 + $0x684] ss:$16 sps:$4 sm:$0xff]   ;;  %v3506_v61 = vld [vmem:[%s3693_s10 + $0x68c] ss:$16 sps:$4 sm:$0xff]  }
  0xc9   : > { %2046 = vmatpush1.bf16.msra.mxu0 %v3417_v62  ;;  %2258 = vmatpush1.bf16.msra.mxu1 %v3420_v63  ;;  %v3501_v62 = vld [vmem:[%s3693_s10 + $0x680] ss:$16 sps:$4 sm:$0xff]   ;;  %v3504_v63 = vld [vmem:[%s3693_s10 + $0x688] ss:$16 sps:$4 sm:$0xff]  }
  0xca   : > { %2047 = vmatprep.subr.bf16.mxu0 %v3425_v0  ;;  %2259 = vmatprep.subr.bf16.mxu1 %v3428_v1  ;;  %v3509_v0 = vld [vmem:[%s3693_s10 + $0x6a4] ss:$16 sps:$4 sm:$0xff]   ;;  %v3512_v1 = vld [vmem:[%s3693_s10 + $0x6ac] ss:$16 sps:$4 sm:$0xff]  }
  0xcd   : > { %2048 = vmatpush1.bf16.msra.mxu0 %v3423_v2  ;;  %2260 = vmatpush1.bf16.msra.mxu1 %v3426_v3  ;;  %v3507_v2 = vld [vmem:[%s3693_s10 + $0x6a0] ss:$16 sps:$4 sm:$0xff]   ;;  %v3510_v3 = vld [vmem:[%s3693_s10 + $0x6a8] ss:$16 sps:$4 sm:$0xff]  }
  0xce   : > { %2049 = vmatprep.subr.bf16.mxu0 %v3431_v4  ;;  %2261 = vmatprep.subr.bf16.mxu1 %v3434_v5  ;;  %v3515_v4 = vld [vmem:[%s3693_s10 + $0x6c4] ss:$16 sps:$4 sm:$0xff]   ;;  %v3518_v5 = vld [vmem:[%s3693_s10 + $0x6cc] ss:$16 sps:$4 sm:$0xff]  }
  0xd1   : > { %2050 = vmatpush1.bf16.msra.mxu0 %v3429_v6  ;;  %2262 = vmatpush1.bf16.msra.mxu1 %v3432_v7  ;;  %v3513_v6 = vld [vmem:[%s3693_s10 + $0x6c0] ss:$16 sps:$4 sm:$0xff]   ;;  %v3516_v7 = vld [vmem:[%s3693_s10 + $0x6c8] ss:$16 sps:$4 sm:$0xff]  }
  0xd2   : > { %2051 = vmatprep.subr.bf16.mxu0 %v3437_v8  ;;  %2263 = vmatprep.subr.bf16.mxu1 %v3440_v9  ;;  %v3521_v8 = vld [vmem:[%s3693_s10 + $0x6e4] ss:$16 sps:$4 sm:$0xff]   ;;  %v3524_v9 = vld [vmem:[%s3693_s10 + $0x6ec] ss:$16 sps:$4 sm:$0xff]  }
  0xd5   : > { %2052 = vmatpush1.bf16.msra.mxu0 %v3435_v10  ;;  %2264 = vmatpush1.bf16.msra.mxu1 %v3438_v11  ;;  %v3519_v10 = vld [vmem:[%s3693_s10 + $0x6e0] ss:$16 sps:$4 sm:$0xff]   ;;  %v3522_v11 = vld [vmem:[%s3693_s10 + $0x6e8] ss:$16 sps:$4 sm:$0xff]  }
  0xd6   : > { %2053 = vmatprep.subr.bf16.mxu0 %v3443_v12  ;;  %2265 = vmatprep.subr.bf16.mxu1 %v3446_v13  ;;  %v3527_v12 = vld [vmem:[%s3693_s10 + $0x704] ss:$16 sps:$4 sm:$0xff]   ;;  %v3530_v13 = vld [vmem:[%s3693_s10 + $0x70c] ss:$16 sps:$4 sm:$0xff]  }
  0xd9   : > { %2054 = vmatpush1.bf16.msra.mxu0 %v3441_v14  ;;  %2266 = vmatpush1.bf16.msra.mxu1 %v3444_v15  ;;  %v3525_v14 = vld [vmem:[%s3693_s10 + $0x700] ss:$16 sps:$4 sm:$0xff]   ;;  %v3528_v15 = vld [vmem:[%s3693_s10 + $0x708] ss:$16 sps:$4 sm:$0xff]  }
  0xda   : > { %2055 = vmatprep.subr.bf16.mxu0 %v3449_v16  ;;  %2267 = vmatprep.subr.bf16.mxu1 %v3452_v17  ;;  %v3533_v16 = vld [vmem:[%s3693_s10 + $0x724] ss:$16 sps:$4 sm:$0xff]   ;;  %v3536_v17 = vld [vmem:[%s3693_s10 + $0x72c] ss:$16 sps:$4 sm:$0xff]  }
  0xdd   : > { %2056 = vmatpush1.bf16.msra.mxu0 %v3447_v18  ;;  %2268 = vmatpush1.bf16.msra.mxu1 %v3450_v19  ;;  %v3531_v18 = vld [vmem:[%s3693_s10 + $0x720] ss:$16 sps:$4 sm:$0xff]   ;;  %v3534_v19 = vld [vmem:[%s3693_s10 + $0x728] ss:$16 sps:$4 sm:$0xff]  }
  0xde   : > { %2057 = vmatprep.subr.bf16.mxu0 %v3455_v20  ;;  %2269 = vmatprep.subr.bf16.mxu1 %v3458_v21  ;;  %v3539_v20 = vld [vmem:[%s3693_s10 + $0x744] ss:$16 sps:$4 sm:$0xff]   ;;  %v3542_v21 = vld [vmem:[%s3693_s10 + $0x74c] ss:$16 sps:$4 sm:$0xff]  }
  0xe1   : > { %2058 = vmatpush1.bf16.msra.mxu0 %v3453_v22  ;;  %2270 = vmatpush1.bf16.msra.mxu1 %v3456_v23  ;;  %v3537_v22 = vld [vmem:[%s3693_s10 + $0x740] ss:$16 sps:$4 sm:$0xff]   ;;  %v3540_v23 = vld [vmem:[%s3693_s10 + $0x748] ss:$16 sps:$4 sm:$0xff]  }
  0xe2   : > { %2059 = vmatprep.subr.bf16.mxu0 %v3461_v24  ;;  %2271 = vmatprep.subr.bf16.mxu1 %v3464_v25  ;;  %v3545_v24 = vld [vmem:[%s3693_s10 + $0x764] ss:$16 sps:$4 sm:$0xff]   ;;  %v3548_v25 = vld [vmem:[%s3693_s10 + $0x76c] ss:$16 sps:$4 sm:$0xff]  }
  0xe5   : > { %2060 = vmatpush1.bf16.msra.mxu0 %v3459_v26  ;;  %2272 = vmatpush1.bf16.msra.mxu1 %v3462_v27  ;;  %v3543_v26 = vld [vmem:[%s3693_s10 + $0x760] ss:$16 sps:$4 sm:$0xff]   ;;  %v3546_v27 = vld [vmem:[%s3693_s10 + $0x768] ss:$16 sps:$4 sm:$0xff]  }
  0xe6   : > { %2061 = vmatprep.subr.bf16.mxu0 %v3467_v28  ;;  %2273 = vmatprep.subr.bf16.mxu1 %v3470_v29  ;;  %v3551_v28 = vld [vmem:[%s3693_s10 + $0x784] ss:$16 sps:$4 sm:$0xff]   ;;  %v3554_v29 = vld [vmem:[%s3693_s10 + $0x78c] ss:$16 sps:$4 sm:$0xff]  }
  0xe9   : > { %2062 = vmatpush1.bf16.msra.mxu0 %v3465_v30  ;;  %2274 = vmatpush1.bf16.msra.mxu1 %v3468_v31  ;;  %v3549_v30 = vld [vmem:[%s3693_s10 + $0x780] ss:$16 sps:$4 sm:$0xff]   ;;  %v3552_v31 = vld [vmem:[%s3693_s10 + $0x788] ss:$16 sps:$4 sm:$0xff]  }
  0xea   : > { %2063 = vmatprep.subr.bf16.mxu0 %v3473_v32  ;;  %2275 = vmatprep.subr.bf16.mxu1 %v3476_v33  ;;  %v3557_v32 = vld [vmem:[%s3693_s10 + $0x7a4] ss:$16 sps:$4 sm:$0xff]   ;;  %v3560_v33 = vld [vmem:[%s3693_s10 + $0x7ac] ss:$16 sps:$4 sm:$0xff]  }
  0xed   : > { %2064 = vmatpush1.bf16.msra.mxu0 %v3471_v34  ;;  %2276 = vmatpush1.bf16.msra.mxu1 %v3474_v35  ;;  %v3555_v34 = vld [vmem:[%s3693_s10 + $0x7a0] ss:$16 sps:$4 sm:$0xff]   ;;  %v3558_v35 = vld [vmem:[%s3693_s10 + $0x7a8] ss:$16 sps:$4 sm:$0xff]  }
  0xee   : > { %2086 = vmatprep.subr.bf16.mxu0 %v3479_v36  ;;  %2298 = vmatprep.subr.bf16.mxu1 %v3482_v37  ;;  %v3563_v36 = vld [vmem:[%s3693_s10 + $0x7c4] ss:$16 sps:$4 sm:$0xff]   ;;  %v3566_v37 = vld [vmem:[%s3693_s10 + $0x7cc] ss:$16 sps:$4 sm:$0xff]  }
  0xf0   : > { %2066 = vmatmul.mubr.bf16.vlgmr.msra.gmra.mrb[0].mxu0 %v2826_v38  ;;  %2278 = vmatmul.mubr.bf16.vlgmr.msra.gmra.mrb[0].mxu1 %v2826_v38  ;;  %v3561_v38 = vld [vmem:[%s3693_s10 + $0x7c0] ss:$16 sps:$4 sm:$0xff]  }
  0xf1   : > { %2087 = vmatpush1.bf16.msra.mxu0 %v3477_v41  ;;  %2299 = vmatpush1.bf16.msra.mxu1 %v3480_v43  ;;  %v3572_v41 = vld [vmem:[%s3693_s10 + $0x7ec] ss:$16 sps:$4 sm:$0xff]   ;;  %v3567_v43 = vld [vmem:[%s3693_s10 + $0x7e0] ss:$16 sps:$4 sm:$0xff]  }
  0xf2   : > { %2088 = vmatprep.subr.bf16.mxu0 %v3485_v45  ;;  %2300 = vmatprep.subr.bf16.mxu1 %v3488_v46  ;;  %v3570_v45 = vld [vmem:[%s3693_s10 + $0x7e8] ss:$16 sps:$4 sm:$0xff]  }
  0xf3   : > { %2075 = vmatprep.mubr.bf16.mxu0 %v2835_v47  ;;  %2287 = vmatprep.mubr.bf16.mxu1 %v2835_v47  ;;  %v306_v46 = vld [vmem:[%s3695_s11 + $0x58] sm:$0xff] }
  0xf4   : > { %v310_v47 = vld [vmem:[%s3695_s11 + $0x78] sm:$0xff] }
  0xf5   : > { %2089 = vmatpush1.bf16.msra.mxu0 %v3483_v42  ;;  %2301 = vmatpush1.bf16.msra.mxu1 %v3486_v44  ;;  %v2828_v42 = vcombine.low %v3929_v51, %v3932_v52  ;;  %v2837_v44 = vcombine.high %v306_v46, %v310_v47 }
  0xf6   : > { %2090 = vmatprep.subr.bf16.mxu0 %v3491_v48  ;;  %2302 = vmatprep.subr.bf16.mxu1 %v3494_v49  ;;  %v2836_v48 = vcombine.low %v306_v46, %v310_v47  ;;  %v279_v49 = vld [vmem:[#allocation2] sm:$0xff] }
  0xf8   : > { %2076 = vmatmul.mubr.bf16.gmra.mrb[4].mxu0 %v2834_v50  ;;  %2288 = vmatmul.mubr.bf16.gmra.mrb[4].mxu1 %v2834_v50  ;;  %v281_v50 = vld [vmem:[#allocation2 + $0x10] sm:$0xff] }
  0xf9   : > { %2091 = vmatpush1.bf16.msra.mxu0 %v3489_v53  ;;  %2303 = vmatpush1.bf16.msra.mxu1 %v3492_v54  ;;  %v280_v53 = vld [vmem:[#allocation2 + $0x8] sm:$0xff]  ;;  %v282_v54 = vld [vmem:[#allocation2 + $0x18] sm:$0xff] }
  0xfa   : > { %2092 = vmatprep.subr.bf16.mxu0 %v3497_v55  ;;  %2304 = vmatprep.subr.bf16.mxu1 %v3500_v56 }
  0xfb   : > { %2118 = vmatprep.mubr.bf16.mxu0 %v2829_v57  ;;  %2330 = vmatprep.mubr.bf16.mxu1 %v2829_v57  ;;  %v283_v57 = vld [vmem:[#allocation2 + $0x20] sm:$0xff] }
  0xfd   : > { %2093 = vmatpush1.bf16.msra.mxu0 %v3495_v58  ;;  %2305 = vmatpush1.bf16.msra.mxu1 %v3498_v59  ;;  %v285_v58 = vld [vmem:[#allocation2 + $0x30] sm:$0xff] }
  0xfe   : > { %2094 = vmatprep.subr.bf16.mxu0 %v3503_v60  ;;  %2306 = vmatprep.subr.bf16.mxu1 %v3506_v61  ;;  %v284_v61 = vld [vmem:[#allocation2 + $0x28] sm:$0xff] }
 0x101   : > { %2095 = vmatpush1.bf16.msra.mxu0 %v3501_v62  ;;  %2307 = vmatpush1.bf16.msra.mxu1 %v3504_v63  ;;  %v286_v62 = vld [vmem:[#allocation2 + $0x38] sm:$0xff] }
 0x102   : > { %2096 = vmatprep.subr.bf16.mxu0 %v3509_v0  ;;  %2308 = vmatprep.subr.bf16.mxu1 %v3512_v1 }
 0x105   : > { %2097 = vmatpush1.bf16.msra.mxu0 %v3507_v2  ;;  %2309 = vmatpush1.bf16.msra.mxu1 %v3510_v3 }
 0x106   : > { %2098 = vmatprep.subr.bf16.mxu0 %v3515_v4  ;;  %2310 = vmatprep.subr.bf16.mxu1 %v3518_v5 }
 0x109   : > { %2099 = vmatpush1.bf16.msra.mxu0 %v3513_v6  ;;  %2311 = vmatpush1.bf16.msra.mxu1 %v3516_v7 }
 0x10a   : > { %2100 = vmatprep.subr.bf16.mxu0 %v3521_v8  ;;  %2312 = vmatprep.subr.bf16.mxu1 %v3524_v9  ;;  %v287_v9 = vld [vmem:[#allocation2 + $0x40] sm:$0xff] }
 0x10d   : > { %2101 = vmatpush1.bf16.msra.mxu0 %v3519_v10  ;;  %2313 = vmatpush1.bf16.msra.mxu1 %v3522_v11  ;;  %v289_v10 = vld [vmem:[#allocation2 + $0x50] sm:$0xff]  ;;  %v288_v11 = vld [vmem:[#allocation2 + $0x48] sm:$0xff] }
 0x10e   : > { %2102 = vmatprep.subr.bf16.mxu0 %v3527_v12  ;;  %2314 = vmatprep.subr.bf16.mxu1 %v3530_v13  ;;  %v290_v12 = vld [vmem:[#allocation2 + $0x58] sm:$0xff] }
 0x111   : > { %2103 = vmatpush1.bf16.msra.mxu0 %v3525_v14  ;;  %2315 = vmatpush1.bf16.msra.mxu1 %v3528_v15  ;;  %v291_v15 = vld [vmem:[#allocation2 + $0x60] sm:$0xff] }
 0x112   : > { %2104 = vmatprep.subr.bf16.mxu0 %v3533_v16  ;;  %2316 = vmatprep.subr.bf16.mxu1 %v3536_v17  ;;  %v293_v16 = vld [vmem:[#allocation2 + $0x70] sm:$0xff] }
 0x115   : > { %2105 = vmatpush1.bf16.msra.mxu0 %v3531_v18  ;;  %2317 = vmatpush1.bf16.msra.mxu1 %v3534_v19 }
 0x116   : > { %2106 = vmatprep.subr.bf16.mxu0 %v3539_v20  ;;  %2318 = vmatprep.subr.bf16.mxu1 %v3542_v21  ;;  %v292_v21 = vld [vmem:[#allocation2 + $0x68] sm:$0xff] }
 0x119   : > { %2107 = vmatpush1.bf16.msra.mxu0 %v3537_v22  ;;  %2319 = vmatpush1.bf16.msra.mxu1 %v3540_v23  ;;  %v294_v22 = vld [vmem:[#allocation2 + $0x78] sm:$0xff] }
 0x11a   : > { %2108 = vmatprep.subr.bf16.mxu0 %v3545_v24  ;;  %2320 = vmatprep.subr.bf16.mxu1 %v3548_v25 }
 0x11d   : > { %2109 = vmatpush1.bf16.msra.mxu0 %v3543_v26  ;;  %2321 = vmatpush1.bf16.msra.mxu1 %v3546_v27 }
 0x11e   : > { %2110 = vmatprep.subr.bf16.mxu0 %v3551_v28  ;;  %2322 = vmatprep.subr.bf16.mxu1 %v3554_v29 }
 0x121   : > { %2111 = vmatpush1.bf16.msra.mxu0 %v3549_v30  ;;  %2323 = vmatpush1.bf16.msra.mxu1 %v3552_v31 }
 0x122   : > { %2112 = vmatprep.subr.bf16.mxu0 %v3557_v32  ;;  %2324 = vmatprep.subr.bf16.mxu1 %v3560_v33 }
 0x125   : > { %2113 = vmatpush1.bf16.msra.mxu0 %v3555_v34  ;;  %2325 = vmatpush1.bf16.msra.mxu1 %v3558_v35 }
 0x126   : > { %2114 = vmatprep.subr.bf16.mxu0 %v3563_v36  ;;  %2326 = vmatprep.subr.bf16.mxu1 %v3566_v37 }
 0x129   : > { %2115 = vmatpush1.bf16.msra.mxu0 %v3561_v38  ;;  %2327 = vmatpush1.bf16.msra.mxu1 %v3564_v39 }
 0x12a   : > { %2116 = vmatprep.subr.bf16.mxu0 %v3569_v40  ;;  %2328 = vmatprep.subr.bf16.mxu1 %v3572_v41 }
 0x12d   : > { %2117 = vmatpush1.bf16.msra.mxu0 %v3567_v43  ;;  %2329 = vmatpush1.bf16.msra.mxu1 %v3570_v45 }
 0x130   : > { %2119 = vmatmul.mubr.bf16.vlgmr.msra.gmra.mrb[0].mxu0 %v2828_v42  ;;  %2331 = vmatmul.mubr.bf16.vlgmr.msra.gmra.mrb[0].mxu1 %v2828_v42 }
 0x131   : > { %2128 = vmatprep.mubr.bf16.mxu0 %v2837_v44  ;;  %2340 = vmatprep.mubr.bf16.mxu1 %v2837_v44 }
 0x138   : > { %2129 = vmatmul.mubr.bf16.gmra.mrb[4].mxu0 %v2836_v48  ;;  %2341 = vmatmul.mubr.bf16.gmra.mrb[4].mxu1 %v2836_v48 }
 0x203   : > { %v2120_v55 = vpop.f32.mrb[0].mxu0  ;;  %v2332_v56 = vpop.f32.mrb[0].mxu1 }
 0x204   : > { %v2351_v59 = vadd.f32 %v2120_v55, %v279_v49  ;;  %v2353_v51 = vadd.f32 %v2332_v56, %v281_v50  ;;  %v2122_v52 = vpop.f32.mrb[1].mxu0  ;;  %v2334_v60 = vpop.f32.mrb[1].mxu1 }
 0x205   : > { %v2352_v63 = vadd.f32 %v2122_v52, %v280_v53  ;;  %v2354_v0 = vadd.f32 %v2334_v60, %v282_v54  ;;  %v2124_v1 = vpop.f32.mrb[2].mxu0  ;;  %v2336_v2 = vpop.f32.mrb[2].mxu1 }
 0x206   : > { %2367 = vst [vmem:[#allocation2] sm:$0xff] %v2351_v59  ;;  %2369 = vst [vmem:[#allocation2 + $0x10] sm:$0xff] %v2353_v51  ;;  %v2355_v3 = vadd.f32 %v2124_v1, %v283_v57  ;;  %v2357_v4 = vadd.f32 %v2336_v2, %v285_v58  ;;  %v2126_v5 = vpop.f32.mrb[3].mxu0  ;;  %v2338_v6 = vpop.f32.mrb[3].mxu1 }
 0x207   : > { %2368 = vst [vmem:[#allocation2 + $0x8] sm:$0xff] %v2352_v63  ;;  %2370 = vst [vmem:[#allocation2 + $0x18] sm:$0xff] %v2354_v0  ;;  %v2356_v7 = vadd.f32 %v2126_v5, %v284_v61  ;;  %v2358_v8 = vadd.f32 %v2338_v6, %v286_v62 }
 0x208   : > { %2371 = vst [vmem:[#allocation2 + $0x20] sm:$0xff] %v2355_v3  ;;  %2373 = vst [vmem:[#allocation2 + $0x30] sm:$0xff] %v2357_v4 }
 0x209   : > { %2372 = vst [vmem:[#allocation2 + $0x28] sm:$0xff] %v2356_v7  ;;  %2374 = vst [vmem:[#allocation2 + $0x38] sm:$0xff] %v2358_v8 }
 0x20b   : > { %v2130_v13 = vpop.f32.mrb[4].mxu0  ;;  %v2342_v14 = vpop.f32.mrb[4].mxu1  ;;  %2386 = sbr.rel (%p3094_p10) target bundleno = 625 (0x271), region = 67 }
 0x20c   : > { %v2359_v17 = vadd.f32 %v2130_v13, %v287_v9  ;;  %v2361_v18 = vadd.f32 %v2342_v14, %v289_v10  ;;  %v2132_v19 = vpop.f32.mrb[5].mxu0  ;;  %v2344_v20 = vpop.f32.mrb[5].mxu1 }
 0x20d   : > { %v2360_v23 = vadd.f32 %v2132_v19, %v288_v11  ;;  %v2362_v24 = vadd.f32 %v2344_v20, %v290_v12  ;;  %v2134_v25 = vpop.f32.mrb[6].mxu0  ;;  %v2346_v26 = vpop.f32.mrb[6].mxu1  ;;  %v3995_v33 = vld [vmem:[#allocation2] sm:$0xff] (!%p3094_p10)  ;;  %v3999_v35 = vld [vmem:[#allocation2 + $0x10] sm:$0xff] (!%p3094_p10) }
 0x20e   : > { %2375 = vst [vmem:[#allocation2 + $0x40] sm:$0xff] %v2359_v17  ;;  %2377 = vst [vmem:[#allocation2 + $0x50] sm:$0xff] %v2361_v18  ;;  %v2363_v27 = vadd.f32 %v2134_v25, %v291_v15  ;;  %v2365_v28 = vadd.f32 %v2346_v26, %v293_v16  ;;  %v2136_v29 = vpop.f32.mrb[7].mxu0  ;;  %v2348_v30 = vpop.f32.mrb[7].mxu1  ;;  %v3997_v34 = vld [vmem:[#allocation2 + $0x8] sm:$0xff] (!%p3094_p10)  ;;  %v4001_v36 = vld [vmem:[#allocation2 + $0x18] sm:$0xff] (!%p3094_p10)  ;;  %v2444_v39 = vmul.f32 (!%p3094_p10), %v3995_v33, %v3995_v33 }
 0x20f   : > { %2376 = vst [vmem:[#allocation2 + $0x48] sm:$0xff] %v2360_v23  ;;  %2378 = vst [vmem:[#allocation2 + $0x58] sm:$0xff] %v2362_v24  ;;  %v2364_v31 = vadd.f32 %v2136_v29, %v292_v21  ;;  %v2366_v32 = vadd.f32 %v2348_v30, %v294_v22  ;;  %v4003_v37 = vld [vmem:[#allocation2 + $0x20] sm:$0xff] (!%p3094_p10)  ;;  %v2445_v40 = vmul.f32 (!%p3094_p10), %v3997_v34, %v3997_v34  ;;  %v4013_v43 = vld [vmem:[#allocation2 + $0x30] sm:$0xff] (!%p3094_p10) }
 0x210   : > { %2379 = vst [vmem:[#allocation2 + $0x60] sm:$0xff] %v2363_v27  ;;  %2381 = vst [vmem:[#allocation2 + $0x70] sm:$0xff] %v2365_v28  ;;  %v4005_v38 = vld [vmem:[#allocation2 + $0x28] sm:$0xff] (!%p3094_p10)  ;;  %v2446_v41 = vmul.f32 (!%p3094_p10), %v3999_v35, %v3999_v35  ;;  %v4015_v45 = vld [vmem:[#allocation2 + $0x38] sm:$0xff] (!%p3094_p10)  ;;  %v2403_v47 = vadd.f32 (!%p3094_p10), %v4003_v37, %v3995_v33  ;;  %v2447_v44 = vmul.f32 (!%p3094_p10), %v4001_v36, %v4001_v36 }
 0x211   : > { %2380 = vst [vmem:[#allocation2 + $0x68] sm:$0xff] %v2364_v31  ;;  %2382 = vst [vmem:[#allocation2 + $0x78] sm:$0xff] %v2366_v32  ;;  %v2412_v42 = vadd.f32 (!%p3094_p10), %v4005_v38, %v3997_v34  ;;  %v2448_v48 = vmul.f32 (!%p3094_p10), %v4003_v37, %v4003_v37  ;;  %v2421_v54 = vadd.f32 (!%p3094_p10), %v4013_v43, %v3999_v35 }
 0x212   : > { %v2430_v55 = vadd.f32 %v4015_v45, %v4001_v36  ;;  %v2449_v56 = vmul.f32 %v4005_v38, %v4005_v38  ;;  %v2450_v57 = vmul.f32 %v4013_v43, %v4013_v43  ;;  %v2451_v61 = vmul.f32 %v4015_v45, %v4015_v45 }
 0x213   : > { %v2460_v15 = vadd.f32 %v2448_v48, %v2444_v39 }
 0x214   : > { %v2469_v18 = vadd.f32 %v2449_v56, %v2445_v40  ;;  %v2478_v19 = vadd.f32 %v2450_v57, %v2446_v41  ;;  %v2487_v23 = vadd.f32 %v2451_v61, %v2447_v44 }
 0x215   : > { %v4017_v46 = vld [vmem:[#allocation2 + $0x40] sm:$0xff]  ;;  %v4029_v50 = vld [vmem:[#allocation2 + $0x50] sm:$0xff] }
 0x216   : > { %v4027_v49 = vld [vmem:[#allocation2 + $0x48] sm:$0xff]  ;;  %v4031_v53 = vld [vmem:[#allocation2 + $0x58] sm:$0xff]  ;;  %v2404_v52 = vadd.f32 %v2403_v47, %v4017_v46  ;;  %v2452_v62 = vmul.f32 %v4017_v46, %v4017_v46  ;;  %v2422_v0 = vadd.f32 %v2421_v54, %v4029_v50  ;;  %v2454_v3 = vmul.f32 %v4029_v50, %v4029_v50 }
 0x217   : > { %v4041_v58 = vld [vmem:[#allocation2 + $0x60] sm:$0xff]  ;;  %v4045_v51 = vld [vmem:[#allocation2 + $0x70] sm:$0xff]  ;;  %v2413_v60 = vadd.f32 %v2412_v42, %v4027_v49  ;;  %v2431_v1 = vadd.f32 %v2430_v55, %v4031_v53  ;;  %v2453_v2 = vmul.f32 %v4027_v49, %v4027_v49  ;;  %v2455_v6 = vmul.f32 %v4031_v53, %v4031_v53 }
 0x218   : > { %v4043_v59 = vld [vmem:[#allocation2 + $0x68] sm:$0xff]  ;;  %v4053_v63 = vld [vmem:[#allocation2 + $0x78] sm:$0xff]  ;;  %v2405_v4 = vadd.f32 %v2404_v52, %v4041_v58  ;;  %v2456_v7 = vmul.f32 %v4041_v58, %v4041_v58  ;;  %v2423_v8 = vadd.f32 %v2422_v0, %v4045_v51  ;;  %v2458_v11 = vmul.f32 %v4045_v51, %v4045_v51 }
 0x219   : > { %v2414_v5 = vadd.f32 %v2413_v60, %v4043_v59  ;;  %v2432_v9 = vadd.f32 %v2431_v1, %v4053_v63  ;;  %v2457_v10 = vmul.f32 %v4043_v59, %v4043_v59  ;;  %v2459_v14 = vmul.f32 %v4053_v63, %v4053_v63 }
 0x21a   : > { %v2406_v12 = vrot.slane %v2405_v4, 4  ;;  %v2424_v16 = vrot.slane %v2423_v8, 4  ;;  %v2461_v22 = vadd.f32 %v2460_v15, %v2452_v62  ;;  %v2470_v26 = vadd.f32 %v2469_v18, %v2453_v2 }
 0x21b   : > { %v2415_v13 = vrot.slane %v2414_v5, 4  ;;  %v2433_v17 = vrot.slane %v2432_v9, 4  ;;  %v2479_v27 = vadd.f32 %v2478_v19, %v2454_v3  ;;  %v2488_v31 = vadd.f32 %v2487_v23, %v2455_v6 }
 0x21c   : > { %v2407_v20 = vadd.f32 %v2406_v12, %v2405_v4  ;;  %v2425_v24 = vadd.f32 %v2424_v16, %v2423_v8  ;;  %v2462_v30 = vadd.f32 %v2461_v22, %v2456_v7  ;;  %v2471_v42 = vadd.f32 %v2470_v26, %v2457_v10 }
 0x21d   : > { %v2416_v21 = vadd.f32 %v2415_v13, %v2414_v5  ;;  %v2434_v25 = vadd.f32 %v2433_v17, %v2432_v9  ;;  %v2480_v39 = vadd.f32 %v2479_v27, %v2458_v11  ;;  %v2489_v41 = vadd.f32 %v2488_v31, %v2459_v14 }
 0x21e   : > { %v2408_v28 = vrot.slane %v2407_v20, 2  ;;  %v2426_v32 = vrot.slane %v2425_v24, 2  ;;  %v2463_v40 = vrot.slane %v2462_v30, 4  ;;  %v2472_v57 = vrot.slane %v2471_v42, 4 }
 0x21f   : > { %v2417_v29 = vrot.slane %v2416_v21, 2  ;;  %v2435_v47 = vrot.slane %v2434_v25, 2  ;;  %v2481_v44 = vrot.slane %v2480_v39, 4  ;;  %v2490_v62 = vrot.slane %v2489_v41, 4 }
 0x220   : > { %v2409_v48 = vadd.f32 %v2408_v28, %v2407_v20  ;;  %v2427_v55 = vadd.f32 %v2426_v32, %v2425_v24  ;;  %v2464_v61 = vadd.f32 %v2463_v40, %v2462_v30  ;;  %v2473_v2 = vadd.f32 %v2472_v57, %v2471_v42 }
 0x221   : > { %v2418_v54 = vadd.f32 %v2417_v29, %v2416_v21  ;;  %v2436_v56 = vadd.f32 %v2435_v47, %v2434_v25  ;;  %v2482_v3 = vadd.f32 %v2481_v44, %v2480_v39  ;;  %v2491_v7 = vadd.f32 %v2490_v62, %v2489_v41 }
 0x222   : > { %v2410_v52 = vrot.slane %v2409_v48, 1  ;;  %v2428_v0 = vrot.slane %v2427_v55, 1  ;;  %v2465_v6 = vrot.slane %v2464_v61, 2  ;;  %v2474_v10 = vrot.slane %v2473_v2, 2 }
 0x223   : > { %v2419_v60 = vrot.slane %v2418_v54, 1  ;;  %v2437_v1 = vrot.slane %v2436_v56, 1  ;;  %v2483_v11 = vrot.slane %v2482_v3, 2  ;;  %v2492_v14 = vrot.slane %v2491_v7, 2 }
 0x224   : > { %v2411_v4 = vadd.f32 %v2410_v52, %v2409_v48  ;;  %v2429_v8 = vadd.f32 %v2428_v0, %v2427_v55  ;;  %v2466_v13 = vadd.f32 %v2465_v6, %v2464_v61  ;;  %v2475_v17 = vadd.f32 %v2474_v10, %v2473_v2 }
 0x225   : > { %v2420_v5 = vadd.f32 %v2419_v60, %v2418_v54  ;;  %v2438_v9 = vadd.f32 %v2437_v1, %v2436_v56  ;;  %v2484_v18 = vadd.f32 %v2483_v11, %v2482_v3  ;;  %v2493_v21 = vadd.f32 %v2492_v14, %v2491_v7 }
 0x226   : > { %v4075_v12 = vmul.f32 0.03125, %v2411_v4  ;;  %v4079_v16 = vmul.f32 0.03125, %v2429_v8  ;;  %v2467_v20 = vrot.slane %v2466_v13, 1  ;;  %v2476_v22 = vrot.slane %v2475_v17, 1 }
 0x227   : > { %v4077_v15 = vmul.f32 0.03125, %v2420_v5  ;;  %v4081_v19 = vmul.f32 0.03125, %v2438_v9  ;;  %v2485_v23 = vrot.slane %v2484_v18, 1  ;;  %v2494_v25 = vrot.slane %v2493_v21, 1 }
 0x228   : > { %v2468_v24 = vadd.f32 %v2467_v20, %v2466_v13  ;;  %v2500_v26 = vmul.f32 %v4075_v12, %v4075_v12  ;;  %v2477_v27 = vadd.f32 %v2476_v22, %v2475_v17  ;;  %v2502_v30 = vmul.f32 %v4079_v16, %v4079_v16  ;;  %v2512_v20 = vld [vmem:[%s4174_s2] sm:$0xf] }
 0x229   : > { %v2486_v28 = vadd.f32 %v2485_v23, %v2484_v18  ;;  %v2501_v29 = vmul.f32 %v4077_v15, %v4077_v15  ;;  %v2495_v31 = vadd.f32 %v2494_v25, %v2493_v21  ;;  %v2503_v47 = vmul.f32 %v4081_v19, %v4081_v19 }
 0x22a   : > { %v2496_v32 = vmul.f32 0.03125, %v2468_v24  ;;  %v2497_v42 = vmul.f32 0.03125, %v2477_v27  ;;  %v3606_v1 = vmov 1966171168   ;;  %v2530_v3 = vlaneseq }
 0x22b   : > { %v2498_v39 = vmul.f32 0.03125, %v2486_v28  ;;  %v2499_v48 = vmul.f32 0.03125, %v2495_v31  ;;  %v2528_v2 = vunpack.c.l.s4 %v3606_v1 }
 0x22c   : > { %v2504_v54 = vsub.f32 %v2496_v32, %v2500_v26  ;;  %v2505_v40 = vsub.f32 %v2497_v42, %v2501_v29  ;;  %v2531_v5 = vshrl.u32 %v2530_v3, 7 }
 0x22d   : > { %v2506_v41 = vsub.f32 %v2498_v39, %v2502_v30  ;;  %v2507_v55 = vsub.f32 %v2499_v48, %v2503_v47  ;;  %v2529_v4 = vunpack.c.0.s8 %v2528_v2 }
 0x22e   : > { %v2508_v56 = vmax.f32 %v2504_v54, 0.0  ;;  %v2509_v57 = vmax.f32 %v2505_v40, 0.0  ;;  %v2555_v21 = vsub.s32 0, %v2531_v5  ;;  %v2559_v23 = vsub.s32 1, %v2531_v5 }
 0x22f   : > { %v2510_v44 = vmax.f32 %v2506_v41, 0.0  ;;  %v2511_v52 = vmax.f32 %v2507_v55, 0.0  ;;  %v2532_v7 = vsub.s32 %v2529_v4, %v2531_v5  ;;  %v2563_v24 = vsub.s32 2, %v2531_v5  ;;  %v2551_v55 = vld [vmem:[%s4175_s3] sm:$0xf] }
 0x230   : > { %v2513_v60 = vadd.f32 1e-05, %v2508_v56  ;;  %v2514_v61 = vadd.f32 1e-05, %v2509_v57  ;;  %v2567_v25 = vsub.s32 3, %v2531_v5 }
 0x231   : > { %v2515_v62 = vadd.f32 1e-05, %v2510_v44  ;;  %v2516_v0 = vadd.f32 1e-05, %v2511_v52 }
 0x232   : > { %3573 = vrsqrt.f32 %v2513_v60 }
 0x233   : > { %3575 = vrsqrt.f32 %v2514_v61 }
 0x234   : > { %3577 = vrsqrt.f32 %v2515_v62 }
 0x235   : > { %3579 = vrsqrt.f32 %v2516_v0 }
 0x23c   : > { %v3574_v6 = vpop.eup %3573 }
 0x23d   : > { %v3576_v8 = vpop.eup %3575 }
 0x23e   : > { %v3578_v9 = vpop.eup %3577  ;;  %v2525_v10 = vcombine.low %v3574_v6, %v3576_v8 }
 0x23f   : > { %v3580_v11 = vpop.eup %3579 }
 0x240   : > { %v2526_v13 = vcombine.low %v3578_v9, %v3580_v11  ;;  %v2533_v14 = vrot.slane %v2525_v10, %v2532_v7 }
 0x242   : > { %v2540_v17 = vrot.slane %v2526_v13, %v2532_v7 }
 0x244   : > { %v2541_v18 = vcombine.low %v2533_v14, %v2540_v17 }
 0x246   : > { %v2548_v22 = vrot.slane %v2541_v18, %v2532_v7 }
 0x248   : > { %v2550_v26 = vmul.f32 %v2548_v22, %v2512_v20 }
 0x24a   : > { %v2556_v27 = vrot.slane %v2550_v26, %v2555_v21  ;;  %v2560_v28 = vrot.slane %v2550_v26, %v2559_v23  ;;  %v2564_v29 = vrot.slane %v2550_v26, %v2563_v24  ;;  %v2568_v30 = vrot.slane %v2550_v26, %v2567_v25 }
 0x24c   : > { %v2573_v31 = vmul.f32 %v2556_v27, %v4075_v12  ;;  %v2574_v32 = vmul.f32 %v2560_v28, %v4077_v15  ;;  %v2575_v47 = vmul.f32 %v2564_v29, %v4079_v16  ;;  %v2576_v42 = vmul.f32 %v2568_v30, %v4081_v19 }
 0x24d   : > { %v2607_v57 = vmul.f32 %v2556_v27, %v3995_v33  ;;  %v2608_v12 = vmul.f32 %v2560_v28, %v3997_v34  ;;  %v2609_v15 = vmul.f32 %v2564_v29, %v3999_v35  ;;  %v2610_v16 = vmul.f32 %v2568_v30, %v4001_v36 }
 0x24e   : > { %v2581_v39 = vcombine.low %v2573_v31, %v2574_v32  ;;  %v2582_v48 = vcombine.low %v2575_v47, %v2576_v42  ;;  %v2611_v19 = vmul.f32 %v2556_v27, %v4003_v37  ;;  %v2612_v52 = vmul.f32 %v2560_v28, %v4005_v38 }
 0x24f   : > { %v2613_v60 = vmul.f32 %v2564_v29, %v4013_v43  ;;  %v2614_v61 = vmul.f32 %v2568_v30, %v4015_v45  ;;  %v2615_v62 = vmul.f32 %v2556_v27, %v4017_v46  ;;  %v2616_v0 = vmul.f32 %v2560_v28, %v4027_v49 }
 0x250   : > { %v2589_v54 = vrot.slane %v2581_v39, %v2532_v7  ;;  %v2596_v40 = vrot.slane %v2582_v48, %v2532_v7  ;;  %v2617_v33 = vmul.f32 %v2564_v29, %v4029_v50  ;;  %v2618_v34 = vmul.f32 %v2568_v30, %v4031_v53 }
 0x251   : > { %v2619_v38 = vmul.f32 %v2556_v27, %v4041_v58  ;;  %v2620_v43 = vmul.f32 %v2560_v28, %v4043_v59  ;;  %v2621_v45 = vmul.f32 %v2564_v29, %v4045_v51  ;;  %v4123_v46 = vmul.f32 %v2568_v30, %v4053_v63 }
 0x252   : > { %v2597_v41 = vcombine.low %v2589_v54, %v2596_v40 }
 0x254   : > { %v2604_v56 = vrot.slane %v2597_v41, %v2532_v7 }
 0x256   : > { %v2606_v44 = vsub.f32 %v2551_v55, %v2604_v56 }
 0x258   : > { %v4113_v35 = vrot.slane %v2606_v44, %v2555_v21  ;;  %v2631_v36 = vrot.slane %v2606_v44, %v2559_v23  ;;  %v4115_v1 = vrot.slane %v2606_v44, %v2563_v24  ;;  %v4117_v37 = vrot.slane %v2606_v44, %v2567_v25 }
 0x25a   : > { %v2644_v49 = vadd.f32 %v4113_v35, %v2607_v57  ;;  %v2645_v50 = vadd.f32 %v2631_v36, %v2608_v12  ;;  %v2646_v53 = vadd.f32 %v4115_v1, %v2609_v15  ;;  %v2647_v2 = vadd.f32 %v4117_v37, %v2610_v16 }
 0x25b   : > { %v2648_v3 = vadd.f32 %v4113_v35, %v2611_v19  ;;  %v2649_v4 = vadd.f32 %v2631_v36, %v2612_v52  ;;  %v2650_v5 = vadd.f32 %v4115_v1, %v2613_v60  ;;  %v2651_v58 = vadd.f32 %v4117_v37, %v2614_v61 }
 0x25c   : > { %vm2660_vm0 = vcmp.ge.f32.partialorder %v2644_v49, 0.0  ;;  %vm2661_vm1 = vcmp.ge.f32.partialorder %v2645_v50, 0.0  ;;  %v2676_v59 = vmul.f32 0.2, %v2644_v49  ;;  %v2677_v51 = vmul.f32 0.2, %v2645_v50 }
 0x25d   : > { %vm2662_vm2 = vcmp.ge.f32.partialorder %v2646_v53, 0.0  ;;  %vm2663_vm3 = vcmp.ge.f32.partialorder %v2647_v2, 0.0  ;;  %v2678_v63 = vmul.f32 0.2, %v2646_v53  ;;  %v2679_v6 = vmul.f32 0.2, %v2647_v2 }
 0x25e   : > { %v2692_v7 = vsel %vm2660_vm0, %v2644_v49, %v2676_v59  ;;  %v2693_v8 = vsel %vm2661_vm1, %v2645_v50, %v2677_v51  ;;  %vm2664_vm4 = vcmp.ge.f32.partialorder %v2648_v3, 0.0  ;;  %vm2665_vm5 = vcmp.ge.f32.partialorder %v2649_v4, 0.0 }
 0x25f   : > { %v3107_v9 = vpack.c.bf16 %v2693_v8, %v2692_v7  ;;  %v2694_v10 = vsel %vm2662_vm2, %v2646_v53, %v2678_v63  ;;  %v2695_v11 = vsel %vm2663_vm3, %v2647_v2, %v2679_v6  ;;  %v2680_v13 = vmul.f32 0.2, %v2648_v3 }
 0x260   : > { %v3108_v14 = vpack.c.bf16 %v2695_v11, %v2694_v10  ;;  %v2681_v17 = vmul.f32 0.2, %v2649_v4  ;;  %vm2666_vm6 = vcmp.ge.f32.partialorder %v2650_v5, 0.0  ;;  %vm2667_vm7 = vcmp.ge.f32.partialorder %v2651_v58, 0.0 }
 0x261   : > { %2756 = vst [vmem:[%s4176_s4] sm:$0xff] %v3107_v9  ;;  %v2696_v18 = vsel %vm2664_vm4, %v2648_v3, %v2680_v13  ;;  %v2682_v20 = vmul.f32 0.2, %v2650_v5  ;;  %v2683_v21 = vmul.f32 0.2, %v2651_v58  ;;  %v2652_v22 = vadd.f32 %v4113_v35, %v2615_v62 }
 0x262   : > { %2757 = vst [vmem:[%s4176_s4 + $0x8] sm:$0xff] %v3108_v14  ;;  %v2697_v23 = vsel %vm2665_vm5, %v2649_v4, %v2681_v17  ;;  %v2653_v24 = vadd.f32 %v2631_v36, %v2616_v0  ;;  %v2654_v25 = vadd.f32 %v4115_v1, %v2617_v33  ;;  %v2655_v26 = vadd.f32 %v4117_v37, %v2618_v34 }
 0x263   : > { %v3109_v27 = vpack.c.bf16 %v2697_v23, %v2696_v18  ;;  %v2698_v28 = vsel %vm2666_vm6, %v2650_v5, %v2682_v20  ;;  %v2699_v29 = vsel %vm2667_vm7, %v2651_v58, %v2683_v21  ;;  %vm2668_vm8 = vcmp.ge.f32.partialorder %v2652_v22, 0.0 }
 0x264   : > { %v3110_v30 = vpack.c.bf16 %v2699_v29, %v2698_v28  ;;  %vm2669_vm9 = vcmp.ge.f32.partialorder %v2653_v24, 0.0  ;;  %v2684_v31 = vmul.f32 0.2, %v2652_v22  ;;  %v2685_v32 = vmul.f32 0.2, %v2653_v24 }
 0x265   : > { %2758 = vst [vmem:[%s4176_s4 + $0x10] sm:$0xff] %v3109_v27  ;;  %vm2670_vm10 = vcmp.ge.f32.partialorder %v2654_v25, 0.0  ;;  %vm2671_vm11 = vcmp.ge.f32.partialorder %v2655_v26, 0.0  ;;  %v2686_v47 = vmul.f32 0.2, %v2654_v25  ;;  %v2656_v54 = vadd.f32 %v4113_v35, %v2619_v38 }
 0x266   : > { %v2687_v42 = vmul.f32 0.2, %v2655_v26  ;;  %2759 = vst [vmem:[%s4176_s4 + $0x18] sm:$0xff] %v3110_v30  ;;  %v2700_v39 = vsel %vm2668_vm8, %v2652_v22, %v2684_v31  ;;  %v2701_v48 = vsel %vm2669_vm9, %v2653_v24, %v2685_v32  ;;  %v2657_v40 = vadd.f32 %v2631_v36, %v2620_v43 }
 0x267   : > { %v3111_v41 = vpack.c.bf16 %v2701_v48, %v2700_v39  ;;  %v2702_v55 = vsel %vm2670_vm10, %v2654_v25, %v2686_v47  ;;  %v2658_v57 = vadd.f32 %v4115_v1, %v2621_v45  ;;  %vm2672_vm12 = vcmp.ge.f32.partialorder %v2656_v54, 0.0 }
 0x268   : > { %v2703_v56 = vsel %vm2671_vm11, %v2655_v26, %v2687_v42  ;;  %vm2673_vm13 = vcmp.ge.f32.partialorder %v2657_v40, 0.0  ;;  %v2688_v15 = vmul.f32 0.2, %v2656_v54  ;;  %v2689_v16 = vmul.f32 0.2, %v2657_v40 }
 0x269   : > { %v3112_v12 = vpack.c.bf16 %v2703_v56, %v2702_v55  ;;  %2760 = vst [vmem:[%s4176_s4 + $0x20] sm:$0xff] %v3111_v41  ;;  %v2659_v19 = vadd.f32 %v4117_v37, %v4123_v46  ;;  %vm2674_vm14 = vcmp.ge.f32.partialorder %v2658_v57, 0.0  ;;  %v2690_v44 = vmul.f32 0.2, %v2658_v57 }
 0x26a   : > { %v2704_v52 = vsel %vm2672_vm12, %v2656_v54, %v2688_v15  ;;  %v2705_v60 = vsel %vm2673_vm13, %v2657_v40, %v2689_v16 }
 0x26b   : > { %2761 = vst [vmem:[%s4176_s4 + $0x28] sm:$0xff] %v3112_v12  ;;  %vm2675_vm15 = vcmp.ge.f32.partialorder %v2659_v19, 0.0  ;;  %v2691_v61 = vmul.f32 0.2, %v2659_v19  ;;  %v2706_v62 = vsel %vm2674_vm14, %v2658_v57, %v2690_v44  ;;  %v3113_v0 = vpack.c.bf16 %v2705_v60, %v2704_v52 }
 0x26d   : > { %v2707_v33 = vsel %vm2675_vm15, %v2659_v19, %v2691_v61  ;;  %2762 = vst [vmem:[%s4176_s4 + $0x30] sm:$0xff] %v3113_v0 }
 0x26e   : > { %v3114_v34 = vpack.c.bf16 %v2707_v33, %v2706_v62 }
 0x270   : > { %2763 = vst [vmem:[%s4176_s4 + $0x38] sm:$0xff] %v3114_v34 }
 0x271 PF: > { %p11_p11 = scmp.ge.s32.totalorder %s3651_s19, 6   ;;  %s4177_s15 = smov %s3599_s16 }
 0x272   : > { %s4178_s16 = smov %s3660_s22  ;;  %s4179_s17 = smov %s3651_s19 }
 0x273   :  { %13 = sbr.rel (!%p11_p11) target bundleno = 2 (0x2), region = 101 }

// kernel: encoder_cnn_forward.9
= control target key start
LH: loop header
LB: loop body
LE: loop exit
PB: predicated region body
PF: predicated region fallthrough
CT: control target
= control target key end

     0   :  { %s1309_s9 = smov 0   ;;  %s1311_s10 = smov 0   ;;  %s1423_s0 = inlined_call_operand.vmem [shape: bf16[8,8192], index: 0, kind: input, shape index: {}]   ;;  %s1424_s1 = inlined_call_operand.vmem [shape: bf16[8192,128], index: 1, kind: input, shape index: {}]   ;;  %s1425_s2 = inlined_call_operand.vmem [shape: f32[8,128], index: 2, kind: output, shape index: {}]  }
   0x1   :  { %s1313_s11 = smov 0  }
   0x2 LB: > { %s21_s12 = sadd.s32 1, %s1287_s10  ;;  %p997_p0 = scmp.ge.s32.totalorder %s1291_s11, 1  ;;  %s1291_s11 = sphi %s1313_s11, %s12_s11   ;;  %s1287_s10 = sphi %s1311_s10, %s1427_s10   ;;  %s1283_s9 = sphi %s1309_s9, %s1426_s9  }
   0x3   : > { %p22_p1 = scmp.ge.s32.totalorder %s21_s12, 8  ;;  %p142_p2 = scmp.lt.s32.totalorder %s1291_s11, 9 }
   0x5   : > { %s1429_s12 = smov (%p22_p1, %s21_s12), 0  ;;  %p143_p3 = pnand %p997_p0, %p142_p2 }
   0x6   : > { %s998_s13 = sshll.u32 (!%p143_p3), %s1283_s9, 3  ;;  %s1000_s14 = sshll.u32 (!%p143_p3), %s1283_s9, 7 }
   0x7   : > { %146 = sbr.rel (%p143_p3) target bundleno = 346 (0x15a), region = 28  ;;  %p175_p4 = scmp.lt.s32.totalorder (!%p143_p3), %s998_s13, 63 }
   0x8   : > { %p183_p5 = scmp.lt.s32.totalorder (!%p143_p3), %s1000_s14, 1023  ;;  %p1002_p6 = scmp.ne.s32.totalorder (!%p143_p3), %s1283_s9, 0 }
   0xe   : > { %s1431_s13 = smov (!%p175_p4, %s998_s13), 63  ;;  %s1433_s14 = smov (!%p183_p5, %s1000_s14), 1023 }
   0xf   : > { %s999_s15 = sshll.u32 %s1431_s13, 2  ;;  %s1001_s19 = sshll.u32 %s1433_s14, 2  ;;  %v1293_v0 = vmov (!%p1002_p6), 0.0  }
  0x10   : > { %s1334_s18 = scalar_lea.vmem %s1423_s0, %s999_s15  ;;  %s1339_s22 = scalar_lea.vmem %s1424_s1, %s1001_s19  ;;  %197 = vst [vmem:[#allocation2] sm:$0xff] (!%p1002_p6), %v1293_v0 }
  0x11   : > { %196 = sbr.rel (%p1002_p6) target bundleno = 24 (0x18), region = 32 }
  0x18 PF: > { %v1193_v1 = vld [vmem:[%s1339_s22 + $0x40] sm:$0xff]   ;;  %v1197_v5 = vld [vmem:[%s1339_s22 + $0x48] sm:$0xff]   ;;  %v1201_v9 = vld [vmem:[%s1339_s22 + $0x50] sm:$0xff]   ;;  %p1075_p7 = scmp.ne.s32.totalorder %s1283_s9, 7 }
  0x19   : > { %v1194_v2 = vld [vmem:[%s1339_s22 + $0xc0] sm:$0xff]   ;;  %1080 = vmatprep.subr.bf16.mxu0 %v1193_v1  ;;  %v1198_v6 = vld [vmem:[%s1339_s22 + $0xc8] sm:$0xff]   ;;  %v1202_v10 = vld [vmem:[%s1339_s22 + $0xd0] sm:$0xff]  }
  0x1a   : > { %v1195_v3 = vld [vmem:[%s1339_s22] sm:$0xff]   ;;  %1102 = vmatprep.subr.bf16.mxu1 %v1194_v2  ;;  %v1199_v7 = vld [vmem:[%s1339_s22 + $0x8] sm:$0xff]   ;;  %v1203_v11 = vld [vmem:[%s1339_s22 + $0x10] sm:$0xff]  }
  0x1b   : > { %v1196_v4 = vld [vmem:[%s1339_s22 + $0x80] sm:$0xff]   ;;  %1081 = vmatpush3.bf16.msra.mxu0 %v1195_v3  ;;  %v1200_v8 = vld [vmem:[%s1339_s22 + $0x88] sm:$0xff]   ;;  %v1204_v12 = vld [vmem:[%s1339_s22 + $0x90] sm:$0xff]  }
  0x1c   : > { %1103 = vmatpush3.bf16.msra.mxu1 %v1196_v4  ;;  %1082 = vmatprep.subr.bf16.mxu0 %v1197_v5  ;;  %v1205_v13 = vld [vmem:[%s1339_s22 + $0x58] sm:$0xff]   ;;  %v1209_v17 = vld [vmem:[%s1339_s22 + $0x60] sm:$0xff]   ;;  %v1213_v21 = vld [vmem:[%s1339_s22 + $0x68] sm:$0xff]  }
  0x1d   : > { %1104 = vmatprep.subr.bf16.mxu1 %v1198_v6  ;;  %v1206_v14 = vld [vmem:[%s1339_s22 + $0xd8] sm:$0xff]   ;;  %v1210_v18 = vld [vmem:[%s1339_s22 + $0xe0] sm:$0xff]   ;;  %v1214_v22 = vld [vmem:[%s1339_s22 + $0xe8] sm:$0xff]  }
  0x1e   : > { %v1207_v15 = vld [vmem:[%s1339_s22 + $0x18] sm:$0xff]   ;;  %v1211_v19 = vld [vmem:[%s1339_s22 + $0x20] sm:$0xff]   ;;  %v1215_v23 = vld [vmem:[%s1339_s22 + $0x28] sm:$0xff]  }
  0x1f   : > { %1083 = vmatpush3.bf16.msra.mxu0 %v1199_v7  ;;  %v1208_v16 = vld [vmem:[%s1339_s22 + $0x98] sm:$0xff]   ;;  %v1212_v20 = vld [vmem:[%s1339_s22 + $0xa0] sm:$0xff]   ;;  %v1216_v24 = vld [vmem:[%s1339_s22 + $0xa8] sm:$0xff]  }
  0x20   : > { %1105 = vmatpush3.bf16.msra.mxu1 %v1200_v8  ;;  %1084 = vmatprep.subr.bf16.mxu0 %v1201_v9  ;;  %v1217_v25 = vld [vmem:[%s1339_s22 + $0x70] sm:$0xff]   ;;  %v1221_v29 = vld [vmem:[%s1339_s22 + $0x78] sm:$0xff]   ;;  %v199_v33 = vld [vmem:[%s1334_s18] sm:$0xff] }
  0x21   : > { %1106 = vmatprep.subr.bf16.mxu1 %v1202_v10  ;;  %v1218_v26 = vld [vmem:[%s1339_s22 + $0xf0] sm:$0xff]   ;;  %v1222_v30 = vld [vmem:[%s1339_s22 + $0xf8] sm:$0xff]   ;;  %v200_v34 = vld [vmem:[%s1334_s18 + $0x8] sm:$0xff]  ;;  %v1003_v35 = vcombine.low %v199_v33, %v199_v33  ;;  %v1004_v36 = vcombine.high %v199_v33, %v199_v33 }
  0x22   : > { %v1219_v27 = vld [vmem:[%s1339_s22 + $0x30] sm:$0xff]   ;;  %v1223_v31 = vld [vmem:[%s1339_s22 + $0x38] sm:$0xff]   ;;  %v1005_v37 = vcombine.low %v200_v34, %v200_v34  ;;  %v1006_v38 = vcombine.high %v200_v34, %v200_v34  ;;  %v1229_v39 = vld [vmem:[%s1339_s22 + $0x140] sm:$0xff]  }
  0x23   : > { %1085 = vmatpush3.bf16.msra.mxu0 %v1203_v11  ;;  %v1220_v28 = vld [vmem:[%s1339_s22 + $0xb0] sm:$0xff]   ;;  %v1224_v32 = vld [vmem:[%s1339_s22 + $0xb8] sm:$0xff]   ;;  %v1230_v40 = vld [vmem:[%s1339_s22 + $0x1c0] sm:$0xff]   ;;  %775 = vmatprep.mubr.bf16.mxu0 %v1004_v36 }
  0x24   : > { %1107 = vmatpush3.bf16.msra.mxu1 %v1204_v12  ;;  %1086 = vmatprep.subr.bf16.mxu0 %v1205_v13  ;;  %v1231_v41 = vld [vmem:[%s1339_s22 + $0x100] sm:$0xff]   ;;  %v1233_v43 = vld [vmem:[%s1339_s22 + $0x148] sm:$0xff]   ;;  %v1237_v47 = vld [vmem:[%s1339_s22 + $0x150] sm:$0xff]  }
  0x25   : > { %1108 = vmatprep.subr.bf16.mxu1 %v1206_v14  ;;  %815 = vmatprep.mubr.bf16.mxu1 %v1006_v38  ;;  %v1232_v42 = vld [vmem:[%s1339_s22 + $0x180] sm:$0xff]   ;;  %v1234_v44 = vld [vmem:[%s1339_s22 + $0x1c8] sm:$0xff]   ;;  %v1238_v48 = vld [vmem:[%s1339_s22 + $0x1d0] sm:$0xff]  }
  0x26   : > { %v1235_v45 = vld [vmem:[%s1339_s22 + $0x108] sm:$0xff]   ;;  %v1239_v49 = vld [vmem:[%s1339_s22 + $0x110] sm:$0xff]   ;;  %v1241_v51 = vld [vmem:[%s1339_s22 + $0x158] sm:$0xff]  }
  0x27   : > { %1087 = vmatpush3.bf16.msra.mxu0 %v1207_v15  ;;  %v1236_v46 = vld [vmem:[%s1339_s22 + $0x188] sm:$0xff]   ;;  %v1240_v50 = vld [vmem:[%s1339_s22 + $0x190] sm:$0xff]   ;;  %v1242_v52 = vld [vmem:[%s1339_s22 + $0x1d8] sm:$0xff]  }
  0x28   : > { %1109 = vmatpush3.bf16.msra.mxu1 %v1208_v16  ;;  %1088 = vmatprep.subr.bf16.mxu0 %v1209_v17  ;;  %v1243_v53 = vld [vmem:[%s1339_s22 + $0x118] sm:$0xff]   ;;  %v1245_v55 = vld [vmem:[%s1339_s22 + $0x160] sm:$0xff]   ;;  %v1249_v59 = vld [vmem:[%s1339_s22 + $0x168] sm:$0xff]  }
  0x29   : > { %1110 = vmatprep.subr.bf16.mxu1 %v1210_v18  ;;  %v1244_v54 = vld [vmem:[%s1339_s22 + $0x198] sm:$0xff]   ;;  %v1246_v56 = vld [vmem:[%s1339_s22 + $0x1e0] sm:$0xff]   ;;  %v1250_v60 = vld [vmem:[%s1339_s22 + $0x1e8] sm:$0xff]  }
  0x2a   : > { %v1247_v57 = vld [vmem:[%s1339_s22 + $0x120] sm:$0xff]   ;;  %v1251_v61 = vld [vmem:[%s1339_s22 + $0x128] sm:$0xff]   ;;  %v1253_v63 = vld [vmem:[%s1339_s22 + $0x170] sm:$0xff]  }
  0x2b   : > { %1089 = vmatpush3.bf16.msra.mxu0 %v1211_v19  ;;  %v1248_v58 = vld [vmem:[%s1339_s22 + $0x1a0] sm:$0xff]   ;;  %v1252_v62 = vld [vmem:[%s1339_s22 + $0x1a8] sm:$0xff]   ;;  %v1254_v0 = vld [vmem:[%s1339_s22 + $0x1f0] sm:$0xff]  }
  0x2c   : > { %1111 = vmatpush3.bf16.msra.mxu1 %v1212_v20  ;;  %1090 = vmatprep.subr.bf16.mxu0 %v1213_v21  ;;  %v1255_v1 = vld [vmem:[%s1339_s22 + $0x130] sm:$0xff]   ;;  %v1257_v3 = vld [vmem:[%s1339_s22 + $0x178] sm:$0xff]  }
  0x2d   : > { %1112 = vmatprep.subr.bf16.mxu1 %v1214_v22  ;;  %v1256_v2 = vld [vmem:[%s1339_s22 + $0x1b0] sm:$0xff]   ;;  %v1258_v4 = vld [vmem:[%s1339_s22 + $0x1f8] sm:$0xff]  }
  0x2e   : > { %v1259_v5 = vld [vmem:[%s1339_s22 + $0x138] sm:$0xff]   ;;  %v201_v7 = vld [vmem:[%s1334_s18 + $0x10] sm:$0xff] }
  0x2f   : > { %1091 = vmatpush3.bf16.msra.mxu0 %v1215_v23  ;;  %v1260_v6 = vld [vmem:[%s1339_s22 + $0x1b8] sm:$0xff]   ;;  %v1007_v8 = vcombine.low %v201_v7, %v201_v7  ;;  %v1008_v9 = vcombine.high %v201_v7, %v201_v7 }
  0x30   : > { %1113 = vmatpush3.bf16.msra.mxu1 %v1216_v24  ;;  %1092 = vmatprep.subr.bf16.mxu0 %v1217_v25  ;;  %v202_v10 = vld [vmem:[%s1334_s18 + $0x18] sm:$0xff] }
  0x31   : > { %1114 = vmatprep.subr.bf16.mxu1 %v1218_v26  ;;  %v1009_v11 = vcombine.low %v202_v10, %v202_v10  ;;  %v1010_v12 = vcombine.high %v202_v10, %v202_v10 }
  0x33   : > { %1093 = vmatpush3.bf16.msra.mxu0 %v1219_v27 }
  0x34   : > { %1115 = vmatpush3.bf16.msra.mxu1 %v1220_v28  ;;  %1094 = vmatprep.subr.bf16.mxu0 %v1221_v29 }
  0x35   : > { %1116 = vmatprep.subr.bf16.mxu1 %v1222_v30 }
  0x37   : > { %1095 = vmatpush3.bf16.msra.mxu0 %v1223_v31 }
  0x38   : > { %1117 = vmatpush3.bf16.msra.mxu1 %v1224_v32  ;;  %1124 = vmatprep.subr.bf16.mxu0 %v1229_v39 }
  0x39   : > { %1146 = vmatprep.subr.bf16.mxu1 %v1230_v40 }
  0x3a   : > { %776 = vmatmul.mubr.bf16.vlgmr.msra.gmra.mrb[0].mxu0 %v1003_v35  ;;  %v198_v35 = vld [vmem:[#allocation2] sm:$0xff] }
  0x3b   : > { %816 = vmatmul.mubr.bf16.vlgmr.msra.gmra.mrb[0].mxu1 %v1005_v37  ;;  %1125 = vmatpush3.bf16.msra.mxu0 %v1231_v41 }
  0x3c   : > { %1147 = vmatpush3.bf16.msra.mxu1 %v1232_v42  ;;  %1126 = vmatprep.subr.bf16.mxu0 %v1233_v43 }
  0x3d   : > { %1148 = vmatprep.subr.bf16.mxu1 %v1234_v44  ;;  %855 = vmatprep.mubr.bf16.mxu0 %v1008_v9 }
  0x3e   : > { %895 = vmatprep.mubr.bf16.mxu1 %v1010_v12 }
  0x3f   : > { %1127 = vmatpush3.bf16.msra.mxu0 %v1235_v45 }
  0x40   : > { %1149 = vmatpush3.bf16.msra.mxu1 %v1236_v46  ;;  %1128 = vmatprep.subr.bf16.mxu0 %v1237_v47 }
  0x41   : > { %1150 = vmatprep.subr.bf16.mxu1 %v1238_v48 }
  0x43   : > { %1129 = vmatpush3.bf16.msra.mxu0 %v1239_v49 }
  0x44   : > { %1151 = vmatpush3.bf16.msra.mxu1 %v1240_v50  ;;  %1130 = vmatprep.subr.bf16.mxu0 %v1241_v51 }
  0x45   : > { %1152 = vmatprep.subr.bf16.mxu1 %v1242_v52 }
  0x47   : > { %1131 = vmatpush3.bf16.msra.mxu0 %v1243_v53 }
  0x48   : > { %1153 = vmatpush3.bf16.msra.mxu1 %v1244_v54  ;;  %1132 = vmatprep.subr.bf16.mxu0 %v1245_v55 }
  0x49   : > { %1154 = vmatprep.subr.bf16.mxu1 %v1246_v56 }
  0x4b   : > { %1133 = vmatpush3.bf16.msra.mxu0 %v1247_v57 }
  0x4c   : > { %1155 = vmatpush3.bf16.msra.mxu1 %v1248_v58  ;;  %1134 = vmatprep.subr.bf16.mxu0 %v1249_v59 }
  0x4d   : > { %1156 = vmatprep.subr.bf16.mxu1 %v1250_v60 }
  0x4f   : > { %1135 = vmatpush3.bf16.msra.mxu0 %v1251_v61 }
  0x50   : > { %1157 = vmatpush3.bf16.msra.mxu1 %v1252_v62  ;;  %1136 = vmatprep.subr.bf16.mxu0 %v1253_v63 }
  0x51   : > { %1158 = vmatprep.subr.bf16.mxu1 %v1254_v0 }
  0x53   : > { %1137 = vmatpush3.bf16.msra.mxu0 %v1255_v1 }
  0x54   : > { %1159 = vmatpush3.bf16.msra.mxu1 %v1256_v2  ;;  %1138 = vmatprep.subr.bf16.mxu0 %v1257_v3 }
  0x55   : > { %1160 = vmatprep.subr.bf16.mxu1 %v1258_v4 }
  0x57   : > { %1139 = vmatpush3.bf16.msra.mxu0 %v1259_v5 }
  0x58   : > { %1161 = vmatpush3.bf16.msra.mxu1 %v1260_v6 }
  0x5a   : > { %856 = vmatmul.mubr.bf16.vlgmr.msra.gmra.mrb[4].mxu0 %v1007_v8 }
  0x5b   : > { %896 = vmatmul.mubr.bf16.vlgmr.msra.gmra.mrb[4].mxu1 %v1009_v11 }
 0x10d   : > { %v1096_v13 = vpop.f32.mrb[0].mxu0 }
 0x10e   : > { %v1118_v14 = vpop.f32.mrb[0].mxu1  ;;  %v1097_v15 = vpop.f32.mrb[1].mxu0 }
 0x10f   : > { %v1119_v16 = vpop.f32.mrb[1].mxu1  ;;  %v1098_v17 = vadd.f32 %v1097_v15, %v1096_v13  ;;  %v1099_v19 = vpop.f32.mrb[2].mxu0 }
 0x110   : > { %v1120_v18 = vadd.f32 %v1119_v16, %v1118_v14  ;;  %v1121_v20 = vpop.f32.mrb[2].mxu1  ;;  %v1100_v21 = vpop.f32.mrb[3].mxu0 }
 0x111   : > { %v1122_v22 = vpop.f32.mrb[3].mxu1 }
 0x112   : > { %v818_v23 = vadd.f32 %v1120_v18, %v1098_v17 }
 0x12d   : > { %v1140_v24 = vpop.f32.mrb[4].mxu0 }
 0x12e   : > { %v1162_v25 = vpop.f32.mrb[4].mxu1  ;;  %v1141_v26 = vpop.f32.mrb[5].mxu0 }
 0x12f   : > { %v1163_v27 = vpop.f32.mrb[5].mxu1  ;;  %v1142_v28 = vadd.f32 %v1141_v26, %v1140_v24  ;;  %v1143_v30 = vpop.f32.mrb[6].mxu0 }
 0x130   : > { %v1164_v29 = vadd.f32 %v1163_v27, %v1162_v25  ;;  %v1165_v31 = vpop.f32.mrb[6].mxu1  ;;  %v1144_v32 = vpop.f32.mrb[7].mxu0 }
 0x131   : > { %v1166_v33 = vpop.f32.mrb[7].mxu1  ;;  %v858_v34 = vadd.f32 %v1142_v28, %v818_v23  ;;  %908 = sbr.rel (%p1075_p7) target bundleno = 346 (0x15a), region = 36 }
 0x133   : > { %v898_v36 = vadd.f32 %v1164_v29, %v858_v34 }
 0x135   : > { %v903_v37 = vadd.f32 %v898_v36, %v198_v35 }
 0x137   : > { %904 = vst [vmem:[#allocation2] sm:$0xff] %v903_v37 }
 0x13e   : > { %v909_v38 = vld [vmem:[#allocation2] sm:$0xff] }
 0x13f   : > { %v1076_v39 = vmul.f32 -1.442695, %v909_v38 }
 0x141   : > { %1265 = vpow2.f32 %v1076_v39 }
 0x14b   : > { %v1266_v40 = vpop.eup %1265 }
 0x14c   : > { %v913_v41 = vadd.f32 1.0, %v1266_v40 }
 0x14e   : > { %1267 = vrcp.f32 %v913_v41 }
 0x158   : > { %v1268_v42 = vpop.eup %1267 }
 0x159   : > { %916 = vst [vmem:[%s1425_s2] sm:$0xff] %v1268_v42 }
 0x15a PF: > { %s12_s11 = sadd.s32 1, %s1291_s11   ;;  %s1426_s9 = smov %s1287_s10 }
 0x15b   : > { %p9_p8 = scmp.ge.s32.totalorder %s12_s11, 10   ;;  %s1427_s10 = smov %s1429_s12 }
 0x15d   :  { %11 = sbr.rel (!%p9_p8) target bundleno = 2 (0x2), region = 69 }

</bundles_post_ra>
